<compile_context>
chip_gen: v6e
topology: v6e:2x2x1
jax: 0.10.0
libtpu: 0.0.40
codegen_flags: <defaults>
</compile_context>

<pallas_src>
import jax
import jax.numpy as jnp
from jax.experimental import pallas as pl
from jax.experimental.pallas import tpu as pltpu

EPS = 1e-5                       # BatchNorm eps (PyTorch default)
MAX_TM = 1024                    # max rows (or lanes) processed per grid step
TILE_BYTES = 4 * 1024 * 1024     # per-operand tile budget (Pallas double-buffers)
VMEM_LIMIT = 32 * 1024 * 1024    # safe on v5e/v6e/v7x


def _ceil_to(x, m):
    return ((x + m - 1) // m) * m


def _choose_tm(M, widest, align=8):
    """Largest tile that divides M, is a multiple of `align`, <= MAX_TM and keeps
    a bf16 (TM, widest) block under TILE_BYTES."""
    assert M % align == 0
    cap = max(align, (TILE_BYTES // (2 * widest)) // align * align)
    tm = max(align, (min(MAX_TM, cap, M) // align) * align)
    while M % tm:
        tm -= align
    return tm


# --------------------------- Pallas kernels ---------------------------------

def matmul_stats_kernel(x_ref, w_ref, y_ref, stats_ref):
    """y = x @ w on the MXU (f32 accum, bf16 store); per-column sum / sum-of-squares
    accumulated directly into the resident stats output block across the M axis."""
    i = pl.program_id(0)

    @pl.when(i == 0)
    def _():
        stats_ref[...] = jnp.zeros_like(stats_ref)

    y = jnp.dot(x_ref[...], w_ref[...], preferred_element_type=jnp.float32)
    y_ref[...] = y.astype(y_ref.dtype)
    stats_ref[0:1, :] += jnp.sum(y, axis=0, keepdims=True)
    stats_ref[1:2, :] += jnp.sum(y * y, axis=0, keepdims=True)


def affine_relu_kernel(y_ref, scale_ref, shift_ref, o_ref):
    z = y_ref[...].astype(jnp.float32) * scale_ref[...] + shift_ref[...]
    o_ref[...] = jnp.maximum(z, 0.0).astype(o_ref.dtype)


def matmul_bias_tanh_t_kernel(w_ref, x_ref, b_ref, o_ref):
    """out^T tile = W^T (resident, tiny) @ patches^T tile, + bias, tanh."""
    y = jnp.dot(w_ref[...], x_ref[...], preferred_element_type=jnp.float32)
    o_ref[...] = jnp.tanh(y + b_ref[...])


# --------------------------- Pallas wrappers ---------------------------------

def matmul_with_stats(x, w):
    """x:(M,K) @ w:(K,C) with bf16 MXU operands.  Returns the bf16 product (rows
    padded to a multiple of 8, pad rows are zero) plus per-column sum and
    sum-of-squares over all rows (f32), for training-mode BatchNorm."""
    M, K = x.shape
    C = w.shape[1]
    Mp = _ceil_to(M, 8)
    if Mp != M:                                  # only the tiny linear layer
        x = jnp.pad(x, ((0, Mp - M), (0, 0)))
    x = x.astype(jnp.bfloat16)
    w = w.astype(jnp.bfloat16)
    TM = _choose_tm(Mp, max(K, C))
    y, stats = pl.pallas_call(
        matmul_stats_kernel,
        out_shape=(jax.ShapeDtypeStruct((Mp, C), jnp.bfloat16),
                   jax.ShapeDtypeStruct((8, C), jnp.float32)),
        grid=(Mp // TM,),
        in_specs=[
            pl.BlockSpec((TM, K), lambda i: (i, 0)),
            pl.BlockSpec((K, C), lambda i: (0, 0)),
        ],
        out_specs=(
            pl.BlockSpec((TM, C), lambda i: (i, 0)),
            pl.BlockSpec((8, C), lambda i: (0, 0)),   # resident accumulator
        ),
        compiler_params=pltpu.CompilerParams(
            dimension_semantics=("arbitrary",),       # stats accumulate over M
            vmem_limit_bytes=VMEM_LIMIT),
    )(x, w)
    return y, stats[0], stats[1]


def affine_relu(y, scale, shift):
    """Per-column z = y*scale + shift, ReLU; bf16 in / bf16 out (memory bound)."""
    Mp, C = y.shape
    TM = _choose_tm(Mp, C)
    return pl.pallas_call(
        affine_relu_kernel,
        out_shape=jax.ShapeDtypeStruct((Mp, C), jnp.bfloat16),
        grid=(Mp // TM,),
        in_specs=[
            pl.BlockSpec((TM, C), lambda i: (i, 0)),
            pl.BlockSpec((1, C), lambda i: (0, 0)),
            pl.BlockSpec((1, C), lambda i: (0, 0)),
        ],
        out_specs=pl.BlockSpec((TM, C), lambda i: (i, 0)),
        compiler_params=pltpu.CompilerParams(
            dimension_semantics=("parallel",)),
    )(y, scale[None, :].astype(jnp.float32), shift[None, :].astype(jnp.float32))


def matmul_bias_tanh_t(w_t, x_t, b_col):
    """out^T = w_t @ x_t + b, tanh.  w_t:(Co,K) tiny resident LHS, x_t:(K,M)
    K-major patch matrix tiled along its lane (M) axis, output (Co,M) f32."""
    Co, K = w_t.shape
    M = x_t.shape[1]
    TM = _choose_tm(M, K, align=128)          # TM is a lane dim -> multiple of 128
    return pl.pallas_call(
        matmul_bias_tanh_t_kernel,
        out_shape=jax.ShapeDtypeStruct((Co, M), jnp.float32),
        grid=(M // TM,),
        in_specs=[
            pl.BlockSpec((Co, K), lambda i: (0, 0)),
            pl.BlockSpec((K, TM), lambda i: (0, i)),
            pl.BlockSpec((Co, 1), lambda i: (0, 0)),
        ],
        out_specs=pl.BlockSpec((Co, TM), lambda i: (0, i)),
        compiler_params=pltpu.CompilerParams(
            dimension_semantics=("parallel",),
            vmem_limit_bytes=VMEM_LIMIT),
    )(w_t.astype(jnp.bfloat16), x_t.astype(jnp.bfloat16), b_col.astype(jnp.float32))


# ---------------- 4-phase transposed-conv decomposition ----------------------

def _phase_taps(parity):
    """(patch offset r in {0,1,2}, 5-tap kernel index k) pairs feeding output
    pixels of the given parity along one spatial dimension."""
    taps = []
    for r in range(3):
        k = (4 - 2 * r) if parity == 0 else (5 - 2 * r)
        if 0 <= k <= 4:
            taps.append((r, k))
    return taps


def dconv_weight_phases(wt):
    """ConvTranspose2d weight (Cin, Cout, 5, 5) -> (Cin*9, 4*Cout) matrix.
    Column block p = py*2+px produces output sub-pixel (2r+py, 2c+px) from the
    3x3 patch of the UN-dilated input centred at (r, c).  Rows are ordered
    (cin, ry, rx) to match conv_general_dilated_patches."""
    cin, cout = wt.shape[0], wt.shape[1]
    blocks = []
    for py in (0, 1):
        for px in (0, 1):
            wm = jnp.zeros((cin, 3, 3, cout), wt.dtype)
            for ry, ky in _phase_taps(py):
                for rx, kx in _phase_taps(px):
                    wm = wm.at[:, ry, rx, :].set(wt[:, :, ky, kx])
            blocks.append(wm.reshape(cin * 9, cout))
    return jnp.concatenate(blocks, axis=1)


def _patches3x3(x_nhwc):
    """(N,H,W,C) -> (N,H,W,C*9): 3x3 patches (pad 1), features ordered (c,ry,rx)."""
    return jax.lax.conv_general_dilated_patches(
        x_nhwc, filter_shape=(3, 3), window_strides=(1, 1),
        padding=[(1, 1), (1, 1)],
        dimension_numbers=("NHWC", "HWIO", "NHWC"))


def _patches3x3_T(x_nhwc):
    """Same patches, K-major output (C*9, N, H, W): feeds the transposed final
    matmul without any wrapper-side transpose of the big patch matrix."""
    return jax.lax.conv_general_dilated_patches(
        x_nhwc, filter_shape=(3, 3), window_strides=(1, 1),
        padding=[(1, 1), (1, 1)],
        dimension_numbers=("NHWC", "HWIO", "CNHW"))


# --------------------------- full forward ------------------------------------

def generator_forward(x, p):
    """x: (N, in_dim) f32  ->  (N, 3, 64, 64) f32 (PyTorch NCHW layout)."""
    N = x.shape[0]
    c1 = p["w1"].shape[0]
    dim8 = c1 // 16

    # ---- l1: Linear (bias=False) -> BatchNorm1d (batch stats) -> ReLU ----
    y, s, q = matmul_with_stats(x, p["w1"].T)
    mean = s / N
    var = jnp.maximum(q / N - mean * mean, 0.0)     # biased var (training-mode BN)
    inv = p["g1"] / jnp.sqrt(var + EPS)
    h = affine_relu(y, inv, p["be1"] - mean * inv)[:N, :]
    # y.view(N, dim*8, 4, 4) is NCHW; convert to NHWC for the conv layers.
    h = jnp.transpose(h.reshape(N, dim8, 4, 4), (0, 2, 3, 1))

    # ---- three [ConvTranspose2d(no bias) -> BN2d -> ReLU] blocks ----
    for l in (2, 3, 4):
        wt = p[f"w{l}"]
        cout = wt.shape[1]
        _, H, W, cin = h.shape
        cols = _patches3x3(h).reshape(N * H * W, cin * 9)           # bf16, no copy
        y, s, q = matmul_with_stats(cols, dconv_weight_phases(wt))  # (M, 4*cout)
        cnt = 4 * N * H * W                                         # all out pixels
        s = s.reshape(4, cout).sum(axis=0)
        q = q.reshape(4, cout).sum(axis=0)
        mean = s / cnt
        var = jnp.maximum(q / cnt - mean * mean, 0.0)
        inv = p[f"g{l}"] / jnp.sqrt(var + EPS)
        shift = p[f"be{l}"] - mean * inv
        z = affine_relu(y, jnp.tile(inv, 4), jnp.tile(shift, 4))    # (M, 4*cout) bf16
        # de-interleave the 4 sub-pixel phases -> NHWC at 2x resolution
        h = (z.reshape(N, H, W, 2, 2, cout)
               .transpose(0, 1, 3, 2, 4, 5)
               .reshape(N, 2 * H, 2 * W, cout))

    # ---- final ConvTranspose2d(dim, 3) + bias + Tanh (transposed matmul) ----
    _, H, W, cin = h.shape
    cout = p["w5"].shape[1]
    x_t = _patches3x3_T(h).reshape(cin * 9, N * H * W)              # (K, M) bf16
    w_t = dconv_weight_phases(p["w5"]).T                            # (4*cout, K)
    Co = _ceil_to(4 * cout, 8)
    w_t = jnp.pad(w_t, ((0, Co - 4 * cout), (0, 0)))
    b_t = jnp.pad(jnp.tile(p["b5"], 4), (0, Co - 4 * cout))[:, None]
    out_t = matmul_bias_tanh_t(w_t, x_t, b_t)                       # (Co, M) f32
    # rows are (py, px, c); columns are (n, r, c) -> interleave phases to NCHW
    out = out_t[:4 * cout].reshape(2, 2, cout, N, H, W)
    return out.transpose(3, 2, 4, 0, 5, 1).reshape(N, cout, 2 * H, 2 * W)


# --------------------------- params & reference ------------------------------

def init_params(key, in_dim=32, dim=16):
    ks = jax.random.split(key, 12)
    p = {}
    c1 = dim * 8 * 4 * 4
    p["w1"] = 0.05 * jax.random.normal(ks[0], (c1, in_dim), jnp.float32)   # (out, in)
    p["g1"] = 1.0 + 0.02 * jax.random.normal(ks[1], (c1,), jnp.float32)
    p["be1"] = jnp.zeros((c1,), jnp.float32)
    chans = [dim * 8, dim * 4, dim * 2, dim]
    for l in range(2, 5):
        cin, cout = chans[l - 2], chans[l - 1]
        p[f"w{l}"] = 0.02 * jax.random.normal(ks[2 * l - 2], (cin, cout, 5, 5), jnp.float32)
        p[f"g{l}"] = 1.0 + 0.02 * jax.random.normal(ks[2 * l - 1], (cout,), jnp.float32)
        p[f"be{l}"] = jnp.zeros((cout,), jnp.float32)
    p["w5"] = 0.02 * jax.random.normal(ks[8], (dim, 3, 5, 5), jnp.float32)
    p["b5"] = 0.05 * jax.random.normal(ks[9], (3,), jnp.float32)
    return p


def ref_generator(x, p):
    """Pure-JAX f32 reference with identical (training-mode BN) semantics."""
    N = x.shape[0]
    y = x @ p["w1"].T
    mean = jnp.mean(y, axis=0)
    var = jnp.mean((y - mean) ** 2, axis=0)
    y = (y - mean) / jnp.sqrt(var + EPS) * p["g1"] + p["be1"]
    y = jnp.maximum(y, 0.0)
    h = y.reshape(N, p["w1"].shape[0] // 16, 4, 4)               # NCHW

    def dconv(v, wt):
        # ConvTranspose2d(k=5,s=2,p=2,op=1) via lhs-dilated conv with flipped kernel.
        w_conv = jnp.transpose(wt[:, :, ::-1, ::-1], (1, 0, 2, 3))   # (Cout,Cin,5,5)
        return jax.lax.conv_general_dilated(
            v, w_conv, window_strides=(1, 1), padding=[(2, 3), (2, 3)],
            lhs_dilation=(2, 2), dimension_numbers=("NCHW", "OIHW", "NCHW"))

    def bn_relu(v, g, b):
        mean = jnp.mean(v, axis=(0, 2, 3), keepdims=True)
        var = jnp.mean((v - mean) ** 2, axis=(0, 2, 3), keepdims=True)
        v = (v - mean) / jnp.sqrt(var + EPS) * g[None, :, None, None] + b[None, :, None, None]
        return jnp.maximum(v, 0.0)

    h = bn_relu(dconv(h, p["w2"]), p["g2"], p["be2"])
    h = bn_relu(dconv(h, p["w3"]), p["g3"], p["be3"])
    h = bn_relu(dconv(h, p["w4"]), p["g4"], p["be4"])
    h = jnp.tanh(dconv(h, p["w5"]) + p["b5"][None, :, None, None])
    return h


if __name__ == "__main__":
    key = jax.random.PRNGKey(0)
    kp, kx = jax.random.split(key)
    in_dim, dim, N = 32, 16, 2            # small dims; architecture fixes output at 64x64
    params = init_params(kp, in_dim=in_dim, dim=dim)
    x = jax.random.normal(kx, (N, in_dim), jnp.float32)

    out = jax.jit(generator_forward)(x, params)
    out = jax.block_until_ready(out)
    assert out.shape == (N, 3, 64, 64), out.shape

    ref = ref_generator(x, params)
    err_max = float(jnp.max(jnp.abs(out - ref)))
    err_mean = float(jnp.mean(jnp.abs(out - ref)))
    # bf16 MXU operands / bf16 intermediates (f32 accumulation and BN stats) vs the
    # f32 reference: loose abs tolerance on tanh outputs in [-1,1]; a structural
    # bug would be O(0.3+).
    assert err_max < 5e-2 and err_mean < 5e-3, (err_max, err_mean)
    print("KERNEL_OK")
</pallas_src>

<mosaic_0001>
module attributes {stable_mosaic.version = 11 : i64} {
  func.func @matmul_stats_kernel(%arg0: i32, %arg1: memref<8x32xbf16, #tpu.memory_space<vmem>>, %arg2: memref<32x2048xbf16, #tpu.memory_space<vmem>>, %arg3: memref<8x2048xbf16, #tpu.memory_space<vmem>>, %arg4: memref<8x2048xf32, #tpu.memory_space<vmem>>) attributes {dimension_semantics = [#tpu.dimension_semantics<arbitrary>], iteration_bounds = array<i64: 1>, scalar_prefetch = 0 : i64, scratch_operands = 0 : i64, tpu.core_type = #tpu.core_type<tc>, window_params = [{transform_indices = @transform_0, window_bounds = array<i64: 8, 32>}, {pipeline_mode = #tpu.pipeline_mode<synchronous>, transform_indices = @transform_1, window_bounds = array<i64: 32, 2048>}, {transform_indices = @transform_2, window_bounds = array<i64: 8, 2048>}, {pipeline_mode = #tpu.pipeline_mode<synchronous>, transform_indices = @transform_3, window_bounds = array<i64: 8, 2048>}]} {
    %c0_i32 = arith.constant 0 : i32
    %0 = arith.cmpi eq, %arg0, %c0_i32 : i32
    %1 = arith.extui %0 : i1 to i32
    %c0_i32_0 = arith.constant 0 : i32
    %2 = arith.cmpi ne, %1, %c0_i32_0 : i32
    scf.if %2 {
      %cst_15 = arith.constant 0.000000e+00 : f32
      %19 = vector.broadcast %cst_15 : f32 to vector<8x2048xf32>
      %c0_16 = arith.constant 0 : index
      %c0_17 = arith.constant 0 : index
      %20 = vector.load %arg4[%c0_16, %c0_17] : memref<8x2048xf32, #tpu.memory_space<vmem>>, vector<8x2048xf32>
      tpu.vector_store %arg4[%c0_16, %c0_17], %19 {strides = array<i32>} : memref<8x2048xf32, #tpu.memory_space<vmem>>, vector<8x2048xf32>,
    } else {
    }
    %c0 = arith.constant 0 : index
    %c0_1 = arith.constant 0 : index
    %3 = vector.load %arg1[%c0, %c0_1] : memref<8x32xbf16, #tpu.memory_space<vmem>>, vector<8x32xbf16>
    %c0_2 = arith.constant 0 : index
    %c0_3 = arith.constant 0 : index
    %4 = vector.load %arg2[%c0_2, %c0_3] : memref<32x2048xbf16, #tpu.memory_space<vmem>>, vector<32x2048xbf16>
    %cst = arith.constant dense<0.000000e+00> : vector<8x2048xf32>
    %5 = tpu.matmul %3, %4, %cst {dimension_numbers = #tpu.dot_dimension_numbers<[1], [0], [0], [1], [0, 0, 1, 1], [], []>} : vector<8x32xbf16>, vector<32x2048xbf16>, vector<8x2048xf32> -> vector<8x2048xf32>
    %6 = arith.truncf %5 : vector<8x2048xf32> to vector<8x2048xbf16>
    %c0_4 = arith.constant 0 : index
    %c0_5 = arith.constant 0 : index
    %7 = vector.load %arg3[%c0_4, %c0_5] : memref<8x2048xbf16, #tpu.memory_space<vmem>>, vector<8x2048xbf16>
    tpu.vector_store %arg3[%c0_4, %c0_5], %6 {strides = array<i32>} : memref<8x2048xbf16, #tpu.memory_space<vmem>>, vector<8x2048xbf16>,
    %c0_6 = arith.constant 0 : index
    %c0_7 = arith.constant 0 : index
    %8 = vector.load %arg4[%c0_6, %c0_7] : memref<8x2048xf32, #tpu.memory_space<vmem>>, vector<1x2048xf32>
    %cst_8 = arith.constant dense<0.000000e+00> : vector<2048xf32>
    %9 = vector.multi_reduction <add>, %5, %cst_8 [0] : vector<8x2048xf32> to vector<2048xf32>
    %10 = vector.shape_cast %9 : vector<2048xf32> to vector<1x2048xf32>
    %11 = arith.addf %8, %10 : vector<1x2048xf32>
    %c0_9 = arith.constant 0 : index
    %c0_10 = arith.constant 0 : index
    %12 = vector.load %arg4[%c0_9, %c0_10] : memref<8x2048xf32, #tpu.memory_space<vmem>>, vector<1x2048xf32>
    tpu.vector_store %arg4[%c0_9, %c0_10], %11 {strides = array<i32>} : memref<8x2048xf32, #tpu.memory_space<vmem>>, vector<1x2048xf32>,
    %c1 = arith.constant 1 : index
    %c0_11 = arith.constant 0 : index
    %13 = vector.load %arg4[%c1, %c0_11] : memref<8x2048xf32, #tpu.memory_space<vmem>>, vector<1x2048xf32>
    %14 = arith.mulf %5, %5 : vector<8x2048xf32>
    %cst_12 = arith.constant dense<0.000000e+00> : vector<2048xf32>
    %15 = vector.multi_reduction <add>, %14, %cst_12 [0] : vector<8x2048xf32> to vector<2048xf32>
    %16 = vector.shape_cast %15 : vector<2048xf32> to vector<1x2048xf32>
    %17 = arith.addf %13, %16 : vector<1x2048xf32>
    %c1_13 = arith.constant 1 : index
    %c0_14 = arith.constant 0 : index
    %18 = vector.load %arg4[%c1_13, %c0_14] : memref<8x2048xf32, #tpu.memory_space<vmem>>, vector<1x2048xf32>
    tpu.vector_store %arg4[%c1_13, %c0_14], %17 {strides = array<i32>} : memref<8x2048xf32, #tpu.memory_space<vmem>>, vector<1x2048xf32>,
    return
  }
  func.func @transform_0(%arg0: i32) -> (i32, i32) {
    %c0_i32 = arith.constant 0 : i32
    %c0_i32_0 = arith.constant 0 : i32
    return %arg0, %c0_i32 : i32, i32
  }
  func.func @transform_1(%arg0: i32) -> (i32, i32) {
    %c0_i32 = arith.constant 0 : i32
    %c0_i32_0 = arith.constant 0 : i32
    %c0_i32_1 = arith.constant 0 : i32
    return %c0_i32, %c0_i32_0 : i32, i32
  }
  func.func @transform_2(%arg0: i32) -> (i32, i32) {
    %c0_i32 = arith.constant 0 : i32
    %c0_i32_0 = arith.constant 0 : i32
    return %arg0, %c0_i32 : i32, i32
  }
  func.func @transform_3(%arg0: i32) -> (i32, i32) {
    %c0_i32 = arith.constant 0 : i32
    %c0_i32_0 = arith.constant 0 : i32
    %c0_i32_1 = arith.constant 0 : i32
    return %c0_i32, %c0_i32_0 : i32, i32
  }
}

module attributes {stable_mosaic.version = 11 : i64} {
  func.func @affine_relu_kernel(%arg0: i32, %arg1: memref<8x2048xbf16, #tpu.memory_space<vmem>>, %arg2: memref<1x2048xf32, #tpu.memory_space<vmem>>, %arg3: memref<1x2048xf32, #tpu.memory_space<vmem>>, %arg4: memref<8x2048xbf16, #tpu.memory_space<vmem>>) attributes {dimension_semantics = [#tpu.dimension_semantics<parallel>], iteration_bounds = array<i64: 1>, scalar_prefetch = 0 : i64, scratch_operands = 0 : i64, tpu.core_type = #tpu.core_type<tc>, window_params = [{transform_indices = @transform_0, window_bounds = array<i64: 8, 2048>}, {pipeline_mode = #tpu.pipeline_mode<synchronous>, transform_indices = @transform_1, window_bounds = array<i64: 1, 2048>}, {pipeline_mode = #tpu.pipeline_mode<synchronous>, transform_indices = @transform_2, window_bounds = array<i64: 1, 2048>}, {transform_indices = @transform_3, window_bounds = array<i64: 8, 2048>}]} {
    %c0 = arith.constant 0 : index
    %c0_0 = arith.constant 0 : index
    %0 = vector.load %arg1[%c0, %c0_0] : memref<8x2048xbf16, #tpu.memory_space<vmem>>, vector<8x2048xbf16>
    %1 = arith.extf %0 : vector<8x2048xbf16> to vector<8x2048xf32>
    %c0_1 = arith.constant 0 : index
    %c0_2 = arith.constant 0 : index
    %2 = vector.load %arg2[%c0_1, %c0_2] : memref<1x2048xf32, #tpu.memory_space<vmem>>, vector<1x2048xf32>
    %3 = vector.broadcast %2 : vector<1x2048xf32> to vector<8x2048xf32>
    %4 = arith.mulf %1, %3 : vector<8x2048xf32>
    %c0_3 = arith.constant 0 : index
    %c0_4 = arith.constant 0 : index
    %5 = vector.load %arg3[%c0_3, %c0_4] : memref<1x2048xf32, #tpu.memory_space<vmem>>, vector<1x2048xf32>
    %6 = vector.broadcast %5 : vector<1x2048xf32> to vector<8x2048xf32>
    %7 = arith.addf %4, %6 : vector<8x2048xf32>
    %cst = arith.constant 0.000000e+00 : f32
    %8 = vector.broadcast %cst : f32 to vector<8x2048xf32>
    %9 = arith.maximumf %7, %8 : vector<8x2048xf32>
    %10 = arith.truncf %9 : vector<8x2048xf32> to vector<8x2048xbf16>
    %c0_5 = arith.constant 0 : index
    %c0_6 = arith.constant 0 : index
    %11 = vector.load %arg4[%c0_5, %c0_6] : memref<8x2048xbf16, #tpu.memory_space<vmem>>, vector<8x2048xbf16>
    tpu.vector_store %arg4[%c0_5, %c0_6], %10 {strides = array<i32>} : memref<8x2048xbf16, #tpu.memory_space<vmem>>, vector<8x2048xbf16>,
    return
  }
  func.func @transform_0(%arg0: i32) -> (i32, i32) {
    %c0_i32 = arith.constant 0 : i32
    %c0_i32_0 = arith.constant 0 : i32
    return %arg0, %c0_i32 : i32, i32
  }
  func.func @transform_1(%arg0: i32) -> (i32, i32) {
    %c0_i32 = arith.constant 0 : i32
    %c0_i32_0 = arith.constant 0 : i32
    %c0_i32_1 = arith.constant 0 : i32
    return %c0_i32, %c0_i32_0 : i32, i32
  }
  func.func @transform_2(%arg0: i32) -> (i32, i32) {
    %c0_i32 = arith.constant 0 : i32
    %c0_i32_0 = arith.constant 0 : i32
    %c0_i32_1 = arith.constant 0 : i32
    return %c0_i32, %c0_i32_0 : i32, i32
  }
  func.func @transform_3(%arg0: i32) -> (i32, i32) {
    %c0_i32 = arith.constant 0 : i32
    %c0_i32_0 = arith.constant 0 : i32
    return %arg0, %c0_i32 : i32, i32
  }
}

module attributes {stable_mosaic.version = 11 : i64} {
  func.func @matmul_stats_kernel(%arg0: i32, %arg1: memref<32x1152xbf16, #tpu.memory_space<vmem>>, %arg2: memref<1152x256xbf16, #tpu.memory_space<vmem>>, %arg3: memref<32x256xbf16, #tpu.memory_space<vmem>>, %arg4: memref<8x256xf32, #tpu.memory_space<vmem>>) attributes {dimension_semantics = [#tpu.dimension_semantics<arbitrary>], iteration_bounds = array<i64: 1>, scalar_prefetch = 0 : i64, scratch_operands = 0 : i64, tpu.core_type = #tpu.core_type<tc>, window_params = [{transform_indices = @transform_0, window_bounds = array<i64: 32, 1152>}, {pipeline_mode = #tpu.pipeline_mode<synchronous>, transform_indices = @transform_1, window_bounds = array<i64: 1152, 256>}, {transform_indices = @transform_2, window_bounds = array<i64: 32, 256>}, {pipeline_mode = #tpu.pipeline_mode<synchronous>, transform_indices = @transform_3, window_bounds = array<i64: 8, 256>}]} {
    %c0_i32 = arith.constant 0 : i32
    %0 = arith.cmpi eq, %arg0, %c0_i32 : i32
    %1 = arith.extui %0 : i1 to i32
    %c0_i32_0 = arith.constant 0 : i32
    %2 = arith.cmpi ne, %1, %c0_i32_0 : i32
    scf.if %2 {
      %cst_15 = arith.constant 0.000000e+00 : f32
      %19 = vector.broadcast %cst_15 : f32 to vector<8x256xf32>
      %c0_16 = arith.constant 0 : index
      %c0_17 = arith.constant 0 : index
      %20 = vector.load %arg4[%c0_16, %c0_17] : memref<8x256xf32, #tpu.memory_space<vmem>>, vector<8x256xf32>
      tpu.vector_store %arg4[%c0_16, %c0_17], %19 {strides = array<i32>} : memref<8x256xf32, #tpu.memory_space<vmem>>, vector<8x256xf32>,
    } else {
    }
    %c0 = arith.constant 0 : index
    %c0_1 = arith.constant 0 : index
    %3 = vector.load %arg1[%c0, %c0_1] : memref<32x1152xbf16, #tpu.memory_space<vmem>>, vector<32x1152xbf16>
    %c0_2 = arith.constant 0 : index
    %c0_3 = arith.constant 0 : index
    %4 = vector.load %arg2[%c0_2, %c0_3] : memref<1152x256xbf16, #tpu.memory_space<vmem>>, vector<1152x256xbf16>
    %cst = arith.constant dense<0.000000e+00> : vector<32x256xf32>
    %5 = tpu.matmul %3, %4, %cst {dimension_numbers = #tpu.dot_dimension_numbers<[1], [0], [0], [1], [0, 0, 1, 1], [], []>} : vector<32x1152xbf16>, vector<1152x256xbf16>, vector<32x256xf32> -> vector<32x256xf32>
    %6 = arith.truncf %5 : vector<32x256xf32> to vector<32x256xbf16>
    %c0_4 = arith.constant 0 : index
    %c0_5 = arith.constant 0 : index
    %7 = vector.load %arg3[%c0_4, %c0_5] : memref<32x256xbf16, #tpu.memory_space<vmem>>, vector<32x256xbf16>
    tpu.vector_store %arg3[%c0_4, %c0_5], %6 {strides = array<i32>} : memref<32x256xbf16, #tpu.memory_space<vmem>>, vector<32x256xbf16>,
    %c0_6 = arith.constant 0 : index
    %c0_7 = arith.constant 0 : index
    %8 = vector.load %arg4[%c0_6, %c0_7] : memref<8x256xf32, #tpu.memory_space<vmem>>, vector<1x256xf32>
    %cst_8 = arith.constant dense<0.000000e+00> : vector<256xf32>
    %9 = vector.multi_reduction <add>, %5, %cst_8 [0] : vector<32x256xf32> to vector<256xf32>
    %10 = vector.shape_cast %9 : vector<256xf32> to vector<1x256xf32>
    %11 = arith.addf %8, %10 : vector<1x256xf32>
    %c0_9 = arith.constant 0 : index
    %c0_10 = arith.constant 0 : index
    %12 = vector.load %arg4[%c0_9, %c0_10] : memref<8x256xf32, #tpu.memory_space<vmem>>, vector<1x256xf32>
    tpu.vector_store %arg4[%c0_9, %c0_10], %11 {strides = array<i32>} : memref<8x256xf32, #tpu.memory_space<vmem>>, vector<1x256xf32>,
    %c1 = arith.constant 1 : index
    %c0_11 = arith.constant 0 : index
    %13 = vector.load %arg4[%c1, %c0_11] : memref<8x256xf32, #tpu.memory_space<vmem>>, vector<1x256xf32>
    %14 = arith.mulf %5, %5 : vector<32x256xf32>
    %cst_12 = arith.constant dense<0.000000e+00> : vector<256xf32>
    %15 = vector.multi_reduction <add>, %14, %cst_12 [0] : vector<32x256xf32> to vector<256xf32>
    %16 = vector.shape_cast %15 : vector<256xf32> to vector<1x256xf32>
    %17 = arith.addf %13, %16 : vector<1x256xf32>
    %c1_13 = arith.constant 1 : index
    %c0_14 = arith.constant 0 : index
    %18 = vector.load %arg4[%c1_13, %c0_14] : memref<8x256xf32, #tpu.memory_space<vmem>>, vector<1x256xf32>
    tpu.vector_store %arg4[%c1_13, %c0_14], %17 {strides = array<i32>} : memref<8x256xf32, #tpu.memory_space<vmem>>, vector<1x256xf32>,
    return
  }
  func.func @transform_0(%arg0: i32) -> (i32, i32) {
    %c0_i32 = arith.constant 0 : i32
    %c0_i32_0 = arith.constant 0 : i32
    return %arg0, %c0_i32 : i32, i32
  }
  func.func @transform_1(%arg0: i32) -> (i32, i32) {
    %c0_i32 = arith.constant 0 : i32
    %c0_i32_0 = arith.constant 0 : i32
    %c0_i32_1 = arith.constant 0 : i32
    return %c0_i32, %c0_i32_0 : i32, i32
  }
  func.func @transform_2(%arg0: i32) -> (i32, i32) {
    %c0_i32 = arith.constant 0 : i32
    %c0_i32_0 = arith.constant 0 : i32
    return %arg0, %c0_i32 : i32, i32
  }
  func.func @transform_3(%arg0: i32) -> (i32, i32) {
    %c0_i32 = arith.constant 0 : i32
    %c0_i32_0 = arith.constant 0 : i32
    %c0_i32_1 = arith.constant 0 : i32
    return %c0_i32, %c0_i32_0 : i32, i32
  }
}

module attributes {stable_mosaic.version = 11 : i64} {
  func.func @affine_relu_kernel(%arg0: i32, %arg1: memref<32x256xbf16, #tpu.memory_space<vmem>>, %arg2: memref<1x256xf32, #tpu.memory_space<vmem>>, %arg3: memref<1x256xf32, #tpu.memory_space<vmem>>, %arg4: memref<32x256xbf16, #tpu.memory_space<vmem>>) attributes {dimension_semantics = [#tpu.dimension_semantics<parallel>], iteration_bounds = array<i64: 1>, scalar_prefetch = 0 : i64, scratch_operands = 0 : i64, tpu.core_type = #tpu.core_type<tc>, window_params = [{transform_indices = @transform_0, window_bounds = array<i64: 32, 256>}, {pipeline_mode = #tpu.pipeline_mode<synchronous>, transform_indices = @transform_1, window_bounds = array<i64: 1, 256>}, {pipeline_mode = #tpu.pipeline_mode<synchronous>, transform_indices = @transform_2, window_bounds = array<i64: 1, 256>}, {transform_indices = @transform_3, window_bounds = array<i64: 32, 256>}]} {
    %c0 = arith.constant 0 : index
    %c0_0 = arith.constant 0 : index
    %0 = vector.load %arg1[%c0, %c0_0] : memref<32x256xbf16, #tpu.memory_space<vmem>>, vector<32x256xbf16>
    %1 = arith.extf %0 : vector<32x256xbf16> to vector<32x256xf32>
    %c0_1 = arith.constant 0 : index
    %c0_2 = arith.constant 0 : index
    %2 = vector.load %arg2[%c0_1, %c0_2] : memref<1x256xf32, #tpu.memory_space<vmem>>, vector<1x256xf32>
    %3 = vector.broadcast %2 : vector<1x256xf32> to vector<32x256xf32>
    %4 = arith.mulf %1, %3 : vector<32x256xf32>
    %c0_3 = arith.constant 0 : index
    %c0_4 = arith.constant 0 : index
    %5 = vector.load %arg3[%c0_3, %c0_4] : memref<1x256xf32, #tpu.memory_space<vmem>>, vector<1x256xf32>
    %6 = vector.broadcast %5 : vector<1x256xf32> to vector<32x256xf32>
    %7 = arith.addf %4, %6 : vector<32x256xf32>
    %cst = arith.constant 0.000000e+00 : f32
    %8 = vector.broadcast %cst : f32 to vector<32x256xf32>
    %9 = arith.maximumf %7, %8 : vector<32x256xf32>
    %10 = arith.truncf %9 : vector<32x256xf32> to vector<32x256xbf16>
    %c0_5 = arith.constant 0 : index
    %c0_6 = arith.constant 0 : index
    %11 = vector.load %arg4[%c0_5, %c0_6] : memref<32x256xbf16, #tpu.memory_space<vmem>>, vector<32x256xbf16>
    tpu.vector_store %arg4[%c0_5, %c0_6], %10 {strides = array<i32>} : memref<32x256xbf16, #tpu.memory_space<vmem>>, vector<32x256xbf16>,
    return
  }
  func.func @transform_0(%arg0: i32) -> (i32, i32) {
    %c0_i32 = arith.constant 0 : i32
    %c0_i32_0 = arith.constant 0 : i32
    return %arg0, %c0_i32 : i32, i32
  }
  func.func @transform_1(%arg0: i32) -> (i32, i32) {
    %c0_i32 = arith.constant 0 : i32
    %c0_i32_0 = arith.constant 0 : i32
    %c0_i32_1 = arith.constant 0 : i32
    return %c0_i32, %c0_i32_0 : i32, i32
  }
  func.func @transform_2(%arg0: i32) -> (i32, i32) {
    %c0_i32 = arith.constant 0 : i32
    %c0_i32_0 = arith.constant 0 : i32
    %c0_i32_1 = arith.constant 0 : i32
    return %c0_i32, %c0_i32_0 : i32, i32
  }
  func.func @transform_3(%arg0: i32) -> (i32, i32) {
    %c0_i32 = arith.constant 0 : i32
    %c0_i32_0 = arith.constant 0 : i32
    return %arg0, %c0_i32 : i32, i32
  }
}

module attributes {stable_mosaic.version = 11 : i64} {
  func.func @matmul_stats_kernel(%arg0: i32, %arg1: memref<128x576xbf16, #tpu.memory_space<vmem>>, %arg2: memref<576x128xbf16, #tpu.memory_space<vmem>>, %arg3: memref<128x128xbf16, #tpu.memory_space<vmem>>, %arg4: memref<8x128xf32, #tpu.memory_space<vmem>>) attributes {dimension_semantics = [#tpu.dimension_semantics<arbitrary>], iteration_bounds = array<i64: 1>, scalar_prefetch = 0 : i64, scratch_operands = 0 : i64, tpu.core_type = #tpu.core_type<tc>, window_params = [{transform_indices = @transform_0, window_bounds = array<i64: 128, 576>}, {pipeline_mode = #tpu.pipeline_mode<synchronous>, transform_indices = @transform_1, window_bounds = array<i64: 576, 128>}, {transform_indices = @transform_2, window_bounds = array<i64: 128, 128>}, {pipeline_mode = #tpu.pipeline_mode<synchronous>, transform_indices = @transform_3, window_bounds = array<i64: 8, 128>}]} {
    %c0_i32 = arith.constant 0 : i32
    %0 = arith.cmpi eq, %arg0, %c0_i32 : i32
    %1 = arith.extui %0 : i1 to i32
    %c0_i32_0 = arith.constant 0 : i32
    %2 = arith.cmpi ne, %1, %c0_i32_0 : i32
    scf.if %2 {
      %cst_15 = arith.constant 0.000000e+00 : f32
      %19 = vector.broadcast %cst_15 : f32 to vector<8x128xf32>
      %c0_16 = arith.constant 0 : index
      %c0_17 = arith.constant 0 : index
      %20 = vector.load %arg4[%c0_16, %c0_17] : memref<8x128xf32, #tpu.memory_space<vmem>>, vector<8x128xf32>
      tpu.vector_store %arg4[%c0_16, %c0_17], %19 {strides = array<i32>} : memref<8x128xf32, #tpu.memory_space<vmem>>, vector<8x128xf32>,
    } else {
    }
    %c0 = arith.constant 0 : index
    %c0_1 = arith.constant 0 : index
    %3 = vector.load %arg1[%c0, %c0_1] : memref<128x576xbf16, #tpu.memory_space<vmem>>, vector<128x576xbf16>
    %c0_2 = arith.constant 0 : index
    %c0_3 = arith.constant 0 : index
    %4 = vector.load %arg2[%c0_2, %c0_3] : memref<576x128xbf16, #tpu.memory_space<vmem>>, vector<576x128xbf16>
    %cst = arith.constant dense<0.000000e+00> : vector<128x128xf32>
    %5 = tpu.matmul %3, %4, %cst {dimension_numbers = #tpu.dot_dimension_numbers<[1], [0], [0], [1], [0, 0, 1, 1], [], []>} : vector<128x576xbf16>, vector<576x128xbf16>, vector<128x128xf32> -> vector<128x128xf32>
    %6 = arith.truncf %5 : vector<128x128xf32> to vector<128x128xbf16>
    %c0_4 = arith.constant 0 : index
    %c0_5 = arith.constant 0 : index
    %7 = vector.load %arg3[%c0_4, %c0_5] : memref<128x128xbf16, #tpu.memory_space<vmem>>, vector<128x128xbf16>
    tpu.vector_store %arg3[%c0_4, %c0_5], %6 {strides = array<i32>} : memref<128x128xbf16, #tpu.memory_space<vmem>>, vector<128x128xbf16>,
    %c0_6 = arith.constant 0 : index
    %c0_7 = arith.constant 0 : index
    %8 = vector.load %arg4[%c0_6, %c0_7] : memref<8x128xf32, #tpu.memory_space<vmem>>, vector<1x128xf32>
    %cst_8 = arith.constant dense<0.000000e+00> : vector<128xf32>
    %9 = vector.multi_reduction <add>, %5, %cst_8 [0] : vector<128x128xf32> to vector<128xf32>
    %10 = vector.shape_cast %9 : vector<128xf32> to vector<1x128xf32>
    %11 = arith.addf %8, %10 : vector<1x128xf32>
    %c0_9 = arith.constant 0 : index
    %c0_10 = arith.constant 0 : index
    %12 = vector.load %arg4[%c0_9, %c0_10] : memref<8x128xf32, #tpu.memory_space<vmem>>, vector<1x128xf32>
    tpu.vector_store %arg4[%c0_9, %c0_10], %11 {strides = array<i32>} : memref<8x128xf32, #tpu.memory_space<vmem>>, vector<1x128xf32>,
    %c1 = arith.constant 1 : index
    %c0_11 = arith.constant 0 : index
    %13 = vector.load %arg4[%c1, %c0_11] : memref<8x128xf32, #tpu.memory_space<vmem>>, vector<1x128xf32>
    %14 = arith.mulf %5, %5 : vector<128x128xf32>
    %cst_12 = arith.constant dense<0.000000e+00> : vector<128xf32>
    %15 = vector.multi_reduction <add>, %14, %cst_12 [0] : vector<128x128xf32> to vector<128xf32>
    %16 = vector.shape_cast %15 : vector<128xf32> to vector<1x128xf32>
    %17 = arith.addf %13, %16 : vector<1x128xf32>
    %c1_13 = arith.constant 1 : index
    %c0_14 = arith.constant 0 : index
    %18 = vector.load %arg4[%c1_13, %c0_14] : memref<8x128xf32, #tpu.memory_space<vmem>>, vector<1x128xf32>
    tpu.vector_store %arg4[%c1_13, %c0_14], %17 {strides = array<i32>} : memref<8x128xf32, #tpu.memory_space<vmem>>, vector<1x128xf32>,
    return
  }
  func.func @transform_0(%arg0: i32) -> (i32, i32) {
    %c0_i32 = arith.constant 0 : i32
    %c0_i32_0 = arith.constant 0 : i32
    return %arg0, %c0_i32 : i32, i32
  }
  func.func @transform_1(%arg0: i32) -> (i32, i32) {
    %c0_i32 = arith.constant 0 : i32
    %c0_i32_0 = arith.constant 0 : i32
    %c0_i32_1 = arith.constant 0 : i32
    return %c0_i32, %c0_i32_0 : i32, i32
  }
  func.func @transform_2(%arg0: i32) -> (i32, i32) {
    %c0_i32 = arith.constant 0 : i32
    %c0_i32_0 = arith.constant 0 : i32
    return %arg0, %c0_i32 : i32, i32
  }
  func.func @transform_3(%arg0: i32) -> (i32, i32) {
    %c0_i32 = arith.constant 0 : i32
    %c0_i32_0 = arith.constant 0 : i32
    %c0_i32_1 = arith.constant 0 : i32
    return %c0_i32, %c0_i32_0 : i32, i32
  }
}

module attributes {stable_mosaic.version = 11 : i64} {
  func.func @affine_relu_kernel(%arg0: i32, %arg1: memref<128x128xbf16, #tpu.memory_space<vmem>>, %arg2: memref<1x128xf32, #tpu.memory_space<vmem>>, %arg3: memref<1x128xf32, #tpu.memory_space<vmem>>, %arg4: memref<128x128xbf16, #tpu.memory_space<vmem>>) attributes {dimension_semantics = [#tpu.dimension_semantics<parallel>], iteration_bounds = array<i64: 1>, scalar_prefetch = 0 : i64, scratch_operands = 0 : i64, tpu.core_type = #tpu.core_type<tc>, window_params = [{transform_indices = @transform_0, window_bounds = array<i64: 128, 128>}, {pipeline_mode = #tpu.pipeline_mode<synchronous>, transform_indices = @transform_1, window_bounds = array<i64: 1, 128>}, {pipeline_mode = #tpu.pipeline_mode<synchronous>, transform_indices = @transform_2, window_bounds = array<i64: 1, 128>}, {transform_indices = @transform_3, window_bounds = array<i64: 128, 128>}]} {
    %c0 = arith.constant 0 : index
    %c0_0 = arith.constant 0 : index
    %0 = vector.load %arg1[%c0, %c0_0] : memref<128x128xbf16, #tpu.memory_space<vmem>>, vector<128x128xbf16>
    %1 = arith.extf %0 : vector<128x128xbf16> to vector<128x128xf32>
    %c0_1 = arith.constant 0 : index
    %c0_2 = arith.constant 0 : index
    %2 = vector.load %arg2[%c0_1, %c0_2] : memref<1x128xf32, #tpu.memory_space<vmem>>, vector<1x128xf32>
    %3 = vector.broadcast %2 : vector<1x128xf32> to vector<128x128xf32>
    %4 = arith.mulf %1, %3 : vector<128x128xf32>
    %c0_3 = arith.constant 0 : index
    %c0_4 = arith.constant 0 : index
    %5 = vector.load %arg3[%c0_3, %c0_4] : memref<1x128xf32, #tpu.memory_space<vmem>>, vector<1x128xf32>
    %6 = vector.broadcast %5 : vector<1x128xf32> to vector<128x128xf32>
    %7 = arith.addf %4, %6 : vector<128x128xf32>
    %cst = arith.constant 0.000000e+00 : f32
    %8 = vector.broadcast %cst : f32 to vector<128x128xf32>
    %9 = arith.maximumf %7, %8 : vector<128x128xf32>
    %10 = arith.truncf %9 : vector<128x128xf32> to vector<128x128xbf16>
    %c0_5 = arith.constant 0 : index
    %c0_6 = arith.constant 0 : index
    %11 = vector.load %arg4[%c0_5, %c0_6] : memref<128x128xbf16, #tpu.memory_space<vmem>>, vector<128x128xbf16>
    tpu.vector_store %arg4[%c0_5, %c0_6], %10 {strides = array<i32>} : memref<128x128xbf16, #tpu.memory_space<vmem>>, vector<128x128xbf16>,
    return
  }
  func.func @transform_0(%arg0: i32) -> (i32, i32) {
    %c0_i32 = arith.constant 0 : i32
    %c0_i32_0 = arith.constant 0 : i32
    return %arg0, %c0_i32 : i32, i32
  }
  func.func @transform_1(%arg0: i32) -> (i32, i32) {
    %c0_i32 = arith.constant 0 : i32
    %c0_i32_0 = arith.constant 0 : i32
    %c0_i32_1 = arith.constant 0 : i32
    return %c0_i32, %c0_i32_0 : i32, i32
  }
  func.func @transform_2(%arg0: i32) -> (i32, i32) {
    %c0_i32 = arith.constant 0 : i32
    %c0_i32_0 = arith.constant 0 : i32
    %c0_i32_1 = arith.constant 0 : i32
    return %c0_i32, %c0_i32_0 : i32, i32
  }
  func.func @transform_3(%arg0: i32) -> (i32, i32) {
    %c0_i32 = arith.constant 0 : i32
    %c0_i32_0 = arith.constant 0 : i32
    return %arg0, %c0_i32 : i32, i32
  }
}

module attributes {stable_mosaic.version = 11 : i64} {
  func.func @matmul_stats_kernel(%arg0: i32, %arg1: memref<512x288xbf16, #tpu.memory_space<vmem>>, %arg2: memref<288x64xbf16, #tpu.memory_space<vmem>>, %arg3: memref<512x64xbf16, #tpu.memory_space<vmem>>, %arg4: memref<8x64xf32, #tpu.memory_space<vmem>>) attributes {dimension_semantics = [#tpu.dimension_semantics<arbitrary>], iteration_bounds = array<i64: 1>, scalar_prefetch = 0 : i64, scratch_operands = 0 : i64, tpu.core_type = #tpu.core_type<tc>, window_params = [{transform_indices = @transform_0, window_bounds = array<i64: 512, 288>}, {pipeline_mode = #tpu.pipeline_mode<synchronous>, transform_indices = @transform_1, window_bounds = array<i64: 288, 64>}, {transform_indices = @transform_2, window_bounds = array<i64: 512, 64>}, {pipeline_mode = #tpu.pipeline_mode<synchronous>, transform_indices = @transform_3, window_bounds = array<i64: 8, 64>}]} {
    %c0_i32 = arith.constant 0 : i32
    %0 = arith.cmpi eq, %arg0, %c0_i32 : i32
    %1 = arith.extui %0 : i1 to i32
    %c0_i32_0 = arith.constant 0 : i32
    %2 = arith.cmpi ne, %1, %c0_i32_0 : i32
    scf.if %2 {
      %cst_15 = arith.constant 0.000000e+00 : f32
      %19 = vector.broadcast %cst_15 : f32 to vector<8x64xf32>
      %c0_16 = arith.constant 0 : index
      %c0_17 = arith.constant 0 : index
      %20 = vector.load %arg4[%c0_16, %c0_17] : memref<8x64xf32, #tpu.memory_space<vmem>>, vector<8x64xf32>
      tpu.vector_store %arg4[%c0_16, %c0_17], %19 {strides = array<i32>} : memref<8x64xf32, #tpu.memory_space<vmem>>, vector<8x64xf32>,
    } else {
    }
    %c0 = arith.constant 0 : index
    %c0_1 = arith.constant 0 : index
    %3 = vector.load %arg1[%c0, %c0_1] : memref<512x288xbf16, #tpu.memory_space<vmem>>, vector<512x288xbf16>
    %c0_2 = arith.constant 0 : index
    %c0_3 = arith.constant 0 : index
    %4 = vector.load %arg2[%c0_2, %c0_3] : memref<288x64xbf16, #tpu.memory_space<vmem>>, vector<288x64xbf16>
    %cst = arith.constant dense<0.000000e+00> : vector<512x64xf32>
    %5 = tpu.matmul %3, %4, %cst {dimension_numbers = #tpu.dot_dimension_numbers<[1], [0], [0], [1], [0, 0, 1, 1], [], []>} : vector<512x288xbf16>, vector<288x64xbf16>, vector<512x64xf32> -> vector<512x64xf32>
    %6 = arith.truncf %5 : vector<512x64xf32> to vector<512x64xbf16>
    %c0_4 = arith.constant 0 : index
    %c0_5 = arith.constant 0 : index
    %7 = vector.load %arg3[%c0_4, %c0_5] : memref<512x64xbf16, #tpu.memory_space<vmem>>, vector<512x64xbf16>
    tpu.vector_store %arg3[%c0_4, %c0_5], %6 {strides = array<i32>} : memref<512x64xbf16, #tpu.memory_space<vmem>>, vector<512x64xbf16>,
    %c0_6 = arith.constant 0 : index
    %c0_7 = arith.constant 0 : index
    %8 = vector.load %arg4[%c0_6, %c0_7] : memref<8x64xf32, #tpu.memory_space<vmem>>, vector<1x64xf32>
    %cst_8 = arith.constant dense<0.000000e+00> : vector<64xf32>
    %9 = vector.multi_reduction <add>, %5, %cst_8 [0] : vector<512x64xf32> to vector<64xf32>
    %10 = vector.shape_cast %9 : vector<64xf32> to vector<1x64xf32>
    %11 = arith.addf %8, %10 : vector<1x64xf32>
    %c0_9 = arith.constant 0 : index
    %c0_10 = arith.constant 0 : index
    %12 = vector.load %arg4[%c0_9, %c0_10] : memref<8x64xf32, #tpu.memory_space<vmem>>, vector<1x64xf32>
    tpu.vector_store %arg4[%c0_9, %c0_10], %11 {strides = array<i32>} : memref<8x64xf32, #tpu.memory_space<vmem>>, vector<1x64xf32>,
    %c1 = arith.constant 1 : index
    %c0_11 = arith.constant 0 : index
    %13 = vector.load %arg4[%c1, %c0_11] : memref<8x64xf32, #tpu.memory_space<vmem>>, vector<1x64xf32>
    %14 = arith.mulf %5, %5 : vector<512x64xf32>
    %cst_12 = arith.constant dense<0.000000e+00> : vector<64xf32>
    %15 = vector.multi_reduction <add>, %14, %cst_12 [0] : vector<512x64xf32> to vector<64xf32>
    %16 = vector.shape_cast %15 : vector<64xf32> to vector<1x64xf32>
    %17 = arith.addf %13, %16 : vector<1x64xf32>
    %c1_13 = arith.constant 1 : index
    %c0_14 = arith.constant 0 : index
    %18 = vector.load %arg4[%c1_13, %c0_14] : memref<8x64xf32, #tpu.memory_space<vmem>>, vector<1x64xf32>
    tpu.vector_store %arg4[%c1_13, %c0_14], %17 {strides = array<i32>} : memref<8x64xf32, #tpu.memory_space<vmem>>, vector<1x64xf32>,
    return
  }
  func.func @transform_0(%arg0: i32) -> (i32, i32) {
    %c0_i32 = arith.constant 0 : i32
    %c0_i32_0 = arith.constant 0 : i32
    return %arg0, %c0_i32 : i32, i32
  }
  func.func @transform_1(%arg0: i32) -> (i32, i32) {
    %c0_i32 = arith.constant 0 : i32
    %c0_i32_0 = arith.constant 0 : i32
    %c0_i32_1 = arith.constant 0 : i32
    return %c0_i32, %c0_i32_0 : i32, i32
  }
  func.func @transform_2(%arg0: i32) -> (i32, i32) {
    %c0_i32 = arith.constant 0 : i32
    %c0_i32_0 = arith.constant 0 : i32
    return %arg0, %c0_i32 : i32, i32
  }
  func.func @transform_3(%arg0: i32) -> (i32, i32) {
    %c0_i32 = arith.constant 0 : i32
    %c0_i32_0 = arith.constant 0 : i32
    %c0_i32_1 = arith.constant 0 : i32
    return %c0_i32, %c0_i32_0 : i32, i32
  }
}

module attributes {stable_mosaic.version = 11 : i64} {
  func.func @affine_relu_kernel(%arg0: i32, %arg1: memref<512x64xbf16, #tpu.memory_space<vmem>>, %arg2: memref<1x64xf32, #tpu.memory_space<vmem>>, %arg3: memref<1x64xf32, #tpu.memory_space<vmem>>, %arg4: memref<512x64xbf16, #tpu.memory_space<vmem>>) attributes {dimension_semantics = [#tpu.dimension_semantics<parallel>], iteration_bounds = array<i64: 1>, scalar_prefetch = 0 : i64, scratch_operands = 0 : i64, tpu.core_type = #tpu.core_type<tc>, window_params = [{transform_indices = @transform_0, window_bounds = array<i64: 512, 64>}, {pipeline_mode = #tpu.pipeline_mode<synchronous>, transform_indices = @transform_1, window_bounds = array<i64: 1, 64>}, {pipeline_mode = #tpu.pipeline_mode<synchronous>, transform_indices = @transform_2, window_bounds = array<i64: 1, 64>}, {transform_indices = @transform_3, window_bounds = array<i64: 512, 64>}]} {
    %c0 = arith.constant 0 : index
    %c0_0 = arith.constant 0 : index
    %0 = vector.load %arg1[%c0, %c0_0] : memref<512x64xbf16, #tpu.memory_space<vmem>>, vector<512x64xbf16>
    %1 = arith.extf %0 : vector<512x64xbf16> to vector<512x64xf32>
    %c0_1 = arith.constant 0 : index
    %c0_2 = arith.constant 0 : index
    %2 = vector.load %arg2[%c0_1, %c0_2] : memref<1x64xf32, #tpu.memory_space<vmem>>, vector<1x64xf32>
    %3 = vector.broadcast %2 : vector<1x64xf32> to vector<512x64xf32>
    %4 = arith.mulf %1, %3 : vector<512x64xf32>
    %c0_3 = arith.constant 0 : index
    %c0_4 = arith.constant 0 : index
    %5 = vector.load %arg3[%c0_3, %c0_4] : memref<1x64xf32, #tpu.memory_space<vmem>>, vector<1x64xf32>
    %6 = vector.broadcast %5 : vector<1x64xf32> to vector<512x64xf32>
    %7 = arith.addf %4, %6 : vector<512x64xf32>
    %cst = arith.constant 0.000000e+00 : f32
    %8 = vector.broadcast %cst : f32 to vector<512x64xf32>
    %9 = arith.maximumf %7, %8 : vector<512x64xf32>
    %10 = arith.truncf %9 : vector<512x64xf32> to vector<512x64xbf16>
    %c0_5 = arith.constant 0 : index
    %c0_6 = arith.constant 0 : index
    %11 = vector.load %arg4[%c0_5, %c0_6] : memref<512x64xbf16, #tpu.memory_space<vmem>>, vector<512x64xbf16>
    tpu.vector_store %arg4[%c0_5, %c0_6], %10 {strides = array<i32>} : memref<512x64xbf16, #tpu.memory_space<vmem>>, vector<512x64xbf16>,
    return
  }
  func.func @transform_0(%arg0: i32) -> (i32, i32) {
    %c0_i32 = arith.constant 0 : i32
    %c0_i32_0 = arith.constant 0 : i32
    return %arg0, %c0_i32 : i32, i32
  }
  func.func @transform_1(%arg0: i32) -> (i32, i32) {
    %c0_i32 = arith.constant 0 : i32
    %c0_i32_0 = arith.constant 0 : i32
    %c0_i32_1 = arith.constant 0 : i32
    return %c0_i32, %c0_i32_0 : i32, i32
  }
  func.func @transform_2(%arg0: i32) -> (i32, i32) {
    %c0_i32 = arith.constant 0 : i32
    %c0_i32_0 = arith.constant 0 : i32
    %c0_i32_1 = arith.constant 0 : i32
    return %c0_i32, %c0_i32_0 : i32, i32
  }
  func.func @transform_3(%arg0: i32) -> (i32, i32) {
    %c0_i32 = arith.constant 0 : i32
    %c0_i32_0 = arith.constant 0 : i32
    return %arg0, %c0_i32 : i32, i32
  }
}

module attributes {stable_mosaic.version = 11 : i64} {
  func.func @matmul_bias_tanh_t_kernel(%arg0: i32, %arg1: memref<16x144xbf16, #tpu.memory_space<vmem>>, %arg2: memref<144x1024xbf16, #tpu.memory_space<vmem>>, %arg3: memref<16x1xf32, #tpu.memory_space<vmem>>, %arg4: memref<16x1024xf32, #tpu.memory_space<vmem>>) attributes {dimension_semantics = [#tpu.dimension_semantics<parallel>], iteration_bounds = array<i64: 2>, scalar_prefetch = 0 : i64, scratch_operands = 0 : i64, tpu.core_type = #tpu.core_type<tc>, window_params = [{pipeline_mode = #tpu.pipeline_mode<synchronous>, transform_indices = @transform_0, window_bounds = array<i64: 16, 144>}, {transform_indices = @transform_1, window_bounds = array<i64: 144, 1024>}, {pipeline_mode = #tpu.pipeline_mode<synchronous>, transform_indices = @transform_2, window_bounds = array<i64: 16, 1>}, {transform_indices = @transform_3, window_bounds = array<i64: 16, 1024>}]} {
    %c0 = arith.constant 0 : index
    %c0_0 = arith.constant 0 : index
    %0 = vector.load %arg1[%c0, %c0_0] : memref<16x144xbf16, #tpu.memory_space<vmem>>, vector<16x144xbf16>
    %c0_1 = arith.constant 0 : index
    %c0_2 = arith.constant 0 : index
    %1 = vector.load %arg2[%c0_1, %c0_2] : memref<144x1024xbf16, #tpu.memory_space<vmem>>, vector<144x1024xbf16>
    %cst = arith.constant dense<0.000000e+00> : vector<16x1024xf32>
    %2 = tpu.matmul %0, %1, %cst {dimension_numbers = #tpu.dot_dimension_numbers<[1], [0], [0], [1], [0, 0, 1, 1], [], []>} : vector<16x144xbf16>, vector<144x1024xbf16>, vector<16x1024xf32> -> vector<16x1024xf32>
    %c0_3 = arith.constant 0 : index
    %c0_4 = arith.constant 0 : index
    %3 = vector.load %arg3[%c0_3, %c0_4] : memref<16x1xf32, #tpu.memory_space<vmem>>, vector<16x1xf32>
    %4 = vector.broadcast %3 : vector<16x1xf32> to vector<16x1024xf32>
    %5 = arith.addf %2, %4 : vector<16x1024xf32>
    %6 = math.tanh %5 : vector<16x1024xf32>
    %c0_5 = arith.constant 0 : index
    %c0_6 = arith.constant 0 : index
    %7 = vector.load %arg4[%c0_5, %c0_6] : memref<16x1024xf32, #tpu.memory_space<vmem>>, vector<16x1024xf32>
    tpu.vector_store %arg4[%c0_5, %c0_6], %6 {strides = array<i32>} : memref<16x1024xf32, #tpu.memory_space<vmem>>, vector<16x1024xf32>,
    return
  }
  func.func @transform_0(%arg0: i32) -> (i32, i32) {
    %c0_i32 = arith.constant 0 : i32
    %c0_i32_0 = arith.constant 0 : i32
    %c0_i32_1 = arith.constant 0 : i32
    return %c0_i32, %c0_i32_0 : i32, i32
  }
  func.func @transform_1(%arg0: i32) -> (i32, i32) {
    %c0_i32 = arith.constant 0 : i32
    %c0_i32_0 = arith.constant 0 : i32
    return %c0_i32, %arg0 : i32, i32
  }
  func.func @transform_2(%arg0: i32) -> (i32, i32) {
    %c0_i32 = arith.constant 0 : i32
    %c0_i32_0 = arith.constant 0 : i32
    %c0_i32_1 = arith.constant 0 : i32
    return %c0_i32, %c0_i32_0 : i32, i32
  }
  func.func @transform_3(%arg0: i32) -> (i32, i32) {
    %c0_i32 = arith.constant 0 : i32
    %c0_i32_0 = arith.constant 0 : i32
    return %c0_i32, %arg0 : i32, i32
  }
}

</mosaic_0001>

<bundles_post_ra>
// kernel: tile.68
= control target key start
LH: loop header
LB: loop body
LE: loop exit
PB: predicated region body
PF: predicated region fallthrough
CT: control target
= control target key end

     0   :  { %2 = vsyncpa [#allocation1], 0  ;;  %s42_s6 = smov [#allocation0]   ;;  %s59_s0 = inlined_call_operand.hbm [shape: f32[3], index: 0, kind: input, shape index: {}]   ;;  %s60_s1 = inlined_call_operand.vmem [shape: f32[4,3], index: 1, kind: output, shape index: {}]  }
   0x1   :  { %s9_s7 = sshll.u32 %s42_s6, 4  ;;  %s10_s7 = int_to_ptr.vmem [resolvable:$true] %s9_s7 }
   0x2   :  { %s28_s8 = scalar_lea.vmem %s10_s7, 16  ;;  %s32_s9 = scalar_lea.vmem %s10_s7, 32 }
   0x3   :  { %p29_p0 = scmp.ne.s32.totalorder %s10_s7, %s28_s8  ;;  %p33_p1 = scmp.lt.s32.totalorder %s10_s7, %s10_s7 }
   0x4   :  { %p34_p2 = scmp.lt.s32.totalorder %s32_s9, %s28_s8 }
   0x6   :  { %p35_p3 = por %p34_p2, %p33_p1 }
   0x8   :  { %p36_p4 = pnand %p35_p3, %p29_p0 }
   0xa   :  { %39 = shalt.err (!%p36_p4)
}
   0xb   :  { %12 = dma.hbm_to_vmem [thread:$0]  %s59_s0, 16, %s10_s7, [#allocation1]  }
   0xc   :  { %40 = dma.done.wait [#allocation1], 16  }
   0xd   :  { %41 = vsyncadd [#allocation1], 4294967280  ;;  %v16_v0 = vld [vmem:[#allocation0] ss:$0 sm:$0xff] }
   0xe   :  { %17 = vst [vmem:[%s60_s1] sm:$0xf] %v16_v0 }
   0xf   :  { %18 = vsyncpa [#allocation1], 1 }

// kernel: tile.69
= control target key start
LH: loop header
LB: loop body
LE: loop exit
PB: predicated region body
PF: predicated region fallthrough
CT: control target
= control target key end

     0   :  { %vm8_vm0 = vcmask 23552   ;;  %s40_s8 = smov 3   ;;  %s41_s9 = smov 6   ;;  %vm14_vm1 = vcmask 97352   ;;  %vm20_vm2 = vcmask 72752   ;;  %vm26_vm3 = vcmask 48152   ;;  %s58_s0 = inlined_call_operand.vmem [shape: f32[4,3], index: 0, kind: input, shape index: {}]   ;;  %s59_s1 = inlined_call_operand.vmem [shape: f32[12], index: 1, kind: output, shape index: {}]  }
   0x1   :  { %v5_v0 = vld [vmem:[%s58_s0] sm:$0xf]  ;;  %s39_s0 = smov 9  }
   0x2   :  { %6 = vst [vmem:[#allocation1] sm:$0xf] %v5_v0 }
   0x9   :  { %v11_v1 = vld [vmem:[#allocation1 + $0x3] sm:$0x1]   ;;  %v23_v2 = vld [vmem:[#allocation1 + $0x1] sm:$0x1]   ;;  %v7_v3 = vld [vmem:[#allocation1] sm:$0x1]  }
   0xa   :  { %12 = vrot.lane.b32.xlu0 %v11_v1, %s39_s0  ;;  %24 = vrot.lane.b32.xlu1 %v23_v2, %s40_s8  ;;  %v17_v4 = vld [vmem:[#allocation1 + $0x2] sm:$0x1]   ;;  %9 = vst.msk [vmem:[#allocation0] sm:$0x1] %vm8_vm0, %v7_v3  }
   0xe   :  { %18 = vrot.lane.b32.xlu0 %v17_v4, %s41_s9 }
  0x7c   :  { %v13_v5 = vpop.permute.xlu0 %12   ;;  %v25_v6 = vpop.permute.xlu1 %24  }
  0x7d   :  { %15 = vst.msk [vmem:[#allocation0] sm:$0x1] %vm14_vm1, %v13_v5  }
  0x80   :  { %v19_v7 = vpop.permute.xlu0 %18  }
  0x81   :  { %21 = vst.msk [vmem:[#allocation0] sm:$0x1] %vm20_vm2, %v19_v7  }
  0x82   :  { %27 = vst.msk [vmem:[#allocation0] sm:$0x1] %vm26_vm3, %v25_v6  }
  0x89   :  { %v32_v8 = vld [vmem:[#allocation0] sm:$0x1] }
  0x8a   :  { %35 = vst [vmem:[%s59_s1] sm:$0x1] %v32_v8 }

// kernel: generator_forward.10
= control target key start
LH: loop header
LB: loop body
LE: loop exit
PB: predicated region body
PF: predicated region fallthrough
CT: control target
= control target key end

     0   :  { %v42_v0 = vlaneseq  ;;  %s504_s0 = inlined_call_operand.vmem [shape: bf16[8,2048], index: 0, kind: input, shape index: {}]   ;;  %s505_s1 = inlined_call_operand.vmem [shape: f32[1,2048], index: 1, kind: input, shape index: {}]   ;;  %s506_s2 = inlined_call_operand.vmem [shape: f32[1,2048], index: 2, kind: input, shape index: {}]   ;;  %s507_s3 = inlined_call_operand.vmem [shape: bf16[8,2048], index: 3, kind: output, shape index: {}]  }
   0x1   :  { %v14_v1 = vld [vmem:[%s504_s0] sm:$0xff]  ;;  %v15_v5 = vld [vmem:[%s504_s0 + $0x8] sm:$0xff]  ;;  %v16_v6 = vld [vmem:[%s504_s0 + $0x10] sm:$0xff] }
   0x2   :  { %v22_v2 = vunpack.c.l.bf16 %v14_v1  ;;  %v23_v3 = vunpack.c.h.bf16 %v14_v1  ;;  %v43_v4 = vshrl.u32 %v42_v0, 7  ;;  %v17_v7 = vld [vmem:[%s504_s0 + $0x18] sm:$0xff]  ;;  %v38_v8 = vld [vmem:[%s505_s1] sm:$0xff]  ;;  %v24_v10 = vunpack.c.l.bf16 %v15_v5  ;;  %v428_v55 = vld [vmem:[%s505_s1 + $0x8] sm:$0xff] }
   0x3   :  { %v384_v9 = vld [vmem:[%s506_s2] sm:$0xff]  ;;  %v25_v11 = vunpack.c.h.bf16 %v15_v5  ;;  %v26_v12 = vunpack.c.l.bf16 %v16_v6  ;;  %v27_v13 = vunpack.c.h.bf16 %v16_v6  ;;  %v28_v20 = vunpack.c.l.bf16 %v17_v7  ;;  %v435_v60 = vld [vmem:[%s506_s2 + $0x8] sm:$0xff] }
   0x4   :  { %v386_v14 = vsub.s32 0, %v43_v4  ;;  %v388_v15 = vsub.s32 1, %v43_v4  ;;  %v390_v16 = vsub.s32 2, %v43_v4  ;;  %v392_v17 = vsub.s32 3, %v43_v4  ;;  %v18_v54 = vld [vmem:[%s504_s0 + $0x20] sm:$0xff]  ;;  %v19_v1 = vld [vmem:[%s504_s0 + $0x28] sm:$0xff] }
   0x5   :  { %v394_v18 = vsub.s32 4, %v43_v4  ;;  %v396_v19 = vsub.s32 5, %v43_v4  ;;  %v29_v21 = vunpack.c.h.bf16 %v17_v7  ;;  %v416_v44 = vsub.s32 6, %v43_v4 }
   0x6   :  { %v45_v22 = vrot.slane %v38_v8, %v386_v14  ;;  %v49_v23 = vrot.slane %v38_v8, %v388_v15  ;;  %v145_v24 = vrot.slane %v384_v9, %v386_v14  ;;  %v149_v25 = vrot.slane %v384_v9, %v388_v15 }
   0x7   :  { %v53_v26 = vrot.slane %v38_v8, %v390_v16  ;;  %v57_v27 = vrot.slane %v38_v8, %v392_v17  ;;  %v153_v28 = vrot.slane %v384_v9, %v390_v16  ;;  %v157_v29 = vrot.slane %v384_v9, %v392_v17 }
   0x8   :  { %v122_v30 = vmul.f32 %v45_v22, %v22_v2  ;;  %v123_v31 = vmul.f32 %v49_v23, %v23_v3  ;;  %v61_v32 = vrot.slane %v38_v8, %v394_v18  ;;  %v65_v33 = vrot.slane %v38_v8, %v396_v19 }
   0x9   :  { %v124_v34 = vmul.f32 %v53_v26, %v24_v10  ;;  %v125_v35 = vmul.f32 %v57_v27, %v25_v11  ;;  %v161_v36 = vrot.slane %v384_v9, %v394_v18  ;;  %v165_v37 = vrot.slane %v384_v9, %v396_v19 }
   0xa   :  { %v222_v38 = vadd.f32 %v145_v24, %v122_v30  ;;  %v223_v39 = vadd.f32 %v149_v25, %v123_v31  ;;  %v126_v40 = vmul.f32 %v61_v32, %v26_v12  ;;  %v127_v41 = vmul.f32 %v65_v33, %v27_v13  ;;  %v21_v31 = vld [vmem:[%s504_s0 + $0x38] sm:$0xff] }
   0xb   :  { %v224_v42 = vadd.f32 %v153_v28, %v124_v34  ;;  %v225_v43 = vadd.f32 %v157_v29, %v125_v35  ;;  %v418_v45 = vsub.s32 7, %v43_v4  ;;  %v69_v52 = vrot.slane %v38_v8, %v416_v44 }
   0xc   :  { %v238_v46 = vmax.f32 %v222_v38, 0.0  ;;  %v239_v47 = vmax.f32 %v223_v39, 0.0  ;;  %v226_v48 = vadd.f32 %v161_v36, %v126_v40  ;;  %v227_v49 = vadd.f32 %v165_v37, %v127_v41 }
   0xd   :  { %v240_v50 = vmax.f32 %v224_v42, 0.0  ;;  %v241_v51 = vmax.f32 %v225_v43, 0.0  ;;  %v73_v53 = vrot.slane %v38_v8, %v418_v45  ;;  %v169_v59 = vrot.slane %v384_v9, %v416_v44 }
   0xe   :  { %v338_v56 = vpack.c.bf16 %v239_v47, %v238_v46  ;;  %v242_v57 = vmax.f32 %v226_v48, 0.0  ;;  %v243_v58 = vmax.f32 %v227_v49, 0.0  ;;  %v128_v62 = vmul.f32 %v69_v52, %v28_v20  ;;  %v20_v20 = vld [vmem:[%s504_s0 + $0x30] sm:$0xff] }
   0xf   :  { %v339_v61 = vpack.c.bf16 %v241_v51, %v240_v50  ;;  %v129_v63 = vmul.f32 %v73_v53, %v29_v21  ;;  %v173_v0 = vrot.slane %v384_v9, %v418_v45  ;;  %v30_v3 = vunpack.c.l.bf16 %v18_v54 }
  0x10   :  { %318 = vst [vmem:[%s507_s3] sm:$0xff] %v338_v56  ;;  %v340_v2 = vpack.c.bf16 %v243_v58, %v242_v57  ;;  %v31_v4 = vunpack.c.h.bf16 %v18_v54  ;;  %v77_v5 = vrot.slane %v428_v55, %v386_v14  ;;  %v228_v6 = vadd.f32 %v169_v59, %v128_v62 }
  0x11   :  { %319 = vst [vmem:[%s507_s3 + $0x8] sm:$0xff] %v339_v61  ;;  %v229_v7 = vadd.f32 %v173_v0, %v129_v63  ;;  %v81_v8 = vrot.slane %v428_v55, %v388_v15  ;;  %v177_v9 = vrot.slane %v435_v60, %v386_v14  ;;  %v181_v11 = vrot.slane %v435_v60, %v388_v15 }
  0x12   :  { %320 = vst [vmem:[%s507_s3 + $0x10] sm:$0xff] %v340_v2  ;;  %v130_v10 = vmul.f32 %v77_v5, %v30_v3  ;;  %v32_v12 = vunpack.c.l.bf16 %v19_v1  ;;  %v33_v13 = vunpack.c.h.bf16 %v19_v1  ;;  %v244_v21 = vmax.f32 %v228_v6, 0.0 }
  0x13   :  { %v245_v22 = vmax.f32 %v229_v7, 0.0  ;;  %v131_v23 = vmul.f32 %v81_v8, %v31_v4  ;;  %v85_v14 = vrot.slane %v428_v55, %v390_v16  ;;  %v89_v25 = vrot.slane %v428_v55, %v392_v17 }
  0x14   :  { %v230_v24 = vadd.f32 %v177_v9, %v130_v10  ;;  %v185_v26 = vrot.slane %v435_v60, %v390_v16  ;;  %v189_v15 = vrot.slane %v435_v60, %v392_v17  ;;  %v34_v30 = vunpack.c.l.bf16 %v20_v20 }
  0x15   :  { %v341_v27 = vpack.c.bf16 %v245_v22, %v244_v21  ;;  %v231_v28 = vadd.f32 %v181_v11, %v131_v23  ;;  %v132_v29 = vmul.f32 %v85_v14, %v32_v12  ;;  %v133_v33 = vmul.f32 %v89_v25, %v33_v13 }
  0x16   :  { %v246_v32 = vmax.f32 %v230_v24, 0.0  ;;  %v35_v34 = vunpack.c.h.bf16 %v20_v20  ;;  %v93_v35 = vrot.slane %v428_v55, %v394_v18  ;;  %v97_v36 = vrot.slane %v428_v55, %v396_v19 }
  0x17   :  { %321 = vst [vmem:[%s507_s3 + $0x18] sm:$0xff] %v341_v27  ;;  %v247_v16 = vmax.f32 %v231_v28, 0.0  ;;  %v232_v17 = vadd.f32 %v185_v26, %v132_v29  ;;  %v193_v37 = vrot.slane %v435_v60, %v394_v18  ;;  %v233_v38 = vadd.f32 %v189_v15, %v133_v33 }
  0x18   :  { %v134_v39 = vmul.f32 %v93_v35, %v34_v30  ;;  %v197_v40 = vrot.slane %v435_v60, %v396_v19  ;;  %v36_v41 = vunpack.c.l.bf16 %v21_v31  ;;  %v135_v46 = vmul.f32 %v97_v36, %v35_v34 }
  0x19   :  { %v342_v42 = vpack.c.bf16 %v247_v16, %v246_v32  ;;  %v248_v43 = vmax.f32 %v232_v17, 0.0  ;;  %v37_v47 = vunpack.c.h.bf16 %v21_v31  ;;  %v249_v48 = vmax.f32 %v233_v38, 0.0 }
  0x1a   :  { %v234_v49 = vadd.f32 %v193_v37, %v134_v39  ;;  %v101_v50 = vrot.slane %v428_v55, %v416_v44  ;;  %v105_v51 = vrot.slane %v428_v55, %v418_v45  ;;  %v235_v18 = vadd.f32 %v197_v40, %v135_v46 }
  0x1b   :  { %322 = vst [vmem:[%s507_s3 + $0x20] sm:$0xff] %v342_v42  ;;  %v201_v19 = vrot.slane %v435_v60, %v416_v44  ;;  %v205_v52 = vrot.slane %v435_v60, %v418_v45  ;;  %v343_v53 = vpack.c.bf16 %v249_v48, %v248_v43 }
  0x1c   :  { %v250_v54 = vmax.f32 %v234_v49, 0.0  ;;  %v136_v56 = vmul.f32 %v101_v50, %v36_v41  ;;  %v137_v57 = vmul.f32 %v105_v51, %v37_v47  ;;  %v251_v58 = vmax.f32 %v235_v18, 0.0 }
  0x1d   :  { %323 = vst [vmem:[%s507_s3 + $0x28] sm:$0xff] %v343_v53 }
  0x1e   :  { %v236_v55 = vadd.f32 %v201_v19, %v136_v56  ;;  %v237_v59 = vadd.f32 %v205_v52, %v137_v57  ;;  %v344_v61 = vpack.c.bf16 %v251_v58, %v250_v54 }
  0x20   :  { %v252_v62 = vmax.f32 %v236_v55, 0.0  ;;  %v253_v63 = vmax.f32 %v237_v59, 0.0  ;;  %324 = vst [vmem:[%s507_s3 + $0x30] sm:$0xff] %v344_v61 }
  0x22   :  { %v345_v44 = vpack.c.bf16 %v253_v63, %v252_v62 }
  0x24   :  { %325 = vst [vmem:[%s507_s3 + $0x38] sm:$0xff] %v345_v44 }

// kernel: generator_forward.9
= control target key start
LH: loop header
LB: loop body
LE: loop exit
PB: predicated region body
PF: predicated region fallthrough
CT: control target
= control target key end

     0   :  { %v1177_v3 = vmov 0   ;;  %vm227_vm0 = vcmask 261120   ;;  %s1585_s1 = inlined_call_operand.vmem [shape: bf16[32,2048], index: 1, kind: input, shape index: {}]   ;;  %s1586_s0 = inlined_call_operand.vmem [shape: bf16[8,32], index: 0, kind: input, shape index: {}]   ;;  %s1587_s3 = inlined_call_operand.vmem [shape: f32[8,2048], index: 3, kind: output, shape index: {1}]   ;;  %s1588_s2 = inlined_call_operand.vmem [shape: bf16[8,2048], index: 2, kind: output, shape index: {0}]  }
   0x1   :  { %v51_v0 = vld [vmem:[%s1585_s1 + $0x80] sm:$0xff]  ;;  %v52_v2 = vld [vmem:[%s1585_s1 + $0x88] sm:$0xff]  ;;  %263 = vmatprep.mubr.bf16.mxu0 %v1177_v3  ;;  %304 = vmatprep.mubr.bf16.mxu1 %v1177_v3  ;;  %v53_v15 = vld [vmem:[%s1585_s1 + $0x90] sm:$0xff] }
   0x2   :  { %v59_v1 = vld [vmem:[%s1585_s1 + $0xc0] sm:$0xff]  ;;  %v60_v5 = vld [vmem:[%s1585_s1 + $0xc8] sm:$0xff]  ;;  %v61_v16 = vld [vmem:[%s1585_s1 + $0xd0] sm:$0xff] }
   0x3   :  { %v1123_v4 = vcombine.high %v51_v0, %v59_v1  ;;  %v1122_v6 = vcombine.low %v51_v0, %v59_v1  ;;  %v35_v7 = vld [vmem:[%s1585_s1] sm:$0xff]  ;;  %v1125_v9 = vcombine.high %v52_v2, %v60_v5  ;;  %v1124_v10 = vcombine.low %v52_v2, %v60_v5  ;;  %v36_v12 = vld [vmem:[%s1585_s1 + $0x8] sm:$0xff]  ;;  %v54_v17 = vld [vmem:[%s1585_s1 + $0x98] sm:$0xff] }
   0x4   :  { %v43_v8 = vld [vmem:[%s1585_s1 + $0x40] sm:$0xff]  ;;  %v44_v13 = vld [vmem:[%s1585_s1 + $0x48] sm:$0xff]  ;;  %v62_v19 = vld [vmem:[%s1585_s1 + $0xd8] sm:$0xff]  ;;  %v1127_v21 = vcombine.high %v53_v15, %v61_v16  ;;  %v1126_v28 = vcombine.low %v53_v15, %v61_v16  ;;  %v1178_v2 = vmov 0.0  }
   0x5   :  { %v1107_v11 = vcombine.high %v35_v7, %v43_v8  ;;  %243 = vmatprep.subr.bf16.mxu0 %v1123_v4  ;;  %v1109_v14 = vcombine.high %v36_v12, %v44_v13  ;;  %284 = vmatprep.subr.bf16.mxu1 %v1125_v9  ;;  %v1106_v18 = vcombine.low %v35_v7, %v43_v8  ;;  %v37_v23 = vld [vmem:[%s1585_s1 + $0x10] sm:$0xff]  ;;  %v38_v25 = vld [vmem:[%s1585_s1 + $0x18] sm:$0xff]  ;;  %v1253_v27 = vld [vmem:[%s1586_s0] sm:$0xf] }
   0x6   :  { %244 = vmatpush1.bf16.msra.mxu0 %v1122_v6  ;;  %285 = vmatpush1.bf16.msra.mxu1 %v1124_v10  ;;  %v1108_v20 = vcombine.low %v36_v12, %v44_v13  ;;  %v1129_v22 = vcombine.high %v54_v17, %v62_v19  ;;  %v45_v24 = vld [vmem:[%s1585_s1 + $0x50] sm:$0xff]  ;;  %v46_v26 = vld [vmem:[%s1585_s1 + $0x58] sm:$0xff]  ;;  %v1128_v29 = vcombine.low %v54_v17, %v62_v19  ;;  %v55_v32 = vld [vmem:[%s1585_s1 + $0xa0] sm:$0xff] }
   0x7   :  { %245 = vmatprep.subr.bf16.mxu0 %v1107_v11  ;;  %286 = vmatprep.subr.bf16.mxu1 %v1109_v14  ;;  %v1111_v30 = vcombine.high %v37_v23, %v45_v24  ;;  %v1113_v31 = vcombine.high %v38_v25, %v46_v26  ;;  %v63_v33 = vld [vmem:[%s1585_s1 + $0xe0] sm:$0xff]  ;;  %v56_v34 = vld [vmem:[%s1585_s1 + $0xa8] sm:$0xff]  ;;  %v1110_v36 = vcombine.low %v37_v23, %v45_v24  ;;  %v57_v48 = vld [vmem:[%s1585_s1 + $0xb0] sm:$0xff] }
   0x8   :  { %v64_v35 = vld [vmem:[%s1585_s1 + $0xe8] sm:$0xff]  ;;  %v1112_v37 = vcombine.low %v38_v25, %v46_v26  ;;  %v1131_v38 = vcombine.high %v55_v32, %v63_v33  ;;  %v39_v40 = vld [vmem:[%s1585_s1 + $0x20] sm:$0xff]  ;;  %v1130_v44 = vcombine.low %v55_v32, %v63_v33  ;;  %v65_v49 = vld [vmem:[%s1585_s1 + $0xf0] sm:$0xff]  ;;  %18 = vst [vmem:[%s1587_s3] sm:$0xff] %v1178_v2 }
   0x9   :  { %v1133_v39 = vcombine.high %v56_v34, %v64_v35  ;;  %v47_v41 = vld [vmem:[%s1585_s1 + $0x60] sm:$0xff]  ;;  %v40_v42 = vld [vmem:[%s1585_s1 + $0x28] sm:$0xff]  ;;  %v1132_v45 = vcombine.low %v56_v34, %v64_v35  ;;  %v58_v50 = vld [vmem:[%s1585_s1 + $0xb8] sm:$0xff]  ;;  %v1135_v54 = vcombine.high %v57_v48, %v65_v49  ;;  %v1134_v60 = vcombine.low %v57_v48, %v65_v49  ;;  %19 = vst [vmem:[%s1587_s3 + $0x8] sm:$0xff] %v1178_v2 }
   0xa   :  { %246 = vmatpush1.bf16.msra.mxu0 %v1106_v18  ;;  %287 = vmatpush1.bf16.msra.mxu1 %v1108_v20  ;;  %v48_v43 = vld [vmem:[%s1585_s1 + $0x68] sm:$0xff]  ;;  %v1115_v46 = vcombine.high %v39_v40, %v47_v41  ;;  %v66_v51 = vld [vmem:[%s1585_s1 + $0xf8] sm:$0xff]  ;;  %v1114_v52 = vcombine.low %v39_v40, %v47_v41  ;;  %v41_v56 = vld [vmem:[%s1585_s1 + $0x30] sm:$0xff]  ;;  %20 = vst [vmem:[%s1587_s3 + $0x10] sm:$0xff] %v1178_v2 }
   0xb   :  { %325 = vmatprep.subr.bf16.mxu0 %v1127_v21  ;;  %366 = vmatprep.subr.bf16.mxu1 %v1129_v22  ;;  %v1117_v47 = vcombine.high %v40_v42, %v48_v43  ;;  %v1116_v53 = vcombine.low %v40_v42, %v48_v43  ;;  %v1137_v55 = vcombine.high %v58_v50, %v66_v51  ;;  %v49_v57 = vld [vmem:[%s1585_s1 + $0x70] sm:$0xff]  ;;  %v42_v58 = vld [vmem:[%s1585_s1 + $0x38] sm:$0xff] }
   0xc   :  { %v50_v59 = vld [vmem:[%s1585_s1 + $0x78] sm:$0xff]  ;;  %v1136_v61 = vcombine.low %v58_v50, %v66_v51  ;;  %v1119_v62 = vcombine.high %v41_v56, %v49_v57  ;;  %v1118_v0 = vcombine.low %v41_v56, %v49_v57  ;;  %21 = vst [vmem:[%s1587_s3 + $0x18] sm:$0xff] %v1178_v2  ;;  %22 = vst [vmem:[%s1587_s3 + $0x20] sm:$0xff] %v1178_v2 }
   0xd   :  { %1138 = vmatmul.mubr.msk.bf16.vlgmr.msra.gmra.mxu0 %vm227_vm0, %v1253_v27  ;;  %1139 = vmatmul.mubr.msk.bf16.vlgmr.msra.gmra.mxu1 %vm227_vm0, %v1253_v27  ;;  %v1121_v63 = vcombine.high %v42_v58, %v50_v59  ;;  %v1120_v1 = vcombine.low %v42_v58, %v50_v59  ;;  %23 = vst [vmem:[%s1587_s3 + $0x28] sm:$0xff] %v1178_v2  ;;  %24 = vst [vmem:[%s1587_s3 + $0x30] sm:$0xff] %v1178_v2 }
   0xe   :  { %326 = vmatpush1.bf16.msra.mxu0 %v1126_v28  ;;  %367 = vmatpush1.bf16.msra.mxu1 %v1128_v29  ;;  %25 = vst [vmem:[%s1587_s3 + $0x38] sm:$0xff] %v1178_v2  ;;  %26 = vst [vmem:[%s1587_s3 + $0x40] sm:$0xff] %v1178_v2 }
   0xf   :  { %327 = vmatprep.subr.bf16.mxu0 %v1111_v30  ;;  %368 = vmatprep.subr.bf16.mxu1 %v1113_v31  ;;  %27 = vst [vmem:[%s1587_s3 + $0x48] sm:$0xff] %v1178_v2  ;;  %28 = vst [vmem:[%s1587_s3 + $0x50] sm:$0xff] %v1178_v2 }
  0x10   :  { %345 = vmatprep.mubr.bf16.mxu0 %v1177_v3  ;;  %386 = vmatprep.mubr.bf16.mxu1 %v1177_v3  ;;  %29 = vst [vmem:[%s1587_s3 + $0x58] sm:$0xff] %v1178_v2  ;;  %30 = vst [vmem:[%s1587_s3 + $0x60] sm:$0xff] %v1178_v2 }
  0x11   :  { %31 = vst [vmem:[%s1587_s3 + $0x68] sm:$0xff] %v1178_v2  ;;  %32 = vst [vmem:[%s1587_s3 + $0x70] sm:$0xff] %v1178_v2 }
  0x12   :  { %328 = vmatpush1.bf16.msra.mxu0 %v1110_v36  ;;  %369 = vmatpush1.bf16.msra.mxu1 %v1112_v37  ;;  %33 = vst [vmem:[%s1587_s3 + $0x78] sm:$0xff] %v1178_v2  ;;  %v1179_v36 = vmov 1966171168  }
  0x13   :  { %407 = vmatprep.subr.bf16.mxu0 %v1131_v38  ;;  %448 = vmatprep.subr.bf16.mxu1 %v1133_v39  ;;  %v755_v37 = vunpack.c.l.s4 %v1179_v36  ;;  %v757_v38 = vlaneseq }
  0x15   :  { %1140 = vmatmul.mubr.msk.bf16.vlgmr.msra.gmra.mxu0 %vm227_vm0, %v1253_v27  ;;  %1141 = vmatmul.mubr.msk.bf16.vlgmr.msra.gmra.mxu1 %vm227_vm0, %v1253_v27 }
  0x16   :  { %408 = vmatpush1.bf16.msra.mxu0 %v1130_v44  ;;  %449 = vmatpush1.bf16.msra.mxu1 %v1132_v45 }
  0x17   :  { %409 = vmatprep.subr.bf16.mxu0 %v1115_v46  ;;  %450 = vmatprep.subr.bf16.mxu1 %v1117_v47 }
  0x18   :  { %427 = vmatprep.mubr.bf16.mxu0 %v1177_v3  ;;  %468 = vmatprep.mubr.bf16.mxu1 %v1177_v3 }
  0x1a   :  { %410 = vmatpush1.bf16.msra.mxu0 %v1114_v52  ;;  %451 = vmatpush1.bf16.msra.mxu1 %v1116_v53  ;;  %v756_v53 = vunpack.c.0.s8 %v755_v37 }
  0x1b   :  { %489 = vmatprep.subr.bf16.mxu0 %v1135_v54  ;;  %530 = vmatprep.subr.bf16.mxu1 %v1137_v55  ;;  %v758_v54 = vshrl.u32 %v757_v38, 7 }
  0x1d   :  { %1142 = vmatmul.mubr.msk.bf16.vlgmr.msra.gmra.mxu0 %vm227_vm0, %v1253_v27  ;;  %1143 = vmatmul.mubr.msk.bf16.vlgmr.msra.gmra.mxu1 %vm227_vm0, %v1253_v27 }
  0x1e   :  { %490 = vmatpush1.bf16.msra.mxu0 %v1134_v60  ;;  %531 = vmatpush1.bf16.msra.mxu1 %v1136_v61  ;;  %v1393_v61 = vld [vmem:[%s1587_s3] ss:$8 sm:$0xf] }
  0x1f   :  { %491 = vmatprep.subr.bf16.mxu0 %v1119_v62  ;;  %532 = vmatprep.subr.bf16.mxu1 %v1121_v63 }
  0x20   :  { %509 = vmatprep.mubr.bf16.mxu0 %v1177_v3  ;;  %550 = vmatprep.mubr.bf16.mxu1 %v1177_v3 }
  0x22   :  { %492 = vmatpush1.bf16.msra.mxu0 %v1118_v0  ;;  %533 = vmatpush1.bf16.msra.mxu1 %v1120_v1 }
  0x25   :  { %1144 = vmatmul.mubr.msk.bf16.vlgmr.msra.gmra.mxu0 %vm227_vm0, %v1253_v27  ;;  %1145 = vmatmul.mubr.msk.bf16.vlgmr.msra.gmra.mxu1 %vm227_vm0, %v1253_v27 }
  0xcd   :  { %v265_v3 = vpop.f32.mrf.mxu0  ;;  %v306_v6 = vpop.f32.mrf.mxu1 }
  0xce   :  { %v638_v4 = vrot.slane %v265_v3, 4  ;;  %v864_v5 = vmul.f32 %v265_v3, %v265_v3  ;;  %v650_v7 = vrot.slane %v306_v6, 4  ;;  %v866_v8 = vmul.f32 %v306_v6, %v306_v6 }
  0xcf   :  { %v267_v9 = vpop.f32.mrf.mxu0  ;;  %v308_v14 = vpop.f32.mrf.mxu1 }
  0xd0   :  { %v639_v10 = vadd.f32 %v638_v4, %v265_v3  ;;  %v880_v11 = vrot.slane %v864_v5, 4  ;;  %v1166_v12 = vpack.c.bf16 %v267_v9, %v265_v3  ;;  %v644_v13 = vrot.slane %v267_v9, 4  ;;  %v1400_v3 = vld [vmem:[%s1587_s3] ss:$8 sm:$0xf0] }
  0xd1   :  { %v892_v15 = vrot.slane %v866_v8, 4  ;;  %v865_v16 = vmul.f32 %v267_v9, %v267_v9  ;;  %v1167_v17 = vpack.c.bf16 %v308_v14, %v306_v6  ;;  %v269_v18 = vpop.f32.mrf.mxu0  ;;  %v651_v19 = vadd.f32 %v650_v7, %v306_v6  ;;  %v310_v22 = vpop.f32.mrf.mxu1 }
  0xd2   :  { %623 = vst [vmem:[%s1588_s2] sm:$0xff] %v1166_v12  ;;  %v645_v20 = vadd.f32 %v644_v13, %v267_v9  ;;  %v656_v21 = vrot.slane %v308_v14, 4  ;;  %v640_v23 = vrot.slane %v639_v10, 2  ;;  %v867_v25 = vmul.f32 %v308_v14, %v308_v14 }
  0xd3   :  { %v886_v24 = vrot.slane %v865_v16, 4  ;;  %624 = vst [vmem:[%s1588_s2 + $0x8] sm:$0xff] %v1167_v17  ;;  %v270_v26 = vpop.f32.mrf.mxu0  ;;  %v881_v27 = vadd.f32 %v880_v11, %v864_v5  ;;  %v893_v28 = vadd.f32 %v892_v15, %v866_v8  ;;  %v311_v31 = vpop.f32.mrf.mxu1  ;;  %v652_v35 = vrot.slane %v651_v19, 2 }
  0xd4   :  { %v646_v29 = vrot.slane %v645_v20, 2  ;;  %v657_v30 = vadd.f32 %v656_v21, %v308_v14  ;;  %v898_v33 = vrot.slane %v867_v25, 4  ;;  %v641_v41 = vadd.f32 %v640_v23, %v639_v10  ;;  %v1412_v14 = vld [vmem:[%s1587_s3 + $0x1] ss:$8 sm:$0xf] }
  0xd5   :  { %v887_v32 = vadd.f32 %v886_v24, %v865_v16  ;;  %v1379_v34 = vpop.f32.mrf.mxu0  ;;  %v1381_v40 = vpop.f32.mrf.mxu1  ;;  %v882_v46 = vrot.slane %v881_v27, 2  ;;  %v894_v47 = vrot.slane %v893_v28, 2  ;;  %v653_v52 = vadd.f32 %v652_v35, %v651_v19 }
  0xd6   :  { %v658_v39 = vrot.slane %v657_v30, 2  ;;  %v647_v42 = vadd.f32 %v646_v29, %v645_v20  ;;  %v899_v44 = vadd.f32 %v898_v33, %v867_v25  ;;  %v662_v55 = vrot.slane %v1379_v34, 4  ;;  %v1421_v20 = vld [vmem:[%s1587_s3 + $0x1] ss:$8 sm:$0xf0] }
  0xd7   :  { %v888_v43 = vrot.slane %v887_v32, 2  ;;  %v1383_v45 = vpop.f32.mrf.mxu0  ;;  %v1385_v48 = vpop.f32.mrf.mxu1  ;;  %v642_v57 = vrot.slane %v641_v41, 1  ;;  %v868_v60 = vmul.f32 %v1379_v34, %v1379_v34  ;;  %v883_v63 = vadd.f32 %v882_v46, %v881_v27 }
  0xd8   :  { %v659_v49 = vadd.f32 %v658_v39, %v657_v30  ;;  %v900_v50 = vrot.slane %v899_v44, 2  ;;  %v648_v58 = vrot.slane %v647_v42, 1  ;;  %v895_v0 = vadd.f32 %v894_v47, %v893_v28 }
  0xd9   :  { %v351_v51 = vpop.f32.mrf.mxu0  ;;  %v392_v56 = vpop.f32.mrf.mxu1  ;;  %v889_v59 = vadd.f32 %v888_v43, %v887_v32  ;;  %v663_v1 = vadd.f32 %v662_v55, %v1379_v34  ;;  %v674_v2 = vrot.slane %v1381_v40, 4  ;;  %v904_v7 = vrot.slane %v868_v60, 4 }
  0xda   :  { %v660_v5 = vrot.slane %v659_v49, 1  ;;  %v901_v6 = vadd.f32 %v900_v50, %v899_v44  ;;  %v870_v8 = vmul.f32 %v1381_v40, %v1381_v40  ;;  %v654_v10 = vrot.slane %v653_v52, 1 }
  0xdb   :  { %v352_v62 = vpop.f32.mrf.mxu0  ;;  %v393_v4 = vpop.f32.mrf.mxu1  ;;  %v1406_v11 = vsub.s32 %v756_v53, %v758_v54  ;;  %v664_v12 = vrot.slane %v663_v1, 2  ;;  %v675_v13 = vadd.f32 %v674_v2, %v1381_v40  ;;  %v649_v16 = vadd.f32 %v648_v58, %v647_v42 }
  0xdc   :  { %v890_v17 = vrot.slane %v889_v59, 1  ;;  %v916_v18 = vrot.slane %v870_v8, 4  ;;  %v633_v19 = vor.u32 %v1400_v3, %v1393_v61  ;;  %v884_v22 = vrot.slane %v883_v63, 1 }
  0xdd   :  { %v1404_v9 = vpop.f32.mrf.mxu0  ;;  %v1414_v15 = vpop.f32.mrf.mxu1  ;;  %v896_v23 = vrot.slane %v895_v0, 1  ;;  %v905_v24 = vadd.f32 %v904_v7, %v868_v60  ;;  %v1168_v25 = vpack.c.bf16 %v1383_v45, %v1379_v34  ;;  %v643_v27 = vadd.f32 %v642_v57, %v641_v41 }
  0xde   :  { %v661_v28 = vadd.f32 %v660_v5, %v659_v49  ;;  %v902_v29 = vrot.slane %v901_v6, 1  ;;  %v665_v30 = vadd.f32 %v664_v12, %v663_v1  ;;  %v655_v32 = vadd.f32 %v654_v10, %v653_v52 }
  0xdf   :  { %v1423_v21 = vpop.f32.mrf.mxu0  ;;  %v1427_v26 = vpop.f32.mrf.mxu1  ;;  %v676_v33 = vrot.slane %v675_v13, 2  ;;  %625 = vst [vmem:[%s1588_s2 + $0x10] sm:$0xff] %v1168_v25  ;;  %v668_v35 = vrot.slane %v1383_v45, 4  ;;  %v859_v36 = vor.u32 %v1421_v20, %v1412_v14  ;;  %v750_v34 = vcombine.low %v643_v27, %v649_v16 }
  0xe0   :  { %v891_v38 = vadd.f32 %v890_v17, %v889_v59  ;;  %v917_v39 = vadd.f32 %v916_v18, %v870_v8  ;;  %v869_v41 = vmul.f32 %v1383_v45, %v1383_v45  ;;  %v885_v43 = vadd.f32 %v884_v22, %v883_v63 }
  0xe1   :  { %v433_v31 = vpop.f32.mrf.mxu0  ;;  %v474_v37 = vpop.f32.mrf.mxu1  ;;  %v897_v44 = vadd.f32 %v896_v23, %v895_v0  ;;  %v906_v46 = vrot.slane %v905_v24, 2  ;;  %v669_v47 = vadd.f32 %v668_v35, %v1383_v45  ;;  %v751_v50 = vcombine.low %v655_v32, %v661_v28 }
  0xe2   :  { %v903_v51 = vadd.f32 %v902_v29, %v901_v6  ;;  %v666_v52 = vrot.slane %v665_v30, 1  ;;  %v910_v53 = vrot.slane %v869_v41, 4  ;;  %v677_v55 = vadd.f32 %v676_v33, %v675_v13 }
  0xe3   :  { %v434_v42 = vpop.f32.mrf.mxu0  ;;  %v475_v49 = vpop.f32.mrf.mxu1  ;;  %v670_v56 = vrot.slane %v669_v47, 2  ;;  %v1169_v57 = vpack.c.bf16 %v1385_v48, %v1381_v40  ;;  %v680_v58 = vrot.slane %v1385_v48, 4  ;;  %v1446_v60 = vrot.slane %v750_v34, %v1406_v11 }
  0xe4   :  { %v992_v45 = vcombine.low %v885_v43, %v891_v38  ;;  %v918_v62 = vrot.slane %v917_v39, 2  ;;  %v911_v63 = vadd.f32 %v910_v53, %v869_v41  ;;  %v907_v1 = vadd.f32 %v906_v46, %v905_v24 }
  0xe5   :  { %v1438_v54 = vpop.f32.mrf.mxu0  ;;  %v1443_v59 = vpop.f32.mrf.mxu1  ;;  %v671_v2 = vadd.f32 %v670_v56, %v669_v47  ;;  %626 = vst [vmem:[%s1588_s2 + $0x18] sm:$0xff] %v1169_v57  ;;  %v681_v40 = vadd.f32 %v680_v58, %v1385_v48  ;;  %v871_v4 = vmul.f32 %v1385_v48, %v1385_v48  ;;  %v1459_v6 = vrot.slane %v751_v50, %v1406_v11 }
  0xe6   :  { %v993_v7 = vcombine.low %v897_v44, %v903_v51  ;;  %v667_v8 = vadd.f32 %v666_v52, %v665_v30  ;;  %v912_v10 = vrot.slane %v911_v63, 2  ;;  %v678_v13 = vrot.slane %v677_v55, 1 }
  0xe7   :  { %v1448_v0 = vpop.f32.mrf.mxu0  ;;  %v1456_v5 = vpop.f32.mrf.mxu1  ;;  %v672_v16 = vrot.slane %v671_v2, 1  ;;  %v682_v17 = vrot.slane %v681_v40, 2  ;;  %v922_v18 = vrot.slane %v871_v4, 4  ;;  %v919_v23 = vadd.f32 %v918_v62, %v917_v39 }
  0xe8   :  { %v913_v24 = vadd.f32 %v912_v10, %v911_v63  ;;  %v872_v25 = vmul.f32 %v1404_v9, %v1404_v9  ;;  %v874_v48 = vmul.f32 %v1414_v15, %v1414_v15  ;;  %v908_v28 = vrot.slane %v907_v1, 1 }
  0xe9   :  { %v515_v12 = vpop.f32.mrf.mxu0  ;;  %v556_v22 = vpop.f32.mrf.mxu1  ;;  %v673_v29 = vadd.f32 %v672_v16, %v671_v2  ;;  %v683_v31 = vadd.f32 %v682_v17, %v681_v40  ;;  %v923_v30 = vadd.f32 %v922_v18, %v871_v4  ;;  %v1002_v33 = vrot.slane %v992_v45, %v1406_v11 }
  0xea   :  { %v914_v35 = vrot.slane %v913_v24, 1  ;;  %v686_v37 = vrot.slane %v1404_v9, 4  ;;  %v698_v34 = vrot.slane %v1414_v15, 4  ;;  %v1009_v38 = vrot.slane %v993_v7, %v1406_v11 }
  0xeb   :  { %v516_v27 = vpop.f32.mrf.mxu0  ;;  %v557_v32 = vpop.f32.mrf.mxu1  ;;  %v752_v39 = vcombine.low %v667_v8, %v673_v29  ;;  %v684_v41 = vrot.slane %v683_v31, 1  ;;  %v924_v42 = vrot.slane %v923_v30, 2  ;;  %v920_v43 = vrot.slane %v919_v23, 1 }
  0xec   :  { %v915_v44 = vadd.f32 %v914_v35, %v913_v24  ;;  %v928_v46 = vrot.slane %v872_v25, 4  ;;  %v940_v47 = vrot.slane %v874_v48, 4  ;;  %v909_v49 = vadd.f32 %v908_v28, %v907_v1 }
  0xed   :  { %v679_v50 = vadd.f32 %v678_v13, %v677_v55  ;;  %v685_v51 = vadd.f32 %v684_v41, %v683_v31  ;;  %v925_v52 = vadd.f32 %v924_v42, %v923_v30  ;;  %v782_v53 = vcombine.low %v1446_v60, %v1459_v6 }
  0xee   :  { %v774_v56 = vrot.slane %v752_v39, %v1406_v11  ;;  %v687_v57 = vadd.f32 %v686_v37, %v1404_v9  ;;  %v699_v58 = vadd.f32 %v698_v34, %v1414_v15  ;;  %v994_v45 = vcombine.low %v909_v49, %v915_v44 }
  0xef   :  { %v753_v62 = vcombine.low %v679_v50, %v685_v51  ;;  %v926_v63 = vrot.slane %v925_v52, 1  ;;  %v1170_v2 = vpack.c.bf16 %v1423_v21, %v1404_v9  ;;  %v1024_v40 = vcombine.low %v1002_v33, %v1009_v38 }
  0xf0   :  { %v921_v1 = vadd.f32 %v920_v43, %v919_v23  ;;  %v929_v55 = vadd.f32 %v928_v46, %v872_v25  ;;  %v941_v4 = vadd.f32 %v940_v47, %v874_v48  ;;  %v692_v60 = vrot.slane %v1423_v21, 4 }
  0xf1   :  { %v781_v7 = vrot.slane %v753_v62, %v1406_v11  ;;  %v927_v8 = vadd.f32 %v926_v63, %v925_v52  ;;  %627 = vst [vmem:[%s1588_s2 + $0x20] sm:$0xff] %v1170_v2  ;;  %v873_v6 = vmul.f32 %v1423_v21, %v1423_v21  ;;  %v688_v10 = vrot.slane %v687_v57, 2 }
  0xf2   :  { %v700_v12 = vrot.slane %v699_v58, 2  ;;  %v1171_v9 = vpack.c.bf16 %v1427_v26, %v1414_v15  ;;  %v704_v13 = vrot.slane %v1427_v26, 4  ;;  %v1016_v16 = vrot.slane %v994_v45, %v1406_v11 }
  0xf3   :  { %v783_v17 = vcombine.low %v774_v56, %v781_v7  ;;  %v995_v18 = vcombine.low %v921_v1, %v927_v8  ;;  %v693_v22 = vadd.f32 %v692_v60, %v1423_v21  ;;  %v930_v23 = vrot.slane %v929_v55, 2 }
  0xf4   :  { %v934_v24 = vrot.slane %v873_v6, 4  ;;  %628 = vst [vmem:[%s1588_s2 + $0x28] sm:$0xff] %v1171_v9  ;;  %v705_v25 = vadd.f32 %v704_v13, %v1427_v26  ;;  %v875_v48 = vmul.f32 %v1427_v26, %v1427_v26  ;;  %v790_v15 = vrot.slane %v782_v53, %v1406_v11 }
  0xf5   :  { %v797_v27 = vrot.slane %v783_v17, %v1406_v11  ;;  %v1023_v28 = vrot.slane %v995_v18, %v1406_v11  ;;  %v942_v29 = vrot.slane %v941_v4, 2  ;;  %v689_v31 = vadd.f32 %v688_v10, %v687_v57 }
  0xf6   :  { %v946_v21 = vrot.slane %v875_v48, 4  ;;  %v710_v30 = vrot.slane %v1438_v54, 4  ;;  %v876_v32 = vmul.f32 %v1438_v54, %v1438_v54  ;;  %v701_v37 = vadd.f32 %v700_v12, %v699_v58 }
  0xf7   :  { %v798_v33 = vcombine.low %v790_v15, %v797_v27  ;;  %v1025_v35 = vcombine.low %v1016_v16, %v1023_v28  ;;  %v694_v34 = vrot.slane %v693_v22, 2  ;;  %v1032_v26 = vrot.slane %v1024_v40, %v1406_v11 }
  0xf8   :  { %v931_v38 = vadd.f32 %v930_v23, %v929_v55  ;;  %v935_v39 = vadd.f32 %v934_v24, %v873_v6  ;;  %v706_v41 = vrot.slane %v705_v25, 2  ;;  %v943_v44 = vadd.f32 %v942_v29, %v941_v4 }
  0xf9   :  { %v850_v42 = vadd.f32 %v798_v33, %v633_v19  ;;  %v1039_v43 = vrot.slane %v1025_v35, %v1406_v11  ;;  %v947_v46 = vadd.f32 %v946_v21, %v875_v48  ;;  %v690_v47 = vrot.slane %v689_v31, 1 }
  0xfa   :  { %v711_v49 = vadd.f32 %v710_v30, %v1438_v54  ;;  %v952_v50 = vrot.slane %v876_v32, 4  ;;  %v702_v52 = vrot.slane %v701_v37, 1  ;;  %v695_v61 = vadd.f32 %v694_v34, %v693_v22 }
  0xfb   :  { %852 = vst [vmem:[%s1587_s3] ss:$8 sm:$0xf] %v850_v42  ;;  %853 = vst [vmem:[%s1587_s3] ss:$8 sm:$0xf0] %v850_v42  ;;  %v1040_v51 = vcombine.low %v1032_v26, %v1039_v43  ;;  %v722_v3 = vrot.slane %v1443_v59, 4  ;;  %v932_v19 = vrot.slane %v931_v38, 1  ;;  %v707_v56 = vadd.f32 %v706_v41, %v705_v25 }
  0xfc   :  { %v936_v53 = vrot.slane %v935_v39, 2  ;;  %v944_v58 = vrot.slane %v943_v44, 1  ;;  %v948_v45 = vrot.slane %v947_v46, 2  ;;  %v712_v62 = vrot.slane %v711_v49, 2 }
  0xfd   :  { %v1092_v57 = vadd.f32 %v1040_v51, %v859_v36  ;;  %v953_v63 = vadd.f32 %v952_v50, %v876_v32  ;;  %v723_v2 = vadd.f32 %v722_v3, %v1443_v59  ;;  %v691_v40 = vadd.f32 %v690_v47, %v689_v31 }
  0xfe   :  { %v703_v1 = vadd.f32 %v702_v52, %v701_v37  ;;  %v696_v55 = vrot.slane %v695_v61, 1  ;;  %v878_v14 = vmul.f32 %v1443_v59, %v1443_v59  ;;  %v1525_v20 = vadd.f32 %v932_v19, %v931_v38 }
  0xff   :  { %1162 = vst [vmem:[%s1587_s3 + $0x1] ss:$8 sm:$0xf] %v1092_v57  ;;  %1163 = vst [vmem:[%s1587_s3 + $0x1] ss:$8 sm:$0xf0] %v1092_v57  ;;  %v937_v36 = vadd.f32 %v936_v53, %v935_v39  ;;  %v1172_v7 = vpack.c.bf16 %v1448_v0, %v1438_v54  ;;  %v1529_v8 = vadd.f32 %v944_v58, %v943_v44 }
 0x100   :  { %v708_v4 = vrot.slane %v707_v56, 1  ;;  %v949_v60 = vadd.f32 %v948_v45, %v947_v46  ;;  %v964_v6 = vrot.slane %v878_v14, 4  ;;  %v716_v10 = vrot.slane %v1448_v0, 4 }
 0x101   :  { %v713_v12 = vadd.f32 %v712_v62, %v711_v49  ;;  %v954_v9 = vrot.slane %v953_v63, 2  ;;  %v724_v13 = vrot.slane %v723_v2, 2  ;;  %629 = vst [vmem:[%s1588_s2 + $0x30] sm:$0xff] %v1172_v7  ;;  %v877_v16 = vmul.f32 %v1448_v0, %v1448_v0 }
 0x102   :  { %v697_v17 = vadd.f32 %v696_v55, %v695_v61  ;;  %v965_v18 = vadd.f32 %v964_v6, %v878_v14  ;;  %v717_v54 = vadd.f32 %v716_v10, %v1448_v0  ;;  %v1173_v22 = vpack.c.bf16 %v1456_v5, %v1443_v59 }
 0x103   :  { %v938_v23 = vrot.slane %v937_v36, 1  ;;  %v709_v24 = vadd.f32 %v708_v4, %v707_v56  ;;  %v958_v25 = vrot.slane %v877_v16, 4  ;;  %v728_v48 = vrot.slane %v1456_v5, 4 }
 0x104   :  { %v950_v15 = vrot.slane %v949_v60, 1  ;;  %v966_v27 = vrot.slane %v965_v18, 2  ;;  %v718_v28 = vrot.slane %v717_v54, 2  ;;  %630 = vst [vmem:[%s1588_s2 + $0x38] sm:$0xff] %v1173_v22  ;;  %v879_v29 = vmul.f32 %v1456_v5, %v1456_v5 }
 0x105   :  { %v955_v31 = vadd.f32 %v954_v9, %v953_v63  ;;  %v725_v0 = vadd.f32 %v724_v13, %v723_v2  ;;  %v959_v21 = vadd.f32 %v958_v25, %v877_v16  ;;  %v729_v59 = vadd.f32 %v728_v48, %v1456_v5  ;;  %v1155_v9 = vld [vmem:[%s1587_s3 + $0x40] ss:$8 sm:$0xf0]  ;;  %v1161_v25 = vld [vmem:[%s1587_s3 + $0x41] ss:$8 sm:$0xf0] }
 0x106   :  { %v799_v30 = vcombine.low %v691_v40, %v697_v17  ;;  %v714_v32 = vrot.slane %v713_v12, 1  ;;  %v719_v33 = vadd.f32 %v718_v28, %v717_v54  ;;  %v970_v35 = vrot.slane %v879_v29, 4 }
 0x107   :  { %v939_v37 = vadd.f32 %v938_v23, %v937_v36  ;;  %v800_v34 = vcombine.low %v703_v1, %v709_v24  ;;  %v960_v26 = vrot.slane %v959_v21, 2  ;;  %v730_v38 = vrot.slane %v729_v59, 2  ;;  %v1160_v24 = vld [vmem:[%s1587_s3 + $0x41] ss:$8 sm:$0xf] }
 0x108   :  { %v951_v39 = vadd.f32 %v950_v15, %v949_v60  ;;  %v967_v41 = vadd.f32 %v966_v27, %v965_v18  ;;  %v720_v42 = vrot.slane %v719_v33, 1  ;;  %v971_v43 = vadd.f32 %v970_v35, %v879_v29 }
 0x109   :  { %v956_v44 = vrot.slane %v955_v31, 1  ;;  %v726_v46 = vrot.slane %v725_v0, 1  ;;  %v961_v47 = vadd.f32 %v960_v26, %v959_v21  ;;  %v731_v49 = vadd.f32 %v730_v38, %v729_v59 }
 0x10a   :  { %v809_v50 = vrot.slane %v799_v30, %v1406_v11  ;;  %v715_v51 = vadd.f32 %v714_v32, %v713_v12  ;;  %v721_v5 = vadd.f32 %v720_v42, %v719_v33  ;;  %v972_v52 = vrot.slane %v971_v43, 2  ;;  %v1154_v12 = vld [vmem:[%s1587_s3 + $0x40] ss:$8 sm:$0xf] }
 0x10b   :  { %v1041_v61 = vcombine.low %v1525_v20, %v939_v37  ;;  %v816_v3 = vrot.slane %v800_v34, %v1406_v11  ;;  %v962_v19 = vrot.slane %v961_v47, 1  ;;  %v732_v53 = vrot.slane %v731_v49, 1 }
 0x10c   :  { %v1042_v56 = vcombine.low %v1529_v8, %v951_v39  ;;  %v968_v57 = vrot.slane %v967_v41, 1  ;;  %v801_v58 = vcombine.low %v715_v51, %v721_v5  ;;  %v973_v45 = vadd.f32 %v972_v52, %v971_v43 }
 0x10d   :  { %v957_v62 = vadd.f32 %v956_v44, %v955_v31  ;;  %v727_v63 = vadd.f32 %v726_v46, %v725_v0  ;;  %v963_v2 = vadd.f32 %v962_v19, %v961_v47  ;;  %v733_v40 = vadd.f32 %v732_v53, %v731_v49 }
 0x10e   :  { %v974_v1 = vrot.slane %v973_v45, 1  ;;  %v823_v55 = vrot.slane %v801_v58, %v1406_v11  ;;  %v1051_v20 = vrot.slane %v1041_v61, %v1406_v11  ;;  %v1058_v4 = vrot.slane %v1042_v56, %v1406_v11 }
 0x10f   :  { %v1043_v14 = vcombine.low %v957_v62, %v963_v2  ;;  %v802_v36 = vcombine.low %v727_v63, %v733_v40  ;;  %v969_v7 = vadd.f32 %v968_v57, %v967_v41  ;;  %v831_v6 = vcombine.low %v809_v50, %v816_v3 }
 0x110   :  { %v975_v60 = vadd.f32 %v974_v1, %v973_v45  ;;  %v1073_v17 = vcombine.low %v1051_v20, %v1058_v4  ;;  %v637_v22 = vor.u32 %v1155_v9, %v1154_v12  ;;  %v863_v28 = vor.u32 %v1161_v25, %v1160_v24 }
 0x111   :  { %v830_v8 = vrot.slane %v802_v36, %v1406_v11  ;;  %v1065_v10 = vrot.slane %v1043_v14, %v1406_v11  ;;  %v839_v54 = vrot.slane %v831_v6, %v1406_v11 }
 0x112   :  { %v1044_v13 = vcombine.low %v969_v7, %v975_v60  ;;  %v1081_v27 = vrot.slane %v1073_v17, %v1406_v11 }
 0x113   :  { %v832_v16 = vcombine.low %v823_v55, %v830_v8 }
 0x114   :  { %v1072_v18 = vrot.slane %v1044_v13, %v1406_v11 }
 0x115   :  { %v846_v23 = vrot.slane %v832_v16, %v1406_v11 }
 0x116   :  { %v1074_v48 = vcombine.low %v1065_v10, %v1072_v18 }
 0x117   :  { %v847_v15 = vcombine.low %v839_v54, %v846_v23 }
 0x118   :  { %v1088_v29 = vrot.slane %v1074_v48, %v1406_v11 }
 0x119   :  { %v851_v31 = vadd.f32 %v847_v15, %v637_v22 }
 0x11a   :  { %v1089_v0 = vcombine.low %v1081_v27, %v1088_v29 }
 0x11b   :  { %1156 = vst [vmem:[%s1587_s3 + $0x40] ss:$8 sm:$0xf] %v851_v31  ;;  %1157 = vst [vmem:[%s1587_s3 + $0x40] ss:$8 sm:$0xf0] %v851_v31 }
 0x11c   :  { %v1093_v21 = vadd.f32 %v1089_v0, %v863_v28 }
 0x11e   :  { %1164 = vst [vmem:[%s1587_s3 + $0x41] ss:$8 sm:$0xf] %v1093_v21  ;;  %1165 = vst [vmem:[%s1587_s3 + $0x41] ss:$8 sm:$0xf0] %v1093_v21 }

// kernel: squeeze.135
= control target key start
LH: loop header
LB: loop body
LE: loop exit
PB: predicated region body
PF: predicated region fallthrough
CT: control target
= control target key end

     0   :  { %vm8_vm0 = vcmask 523264   ;;  %s42_s0 = inlined_call_operand.vmem [shape: f32[256], index: 0, kind: input, shape index: {}]   ;;  %s43_s1 = inlined_call_operand.vmem [shape: f32[4,64], index: 1, kind: output, shape index: {}]  }
   0x1   :  { %v5_v0 = vld [vmem:[%s42_s0] sm:$0x3]  ;;  %s25_s0 = smov 64  }
   0x2   :  { %6 = vst [vmem:[#allocation1] sm:$0x3] %v5_v0 }
   0x9   :  { %v10_v1 = vld [vmem:[#allocation1] sm:$0x3]  }
   0xa   :  { %v7_v2 = vld [vmem:[#allocation1] sm:$0x3]   ;;  %11 = vrot.lane.b32.xlu0 %v10_v1, %s25_s0 }
   0xb   :  { %9 = vst.msk [vmem:[#allocation0] ss:$2 sm:$0x3] %vm8_vm0, %v7_v2  }
  0x7c   :  { %v12_v3 = vpop.permute.xlu0 %11  }
  0x7d   :  { %15 = vst.msk [vmem:[#allocation0 + $0x1] ss:$2 sm:$0x3] %vm8_vm0, %v12_v3  }
  0x84   :  { %v20_v4 = vld [vmem:[#allocation0] sm:$0xf] }
  0x85   :  { %23 = vst [vmem:[%s43_s1] sm:$0xf] %v20_v4 }

// kernel: tile.42
= control target key start
LH: loop header
LB: loop body
LE: loop exit
PB: predicated region body
PF: predicated region fallthrough
CT: control target
= control target key end

     0   :  { %s22_s0 = inlined_call_operand.vmem [shape: f32[64], index: 0, kind: input, shape index: {}]   ;;  %s23_s1 = inlined_call_operand.vmem [shape: f32[4,64], index: 1, kind: output, shape index: {}]  }
   0x1   :  { %v4_v0 = vld [vmem:[%s22_s0] ss:$0 sm:$0xff] }
   0x2   :  { %5 = vst [vmem:[%s23_s1] sm:$0xf] %v4_v0 }

// kernel: tile.44
= control target key start
LH: loop header
LB: loop body
LE: loop exit
PB: predicated region body
PF: predicated region fallthrough
CT: control target
= control target key end

     0   :  { %s7_s8 = smov 3  ;;  %vm9_vm0 = vcmask 523264   ;;  %s34_s9 = smov 64   ;;  %vm16_vm1 = vcmask 1048064   ;;  %s54_s0 = inlined_call_operand.vmem [shape: f32[4,64], index: 0, kind: input, shape index: {}]   ;;  %s55_s1 = inlined_call_operand.vmem [shape: f32[1,256], index: 1, kind: output, shape index: {}]  }
   0x1   :  { %v5_v0 = vld [vmem:[%s54_s0] sm:$0xf]  ;;  %s12_s0 = smov 3 }
   0x2   :  { %6 = vst [vmem:[#allocation1] sm:$0xf] %v5_v0 }
   0x9   :  { %v13_v1 = vld [vmem:[#allocation1 + $0x1] ss:$2 sm:%s12_s0]   ;;  %v8_v2 = vld [vmem:[#allocation1] ss:$2 sm:%s7_s8]  }
   0xa   :  { %14 = vrot.lane.b32.xlu0 %v13_v1, %s34_s9  ;;  %10 = vst.msk [vmem:[#allocation0] ss:$8 sm:$0x3] %vm9_vm0, %v8_v2  }
  0x7c   :  { %v15_v3 = vpop.permute.xlu0 %14  }
  0x7d   :  { %17 = vst.msk [vmem:[#allocation0] ss:$8 sm:$0x3] %vm16_vm1, %v15_v3  }
  0x84   :  { %v22_v4 = vld [vmem:[#allocation0] sm:$0x1]  ;;  %v27_v5 = vld [vmem:[#allocation0 + $0x8] sm:$0x1] }
  0x85   :  { %25 = vst [vmem:[%s55_s1] sm:$0x1] %v22_v4  ;;  %32 = vst [vmem:[%s55_s1 + $0x1] sm:$0x1] %v27_v5 }

// kernel: generator_forward.11
= control target key start
LH: loop header
LB: loop body
LE: loop exit
PB: predicated region body
PF: predicated region fallthrough
CT: control target
= control target key end

     0   :  { %s2362_s1 = inlined_call_operand.vmem [shape: bf16[1152,256], index: 1, kind: input, shape index: {}]   ;;  %s2363_s0 = inlined_call_operand.vmem [shape: bf16[32,1152], index: 0, kind: input, shape index: {}]   ;;  %s2364_s3 = inlined_call_operand.vmem [shape: f32[8,256], index: 3, kind: output, shape index: {1}]   ;;  %s2365_s2 = inlined_call_operand.vmem [shape: bf16[32,256], index: 2, kind: output, shape index: {0}]  }
   0x1   :  { %v1581_v0 = vld [vmem:[%s2362_s1 + $0x74] ss:$8 sps:$4 sm:$0xff]   ;;  %v1585_v2 = vld [vmem:[%s2362_s1 + $0x70] ss:$8 sps:$4 sm:$0xff]   ;;  %v1587_v4 = vld [vmem:[%s2362_s1 + $0x64] ss:$8 sps:$4 sm:$0xff]  }
   0x2   :  { %v1583_v1 = vld [vmem:[%s2362_s1 + $0x174] ss:$8 sps:$4 sm:$0xff]   ;;  %996 = vmatprep.subr.bf16.mxu0 %v1581_v0  ;;  %v1586_v3 = vld [vmem:[%s2362_s1 + $0x170] ss:$8 sps:$4 sm:$0xff]   ;;  %v1589_v5 = vld [vmem:[%s2362_s1 + $0x164] ss:$8 sps:$4 sm:$0xff]  }
   0x3   :  { %1049 = vmatprep.subr.bf16.mxu1 %v1583_v1  ;;  %997 = vmatpush1.bf16.msra.mxu0 %v1585_v2  ;;  %v1591_v6 = vld [vmem:[%s2362_s1 + $0x60] ss:$8 sps:$4 sm:$0xff]   ;;  %v1593_v8 = vld [vmem:[%s2362_s1 + $0x54] ss:$8 sps:$4 sm:$0xff]   ;;  %v1597_v10 = vld [vmem:[%s2362_s1 + $0x50] ss:$8 sps:$4 sm:$0xff]  }
   0x4   :  { %1050 = vmatpush1.bf16.msra.mxu1 %v1586_v3  ;;  %998 = vmatprep.subr.bf16.mxu0 %v1587_v4  ;;  %v1592_v7 = vld [vmem:[%s2362_s1 + $0x160] ss:$8 sps:$4 sm:$0xff]   ;;  %v1595_v9 = vld [vmem:[%s2362_s1 + $0x154] ss:$8 sps:$4 sm:$0xff]   ;;  %v1598_v11 = vld [vmem:[%s2362_s1 + $0x150] ss:$8 sps:$4 sm:$0xff]  }
   0x5   :  { %1051 = vmatprep.subr.bf16.mxu1 %v1589_v5  ;;  %v1599_v12 = vld [vmem:[%s2362_s1 + $0x44] ss:$8 sps:$4 sm:$0xff]   ;;  %v1603_v14 = vld [vmem:[%s2362_s1 + $0x40] ss:$8 sps:$4 sm:$0xff]   ;;  %v1605_v16 = vld [vmem:[%s2362_s1 + $0x34] ss:$8 sps:$4 sm:$0xff]  }
   0x6   :  { %v1601_v13 = vld [vmem:[%s2362_s1 + $0x144] ss:$8 sps:$4 sm:$0xff]   ;;  %v1604_v15 = vld [vmem:[%s2362_s1 + $0x140] ss:$8 sps:$4 sm:$0xff]   ;;  %v1607_v17 = vld [vmem:[%s2362_s1 + $0x134] ss:$8 sps:$4 sm:$0xff]  }
   0x7   :  { %999 = vmatpush1.bf16.msra.mxu0 %v1591_v6  ;;  %v1609_v18 = vld [vmem:[%s2362_s1 + $0x30] ss:$8 sps:$4 sm:$0xff]   ;;  %v1611_v20 = vld [vmem:[%s2362_s1 + $0x24] ss:$8 sps:$4 sm:$0xff]   ;;  %v1615_v22 = vld [vmem:[%s2362_s1 + $0x20] ss:$8 sps:$4 sm:$0xff]  }
   0x8   :  { %1052 = vmatpush1.bf16.msra.mxu1 %v1592_v7  ;;  %1000 = vmatprep.subr.bf16.mxu0 %v1593_v8  ;;  %v1610_v19 = vld [vmem:[%s2362_s1 + $0x130] ss:$8 sps:$4 sm:$0xff]   ;;  %v1613_v21 = vld [vmem:[%s2362_s1 + $0x124] ss:$8 sps:$4 sm:$0xff]   ;;  %v1616_v23 = vld [vmem:[%s2362_s1 + $0x120] ss:$8 sps:$4 sm:$0xff]  }
   0x9   :  { %1053 = vmatprep.subr.bf16.mxu1 %v1595_v9  ;;  %v1617_v24 = vld [vmem:[%s2362_s1 + $0x14] ss:$8 sps:$4 sm:$0xff]   ;;  %v1621_v26 = vld [vmem:[%s2362_s1 + $0x10] ss:$8 sps:$4 sm:$0xff]   ;;  %v1623_v28 = vld [vmem:[%s2362_s1 + $0x4] ss:$8 sps:$4 sm:$0xff]  }
   0xa   :  { %v1619_v25 = vld [vmem:[%s2362_s1 + $0x114] ss:$8 sps:$4 sm:$0xff]   ;;  %v1622_v27 = vld [vmem:[%s2362_s1 + $0x110] ss:$8 sps:$4 sm:$0xff]   ;;  %v1625_v29 = vld [vmem:[%s2362_s1 + $0x104] ss:$8 sps:$4 sm:$0xff]  }
   0xb   :  { %1001 = vmatpush1.bf16.msra.mxu0 %v1597_v10  ;;  %v1627_v30 = vld [vmem:[%s2362_s1] ss:$8 sps:$4 sm:$0xff]   ;;  %v1629_v32 = vld [vmem:[%s2362_s1 + $0xf4] ss:$8 sps:$4 sm:$0xff]   ;;  %v1633_v34 = vld [vmem:[%s2362_s1 + $0xf0] ss:$8 sps:$4 sm:$0xff]  }
   0xc   :  { %1054 = vmatpush1.bf16.msra.mxu1 %v1598_v11  ;;  %1002 = vmatprep.subr.bf16.mxu0 %v1599_v12  ;;  %v1628_v31 = vld [vmem:[%s2362_s1 + $0x100] ss:$8 sps:$4 sm:$0xff]   ;;  %v1631_v33 = vld [vmem:[%s2362_s1 + $0x1f4] ss:$8 sps:$4 sm:$0xff]   ;;  %v1634_v35 = vld [vmem:[%s2362_s1 + $0x1f0] ss:$8 sps:$4 sm:$0xff]  }
   0xd   :  { %1055 = vmatprep.subr.bf16.mxu1 %v1601_v13  ;;  %v1635_v36 = vld [vmem:[%s2362_s1 + $0xe4] ss:$8 sps:$4 sm:$0xff]   ;;  %v1639_v38 = vld [vmem:[%s2362_s1 + $0xe0] ss:$8 sps:$4 sm:$0xff]   ;;  %v1641_v40 = vld [vmem:[%s2362_s1 + $0xd4] ss:$8 sps:$4 sm:$0xff]  }
   0xe   :  { %v1637_v37 = vld [vmem:[%s2362_s1 + $0x1e4] ss:$8 sps:$4 sm:$0xff]   ;;  %v1640_v39 = vld [vmem:[%s2362_s1 + $0x1e0] ss:$8 sps:$4 sm:$0xff]   ;;  %v1643_v41 = vld [vmem:[%s2362_s1 + $0x1d4] ss:$8 sps:$4 sm:$0xff]  }
   0xf   :  { %1003 = vmatpush1.bf16.msra.mxu0 %v1603_v14  ;;  %v1645_v42 = vld [vmem:[%s2362_s1 + $0xd0] ss:$8 sps:$4 sm:$0xff]   ;;  %v1647_v44 = vld [vmem:[%s2362_s1 + $0xc4] ss:$8 sps:$4 sm:$0xff]   ;;  %v1651_v46 = vld [vmem:[%s2362_s1 + $0xc0] ss:$8 sps:$4 sm:$0xff]  }
  0x10   :  { %1056 = vmatpush1.bf16.msra.mxu1 %v1604_v15  ;;  %1004 = vmatprep.subr.bf16.mxu0 %v1605_v16  ;;  %v1646_v43 = vld [vmem:[%s2362_s1 + $0x1d0] ss:$8 sps:$4 sm:$0xff]   ;;  %v1649_v45 = vld [vmem:[%s2362_s1 + $0x1c4] ss:$8 sps:$4 sm:$0xff]   ;;  %v1652_v47 = vld [vmem:[%s2362_s1 + $0x1c0] ss:$8 sps:$4 sm:$0xff]  }
  0x11   :  { %1057 = vmatprep.subr.bf16.mxu1 %v1607_v17  ;;  %v1653_v48 = vld [vmem:[%s2362_s1 + $0xb4] ss:$8 sps:$4 sm:$0xff]   ;;  %v1679_v49 = vld [vmem:[%s2363_s0 + $0x4] ss:$36 sps:$4 sm:$0xff]   ;;  %v1682_v51 = vld [vmem:[%s2363_s0 + $0xc] ss:$36 sps:$4 sm:$0xff]  }
  0x12   :  { %v1655_v50 = vld [vmem:[%s2362_s1 + $0x1b4] ss:$8 sps:$4 sm:$0xff]   ;;  %1028 = vmatprep.mubr.bf16.mxu0 %v1679_v49  ;;  %v1657_v52 = vld [vmem:[%s2362_s1 + $0xb0] ss:$8 sps:$4 sm:$0xff]   ;;  %1081 = vmatprep.mubr.bf16.mxu1 %v1682_v51  ;;  %v1659_v54 = vld [vmem:[%s2362_s1 + $0xa4] ss:$8 sps:$4 sm:$0xff]  }
  0x13   :  { %1005 = vmatpush1.bf16.msra.mxu0 %v1609_v18  ;;  %v1658_v53 = vld [vmem:[%s2362_s1 + $0x1b0] ss:$8 sps:$4 sm:$0xff]   ;;  %v1661_v55 = vld [vmem:[%s2362_s1 + $0x1a4] ss:$8 sps:$4 sm:$0xff]   ;;  %v1663_v56 = vld [vmem:[%s2362_s1 + $0xa0] ss:$8 sps:$4 sm:$0xff]  }
  0x14   :  { %1058 = vmatpush1.bf16.msra.mxu1 %v1610_v19  ;;  %1006 = vmatprep.subr.bf16.mxu0 %v1611_v20  ;;  %v1664_v57 = vld [vmem:[%s2362_s1 + $0x1a0] ss:$8 sps:$4 sm:$0xff]   ;;  %v1665_v58 = vld [vmem:[%s2362_s1 + $0x94] ss:$8 sps:$4 sm:$0xff]   ;;  %v1669_v60 = vld [vmem:[%s2362_s1 + $0x90] ss:$8 sps:$4 sm:$0xff]  }
  0x15   :  { %1059 = vmatprep.subr.bf16.mxu1 %v1613_v21  ;;  %v1667_v59 = vld [vmem:[%s2362_s1 + $0x194] ss:$8 sps:$4 sm:$0xff]   ;;  %v1670_v61 = vld [vmem:[%s2362_s1 + $0x190] ss:$8 sps:$4 sm:$0xff]   ;;  %v1671_v62 = vld [vmem:[%s2362_s1 + $0x84] ss:$8 sps:$4 sm:$0xff]  }
  0x16   :  { %v1673_v63 = vld [vmem:[%s2362_s1 + $0x184] ss:$8 sps:$4 sm:$0xff]   ;;  %v1675_v0 = vld [vmem:[%s2362_s1 + $0x80] ss:$8 sps:$4 sm:$0xff]   ;;  %v1685_v2 = vld [vmem:[%s2362_s1 + $0x274] ss:$8 sps:$4 sm:$0xff]  }
  0x17   :  { %1007 = vmatpush1.bf16.msra.mxu0 %v1615_v22  ;;  %v1676_v1 = vld [vmem:[%s2362_s1 + $0x180] ss:$8 sps:$4 sm:$0xff]   ;;  %v1688_v3 = vld [vmem:[%s2362_s1 + $0x374] ss:$8 sps:$4 sm:$0xff]   ;;  %v1683_v6 = vld [vmem:[%s2362_s1 + $0x270] ss:$8 sps:$4 sm:$0xff]  }
  0x18   :  { %1060 = vmatpush1.bf16.msra.mxu1 %v1616_v23  ;;  %1008 = vmatprep.subr.bf16.mxu0 %v1617_v24  ;;  %v1677_v4 = vld [vmem:[%s2363_s0] ss:$36 sps:$4 sm:$0xff]   ;;  %v1680_v5 = vld [vmem:[%s2363_s0 + $0x8] ss:$36 sps:$4 sm:$0xff]   ;;  %v1686_v7 = vld [vmem:[%s2362_s1 + $0x370] ss:$8 sps:$4 sm:$0xff]  }
  0x19   :  { %1061 = vmatprep.subr.bf16.mxu1 %v1619_v25  ;;  %v1691_v8 = vld [vmem:[%s2362_s1 + $0x264] ss:$8 sps:$4 sm:$0xff]   ;;  %v1689_v10 = vld [vmem:[%s2362_s1 + $0x260] ss:$8 sps:$4 sm:$0xff]   ;;  %v1697_v12 = vld [vmem:[%s2362_s1 + $0x254] ss:$8 sps:$4 sm:$0xff]  }
  0x1a   :  { %v1694_v9 = vld [vmem:[%s2362_s1 + $0x364] ss:$8 sps:$4 sm:$0xff]   ;;  %v1692_v11 = vld [vmem:[%s2362_s1 + $0x360] ss:$8 sps:$4 sm:$0xff]   ;;  %v1700_v13 = vld [vmem:[%s2362_s1 + $0x354] ss:$8 sps:$4 sm:$0xff]  }
  0x1b   :  { %1009 = vmatpush1.bf16.msra.mxu0 %v1621_v26  ;;  %v1695_v14 = vld [vmem:[%s2362_s1 + $0x250] ss:$8 sps:$4 sm:$0xff]   ;;  %v1703_v16 = vld [vmem:[%s2362_s1 + $0x244] ss:$8 sps:$4 sm:$0xff]   ;;  %v1701_v18 = vld [vmem:[%s2362_s1 + $0x240] ss:$8 sps:$4 sm:$0xff]  }
  0x1c   :  { %1062 = vmatpush1.bf16.msra.mxu1 %v1622_v27  ;;  %1010 = vmatprep.subr.bf16.mxu0 %v1623_v28  ;;  %v1698_v15 = vld [vmem:[%s2362_s1 + $0x350] ss:$8 sps:$4 sm:$0xff]   ;;  %v1706_v17 = vld [vmem:[%s2362_s1 + $0x344] ss:$8 sps:$4 sm:$0xff]   ;;  %v1704_v19 = vld [vmem:[%s2362_s1 + $0x340] ss:$8 sps:$4 sm:$0xff]  }
  0x1d   :  { %1063 = vmatprep.subr.bf16.mxu1 %v1625_v29  ;;  %v1709_v20 = vld [vmem:[%s2362_s1 + $0x234] ss:$8 sps:$4 sm:$0xff]   ;;  %v1707_v22 = vld [vmem:[%s2362_s1 + $0x230] ss:$8 sps:$4 sm:$0xff]   ;;  %v1715_v24 = vld [vmem:[%s2362_s1 + $0x224] ss:$8 sps:$4 sm:$0xff]  }
  0x1e   :  { %v1712_v21 = vld [vmem:[%s2362_s1 + $0x334] ss:$8 sps:$4 sm:$0xff]   ;;  %v1710_v23 = vld [vmem:[%s2362_s1 + $0x330] ss:$8 sps:$4 sm:$0xff]   ;;  %v1718_v25 = vld [vmem:[%s2362_s1 + $0x324] ss:$8 sps:$4 sm:$0xff]  }
  0x1f   :  { %1011 = vmatpush1.bf16.msra.mxu0 %v1627_v30  ;;  %v1761_v26 = vld [vmem:[%s2363_s0 + $0x4c] ss:$36 sps:$4 sm:$0xff]   ;;  %v1763_v27 = vld [vmem:[%s2363_s0 + $0x54] ss:$36 sps:$4 sm:$0xff]   ;;  %v1713_v30 = vld [vmem:[%s2362_s1 + $0x220] ss:$8 sps:$4 sm:$0xff]  }
  0x20   :  { %1064 = vmatpush1.bf16.msra.mxu1 %v1628_v31  ;;  %1012 = vmatprep.subr.bf16.mxu0 %v1629_v32  ;;  %v1765_v28 = vld [vmem:[%s2363_s0 + $0x48] ss:$36 sps:$4 sm:$0xff]   ;;  %v1766_v29 = vld [vmem:[%s2363_s0 + $0x50] ss:$36 sps:$4 sm:$0xff]  }
  0x21   :  { %1065 = vmatprep.subr.bf16.mxu1 %v1631_v33  ;;  %v1716_v31 = vld [vmem:[%s2362_s1 + $0x320] ss:$8 sps:$4 sm:$0xff]   ;;  %v1721_v32 = vld [vmem:[%s2362_s1 + $0x214] ss:$8 sps:$4 sm:$0xff]  }
  0x22   :  { %v1724_v33 = vld [vmem:[%s2362_s1 + $0x314] ss:$8 sps:$4 sm:$0xff]   ;;  %v1740_v49 = vld [vmem:[%s2362_s1 + $0x3e0] ss:$8 sps:$4 sm:$0xff]  }
  0x23   :  { %1013 = vmatpush2.bf16.msra.mxu0 %v1633_v34  ;;  %v1719_v34 = vld [vmem:[%s2362_s1 + $0x210] ss:$8 sps:$4 sm:$0xff]   ;;  %v1748_v51 = vld [vmem:[%s2362_s1 + $0x3d4] ss:$8 sps:$4 sm:$0xff]  }
  0x24   :  { %1066 = vmatpush2.bf16.msra.mxu1 %v1634_v35  ;;  %1014 = vmatprep.subr.bf16.mxu0 %v1635_v36  ;;  %v1722_v35 = vld [vmem:[%s2362_s1 + $0x310] ss:$8 sps:$4 sm:$0xff]   ;;  %v1727_v36 = vld [vmem:[%s2362_s1 + $0x204] ss:$8 sps:$4 sm:$0xff]  }
  0x25   :  { %1067 = vmatprep.subr.bf16.mxu1 %v1637_v37  ;;  %v1730_v37 = vld [vmem:[%s2362_s1 + $0x304] ss:$8 sps:$4 sm:$0xff]  }
  0x27   :  { %1015 = vmatpush2.bf16.msra.mxu0 %v1639_v38  ;;  %v1725_v38 = vld [vmem:[%s2362_s1 + $0x200] ss:$8 sps:$4 sm:$0xff]  }
  0x28   :  { %1068 = vmatpush2.bf16.msra.mxu1 %v1640_v39  ;;  %1016 = vmatprep.subr.bf16.mxu0 %v1641_v40  ;;  %v1728_v39 = vld [vmem:[%s2362_s1 + $0x300] ss:$8 sps:$4 sm:$0xff]   ;;  %v1733_v40 = vld [vmem:[%s2362_s1 + $0x2f4] ss:$8 sps:$4 sm:$0xff]  }
  0x29   :  { %1069 = vmatprep.subr.bf16.mxu1 %v1643_v41  ;;  %v1787_v41 = vld [vmem:[%s2363_s0 + $0x14] ss:$36 sps:$4 sm:$0xff]  }
  0x2b   :  { %1017 = vmatpush2.bf16.msra.mxu0 %v1645_v42  ;;  %v1736_v42 = vld [vmem:[%s2362_s1 + $0x3f4] ss:$8 sps:$4 sm:$0xff]  }
  0x2c   :  { %1070 = vmatpush2.bf16.msra.mxu1 %v1646_v43  ;;  %1018 = vmatprep.subr.bf16.mxu0 %v1647_v44  ;;  %v1790_v43 = vld [vmem:[%s2363_s0 + $0x1c] ss:$36 sps:$4 sm:$0xff]   ;;  %v1731_v44 = vld [vmem:[%s2362_s1 + $0x2f0] ss:$8 sps:$4 sm:$0xff]  }
  0x2d   :  { %1071 = vmatprep.subr.bf16.mxu1 %v1649_v45  ;;  %v1734_v45 = vld [vmem:[%s2362_s1 + $0x3f0] ss:$8 sps:$4 sm:$0xff]  }
  0x2f   :  { %1019 = vmatpush2.bf16.msra.mxu0 %v1651_v46  ;;  %v1739_v46 = vld [vmem:[%s2362_s1 + $0x2e4] ss:$8 sps:$4 sm:$0xff]  }
  0x30   :  { %1072 = vmatpush2.bf16.msra.mxu1 %v1652_v47  ;;  %1020 = vmatprep.subr.bf16.mxu0 %v1653_v48  ;;  %v1742_v47 = vld [vmem:[%s2362_s1 + $0x3e4] ss:$8 sps:$4 sm:$0xff]   ;;  %v1737_v48 = vld [vmem:[%s2362_s1 + $0x2e0] ss:$8 sps:$4 sm:$0xff]  }
  0x31   :  { %1073 = vmatprep.subr.bf16.mxu1 %v1655_v50  ;;  %v1745_v50 = vld [vmem:[%s2362_s1 + $0x2d4] ss:$8 sps:$4 sm:$0xff]  }
  0x33   :  { %1021 = vmatpush2.bf16.msra.mxu0 %v1657_v52  ;;  %v1743_v52 = vld [vmem:[%s2362_s1 + $0x2d0] ss:$8 sps:$4 sm:$0xff]  }
  0x34   :  { %1074 = vmatpush2.bf16.msra.mxu1 %v1658_v53  ;;  %1022 = vmatprep.subr.bf16.mxu0 %v1659_v54  ;;  %v1746_v53 = vld [vmem:[%s2362_s1 + $0x3d0] ss:$8 sps:$4 sm:$0xff]   ;;  %v1751_v54 = vld [vmem:[%s2362_s1 + $0x2c4] ss:$8 sps:$4 sm:$0xff]  }
  0x35   :  { %1075 = vmatprep.subr.bf16.mxu1 %v1661_v55  ;;  %v1754_v55 = vld [vmem:[%s2362_s1 + $0x3c4] ss:$8 sps:$4 sm:$0xff]  }
  0x37   :  { %1023 = vmatpush2.bf16.msra.mxu0 %v1663_v56  ;;  %v1749_v56 = vld [vmem:[%s2362_s1 + $0x2c0] ss:$8 sps:$4 sm:$0xff]  }
  0x38   :  { %1076 = vmatpush2.bf16.msra.mxu1 %v1664_v57  ;;  %1024 = vmatprep.subr.bf16.mxu0 %v1665_v58  ;;  %v1752_v57 = vld [vmem:[%s2362_s1 + $0x3c0] ss:$8 sps:$4 sm:$0xff]   ;;  %v1757_v58 = vld [vmem:[%s2362_s1 + $0x2b4] ss:$8 sps:$4 sm:$0xff]  }
  0x39   :  { %1077 = vmatprep.subr.bf16.mxu1 %v1667_v59  ;;  %v1760_v59 = vld [vmem:[%s2362_s1 + $0x3b4] ss:$8 sps:$4 sm:$0xff]  }
  0x3b   :  { %1025 = vmatpush2.bf16.msra.mxu0 %v1669_v60  ;;  %v1755_v60 = vld [vmem:[%s2362_s1 + $0x2b0] ss:$8 sps:$4 sm:$0xff]  }
  0x3c   :  { %1078 = vmatpush2.bf16.msra.mxu1 %v1670_v61  ;;  %1026 = vmatprep.subr.bf16.mxu0 %v1671_v62  ;;  %v1758_v61 = vld [vmem:[%s2362_s1 + $0x3b0] ss:$8 sps:$4 sm:$0xff]   ;;  %v1769_v62 = vld [vmem:[%s2362_s1 + $0x2a4] ss:$8 sps:$4 sm:$0xff]  }
  0x3d   :  { %1079 = vmatprep.subr.bf16.mxu1 %v1673_v63  ;;  %v1772_v63 = vld [vmem:[%s2362_s1 + $0x3a4] ss:$8 sps:$4 sm:$0xff]  }
  0x3f   :  { %1027 = vmatpush2.bf16.msra.mxu0 %v1675_v0  ;;  %v1767_v0 = vld [vmem:[%s2362_s1 + $0x2a0] ss:$8 sps:$4 sm:$0xff]  }
  0x40   :  { %1080 = vmatpush2.bf16.msra.mxu1 %v1676_v1  ;;  %1102 = vmatprep.subr.bf16.mxu0 %v1685_v2  ;;  %v1770_v1 = vld [vmem:[%s2362_s1 + $0x3a0] ss:$8 sps:$4 sm:$0xff]   ;;  %v1775_v2 = vld [vmem:[%s2362_s1 + $0x294] ss:$8 sps:$4 sm:$0xff]  }
  0x41   :  { %1155 = vmatprep.subr.bf16.mxu1 %v1688_v3  ;;  %v1778_v3 = vld [vmem:[%s2362_s1 + $0x394] ss:$8 sps:$4 sm:$0xff]  }
  0x42   :  { %1029 = vmatmul.mubr.bf16.vlgmr.msra.gmra.mxu0 %v1677_v4  ;;  %v1773_v4 = vld [vmem:[%s2362_s1 + $0x290] ss:$8 sps:$4 sm:$0xff]  }
  0x43   :  { %1082 = vmatmul.mubr.bf16.vlgmr.msra.gmra.mxu1 %v1680_v5  ;;  %1103 = vmatpush1.bf16.msra.mxu0 %v1683_v6  ;;  %v1776_v5 = vld [vmem:[%s2362_s1 + $0x390] ss:$8 sps:$4 sm:$0xff]   ;;  %v1781_v6 = vld [vmem:[%s2362_s1 + $0x284] ss:$8 sps:$4 sm:$0xff]  }
  0x44   :  { %1156 = vmatpush1.bf16.msra.mxu1 %v1686_v7  ;;  %1104 = vmatprep.subr.bf16.mxu0 %v1691_v8  ;;  %v1784_v7 = vld [vmem:[%s2362_s1 + $0x384] ss:$8 sps:$4 sm:$0xff]   ;;  %v1779_v8 = vld [vmem:[%s2362_s1 + $0x280] ss:$8 sps:$4 sm:$0xff]  }
  0x45   :  { %1157 = vmatprep.subr.bf16.mxu1 %v1694_v9  ;;  %1038 = vmatprep.mubr.bf16.mxu0 %v1761_v26  ;;  %v1782_v9 = vld [vmem:[%s2362_s1 + $0x380] ss:$8 sps:$4 sm:$0xff]   ;;  %v1809_v26 = vld [vmem:[%s2362_s1 + $0x430] ss:$8 sps:$4 sm:$0xff]  }
  0x46   :  { %1091 = vmatprep.mubr.bf16.mxu1 %v1763_v27  ;;  %v1814_v27 = vld [vmem:[%s2362_s1 + $0x424] ss:$8 sps:$4 sm:$0xff]  }
  0x47   :  { %1105 = vmatpush1.bf16.msra.mxu0 %v1689_v10  ;;  %v1793_v10 = vld [vmem:[%s2362_s1 + $0x474] ss:$8 sps:$4 sm:$0xff]  }
  0x48   :  { %1158 = vmatpush1.bf16.msra.mxu1 %v1692_v11  ;;  %1106 = vmatprep.subr.bf16.mxu0 %v1697_v12  ;;  %v1785_v11 = vld [vmem:[%s2363_s0 + $0x10] ss:$36 sps:$4 sm:$0xff]   ;;  %v1788_v12 = vld [vmem:[%s2363_s0 + $0x18] ss:$36 sps:$4 sm:$0xff]  }
  0x49   :  { %1159 = vmatprep.subr.bf16.mxu1 %v1700_v13  ;;  %v1791_v13 = vld [vmem:[%s2362_s1 + $0x470] ss:$8 sps:$4 sm:$0xff]  }
  0x4a   :  { %1039 = vmatmul.mubr.bf16.gmra.mxu0 %v1765_v28  ;;  %v1812_v28 = vld [vmem:[%s2362_s1 + $0x420] ss:$8 sps:$4 sm:$0xff]  }
  0x4b   :  { %1107 = vmatpush1.bf16.msra.mxu0 %v1695_v14  ;;  %1092 = vmatmul.mubr.bf16.gmra.mxu1 %v1766_v29  ;;  %v1796_v14 = vld [vmem:[%s2362_s1 + $0x464] ss:$8 sps:$4 sm:$0xff]   ;;  %v1817_v29 = vld [vmem:[%s2362_s1 + $0x414] ss:$8 sps:$4 sm:$0xff]  }
  0x4c   :  { %1160 = vmatpush1.bf16.msra.mxu1 %v1698_v15  ;;  %1108 = vmatprep.subr.bf16.mxu0 %v1703_v16  ;;  %v1797_v15 = vld [vmem:[%s2363_s0 + $0x5c] ss:$36 sps:$4 sm:$0xff]   ;;  %v1803_v16 = vld [vmem:[%s2363_s0 + $0x64] ss:$36 sps:$4 sm:$0xff]  }
  0x4d   :  { %1161 = vmatprep.subr.bf16.mxu1 %v1706_v17  ;;  %1134 = vmatprep.mubr.bf16.mxu0 %v1787_v41  ;;  %v1794_v17 = vld [vmem:[%s2362_s1 + $0x460] ss:$8 sps:$4 sm:$0xff]  }
  0x4e   :  { %1187 = vmatprep.mubr.bf16.mxu1 %v1790_v43 }
  0x4f   :  { %1109 = vmatpush1.bf16.msra.mxu0 %v1701_v18  ;;  %v1802_v18 = vld [vmem:[%s2362_s1 + $0x454] ss:$8 sps:$4 sm:$0xff]  }
  0x50   :  { %1162 = vmatpush1.bf16.msra.mxu1 %v1704_v19  ;;  %1110 = vmatprep.subr.bf16.mxu0 %v1709_v20  ;;  %v1799_v19 = vld [vmem:[%s2363_s0 + $0x58] ss:$36 sps:$4 sm:$0xff]   ;;  %v1805_v20 = vld [vmem:[%s2363_s0 + $0x60] ss:$36 sps:$4 sm:$0xff]  }
  0x51   :  { %1163 = vmatprep.subr.bf16.mxu1 %v1712_v21  ;;  %v1800_v21 = vld [vmem:[%s2362_s1 + $0x450] ss:$8 sps:$4 sm:$0xff]  }
  0x53   :  { %1111 = vmatpush1.bf16.msra.mxu0 %v1707_v22  ;;  %v1808_v22 = vld [vmem:[%s2362_s1 + $0x444] ss:$8 sps:$4 sm:$0xff]  }
  0x54   :  { %1164 = vmatpush1.bf16.msra.mxu1 %v1710_v23  ;;  %1112 = vmatprep.subr.bf16.mxu0 %v1715_v24  ;;  %v1806_v23 = vld [vmem:[%s2362_s1 + $0x440] ss:$8 sps:$4 sm:$0xff]   ;;  %v1811_v24 = vld [vmem:[%s2362_s1 + $0x434] ss:$8 sps:$4 sm:$0xff]  }
  0x55   :  { %1165 = vmatprep.subr.bf16.mxu1 %v1718_v25  ;;  %v1823_v25 = vmov 0  }
  0x57   :  { %1113 = vmatpush1.bf16.msra.mxu0 %v1713_v30  ;;  %v1815_v30 = vld [vmem:[%s2362_s1 + $0x410] ss:$8 sps:$4 sm:$0xff]  }
  0x58   :  { %1166 = vmatpush1.bf16.msra.mxu1 %v1716_v31  ;;  %1114 = vmatprep.subr.bf16.mxu0 %v1721_v32  ;;  %v1820_v31 = vld [vmem:[%s2362_s1 + $0x404] ss:$8 sps:$4 sm:$0xff]   ;;  %v1818_v32 = vld [vmem:[%s2362_s1 + $0x400] ss:$8 sps:$4 sm:$0xff]  }
  0x59   :  { %1167 = vmatprep.subr.bf16.mxu1 %v1724_v33  ;;  %v1821_v33 = vld [vmem:[%s2363_s0 + $0x20] ss:$36 sps:$4 sm:$0xff]  }
  0x5b   :  { %1115 = vmatpush1.bf16.msra.mxu0 %v1719_v34  ;;  %v1822_v34 = vld [vmem:[%s2363_s0 + $0x68] ss:$36 sps:$4 sm:$0xff]  }
  0x5c   :  { %1168 = vmatpush1.bf16.msra.mxu1 %v1722_v35  ;;  %1116 = vmatprep.subr.bf16.mxu0 %v1727_v36  ;;  %v1824_v35 = vmov 0.0  }
  0x5d   :  { %1169 = vmatprep.subr.bf16.mxu1 %v1730_v37  ;;  %18 = vst [vmem:[%s2364_s3] sm:$0xff] %v1824_v35  ;;  %19 = vst [vmem:[%s2364_s3 + $0x8] sm:$0xff] %v1824_v35 }
  0x5f   :  { %1117 = vmatpush1.bf16.msra.mxu0 %v1725_v38 }
  0x60   :  { %1170 = vmatpush1.bf16.msra.mxu1 %v1728_v39  ;;  %1118 = vmatprep.subr.bf16.mxu0 %v1733_v40 }
  0x61   :  { %1171 = vmatprep.subr.bf16.mxu1 %v1736_v42 }
  0x63   :  { %1119 = vmatpush2.bf16.msra.mxu0 %v1731_v44 }
  0x64   :  { %1172 = vmatpush2.bf16.msra.mxu1 %v1734_v45  ;;  %1120 = vmatprep.subr.bf16.mxu0 %v1739_v46 }
  0x65   :  { %1173 = vmatprep.subr.bf16.mxu1 %v1742_v47 }
  0x67   :  { %1121 = vmatpush2.bf16.msra.mxu0 %v1737_v48 }
  0x68   :  { %1174 = vmatpush2.bf16.msra.mxu1 %v1740_v49  ;;  %1122 = vmatprep.subr.bf16.mxu0 %v1745_v50 }
  0x69   :  { %1175 = vmatprep.subr.bf16.mxu1 %v1748_v51 }
  0x6b   :  { %1123 = vmatpush2.bf16.msra.mxu0 %v1743_v52 }
  0x6c   :  { %1176 = vmatpush2.bf16.msra.mxu1 %v1746_v53  ;;  %1124 = vmatprep.subr.bf16.mxu0 %v1751_v54 }
  0x6d   :  { %1177 = vmatprep.subr.bf16.mxu1 %v1754_v55 }
  0x6f   :  { %1125 = vmatpush2.bf16.msra.mxu0 %v1749_v56 }
  0x70   :  { %1178 = vmatpush2.bf16.msra.mxu1 %v1752_v57  ;;  %1126 = vmatprep.subr.bf16.mxu0 %v1757_v58 }
  0x71   :  { %1179 = vmatprep.subr.bf16.mxu1 %v1760_v59 }
  0x73   :  { %1127 = vmatpush2.bf16.msra.mxu0 %v1755_v60 }
  0x74   :  { %1180 = vmatpush2.bf16.msra.mxu1 %v1758_v61  ;;  %1128 = vmatprep.subr.bf16.mxu0 %v1769_v62 }
  0x75   :  { %1181 = vmatprep.subr.bf16.mxu1 %v1772_v63 }
  0x77   :  { %1129 = vmatpush2.bf16.msra.mxu0 %v1767_v0 }
  0x78   :  { %1182 = vmatpush2.bf16.msra.mxu1 %v1770_v1  ;;  %1130 = vmatprep.subr.bf16.mxu0 %v1775_v2 }
  0x79   :  { %1183 = vmatprep.subr.bf16.mxu1 %v1778_v3 }
  0x7b   :  { %1131 = vmatpush2.bf16.msra.mxu0 %v1773_v4 }
  0x7c   :  { %1184 = vmatpush2.bf16.msra.mxu1 %v1776_v5  ;;  %1132 = vmatprep.subr.bf16.mxu0 %v1781_v6 }
  0x7d   :  { %1185 = vmatprep.subr.bf16.mxu1 %v1784_v7 }
  0x7f   :  { %1133 = vmatpush2.bf16.msra.mxu0 %v1779_v8 }
  0x80   :  { %1186 = vmatpush2.bf16.msra.mxu1 %v1782_v9  ;;  %1208 = vmatprep.subr.bf16.mxu0 %v1793_v10 }
  0x81   :  { %1562 = vmatprep.subr.bf16.mxu1 %v1793_v10 }
  0x82   :  { %1135 = vmatmul.mubr.bf16.vlgmr.msra.gmra.mxu0 %v1785_v11 }
  0x83   :  { %1188 = vmatmul.mubr.bf16.vlgmr.msra.gmra.mxu1 %v1788_v12  ;;  %1209 = vmatpush1.bf16.msra.mxu0 %v1791_v13 }
  0x84   :  { %1570 = vmatpush1.bf16.msra.mxu1 %v1791_v13  ;;  %1210 = vmatprep.subr.bf16.mxu0 %v1796_v14 }
  0x85   :  { %1563 = vmatprep.subr.bf16.mxu1 %v1796_v14  ;;  %1144 = vmatprep.mubr.bf16.mxu0 %v1797_v15 }
  0x86   :  { %1197 = vmatprep.mubr.bf16.mxu1 %v1803_v16 }
  0x87   :  { %1211 = vmatpush1.bf16.msra.mxu0 %v1794_v17 }
  0x88   :  { %1571 = vmatpush1.bf16.msra.mxu1 %v1794_v17  ;;  %1212 = vmatprep.subr.bf16.mxu0 %v1802_v18 }
  0x89   :  { %1564 = vmatprep.subr.bf16.mxu1 %v1802_v18 }
  0x8a   :  { %1145 = vmatmul.mubr.bf16.gmra.mxu0 %v1799_v19 }
  0x8b   :  { %1198 = vmatmul.mubr.bf16.gmra.mxu1 %v1805_v20  ;;  %1213 = vmatpush1.bf16.msra.mxu0 %v1800_v21 }
  0x8c   :  { %1572 = vmatpush1.bf16.msra.mxu1 %v1800_v21  ;;  %1214 = vmatprep.subr.bf16.mxu0 %v1808_v22 }
  0x8d   :  { %1565 = vmatprep.subr.bf16.mxu1 %v1808_v22  ;;  %1240 = vmatprep.mubr.bf16.mxu0 %v1823_v25 }
  0x8e   :  { %1250 = vmatprep.mubr.bf16.mxu1 %v1823_v25 }
  0x8f   :  { %1215 = vmatpush1.bf16.msra.mxu0 %v1806_v23 }
  0x90   :  { %1573 = vmatpush1.bf16.msra.mxu1 %v1806_v23  ;;  %1216 = vmatprep.subr.bf16.mxu0 %v1811_v24 }
  0x91   :  { %1566 = vmatprep.subr.bf16.mxu1 %v1811_v24 }
  0x93   :  { %1217 = vmatpush1.bf16.msra.mxu0 %v1809_v26 }
  0x94   :  { %1574 = vmatpush1.bf16.msra.mxu1 %v1809_v26  ;;  %1218 = vmatprep.subr.bf16.mxu0 %v1814_v27 }
  0x95   :  { %1567 = vmatprep.subr.bf16.mxu1 %v1814_v27 }
  0x97   :  { %1219 = vmatpush1.bf16.msra.mxu0 %v1812_v28 }
  0x98   :  { %1575 = vmatpush1.bf16.msra.mxu1 %v1812_v28  ;;  %1220 = vmatprep.subr.bf16.mxu0 %v1817_v29 }
  0x99   :  { %1568 = vmatprep.subr.bf16.mxu1 %v1817_v29 }
  0x9b   :  { %1221 = vmatpush1.bf16.msra.mxu0 %v1815_v30 }
  0x9c   :  { %1576 = vmatpush1.bf16.msra.mxu1 %v1815_v30  ;;  %1222 = vmatprep.subr.bf16.mxu0 %v1820_v31 }
  0x9d   :  { %1569 = vmatprep.subr.bf16.mxu1 %v1820_v31 }
  0x9f   :  { %1223 = vmatpush1.bf16.msra.mxu0 %v1818_v32 }
  0xa0   :  { %1577 = vmatpush1.bf16.msra.mxu1 %v1818_v32 }
  0xa2   :  { %1241 = vmatmul.mubr.bf16.vlgmr.msra.gmra.mxu0 %v1821_v33 }
  0xa3   :  { %1251 = vmatmul.mubr.bf16.vlgmr.msra.gmra.mxu1 %v1822_v34 }
 0x102   :  { %v1030_v36 = vpop.f32.mrf.mxu0 }
 0x103   :  { %v1083_v37 = vpop.f32.mrf.mxu1 }
 0x104   :  { %v1032_v38 = vpop.f32.mrf.mxu0  ;;  %v1084_v0 = vadd.f32 %v1083_v37, %v1030_v36 }
 0x105   :  { %v1085_v39 = vpop.f32.mrf.mxu1 }
 0x106   :  { %v1034_v40 = vpop.f32.mrf.mxu0  ;;  %v1086_v1 = vadd.f32 %v1085_v39, %v1032_v38 }
 0x107   :  { %v1087_v41 = vpop.f32.mrf.mxu1 }
 0x108   :  { %v1036_v42 = vpop.f32.mrf.mxu0  ;;  %v1088_v10 = vadd.f32 %v1087_v41, %v1034_v40 }
 0x109   :  { %v1089_v43 = vpop.f32.mrf.mxu1 }
 0x10a   :  { %v1040_v44 = vpop.f32.mrf.mxu0  ;;  %v1090_v11 = vadd.f32 %v1089_v43, %v1036_v42 }
 0x10b   :  { %v1093_v45 = vpop.f32.mrf.mxu1 }
 0x10c   :  { %v1042_v46 = vpop.f32.mrf.mxu0  ;;  %v1094_v4 = vadd.f32 %v1093_v45, %v1040_v44 }
 0x10d   :  { %v1095_v47 = vpop.f32.mrf.mxu1 }
 0x10e   :  { %v1044_v48 = vpop.f32.mrf.mxu0  ;;  %v1096_v5 = vadd.f32 %v1095_v47, %v1042_v46 }
 0x10f   :  { %v1097_v49 = vpop.f32.mrf.mxu1 }
 0x110   :  { %v1046_v50 = vpop.f32.mrf.mxu0  ;;  %v1098_v14 = vadd.f32 %v1097_v49, %v1044_v48 }
 0x111   :  { %v1099_v51 = vpop.f32.mrf.mxu1 }
 0x112   :  { %v1100_v15 = vadd.f32 %v1099_v51, %v1046_v50 }
 0x142   :  { %v1136_v52 = vpop.f32.mrf.mxu0 }
 0x143   :  { %v1189_v53 = vpop.f32.mrf.mxu1  ;;  %v1137_v6 = vadd.f32 %v1136_v52, %v1084_v0 }
 0x144   :  { %v1138_v54 = vpop.f32.mrf.mxu0 }
 0x145   :  { %v1191_v55 = vpop.f32.mrf.mxu1  ;;  %v1139_v7 = vadd.f32 %v1138_v54, %v1086_v1  ;;  %v1190_v16 = vadd.f32 %v1189_v53, %v1137_v6 }
 0x146   :  { %v1140_v56 = vpop.f32.mrf.mxu0 }
 0x147   :  { %v1193_v57 = vpop.f32.mrf.mxu1  ;;  %v1192_v17 = vadd.f32 %v1191_v55, %v1139_v7  ;;  %v1141_v18 = vadd.f32 %v1140_v56, %v1088_v10 }
 0x148   :  { %v1142_v58 = vpop.f32.mrf.mxu0 }
 0x149   :  { %v1195_v59 = vpop.f32.mrf.mxu1  ;;  %v1143_v19 = vadd.f32 %v1142_v58, %v1090_v11  ;;  %v1194_v32 = vadd.f32 %v1193_v57, %v1141_v18  ;;  %v1314_v11 = vlaneseq }
 0x14a   :  { %v1146_v60 = vpop.f32.mrf.mxu0 }
 0x14b   :  { %v1199_v61 = vpop.f32.mrf.mxu1  ;;  %v1147_v8 = vadd.f32 %v1146_v60, %v1094_v4  ;;  %v1196_v33 = vadd.f32 %v1195_v59, %v1143_v19  ;;  %vm1329_vm0 = vcmp.lt.s32.totalorder %v1314_v11, 256 }
 0x14c   :  { %v1148_v62 = vpop.f32.mrf.mxu0 }
 0x14d   :  { %v1201_v63 = vpop.f32.mrf.mxu1  ;;  %v1149_v9 = vadd.f32 %v1148_v62, %v1096_v5  ;;  %v1200_v22 = vadd.f32 %v1199_v61, %v1147_v8 }
 0x14e   :  { %v1150_v2 = vpop.f32.mrf.mxu0 }
 0x14f   :  { %v1203_v3 = vpop.f32.mrf.mxu1  ;;  %v1151_v23 = vadd.f32 %v1150_v2, %v1098_v14  ;;  %v1202_v24 = vadd.f32 %v1201_v63, %v1149_v9  ;;  %v1825_v9 = vmov 1966171168  }
 0x150   :  { %v1152_v12 = vpop.f32.mrf.mxu0  ;;  %v1312_v10 = vunpack.c.l.s4 %v1825_v9 }
 0x151   :  { %v1205_v13 = vpop.f32.mrf.mxu1  ;;  %v1153_v25 = vadd.f32 %v1152_v12, %v1100_v15  ;;  %v1204_v36 = vadd.f32 %v1203_v3, %v1151_v23 }
 0x153   :  { %v1206_v37 = vadd.f32 %v1205_v13, %v1153_v25 }
 0x162   :  { %v1242_v20 = vpop.f32.mrf.mxu0 }
 0x163   :  { %v1252_v21 = vpop.f32.mrf.mxu1  ;;  %v1243_v28 = vadd.f32 %v1242_v20, %v1190_v16  ;;  %v1313_v20 = vunpack.c.0.s8 %v1312_v10 }
 0x164   :  { %v1244_v26 = vpop.f32.mrf.mxu0  ;;  %v1253_v29 = vadd.f32 %v1252_v21, %v1200_v22  ;;  %v1315_v21 = vshrl.u32 %v1314_v11, 7 }
 0x165   :  { %v1254_v27 = vpop.f32.mrf.mxu1  ;;  %v1245_v30 = vadd.f32 %v1244_v26, %v1192_v17  ;;  %v1335_v46 = vmul.f32 %v1243_v28, %v1243_v28 }
 0x166   :  { %v1255_v31 = vadd.f32 %v1254_v27, %v1202_v24  ;;  %v1246_v34 = vpop.f32.mrf.mxu0  ;;  %v1339_v54 = vmul.f32 %v1253_v29, %v1253_v29 }
 0x167   :  { %v1256_v35 = vpop.f32.mrf.mxu1  ;;  %v1558_v38 = vpack.c.bf16 %v1245_v30, %v1243_v28  ;;  %v1247_v40 = vadd.f32 %v1246_v34, %v1194_v32  ;;  %v1336_v47 = vmul.f32 %v1245_v30, %v1245_v30 }
 0x168   :  { %v1560_v39 = vpack.c.bf16 %v1255_v31, %v1253_v29  ;;  %v1248_v41 = vpop.f32.mrf.mxu0  ;;  %v1257_v43 = vadd.f32 %v1256_v35, %v1204_v36  ;;  %v1340_v57 = vmul.f32 %v1255_v31, %v1255_v31 }
 0x169   :  { %v1258_v42 = vpop.f32.mrf.mxu1  ;;  %1285 = vst [vmem:[%s2365_s2] sm:$0xff] %v1558_v38  ;;  %v1249_v44 = vadd.f32 %v1248_v41, %v1196_v33  ;;  %v1290_v48 = vadd.f32 %v1247_v40, %v1243_v28  ;;  %v1337_v49 = vmul.f32 %v1247_v40, %v1247_v40 }
 0x16a   :  { %1287 = vst [vmem:[%s2365_s2 + $0x10] sm:$0xff] %v1560_v39  ;;  %v1259_v45 = vadd.f32 %v1258_v42, %v1206_v37  ;;  %v1341_v61 = vmul.f32 %v1257_v43, %v1257_v43  ;;  %v1289_v37 = vld [vmem:[%s2364_s3] ss:$8 sm:$0x3] }
 0x16b   :  { %v1559_v50 = vpack.c.bf16 %v1249_v44, %v1247_v40  ;;  %v1299_v51 = vadd.f32 %v1249_v44, %v1245_v30  ;;  %v1338_v52 = vmul.f32 %v1249_v44, %v1249_v44  ;;  %v1343_v55 = vadd.f32 %v1337_v49, %v1335_v46  ;;  %v1556_v40 = vld [vmem:[%s2364_s3 + $0x1] ss:$8 sm:$0x3] }
 0x16c   :  { %v1561_v53 = vpack.c.bf16 %v1259_v45, %v1257_v43  ;;  %v1291_v56 = vadd.f32 %v1290_v48, %v1253_v29  ;;  %v1342_v0 = vmul.f32 %v1259_v45, %v1259_v45  ;;  %v1316_v30 = vsub.s32 %v1313_v20, %v1315_v21 }
 0x16d   :  { %1286 = vst [vmem:[%s2365_s2 + $0x8] sm:$0xff] %v1559_v50  ;;  %v1352_v58 = vadd.f32 %v1338_v52, %v1336_v47  ;;  %v1300_v59 = vadd.f32 %v1299_v51, %v1255_v31  ;;  %v1344_v62 = vadd.f32 %v1343_v55, %v1339_v54 }
 0x16e   :  { %1288 = vst [vmem:[%s2365_s2 + $0x18] sm:$0xff] %v1561_v53  ;;  %v1292_v60 = vadd.f32 %v1291_v56, %v1257_v43 }
 0x16f   :  { %v1301_v63 = vadd.f32 %v1300_v59, %v1259_v45  ;;  %v1353_v1 = vadd.f32 %v1352_v58, %v1340_v57  ;;  %v1345_v3 = vadd.f32 %v1344_v62, %v1341_v61 }
 0x170   :  { %v1293_v2 = vrot.slane %v1292_v60, 4 }
 0x171   :  { %v1302_v4 = vrot.slane %v1301_v63, 4  ;;  %v1354_v5 = vadd.f32 %v1353_v1, %v1342_v0  ;;  %v1346_v7 = vrot.slane %v1345_v3, 4 }
 0x172   :  { %v1294_v6 = vadd.f32 %v1293_v2, %v1292_v60 }
 0x173   :  { %v1303_v8 = vadd.f32 %v1302_v4, %v1301_v63  ;;  %v1355_v12 = vrot.slane %v1354_v5, 4  ;;  %v1347_v14 = vadd.f32 %v1346_v7, %v1345_v3 }
 0x174   :  { %v1295_v13 = vrot.slane %v1294_v6, 2 }
 0x175   :  { %v1304_v15 = vrot.slane %v1303_v8, 2  ;;  %v1356_v16 = vadd.f32 %v1355_v12, %v1354_v5  ;;  %v1348_v18 = vrot.slane %v1347_v14, 2 }
 0x176   :  { %v1296_v17 = vadd.f32 %v1295_v13, %v1294_v6 }
 0x177   :  { %v1305_v19 = vadd.f32 %v1304_v15, %v1303_v8  ;;  %v1357_v22 = vrot.slane %v1356_v16, 2  ;;  %v1349_v24 = vadd.f32 %v1348_v18, %v1347_v14 }
 0x178   :  { %v1297_v23 = vrot.slane %v1296_v17, 1 }
 0x179   :  { %v1306_v25 = vrot.slane %v1305_v19, 1  ;;  %v1358_v26 = vadd.f32 %v1357_v22, %v1356_v16  ;;  %v1350_v27 = vrot.slane %v1349_v24, 1 }
 0x17a   :  { %v1298_v28 = vadd.f32 %v1297_v23, %v1296_v17 }
 0x17b   :  { %v1307_v29 = vadd.f32 %v1306_v25, %v1305_v19  ;;  %v1359_v31 = vrot.slane %v1358_v26, 1  ;;  %v1351_v32 = vadd.f32 %v1350_v27, %v1349_v24 }
 0x17d   :  { %v1310_v33 = vcombine.low %v1298_v28, %v1307_v29  ;;  %v1360_v34 = vadd.f32 %v1359_v31, %v1358_v26 }
 0x17f   :  { %v1317_v35 = vrot.slane %v1310_v33, %v1316_v30  ;;  %v1363_v36 = vcombine.low %v1351_v32, %v1360_v34 }
 0x181   :  { %v1324_v38 = vrot.slane %v1317_v35, %v1316_v30  ;;  %v1370_v39 = vrot.slane %v1363_v36, %v1316_v30 }
 0x183   :  { %v1326_v41 = vadd.f32 %v1324_v38, %v1289_v37  ;;  %v1377_v42 = vrot.slane %v1370_v39, %v1316_v30 }
 0x185   :  { %1331 = vst.msk [vmem:[%s2364_s3] ss:$8 sm:$0x3] %vm1329_vm0, %v1326_v41  ;;  %v1379_v43 = vadd.f32 %v1556_v40, %v1377_v42 }
 0x187   :  { %1557 = vst.msk [vmem:[%s2364_s3 + $0x1] ss:$8 sm:$0x3] %vm1329_vm0, %v1379_v43 }

// kernel: generator_forward.12
= control target key start
LH: loop header
LB: loop body
LE: loop exit
PB: predicated region body
PF: predicated region fallthrough
CT: control target
= control target key end

     0   :  { %v28_v0 = vlaneseq  ;;  %s164_s0 = inlined_call_operand.vmem [shape: bf16[32,256], index: 0, kind: input, shape index: {}]   ;;  %s165_s1 = inlined_call_operand.vmem [shape: f32[1,256], index: 1, kind: input, shape index: {}]   ;;  %s166_s2 = inlined_call_operand.vmem [shape: f32[1,256], index: 2, kind: input, shape index: {}]   ;;  %s167_s3 = inlined_call_operand.vmem [shape: bf16[32,256], index: 3, kind: output, shape index: {}]  }
   0x1   :  { %v14_v1 = vld [vmem:[%s164_s0] sm:$0xff]  ;;  %v15_v3 = vld [vmem:[%s164_s0 + $0x8] sm:$0xff]  ;;  %v16_v4 = vld [vmem:[%s164_s0 + $0x10] sm:$0xff] }
   0x2   :  { %v29_v2 = vshrl.u32 %v28_v0, 7  ;;  %v17_v5 = vld [vmem:[%s164_s0 + $0x18] sm:$0xff]  ;;  %v18_v6 = vunpack.c.l.bf16 %v14_v1  ;;  %v19_v7 = vunpack.c.h.bf16 %v14_v1  ;;  %v26_v8 = vld [vmem:[%s165_s1] sm:$0x3]  ;;  %v20_v12 = vunpack.c.l.bf16 %v15_v3 }
   0x3   :  { %v46_v9 = vld [vmem:[%s166_s2] sm:$0x3]  ;;  %v21_v13 = vunpack.c.h.bf16 %v15_v3  ;;  %v22_v14 = vunpack.c.l.bf16 %v16_v4  ;;  %v23_v15 = vunpack.c.h.bf16 %v16_v4  ;;  %v24_v16 = vunpack.c.l.bf16 %v17_v5 }
   0x4   :  { %v30_v10 = vsub.s32 0, %v29_v2  ;;  %v34_v11 = vsub.s32 1, %v29_v2  ;;  %v25_v17 = vunpack.c.h.bf16 %v17_v5 }
   0x6   :  { %v31_v18 = vrot.slane %v26_v8, %v30_v10  ;;  %v35_v19 = vrot.slane %v26_v8, %v34_v11  ;;  %v51_v20 = vrot.slane %v46_v9, %v30_v10  ;;  %v55_v21 = vrot.slane %v46_v9, %v34_v11 }
   0x8   :  { %v38_v22 = vmul.f32 %v31_v18, %v18_v6  ;;  %v39_v23 = vmul.f32 %v35_v19, %v19_v7  ;;  %v40_v24 = vmul.f32 %v31_v18, %v20_v12  ;;  %v41_v25 = vmul.f32 %v35_v19, %v21_v13 }
   0x9   :  { %v42_v26 = vmul.f32 %v31_v18, %v22_v14  ;;  %v43_v27 = vmul.f32 %v35_v19, %v23_v15  ;;  %v44_v28 = vmul.f32 %v31_v18, %v24_v16  ;;  %v45_v29 = vmul.f32 %v35_v19, %v25_v17 }
   0xa   :  { %v58_v30 = vadd.f32 %v51_v20, %v38_v22  ;;  %v59_v31 = vadd.f32 %v55_v21, %v39_v23  ;;  %v60_v32 = vadd.f32 %v51_v20, %v40_v24  ;;  %v61_v33 = vadd.f32 %v55_v21, %v41_v25 }
   0xb   :  { %v62_v34 = vadd.f32 %v51_v20, %v42_v26  ;;  %v63_v35 = vadd.f32 %v55_v21, %v43_v27  ;;  %v64_v36 = vadd.f32 %v51_v20, %v44_v28  ;;  %v65_v37 = vadd.f32 %v55_v21, %v45_v29 }
   0xc   :  { %v66_v38 = vmax.f32 %v58_v30, 0.0  ;;  %v67_v39 = vmax.f32 %v59_v31, 0.0  ;;  %v68_v40 = vmax.f32 %v60_v32, 0.0  ;;  %v69_v41 = vmax.f32 %v61_v33, 0.0 }
   0xd   :  { %v70_v42 = vmax.f32 %v62_v34, 0.0  ;;  %v71_v43 = vmax.f32 %v63_v35, 0.0  ;;  %v72_v44 = vmax.f32 %v64_v36, 0.0  ;;  %v73_v45 = vmax.f32 %v65_v37, 0.0 }
   0xe   :  { %v110_v46 = vpack.c.bf16 %v67_v39, %v66_v38  ;;  %v111_v47 = vpack.c.bf16 %v69_v41, %v68_v40 }
   0xf   :  { %v112_v48 = vpack.c.bf16 %v71_v43, %v70_v42  ;;  %v113_v49 = vpack.c.bf16 %v73_v45, %v72_v44 }
  0x10   :  { %98 = vst [vmem:[%s167_s3] sm:$0xff] %v110_v46  ;;  %99 = vst [vmem:[%s167_s3 + $0x8] sm:$0xff] %v111_v47 }
  0x11   :  { %100 = vst [vmem:[%s167_s3 + $0x10] sm:$0xff] %v112_v48  ;;  %101 = vst [vmem:[%s167_s3 + $0x18] sm:$0xff] %v113_v49 }

// kernel: squeeze.162
= control target key start
LH: loop header
LB: loop body
LE: loop exit
PB: predicated region body
PF: predicated region fallthrough
CT: control target
= control target key end

     0   :  { %s40_s8 = smov 32   ;;  %vm8_vm0 = vcmask 261120   ;;  %s41_s9 = smov 64   ;;  %s58_s0 = inlined_call_operand.vmem [shape: f32[128], index: 0, kind: input, shape index: {}]   ;;  %s59_s1 = inlined_call_operand.vmem [shape: f32[4,32], index: 1, kind: output, shape index: {}]  }
   0x1   :  { %v5_v0 = vld [vmem:[%s58_s0] sm:$0x1]  ;;  %s39_s0 = smov 96  }
   0x2   :  { %6 = vst [vmem:[#allocation1] sm:$0x1] %v5_v0 }
   0x9   :  { %v10_v1 = vld [vmem:[#allocation1] sm:$0x1]  }
   0xa   :  { %v22_v2 = vld [vmem:[#allocation1] sm:$0x1]   ;;  %11 = vrot.lane.b32.xlu0 %v10_v1, %s39_s0 }
   0xb   :  { %23 = vrot.lane.b32.xlu1 %v22_v2, %s40_s8  ;;  %v7_v3 = vld [vmem:[#allocation1] sm:$0x1]  }
   0xc   :  { %v16_v4 = vld [vmem:[#allocation1] sm:$0x1]   ;;  %9 = vst.msk [vmem:[#allocation0] sm:$0x1] %vm8_vm0, %v7_v3  }
   0xe   :  { %17 = vrot.lane.b32.xlu0 %v16_v4, %s41_s9 }
  0x7c   :  { %v12_v5 = vpop.permute.xlu0 %11  }
  0x7d   :  { %v24_v6 = vpop.permute.xlu1 %23   ;;  %15 = vst.msk [vmem:[#allocation0 + $0x1] sm:$0x1] %vm8_vm0, %v12_v5  }
  0x7e   :  { %27 = vst.msk [vmem:[#allocation0 + $0x3] sm:$0x1] %vm8_vm0, %v24_v6  }
  0x80   :  { %v18_v7 = vpop.permute.xlu0 %17  }
  0x81   :  { %21 = vst.msk [vmem:[#allocation0 + $0x2] sm:$0x1] %vm8_vm0, %v18_v7  }
  0x88   :  { %v32_v8 = vld [vmem:[#allocation0] sm:$0xf] }
  0x89   :  { %35 = vst [vmem:[%s59_s1] sm:$0xf] %v32_v8 }

// kernel: tile.52
= control target key start
LH: loop header
LB: loop body
LE: loop exit
PB: predicated region body
PF: predicated region fallthrough
CT: control target
= control target key end

     0   :  { %s22_s0 = inlined_call_operand.vmem [shape: f32[32], index: 0, kind: input, shape index: {}]   ;;  %s23_s1 = inlined_call_operand.vmem [shape: f32[4,32], index: 1, kind: output, shape index: {}]  }
   0x1   :  { %v4_v0 = vld [vmem:[%s22_s0] ss:$0 sm:$0xff] }
   0x2   :  { %5 = vst [vmem:[%s23_s1] sm:$0xf] %v4_v0 }

// kernel: tile.54
= control target key start
LH: loop header
LB: loop body
LE: loop exit
PB: predicated region body
PF: predicated region fallthrough
CT: control target
= control target key end

     0   :  { %vm8_vm0 = vcmask 261120   ;;  %s40_s8 = smov 32   ;;  %s41_s9 = smov 64   ;;  %vm14_vm1 = vcmask 1048320   ;;  %vm20_vm2 = vcmask 785920   ;;  %vm26_vm3 = vcmask 523520   ;;  %s58_s0 = inlined_call_operand.vmem [shape: f32[4,32], index: 0, kind: input, shape index: {}]   ;;  %s59_s1 = inlined_call_operand.vmem [shape: f32[1,128], index: 1, kind: output, shape index: {}]  }
   0x1   :  { %v5_v0 = vld [vmem:[%s58_s0] sm:$0xf]  ;;  %s39_s0 = smov 96  }
   0x2   :  { %6 = vst [vmem:[#allocation1] sm:$0xf] %v5_v0 }
   0x9   :  { %v11_v1 = vld [vmem:[#allocation1 + $0x3] sm:$0x1]   ;;  %v23_v2 = vld [vmem:[#allocation1 + $0x1] sm:$0x1]   ;;  %v7_v3 = vld [vmem:[#allocation1] sm:$0x1]  }
   0xa   :  { %12 = vrot.lane.b32.xlu0 %v11_v1, %s39_s0  ;;  %24 = vrot.lane.b32.xlu1 %v23_v2, %s40_s8  ;;  %v17_v4 = vld [vmem:[#allocation1 + $0x2] sm:$0x1]   ;;  %9 = vst.msk [vmem:[#allocation0] sm:$0x1] %vm8_vm0, %v7_v3  }
   0xe   :  { %18 = vrot.lane.b32.xlu0 %v17_v4, %s41_s9 }
  0x7c   :  { %v13_v5 = vpop.permute.xlu0 %12   ;;  %v25_v6 = vpop.permute.xlu1 %24  }
  0x7d   :  { %15 = vst.msk [vmem:[#allocation0] sm:$0x1] %vm14_vm1, %v13_v5  }
  0x80   :  { %v19_v7 = vpop.permute.xlu0 %18  }
  0x81   :  { %21 = vst.msk [vmem:[#allocation0] sm:$0x1] %vm20_vm2, %v19_v7  }
  0x82   :  { %27 = vst.msk [vmem:[#allocation0] sm:$0x1] %vm26_vm3, %v25_v6  }
  0x89   :  { %v32_v8 = vld [vmem:[#allocation0] sm:$0x1] }
  0x8a   :  { %35 = vst [vmem:[%s59_s1] sm:$0x1] %v32_v8 }

// kernel: generator_forward.13
= control target key start
LH: loop header
LB: loop body
LE: loop exit
PB: predicated region body
PF: predicated region fallthrough
CT: control target
= control target key end

     0   :  { %vm555_vm0 = vcmask 523264   ;;  %s1804_s1 = inlined_call_operand.vmem [shape: bf16[576,128], index: 1, kind: input, shape index: {}]   ;;  %s1805_s0 = inlined_call_operand.vmem [shape: bf16[128,576], index: 0, kind: input, shape index: {}]   ;;  %s1806_s3 = inlined_call_operand.vmem [shape: f32[8,128], index: 3, kind: output, shape index: {1}]   ;;  %s1807_s2 = inlined_call_operand.vmem [shape: bf16[128,128], index: 2, kind: output, shape index: {0}]  }
   0x1   :  { %v1359_v0 = vld [vmem:[%s1804_s1 + $0x78] sm:$0xff]   ;;  %v1363_v4 = vld [vmem:[%s1804_s1 + $0x70] sm:$0xff]   ;;  %v1367_v8 = vld [vmem:[%s1804_s1 + $0x68] sm:$0xff]  }
   0x2   :  { %v1360_v1 = vld [vmem:[%s1804_s1 + $0xf8] sm:$0xff]   ;;  %1186 = vmatprep.subr.bf16.mxu0 %v1359_v0  ;;  %v1364_v5 = vld [vmem:[%s1804_s1 + $0xf0] sm:$0xff]   ;;  %v1368_v9 = vld [vmem:[%s1804_s1 + $0xe8] sm:$0xff]  }
   0x3   :  { %v1361_v2 = vld [vmem:[%s1804_s1 + $0x38] sm:$0xff]   ;;  %1250 = vmatprep.subr.bf16.mxu1 %v1360_v1  ;;  %v1365_v6 = vld [vmem:[%s1804_s1 + $0x30] sm:$0xff]   ;;  %v1369_v10 = vld [vmem:[%s1804_s1 + $0x28] sm:$0xff]  }
   0x4   :  { %v1362_v3 = vld [vmem:[%s1804_s1 + $0xb8] sm:$0xff]   ;;  %1187 = vmatpush3.bf16.msra.mxu0 %v1361_v2  ;;  %v1366_v7 = vld [vmem:[%s1804_s1 + $0xb0] sm:$0xff]   ;;  %v1370_v11 = vld [vmem:[%s1804_s1 + $0xa8] sm:$0xff]  }
   0x5   :  { %1251 = vmatpush3.bf16.msra.mxu1 %v1362_v3  ;;  %1188 = vmatprep.subr.bf16.mxu0 %v1363_v4  ;;  %v1371_v12 = vld [vmem:[%s1804_s1 + $0x60] sm:$0xff]   ;;  %v1375_v16 = vld [vmem:[%s1804_s1 + $0x58] sm:$0xff]   ;;  %v1379_v20 = vld [vmem:[%s1804_s1 + $0x50] sm:$0xff]  }
   0x6   :  { %1252 = vmatprep.subr.bf16.mxu1 %v1364_v5  ;;  %v1372_v13 = vld [vmem:[%s1804_s1 + $0xe0] sm:$0xff]   ;;  %v1376_v17 = vld [vmem:[%s1804_s1 + $0xd8] sm:$0xff]   ;;  %v1380_v21 = vld [vmem:[%s1804_s1 + $0xd0] sm:$0xff]  }
   0x7   :  { %v1373_v14 = vld [vmem:[%s1804_s1 + $0x20] sm:$0xff]   ;;  %v1377_v18 = vld [vmem:[%s1804_s1 + $0x18] sm:$0xff]   ;;  %v1381_v22 = vld [vmem:[%s1804_s1 + $0x10] sm:$0xff]  }
   0x8   :  { %1189 = vmatpush3.bf16.msra.mxu0 %v1365_v6  ;;  %v1374_v15 = vld [vmem:[%s1804_s1 + $0xa0] sm:$0xff]   ;;  %v1378_v19 = vld [vmem:[%s1804_s1 + $0x98] sm:$0xff]   ;;  %v1382_v23 = vld [vmem:[%s1804_s1 + $0x90] sm:$0xff]  }
   0x9   :  { %1253 = vmatpush3.bf16.msra.mxu1 %v1366_v7  ;;  %1190 = vmatprep.subr.bf16.mxu0 %v1367_v8  ;;  %v1383_v24 = vld [vmem:[%s1804_s1 + $0x48] sm:$0xff]   ;;  %v1387_v28 = vld [vmem:[%s1804_s1 + $0x40] sm:$0xff]   ;;  %v1397_v36 = vld [vmem:[%s1804_s1 + $0x118] sm:$0xff]  }
   0xa   :  { %1254 = vmatprep.subr.bf16.mxu1 %v1368_v9  ;;  %v1384_v25 = vld [vmem:[%s1804_s1 + $0xc8] sm:$0xff]   ;;  %v1388_v29 = vld [vmem:[%s1804_s1 + $0xc0] sm:$0xff]   ;;  %v1410_v42 = vld [vmem:[%s1804_s1 + $0x110] sm:$0xff]  }
   0xb   :  { %v1385_v26 = vld [vmem:[%s1804_s1 + $0x8] sm:$0xff]   ;;  %v1389_v30 = vld [vmem:[%s1804_s1] sm:$0xff]   ;;  %v1406_v43 = vld [vmem:[%s1805_s0 + $0x5c] ss:$20 sps:$4 sm:$0xff]  }
   0xc   :  { %1191 = vmatpush3.bf16.msra.mxu0 %v1369_v10  ;;  %v1386_v27 = vld [vmem:[%s1804_s1 + $0x88] sm:$0xff]   ;;  %v1390_v31 = vld [vmem:[%s1804_s1 + $0x80] sm:$0xff]   ;;  %v1411_v47 = vld [vmem:[%s1805_s0 + $0x7c] ss:$20 sps:$4 sm:$0xff]  }
   0xd   :  { %1255 = vmatpush3.bf16.msra.mxu1 %v1370_v11  ;;  %1192 = vmatprep.subr.bf16.mxu0 %v1371_v12  ;;  %v1391_v32 = vld [vmem:[%s1805_s0] ss:$20 sps:$4 sm:$0xff]   ;;  %v1393_v33 = vld [vmem:[%s1805_s0 + $0x4] ss:$20 sps:$4 sm:$0xff]   ;;  %v1394_v34 = vld [vmem:[%s1805_s0 + $0x8] ss:$20 sps:$4 sm:$0xff]  }
   0xe   :  { %1256 = vmatprep.subr.bf16.mxu1 %v1372_v13  ;;  %v1396_v35 = vld [vmem:[%s1805_s0 + $0xc] ss:$20 sps:$4 sm:$0xff]   ;;  %612 = vmatprep.mubr.bf16.mxu0 %v1393_v33  ;;  %v1400_v38 = vld [vmem:[%s1805_s0 + $0x34] ss:$20 sps:$4 sm:$0xff]   ;;  %v1403_v40 = vld [vmem:[%s1805_s0 + $0x30] ss:$20 sps:$4 sm:$0xff]  }
   0xf   :  { %709 = vmatprep.mubr.bf16.mxu1 %v1396_v35  ;;  %v1398_v37 = vld [vmem:[%s1805_s0 + $0x2c] ss:$20 sps:$4 sm:$0xff]   ;;  %v1402_v39 = vld [vmem:[%s1805_s0 + $0x28] ss:$20 sps:$4 sm:$0xff]   ;;  %v1408_v44 = vld [vmem:[%s1805_s0 + $0x50] ss:$20 sps:$4 sm:$0xff]  }
  0x10   :  { %1193 = vmatpush3.bf16.msra.mxu0 %v1373_v14  ;;  %v1404_v41 = vld [vmem:[%s1805_s0 + $0x54] ss:$20 sps:$4 sm:$0xff]   ;;  %v1409_v45 = vld [vmem:[%s1805_s0 + $0x58] ss:$20 sps:$4 sm:$0xff]   ;;  %v1436_v49 = vld [vmem:[%s1804_s1 + $0x100] sm:$0xff]   ;;  %v1451_v12 = vmov 0.0  }
  0x11   :  { %1257 = vmatpush3.bf16.msra.mxu1 %v1374_v15  ;;  %1194 = vmatprep.subr.bf16.mxu0 %v1375_v16  ;;  %v1423_v46 = vld [vmem:[%s1804_s1 + $0x108] sm:$0xff]   ;;  %v1413_v48 = vld [vmem:[%s1805_s0 + $0x84] ss:$20 sps:$4 sm:$0xff]   ;;  %v1416_v51 = vld [vmem:[%s1805_s0 + $0x80] ss:$20 sps:$4 sm:$0xff]   ;;  %18 = vst [vmem:[%s1806_s3] sm:$0xff] %v1451_v12 }
  0x12   :  { %1258 = vmatprep.subr.bf16.mxu1 %v1376_v17  ;;  %v1415_v50 = vld [vmem:[%s1805_s0 + $0x78] ss:$20 sps:$4 sm:$0xff]   ;;  %v1421_v54 = vld [vmem:[%s1805_s0 + $0xa0] ss:$20 sps:$4 sm:$0xff]   ;;  %v1422_v55 = vld [vmem:[%s1805_s0 + $0xa8] ss:$20 sps:$4 sm:$0xff]  }
  0x13   :  { %v1417_v52 = vld [vmem:[%s1805_s0 + $0xa4] ss:$20 sps:$4 sm:$0xff]   ;;  %v1419_v53 = vld [vmem:[%s1805_s0 + $0xac] ss:$20 sps:$4 sm:$0xff]   ;;  %v1426_v57 = vld [vmem:[%s1805_s0 + $0xd4] ss:$20 sps:$4 sm:$0xff]  }
  0x14   :  { %1195 = vmatpush3.bf16.msra.mxu0 %v1377_v18  ;;  %v1424_v56 = vld [vmem:[%s1805_s0 + $0xcc] ss:$20 sps:$4 sm:$0xff]   ;;  %v1428_v58 = vld [vmem:[%s1805_s0 + $0xc8] ss:$20 sps:$4 sm:$0xff]   ;;  %v1429_v59 = vld [vmem:[%s1805_s0 + $0xd0] ss:$20 sps:$4 sm:$0xff]  }
  0x15   :  { %1259 = vmatpush3.bf16.msra.mxu1 %v1378_v19  ;;  %1196 = vmatprep.subr.bf16.mxu0 %v1379_v20  ;;  %v1430_v60 = vld [vmem:[%s1805_s0 + $0xf4] ss:$20 sps:$4 sm:$0xff]   ;;  %v1432_v61 = vld [vmem:[%s1805_s0 + $0xfc] ss:$20 sps:$4 sm:$0xff]   ;;  %v1435_v63 = vld [vmem:[%s1805_s0 + $0xf8] ss:$20 sps:$4 sm:$0xff]  }
  0x16   :  { %1260 = vmatprep.subr.bf16.mxu1 %v1380_v21  ;;  %v1434_v62 = vld [vmem:[%s1805_s0 + $0xf0] ss:$20 sps:$4 sm:$0xff]   ;;  %v1441_v2 = vld [vmem:[%s1805_s0 + $0x118] ss:$20 sps:$4 sm:$0xff]   ;;  %v1442_v3 = vld [vmem:[%s1805_s0 + $0x120] ss:$20 sps:$4 sm:$0xff]  }
  0x17   :  { %v1437_v0 = vld [vmem:[%s1805_s0 + $0x11c] ss:$20 sps:$4 sm:$0xff]   ;;  %v1439_v1 = vld [vmem:[%s1805_s0 + $0x124] ss:$20 sps:$4 sm:$0xff]   ;;  %v1447_v8 = vld [vmem:[%s1805_s0 + $0x60] ss:$20 sps:$4 sm:$0xff]  }
  0x18   :  { %1197 = vmatpush3.bf16.msra.mxu0 %v1381_v22  ;;  %v1443_v4 = vld [vmem:[%s1805_s0 + $0x10] ss:$20 sps:$4 sm:$0xff]   ;;  %v1445_v6 = vld [vmem:[%s1805_s0 + $0x38] ss:$20 sps:$4 sm:$0xff]   ;;  %v1448_v9 = vld [vmem:[%s1805_s0 + $0x100] ss:$20 sps:$4 sm:$0xff]  }
  0x19   :  { %1261 = vmatpush3.bf16.msra.mxu1 %v1382_v23  ;;  %1198 = vmatprep.subr.bf16.mxu0 %v1383_v24  ;;  %v1444_v5 = vld [vmem:[%s1805_s0 + $0xb0] ss:$20 sps:$4 sm:$0xff]   ;;  %v1446_v7 = vld [vmem:[%s1805_s0 + $0xd8] ss:$20 sps:$4 sm:$0xff]   ;;  %v1449_v10 = vld [vmem:[%s1805_s0 + $0x88] ss:$20 sps:$4 sm:$0xff]  }
  0x1a   :  { %1262 = vmatprep.subr.bf16.mxu1 %v1384_v25  ;;  %v1450_v11 = vld [vmem:[%s1805_s0 + $0x128] ss:$20 sps:$4 sm:$0xff]  }
  0x1c   :  { %1199 = vmatpush3.bf16.msra.mxu0 %v1385_v26 }
  0x1d   :  { %1263 = vmatpush3.bf16.msra.mxu1 %v1386_v27  ;;  %1200 = vmatprep.subr.bf16.mxu0 %v1387_v28 }
  0x1e   :  { %1264 = vmatprep.subr.bf16.mxu1 %v1388_v29 }
  0x20   :  { %1201 = vmatpush3.bf16.msra.mxu0 %v1389_v30 }
  0x21   :  { %1265 = vmatpush3.bf16.msra.mxu1 %v1390_v31  ;;  %1326 = vmatprep.subr.bf16.mxu0 %v1397_v36 }
  0x22   :  { %1350 = vmatprep.subr.bf16.mxu1 %v1397_v36 }
  0x23   :  { %613 = vmatmul.mubr.bf16.vlgmr.msra.gmra.mxu0 %v1391_v32 }
  0x24   :  { %710 = vmatmul.mubr.bf16.vlgmr.msra.gmra.mxu1 %v1394_v34  ;;  %1327 = vmatpush3.bf16.msra.mxu0 %v1397_v36 }
  0x25   :  { %620 = vmatprep.mubr.bf16.mxu0 %v1398_v37  ;;  %717 = vmatprep.mubr.bf16.mxu1 %v1400_v38 }
  0x26   :  { %1354 = vmatpush3.bf16.msra.mxu1 %v1397_v36  ;;  %1328 = vmatprep.subr.bf16.mxu0 %v1410_v42 }
  0x27   :  { %1351 = vmatprep.subr.bf16.mxu1 %v1410_v42 }
  0x28   :  { %1329 = vmatpush3.bf16.msra.mxu0 %v1410_v42 }
  0x29   :  { %1330 = vmatprep.subr.bf16.mxu0 %v1423_v46 }
  0x2a   :  { %1355 = vmatpush3.bf16.msra.mxu1 %v1410_v42 }
  0x2b   :  { %621 = vmatmul.mubr.bf16.gmra.mxu0 %v1402_v39  ;;  %1352 = vmatprep.subr.bf16.mxu1 %v1423_v46 }
  0x2c   :  { %718 = vmatmul.mubr.bf16.gmra.mxu1 %v1403_v40  ;;  %628 = vmatprep.mubr.bf16.mxu0 %v1404_v41 }
  0x2d   :  { %725 = vmatprep.mubr.bf16.mxu1 %v1406_v43  ;;  %1331 = vmatpush3.bf16.msra.mxu0 %v1423_v46 }
  0x2e   :  { %1356 = vmatpush3.bf16.msra.mxu1 %v1423_v46  ;;  %1332 = vmatprep.subr.bf16.mxu0 %v1436_v49 }
  0x2f   :  { %1353 = vmatprep.subr.bf16.mxu1 %v1436_v49 }
  0x31   :  { %1333 = vmatpush3.bf16.msra.mxu0 %v1436_v49 }
  0x32   :  { %1357 = vmatpush3.bf16.msra.mxu1 %v1436_v49 }
  0x33   :  { %629 = vmatmul.mubr.bf16.gmra.mxu0 %v1408_v44 }
  0x34   :  { %726 = vmatmul.mubr.bf16.gmra.mxu1 %v1409_v45  ;;  %636 = vmatprep.mubr.bf16.mxu0 %v1411_v47 }
  0x35   :  { %733 = vmatprep.mubr.bf16.mxu1 %v1413_v48 }
  0x3b   :  { %637 = vmatmul.mubr.bf16.gmra.mxu0 %v1415_v50 }
  0x3c   :  { %734 = vmatmul.mubr.bf16.gmra.mxu1 %v1416_v51  ;;  %644 = vmatprep.mubr.bf16.mxu0 %v1417_v52 }
  0x3d   :  { %741 = vmatprep.mubr.bf16.mxu1 %v1419_v53 }
  0x43   :  { %645 = vmatmul.mubr.bf16.gmra.mxu0 %v1421_v54 }
  0x44   :  { %742 = vmatmul.mubr.bf16.gmra.mxu1 %v1422_v55  ;;  %652 = vmatprep.mubr.bf16.mxu0 %v1424_v56 }
  0x45   :  { %749 = vmatprep.mubr.bf16.mxu1 %v1426_v57 }
  0x4b   :  { %653 = vmatmul.mubr.bf16.gmra.mxu0 %v1428_v58 }
  0x4c   :  { %750 = vmatmul.mubr.bf16.gmra.mxu1 %v1429_v59  ;;  %660 = vmatprep.mubr.bf16.mxu0 %v1430_v60 }
  0x4d   :  { %757 = vmatprep.mubr.bf16.mxu1 %v1432_v61 }
  0x53   :  { %661 = vmatmul.mubr.bf16.gmra.mxu0 %v1434_v62 }
  0x54   :  { %758 = vmatmul.mubr.bf16.gmra.mxu1 %v1435_v63  ;;  %668 = vmatprep.mubr.bf16.mxu0 %v1437_v0 }
  0x55   :  { %765 = vmatprep.mubr.bf16.mxu1 %v1439_v1 }
  0x5b   :  { %669 = vmatmul.mubr.bf16.gmra.mxu0 %v1441_v2 }
  0x5c   :  { %766 = vmatmul.mubr.bf16.gmra.mxu1 %v1442_v3  ;;  %1334 = vmatprep.mubr.msk.bf16.mxu0 %vm555_vm0, %v1443_v4 }
  0x5d   :  { %1342 = vmatprep.mubr.msk.bf16.mxu1 %vm555_vm0, %v1444_v5 }
  0x63   :  { %1335 = vmatmul.mubr.msk.bf16.vlgmr.msra.gmra.mxu0 %vm555_vm0, %v1445_v6 }
  0x64   :  { %1343 = vmatmul.mubr.msk.bf16.vlgmr.msra.gmra.mxu1 %vm555_vm0, %v1446_v7  ;;  %1338 = vmatprep.mubr.msk.bf16.mxu0 %vm555_vm0, %v1447_v8 }
  0x65   :  { %1346 = vmatprep.mubr.msk.bf16.mxu1 %vm555_vm0, %v1448_v9 }
  0x6b   :  { %1339 = vmatmul.mubr.msk.bf16.gmra.mxu0 %vm555_vm0, %v1449_v10 }
  0x6c   :  { %1347 = vmatmul.mubr.msk.bf16.gmra.mxu1 %vm555_vm0, %v1450_v11 }
  0xe3   :  { %v1202_v13 = vpop.f32.mrf.mxu0 }
  0xe4   :  { %v1266_v14 = vpop.f32.mrf.mxu1 }
  0xe5   :  { %v1203_v15 = vpop.f32.mrf.mxu0 }
  0xe6   :  { %v1204_v16 = vadd.f32 %v1203_v15, %v1202_v13  ;;  %v1267_v17 = vpop.f32.mrf.mxu1 }
  0xe7   :  { %v1268_v18 = vadd.f32 %v1267_v17, %v1266_v14  ;;  %v1205_v19 = vpop.f32.mrf.mxu0 }
  0xe8   :  { %v1269_v20 = vpop.f32.mrf.mxu1 }
  0xe9   :  { %v1206_v21 = vpop.f32.mrf.mxu0  ;;  %v1711_v22 = vadd.f32 %v1268_v18, %v1204_v16 }
  0xea   :  { %v1270_v23 = vpop.f32.mrf.mxu1  ;;  %v1207_v12 = vadd.f32 %v1206_v21, %v1205_v19 }
  0xeb   :  { %1808 = vst [vmem:[#allocation2_spill] sm:$0xff] %v1711_v22  ;;  %v1208_v24 = vpop.f32.mrf.mxu0  ;;  %v1271_v13 = vadd.f32 %v1270_v23, %v1269_v20 }
  0xec   :  { %v1272_v25 = vpop.f32.mrf.mxu1 }
  0xed   :  { %v1209_v26 = vpop.f32.mrf.mxu0 }
  0xee   :  { %v1273_v27 = vpop.f32.mrf.mxu1  ;;  %v1210_v15 = vadd.f32 %v1209_v26, %v1208_v24 }
  0xef   :  { %v1211_v28 = vpop.f32.mrf.mxu0  ;;  %v1274_v16 = vadd.f32 %v1273_v27, %v1272_v25 }
  0xf0   :  { %v1275_v29 = vpop.f32.mrf.mxu1 }
  0xf1   :  { %v1212_v30 = vpop.f32.mrf.mxu0 }
  0xf2   :  { %v1276_v31 = vpop.f32.mrf.mxu1  ;;  %v1213_v17 = vadd.f32 %v1212_v30, %v1211_v28  ;;  %v720_v28 = vadd.f32 %v1274_v16, %v1210_v15 }
  0xf3   :  { %v1214_v32 = vpop.f32.mrf.mxu0  ;;  %v1277_v18 = vadd.f32 %v1276_v31, %v1275_v29  ;;  %v715_v31 = vadd.f32 %v1271_v13, %v1207_v12 }
  0xf4   :  { %v1278_v33 = vpop.f32.mrf.mxu1 }
  0xf5   :  { %v1215_v34 = vpop.f32.mrf.mxu0  ;;  %v723_v30 = vadd.f32 %v1277_v18, %v1213_v17 }
  0xf6   :  { %v1279_v35 = vpop.f32.mrf.mxu1 }
  0xf7   :  { %v1713_v36 = vpop.f32.mrf.mxu0 }
  0xf8   :  { %1809 = vst [vmem:[#allocation3_spill] sm:$0xff] %v1713_v36  ;;  %v1715_v37 = vpop.f32.mrf.mxu1 }
  0xf9   :  { %1810 = vst [vmem:[#allocation4_spill] sm:$0xff] %v1715_v37  ;;  %v1717_v38 = vpop.f32.mrf.mxu0 }
  0xfa   :  { %1811 = vst [vmem:[#allocation5_spill] sm:$0xff] %v1717_v38  ;;  %v1719_v39 = vpop.f32.mrf.mxu1 }
  0xfb   :  { %1812 = vst [vmem:[#allocation6_spill] sm:$0xff] %v1719_v39  ;;  %v1220_v40 = vpop.f32.mrf.mxu0 }
  0xfc   :  { %v1284_v41 = vpop.f32.mrf.mxu1 }
  0xfd   :  { %v1221_v42 = vpop.f32.mrf.mxu0 }
  0xfe   :  { %v1285_v43 = vpop.f32.mrf.mxu1  ;;  %v1222_v22 = vadd.f32 %v1221_v42, %v1220_v40 }
  0xff   :  { %v1223_v44 = vpop.f32.mrf.mxu0 }
 0x100   :  { %v1287_v45 = vpop.f32.mrf.mxu1 }
 0x101   :  { %v1224_v46 = vpop.f32.mrf.mxu0 }
 0x102   :  { %v1288_v47 = vpop.f32.mrf.mxu1  ;;  %v1822_v40 = vld [vmem:[#allocation6_spill] sm:$0xff] }
 0x103   :  { %v1226_v48 = vpop.f32.mrf.mxu0  ;;  %v1289_v37 = vadd.f32 %v1288_v47, %v1287_v45 }
 0x104   :  { %v1290_v49 = vpop.f32.mrf.mxu1 }
 0x105   :  { %v1227_v50 = vpop.f32.mrf.mxu0 }
 0x106   :  { %v1291_v51 = vpop.f32.mrf.mxu1 }
 0x107   :  { %v1229_v52 = vpop.f32.mrf.mxu0  ;;  %v1292_v38 = vadd.f32 %v1291_v51, %v1290_v49  ;;  %v1823_v51 = vld [vmem:[#allocation2_spill] sm:$0xff] }
 0x108   :  { %v1293_v53 = vpop.f32.mrf.mxu1 }
 0x109   :  { %v1230_v54 = vpop.f32.mrf.mxu0 }
 0x10a   :  { %v1294_v55 = vpop.f32.mrf.mxu1  ;;  %v1231_v26 = vadd.f32 %v1230_v54, %v1229_v52 }
 0x10b   :  { %v1232_v56 = vpop.f32.mrf.mxu0  ;;  %v1295_v25 = vadd.f32 %v1294_v55, %v1293_v53 }
 0x10c   :  { %v1296_v57 = vpop.f32.mrf.mxu1 }
 0x10d   :  { %v1233_v58 = vpop.f32.mrf.mxu0  ;;  %v747_v55 = vadd.f32 %v1295_v25, %v1231_v26 }
 0x10e   :  { %v1297_v59 = vpop.f32.mrf.mxu1  ;;  %v1234_v19 = vadd.f32 %v1233_v58, %v1232_v56 }
 0x10f   :  { %v1235_v60 = vpop.f32.mrf.mxu0  ;;  %v1298_v21 = vadd.f32 %v1297_v59, %v1296_v57 }
 0x110   :  { %v1299_v61 = vpop.f32.mrf.mxu1 }
 0x111   :  { %v1236_v62 = vpop.f32.mrf.mxu0  ;;  %v752_v45 = vadd.f32 %v1298_v21, %v1234_v19 }
 0x112   :  { %v1300_v63 = vpop.f32.mrf.mxu1  ;;  %v1237_v20 = vadd.f32 %v1236_v62, %v1235_v60 }
 0x113   :  { %v1238_v0 = vpop.f32.mrf.mxu0  ;;  %v1301_v23 = vadd.f32 %v1300_v63, %v1299_v61 }
 0x114   :  { %v1721_v1 = vpop.f32.mrf.mxu1 }
 0x115   :  { %1813 = vst [vmem:[#allocation7_spill] sm:$0xff] %v1721_v1  ;;  %v1239_v2 = vpop.f32.mrf.mxu0  ;;  %v1216_v1 = vadd.f32 %v1215_v34, %v1214_v32  ;;  %v1819_v32 = vld [vmem:[#allocation3_spill] sm:$0xff] }
 0x116   :  { %v1723_v3 = vpop.f32.mrf.mxu1  ;;  %v1240_v56 = vadd.f32 %v1239_v2, %v1238_v0 }
 0x117   :  { %1814 = vst [vmem:[#allocation8_spill] sm:$0xff] %v1723_v3  ;;  %v1725_v4 = vpop.f32.mrf.mxu0 }
 0x118   :  { %1815 = vst [vmem:[#allocation9_spill] sm:$0xff] %v1725_v4  ;;  %v1727_v5 = vpop.f32.mrf.mxu1  ;;  %v1280_v4 = vadd.f32 %v1279_v35, %v1278_v33  ;;  %v1820_v33 = vld [vmem:[#allocation5_spill] sm:$0xff]  ;;  %v1821_v35 = vld [vmem:[#allocation4_spill] sm:$0xff] }
 0x119   :  { %1816 = vst [vmem:[#allocation10_spill] sm:$0xff] %v1727_v5  ;;  %v1729_v6 = vpop.f32.mrf.mxu0  ;;  %v1286_v5 = vadd.f32 %v1285_v43, %v1284_v41  ;;  %v1219_v34 = vadd.f32 %v1820_v33, %v1819_v32  ;;  %v1283_v41 = vadd.f32 %v1822_v40, %v1821_v35 }
 0x11a   :  { %1817 = vst [vmem:[#allocation11_spill] sm:$0xff] %v1729_v6  ;;  %v1731_v7 = vpop.f32.mrf.mxu1  ;;  %v1225_v6 = vadd.f32 %v1224_v46, %v1223_v44  ;;  %v728_v44 = vadd.f32 %v1280_v4, %v1216_v1 }
 0x11b   :  { %1818 = vst [vmem:[#allocation12_spill] sm:$0xff] %v1731_v7  ;;  %v1244_v8 = vpop.f32.mrf.mxu0  ;;  %v1228_v7 = vadd.f32 %v1227_v50, %v1226_v48  ;;  %v736_v43 = vadd.f32 %v1286_v5, %v1222_v22  ;;  %v755_v48 = vadd.f32 %v1301_v23, %v1237_v20 }
 0x11c   :  { %v1308_v9 = vpop.f32.mrf.mxu1  ;;  %v739_v49 = vadd.f32 %v1289_v37, %v1225_v6 }
 0x11d   :  { %v1245_v10 = vpop.f32.mrf.mxu0  ;;  %v744_v46 = vadd.f32 %v1292_v38, %v1228_v7 }
 0x11e   :  { %v1309_v11 = vpop.f32.mrf.mxu1  ;;  %v1246_v57 = vadd.f32 %v1245_v10, %v1244_v8  ;;  %v1825_v10 = vld [vmem:[#allocation8_spill] sm:$0xff] }
 0x11f   :  { %v1247_v14 = vpop.f32.mrf.mxu0  ;;  %v1310_v22 = vadd.f32 %v1309_v11, %v1308_v9  ;;  %v1824_v9 = vld [vmem:[#allocation7_spill] sm:$0xff] }
 0x120   :  { %v1311_v3 = vpop.f32.mrf.mxu1  ;;  %v1828_v13 = vld [vmem:[#allocation10_spill] sm:$0xff] }
 0x121   :  { %v1248_v39 = vpop.f32.mrf.mxu0  ;;  %v1827_v11 = vld [vmem:[#allocation11_spill] sm:$0xff]  ;;  %v768_v26 = vadd.f32 %v1310_v22, %v1246_v57 }
 0x122   :  { %v1312_v36 = vpop.f32.mrf.mxu1  ;;  %v1249_v61 = vadd.f32 %v1248_v39, %v1247_v14  ;;  %v1829_v14 = vld [vmem:[#allocation12_spill] sm:$0xff] }
 0x123   :  { %v1336_v24 = vpop.f32.mrf.mxu0  ;;  %v1313_v1 = vadd.f32 %v1312_v36, %v1311_v3  ;;  %v1304_v36 = vadd.f32 %v1825_v10, %v1824_v9  ;;  %v1826_v3 = vld [vmem:[#allocation9_spill] sm:$0xff]  ;;  %v1307_v15 = vadd.f32 %v1829_v14, %v1828_v13 }
 0x124   :  { %v1344_v27 = vpop.f32.mrf.mxu1  ;;  %v817_v50 = vadd.f32 %v1336_v24, %v720_v28  ;;  %v1243_v12 = vadd.f32 %v1827_v11, %v1826_v3  ;;  %v731_v28 = vadd.f32 %v1283_v41, %v1219_v34 }
 0x125   :  { %v808_v29 = vpop.f32.mrf.mxu0  ;;  %v1738_v58 = vadd.f32 %v1344_v27, %v752_v45  ;;  %v771_v27 = vadd.f32 %v1313_v1, %v1249_v61  ;;  %v760_v40 = vadd.f32 %v1304_v36, %v1240_v56 }
 0x126   :  { %v840_v42 = vpop.f32.mrf.mxu1  ;;  %v809_v52 = vadd.f32 %v808_v29, %v1823_v51  ;;  %v978_v18 = vmul.f32 %v817_v50, %v817_v50 }
 0x127   :  { %v1337_v47 = vpop.f32.mrf.mxu0  ;;  %v1742_v37 = vadd.f32 %v840_v42, %v744_v46 }
 0x128   :  { %v820_v53 = vadd.f32 %v1337_v47, %v723_v30  ;;  %v1345_v54 = vpop.f32.mrf.mxu1  ;;  %v976_v2 = vmul.f32 %v809_v52, %v809_v52 }
 0x129   :  { %v1740_v59 = vadd.f32 %v1345_v54, %v755_v48  ;;  %v811_v60 = vpop.f32.mrf.mxu0 }
 0x12a   :  { %v1147_v62 = vpack.c.bf16 %v820_v53, %v817_v50  ;;  %v812_v38 = vadd.f32 %v811_v60, %v715_v31  ;;  %v843_v63 = vpop.f32.mrf.mxu1  ;;  %v979_v24 = vmul.f32 %v820_v53, %v820_v53 }
 0x12b   :  { %v1167_v4 = vpack.c.bf16 %v1740_v59, %v1738_v58  ;;  %v1746_v5 = vadd.f32 %v843_v63, %v747_v55  ;;  %v1340_v0 = vpop.f32.mrf.mxu0  ;;  %v984_v63 = vmul.f32 %v1742_v37, %v1742_v37  ;;  %v987_v9 = vmul.f32 %v1740_v59, %v1740_v59 }
 0x12c   :  { %1179 = vst [vmem:[%s1807_s2 + $0x8] sm:$0xff] %v1147_v62   ;;  %v1142_v6 = vpack.c.bf16 %v812_v38, %v809_v52  ;;  %v952_v7 = vadd.f32 %v812_v38, %v809_v52  ;;  %v977_v39 = vmul.f32 %v812_v38, %v812_v38  ;;  %v1348_v8 = vpop.f32.mrf.mxu1  ;;  %v833_v30 = vadd.f32 %v1340_v0, %v736_v43 }
 0x12d   :  { %1183 = vst [vmem:[%s1807_s2 + $0x28] sm:$0xff] %v1167_v4   ;;  %v1162_v16 = vpack.c.bf16 %v1746_v5, %v1742_v37  ;;  %v824_v17 = vpop.f32.mrf.mxu0  ;;  %v865_v35 = vadd.f32 %v1348_v8, %v768_v26  ;;  %v985_v0 = vmul.f32 %v1746_v5, %v1746_v5 }
 0x12e   :  { %1143 = vst [vmem:[%s1807_s2] sm:$0xff] %v1142_v6   ;;  %v953_v19 = vadd.f32 %v952_v7, %v817_v50  ;;  %v992_v21 = vadd.f32 %v977_v39, %v976_v2  ;;  %v825_v20 = vadd.f32 %v824_v17, %v728_v44  ;;  %v856_v23 = vpop.f32.mrf.mxu1  ;;  %v763_v44 = vadd.f32 %v1307_v15, %v1243_v12 }
 0x12f   :  { %1182 = vst [vmem:[%s1807_s2 + $0x20] sm:$0xff] %v1162_v16   ;;  %v1341_v25 = vpop.f32.mrf.mxu0  ;;  %v857_v52 = vadd.f32 %v856_v23, %v760_v40  ;;  %v982_v56 = vmul.f32 %v833_v30, %v833_v30  ;;  %v986_v7 = vmul.f32 %v1738_v58, %v1738_v58  ;;  %v990_v15 = vmul.f32 %v865_v35, %v865_v35 }
 0x130   :  { %v993_v29 = vadd.f32 %v992_v21, %v978_v18  ;;  %v954_v31 = vadd.f32 %v953_v19, %v820_v53  ;;  %v836_v32 = vadd.f32 %v1341_v25, %v739_v49  ;;  %v1349_v33 = vpop.f32.mrf.mxu1  ;;  %v980_v47 = vmul.f32 %v825_v20, %v825_v20 }
 0x131   :  { %v868_v42 = vadd.f32 %v1349_v33, %v771_v27  ;;  %v827_v45 = vpop.f32.mrf.mxu0 }
 0x132   :  { %v955_v46 = vadd.f32 %v954_v31, %v825_v20  ;;  %v994_v48 = vadd.f32 %v993_v29, %v979_v24  ;;  %v1157_v50 = vpack.c.bf16 %v836_v32, %v833_v30  ;;  %v859_v51 = vpop.f32.mrf.mxu1  ;;  %v828_v55 = vadd.f32 %v827_v45, %v731_v28  ;;  %v951_v29 = vld [vmem:[%s1806_s3] sm:$0x1] }
 0x133   :  { %v1177_v54 = vpack.c.bf16 %v868_v42, %v865_v35  ;;  %v860_v57 = vadd.f32 %v859_v51, %v763_v44  ;;  %v983_v61 = vmul.f32 %v836_v32, %v836_v32  ;;  %v991_v17 = vmul.f32 %v868_v42, %v868_v42 }
 0x134   :  { %v995_v34 = vadd.f32 %v994_v48, %v980_v47  ;;  %1181 = vst [vmem:[%s1807_s2 + $0x18] sm:$0xff] %v1157_v50   ;;  %v1152_v41 = vpack.c.bf16 %v828_v55, %v825_v20  ;;  %v956_v43 = vadd.f32 %v955_v46, %v828_v55  ;;  %v981_v49 = vmul.f32 %v828_v55, %v828_v55 }
 0x135   :  { %1185 = vst [vmem:[%s1807_s2 + $0x38] sm:$0xff] %v1177_v54   ;;  %v1172_v53 = vpack.c.bf16 %v860_v57, %v857_v52  ;;  %v989_v13 = vmul.f32 %v860_v57, %v860_v57 }
 0x136   :  { %1180 = vst [vmem:[%s1807_s2 + $0x10] sm:$0xff] %v1152_v41   ;;  %v957_v60 = vadd.f32 %v956_v43, %v833_v30  ;;  %v996_v22 = vadd.f32 %v995_v34, %v981_v49 }
 0x137   :  { %1184 = vst [vmem:[%s1807_s2 + $0x30] sm:$0xff] %v1172_v53  }
 0x138   :  { %v958_v62 = vadd.f32 %v957_v60, %v836_v32  ;;  %v997_v38 = vadd.f32 %v996_v22, %v982_v56  ;;  %v975_v32 = vld [vmem:[%s1806_s3 + $0x1] sm:$0x1] }
 0x13a   :  { %v959_v1 = vadd.f32 %v958_v62, %v1742_v37  ;;  %v998_v4 = vadd.f32 %v997_v38, %v983_v61  ;;  %v988_v37 = vmul.f32 %v857_v52, %v857_v52 }
 0x13c   :  { %v999_v2 = vadd.f32 %v998_v4, %v984_v63  ;;  %v960_v6 = vadd.f32 %v959_v1, %v1746_v5 }
 0x13e   :  { %v961_v39 = vadd.f32 %v960_v6, %v1738_v58  ;;  %v1000_v8 = vadd.f32 %v999_v2, %v985_v0 }
 0x140   :  { %v962_v10 = vadd.f32 %v961_v39, %v1740_v59  ;;  %v1001_v36 = vadd.f32 %v1000_v8, %v986_v7 }
 0x142   :  { %v963_v3 = vadd.f32 %v962_v10, %v857_v52  ;;  %v1002_v11 = vadd.f32 %v1001_v36, %v987_v9 }
 0x144   :  { %v964_v12 = vadd.f32 %v963_v3, %v860_v57  ;;  %v1003_v14 = vadd.f32 %v1002_v11, %v988_v37 }
 0x146   :  { %v965_v5 = vadd.f32 %v964_v12, %v865_v35  ;;  %v1004_v16 = vadd.f32 %v1003_v14, %v989_v13 }
 0x148   :  { %v966_v18 = vadd.f32 %v965_v5, %v868_v42  ;;  %v1005_v19 = vadd.f32 %v1004_v16, %v990_v15 }
 0x14a   :  { %v967_v58 = vrot.slane %v966_v18, 4  ;;  %v1006_v21 = vadd.f32 %v1005_v19, %v991_v17 }
 0x14c   :  { %v968_v20 = vadd.f32 %v967_v58, %v966_v18  ;;  %v1007_v23 = vrot.slane %v1006_v21, 4 }
 0x14e   :  { %v969_v24 = vrot.slane %v968_v20, 2  ;;  %v1008_v26 = vadd.f32 %v1007_v23, %v1006_v21 }
 0x150   :  { %v970_v59 = vadd.f32 %v969_v24, %v968_v20  ;;  %v1009_v25 = vrot.slane %v1008_v26, 2 }
 0x152   :  { %v971_v27 = vrot.slane %v970_v59, 1  ;;  %v1010_v28 = vadd.f32 %v1009_v25, %v1008_v26 }
 0x154   :  { %v972_v30 = vadd.f32 %v971_v27, %v970_v59  ;;  %v1011_v31 = vrot.slane %v1010_v28, 1 }
 0x156   :  { %v973_v33 = vadd.f32 %v972_v30, %v951_v29  ;;  %v1012_v35 = vadd.f32 %v1011_v31, %v1010_v28 }
 0x158   :  { %974 = vst [vmem:[%s1806_s3] sm:$0x1] %v973_v33  ;;  %v1013_v40 = vadd.f32 %v1012_v35, %v975_v32 }
 0x15a   :  { %1014 = vst [vmem:[%s1806_s3 + $0x1] sm:$0x1] %v1013_v40 }

// kernel: generator_forward.14
= control target key start
LH: loop header
LB: loop body
LE: loop exit
PB: predicated region body
PF: predicated region fallthrough
CT: control target
= control target key end

     0   :  { %s422_s0 = inlined_call_operand.vmem [shape: bf16[128,128], index: 0, kind: input, shape index: {}]   ;;  %s423_s1 = inlined_call_operand.vmem [shape: f32[1,128], index: 1, kind: input, shape index: {}]   ;;  %s424_s2 = inlined_call_operand.vmem [shape: f32[1,128], index: 2, kind: input, shape index: {}]   ;;  %s425_s3 = inlined_call_operand.vmem [shape: bf16[128,128], index: 3, kind: output, shape index: {}]  }
   0x1   :  { %v227_v0 = vld [vmem:[%s422_s0] sm:$0xff]   ;;  %v298_v4 = vld [vmem:[%s422_s0 + $0x8] sm:$0xff]   ;;  %v299_v5 = vld [vmem:[%s422_s0 + $0x10] sm:$0xff]  }
   0x2   :  { %v338_v1 = vld [vmem:[%s423_s1] ss:$0 sm:$0xff]  ;;  %v228_v2 = vunpack.c.l.bf16 %v227_v0  ;;  %v229_v3 = vunpack.c.h.bf16 %v227_v0  ;;  %v300_v6 = vld [vmem:[%s422_s0 + $0x18] sm:$0xff]   ;;  %v232_v8 = vunpack.c.l.bf16 %v298_v4  ;;  %v233_v9 = vunpack.c.h.bf16 %v298_v4  ;;  %v302_v33 = vld [vmem:[%s422_s0 + $0x28] sm:$0xff]  }
   0x3   :  { %v352_v7 = vld [vmem:[%s424_s2] ss:$0 sm:$0xff]  ;;  %v236_v10 = vunpack.c.l.bf16 %v299_v5  ;;  %v237_v11 = vunpack.c.h.bf16 %v299_v5  ;;  %v240_v14 = vunpack.c.l.bf16 %v300_v6  ;;  %v241_v15 = vunpack.c.h.bf16 %v300_v6  ;;  %v303_v38 = vld [vmem:[%s422_s0 + $0x30] sm:$0xff]   ;;  %v304_v43 = vld [vmem:[%s422_s0 + $0x38] sm:$0xff]  }
   0x4   :  { %v53_v12 = vmul.f32 %v228_v2, %v338_v1  ;;  %v54_v13 = vmul.f32 %v229_v3, %v338_v1  ;;  %v55_v16 = vmul.f32 %v232_v8, %v338_v1  ;;  %v56_v17 = vmul.f32 %v233_v9, %v338_v1  ;;  %v301_v28 = vld [vmem:[%s422_s0 + $0x20] sm:$0xff]  }
   0x5   :  { %v57_v18 = vmul.f32 %v236_v10, %v338_v1  ;;  %v58_v19 = vmul.f32 %v237_v11, %v338_v1  ;;  %v59_v22 = vmul.f32 %v240_v14, %v338_v1  ;;  %v60_v23 = vmul.f32 %v241_v15, %v338_v1 }
   0x6   :  { %v76_v20 = vadd.f32 %v352_v7, %v53_v12  ;;  %v77_v21 = vadd.f32 %v352_v7, %v54_v13  ;;  %v78_v24 = vadd.f32 %v352_v7, %v55_v16  ;;  %v79_v25 = vadd.f32 %v352_v7, %v56_v17 }
   0x7   :  { %v80_v26 = vadd.f32 %v352_v7, %v57_v18  ;;  %v81_v27 = vadd.f32 %v352_v7, %v58_v19  ;;  %v82_v31 = vadd.f32 %v352_v7, %v59_v22  ;;  %v83_v32 = vadd.f32 %v352_v7, %v60_v23 }
   0x8   :  { %v92_v29 = vmax.f32 %v76_v20, 0.0  ;;  %v93_v30 = vmax.f32 %v77_v21, 0.0  ;;  %v94_v34 = vmax.f32 %v78_v24, 0.0  ;;  %v95_v35 = vmax.f32 %v79_v25, 0.0 }
   0x9   :  { %v96_v36 = vmax.f32 %v80_v26, 0.0  ;;  %v97_v37 = vmax.f32 %v81_v27, 0.0  ;;  %v98_v40 = vmax.f32 %v82_v31, 0.0  ;;  %v99_v41 = vmax.f32 %v83_v32, 0.0 }
   0xa   :  { %v261_v39 = vpack.c.bf16 %v93_v30, %v92_v29  ;;  %v244_v42 = vunpack.c.l.bf16 %v301_v28  ;;  %v266_v44 = vpack.c.bf16 %v95_v35, %v94_v34  ;;  %v245_v46 = vunpack.c.h.bf16 %v301_v28 }
   0xb   :  { %v271_v45 = vpack.c.bf16 %v97_v37, %v96_v36  ;;  %v248_v47 = vunpack.c.l.bf16 %v302_v33  ;;  %v276_v48 = vpack.c.bf16 %v99_v41, %v98_v40  ;;  %v249_v50 = vunpack.c.h.bf16 %v302_v33 }
   0xc   :  { %262 = vst [vmem:[%s425_s3] sm:$0xff] %v261_v39   ;;  %v61_v49 = vmul.f32 %v244_v42, %v338_v1  ;;  %v252_v51 = vunpack.c.l.bf16 %v303_v38  ;;  %305 = vst [vmem:[%s425_s3 + $0x8] sm:$0xff] %v266_v44   ;;  %v62_v52 = vmul.f32 %v245_v46, %v338_v1  ;;  %v253_v54 = vunpack.c.h.bf16 %v303_v38 }
   0xd   :  { %306 = vst [vmem:[%s425_s3 + $0x10] sm:$0xff] %v271_v45   ;;  %v63_v53 = vmul.f32 %v248_v47, %v338_v1  ;;  %v256_v55 = vunpack.c.l.bf16 %v304_v43  ;;  %307 = vst [vmem:[%s425_s3 + $0x18] sm:$0xff] %v276_v48   ;;  %v64_v57 = vmul.f32 %v249_v50, %v338_v1  ;;  %v257_v59 = vunpack.c.h.bf16 %v304_v43 }
   0xe   :  { %v84_v56 = vadd.f32 %v352_v7, %v61_v49  ;;  %v65_v58 = vmul.f32 %v252_v51, %v338_v1  ;;  %v85_v60 = vadd.f32 %v352_v7, %v62_v52  ;;  %v66_v62 = vmul.f32 %v253_v54, %v338_v1 }
   0xf   :  { %v86_v61 = vadd.f32 %v352_v7, %v63_v53  ;;  %v67_v63 = vmul.f32 %v256_v55, %v338_v1  ;;  %v87_v2 = vadd.f32 %v352_v7, %v64_v57  ;;  %v68_v4 = vmul.f32 %v257_v59, %v338_v1 }
  0x10   :  { %v100_v0 = vmax.f32 %v84_v56, 0.0  ;;  %v88_v3 = vadd.f32 %v352_v7, %v65_v58  ;;  %v101_v5 = vmax.f32 %v85_v60, 0.0  ;;  %v89_v8 = vadd.f32 %v352_v7, %v66_v62 }
  0x11   :  { %v102_v6 = vmax.f32 %v86_v61, 0.0  ;;  %v90_v9 = vadd.f32 %v352_v7, %v67_v63  ;;  %v103_v10 = vmax.f32 %v87_v2, 0.0  ;;  %v91_v12 = vadd.f32 %v352_v7, %v68_v4 }
  0x12   :  { %v104_v11 = vmax.f32 %v88_v3, 0.0  ;;  %v281_v13 = vpack.c.bf16 %v101_v5, %v100_v0  ;;  %v105_v14 = vmax.f32 %v89_v8, 0.0 }
  0x13   :  { %v106_v15 = vmax.f32 %v90_v9, 0.0  ;;  %v286_v16 = vpack.c.bf16 %v103_v10, %v102_v6  ;;  %v107_v17 = vmax.f32 %v91_v12, 0.0 }
  0x14   :  { %308 = vst [vmem:[%s425_s3 + $0x20] sm:$0xff] %v281_v13   ;;  %v291_v1 = vpack.c.bf16 %v105_v14, %v104_v11 }
  0x15   :  { %309 = vst [vmem:[%s425_s3 + $0x28] sm:$0xff] %v286_v16   ;;  %v296_v18 = vpack.c.bf16 %v107_v17, %v106_v15 }
  0x16   :  { %310 = vst [vmem:[%s425_s3 + $0x30] sm:$0xff] %v291_v1  }
  0x17   :  { %311 = vst [vmem:[%s425_s3 + $0x38] sm:$0xff] %v296_v18  }

// kernel: generator_forward.15
= control target key start
LH: loop header
LB: loop body
LE: loop exit
PB: predicated region body
PF: predicated region fallthrough
CT: control target
= control target key end

     0   :  { %v2670_v0 = vmov 0   ;;  %vm772_vm0 = vcmask 261120   ;;  %vm1703_vm1 = vcmask 519168   ;;  %vm18_vm2 = vcmask 523264   ;;  %s3835_s1 = inlined_call_operand.vmem [shape: bf16[288,64], index: 1, kind: input, shape index: {}]   ;;  %s3836_s0 = inlined_call_operand.vmem [shape: bf16[512,288], index: 0, kind: input, shape index: {}]   ;;  %s3837_s2 = inlined_call_operand.vmem [shape: bf16[512,64], index: 2, kind: output, shape index: {0}]   ;;  %s3838_s3 = inlined_call_operand.vmem [shape: f32[8,64], index: 3, kind: output, shape index: {1}]  }
   0x1   :  { %869 = vmatprep.subr.bf16.mxu0 %v2670_v0  ;;  %2490 = vmatprep.subr.bf16.mxu1 %v2670_v0  ;;  %v2524_v1 = vld [vmem:[%s3835_s1 + $0x38] sm:$0xff]   ;;  %v2525_v2 = vld [vmem:[%s3835_s1 + $0x30] sm:$0xff]   ;;  %v2526_v3 = vld [vmem:[%s3835_s1 + $0x28] sm:$0xff]   ;;  %vm1904_vm3 = vcmask 516096  }
   0x2   :  { %870 = vmatpush1.bf16.msra.mxu0 %v2524_v1  ;;  %2506 = vmatpush1.bf16.msra.mxu1 %v2524_v1  ;;  %v2527_v4 = vld [vmem:[%s3835_s1 + $0x20] sm:$0xff]   ;;  %v2528_v5 = vld [vmem:[%s3835_s1 + $0x18] sm:$0xff]   ;;  %v2529_v7 = vld [vmem:[%s3835_s1 + $0x10] sm:$0xff]  }
   0x3   :  { %871 = vmatprep.subr.bf16.mxu0 %v2670_v0  ;;  %2491 = vmatprep.subr.bf16.mxu1 %v2670_v0  ;;  %v2542_v6 = vld [vmem:[%s3836_s0 + $0x4] ss:$12 sps:$4 sm:$0xff]   ;;  %v2530_v9 = vld [vmem:[%s3835_s1 + $0x8] sm:$0xff]   ;;  %v2532_v11 = vld [vmem:[%s3835_s1 + $0x78] sm:$0xff]  }
   0x4   :  { %v2545_v8 = vld [vmem:[%s3836_s0 + $0x244] ss:$12 sps:$4 sm:$0xff]   ;;  %901 = vmatprep.mubr.bf16.mxu0 %v2542_v6  ;;  %v2534_v13 = vld [vmem:[%s3835_s1 + $0x68] sm:$0xff]   ;;  %v2536_v15 = vld [vmem:[%s3835_s1 + $0x58] sm:$0xff]  }
   0x5   :  { %1093 = vmatprep.mubr.bf16.mxu1 %v2545_v8  ;;  %v2531_v10 = vld [vmem:[%s3835_s1] sm:$0xff]   ;;  %v2533_v12 = vld [vmem:[%s3835_s1 + $0x70] sm:$0xff]   ;;  %v2538_v17 = vld [vmem:[%s3835_s1 + $0x48] sm:$0xff]  }
   0x6   :  { %872 = vmatpush1.bf16.msra.mxu0 %v2525_v2  ;;  %2507 = vmatpush1.bf16.msra.mxu1 %v2525_v2  ;;  %v2535_v14 = vld [vmem:[%s3835_s1 + $0x60] sm:$0xff]   ;;  %v2537_v16 = vld [vmem:[%s3835_s1 + $0x50] sm:$0xff]   ;;  %v2564_v19 = vld [vmem:[%s3835_s1 + $0x88] sm:$0xff]  }
   0x7   :  { %873 = vmatprep.subr.bf16.mxu0 %v2670_v0  ;;  %2492 = vmatprep.subr.bf16.mxu1 %v2670_v0  ;;  %v2539_v18 = vld [vmem:[%s3835_s1 + $0x40] sm:$0xff]   ;;  %v2546_v22 = vld [vmem:[%s3836_s0 + $0x1c] ss:$12 sps:$4 sm:$0xff]   ;;  %v2558_v31 = vld [vmem:[%s3836_s0 + $0x4c] ss:$12 sps:$4 sm:$0xff]  }
   0x8   :  { %v2540_v20 = vld [vmem:[%s3836_s0] ss:$12 sps:$4 sm:$0xff]   ;;  %v2548_v23 = vld [vmem:[%s3836_s0 + $0x25c] ss:$12 sps:$4 sm:$0xff]   ;;  %v2550_v25 = vld [vmem:[%s3836_s0 + $0x18] ss:$12 sps:$4 sm:$0xff]  }
   0x9   :  { %v2543_v21 = vld [vmem:[%s3836_s0 + $0x240] ss:$12 sps:$4 sm:$0xff]   ;;  %v2551_v26 = vld [vmem:[%s3836_s0 + $0x258] ss:$12 sps:$4 sm:$0xff]   ;;  %v2556_v29 = vld [vmem:[%s3836_s0 + $0x30] ss:$12 sps:$4 sm:$0xff]  }
   0xa   :  { %874 = vmatpush1.bf16.msra.mxu0 %v2526_v3  ;;  %2508 = vmatpush1.bf16.msra.mxu1 %v2526_v3  ;;  %v2589_v24 = vld [vmem:[%s3835_s1 + $0x80] sm:$0xff]   ;;  %v2557_v30 = vld [vmem:[%s3836_s0 + $0x270] ss:$12 sps:$4 sm:$0xff]   ;;  %v2560_v32 = vld [vmem:[%s3836_s0 + $0x28c] ss:$12 sps:$4 sm:$0xff]  }
   0xb   :  { %875 = vmatprep.subr.bf16.mxu0 %v2670_v0  ;;  %2493 = vmatprep.subr.bf16.mxu1 %v2670_v0  ;;  %v2552_v27 = vld [vmem:[%s3836_s0 + $0x34] ss:$12 sps:$4 sm:$0xff]   ;;  %v2565_v35 = vld [vmem:[%s3836_s0 + $0x64] ss:$12 sps:$4 sm:$0xff]   ;;  %v2571_v39 = vld [vmem:[%s3836_s0 + $0x7c] ss:$12 sps:$4 sm:$0xff]  }
   0xc   :  { %v2554_v28 = vld [vmem:[%s3836_s0 + $0x274] ss:$12 sps:$4 sm:$0xff]   ;;  %v2567_v36 = vld [vmem:[%s3836_s0 + $0x2a4] ss:$12 sps:$4 sm:$0xff]   ;;  %v2573_v40 = vld [vmem:[%s3836_s0 + $0x2bc] ss:$12 sps:$4 sm:$0xff]  }
   0xd   :  { %v2562_v33 = vld [vmem:[%s3836_s0 + $0x48] ss:$12 sps:$4 sm:$0xff]   ;;  %v2569_v37 = vld [vmem:[%s3836_s0 + $0x60] ss:$12 sps:$4 sm:$0xff]   ;;  %v2575_v41 = vld [vmem:[%s3836_s0 + $0x78] ss:$12 sps:$4 sm:$0xff]  }
   0xe   :  { %876 = vmatpush1.bf16.msra.mxu0 %v2527_v4  ;;  %2509 = vmatpush1.bf16.msra.mxu1 %v2527_v4  ;;  %v2563_v34 = vld [vmem:[%s3836_s0 + $0x288] ss:$12 sps:$4 sm:$0xff]   ;;  %v2570_v38 = vld [vmem:[%s3836_s0 + $0x2a0] ss:$12 sps:$4 sm:$0xff]   ;;  %v2576_v42 = vld [vmem:[%s3836_s0 + $0x2b8] ss:$12 sps:$4 sm:$0xff]  }
   0xf   :  { %877 = vmatprep.subr.bf16.mxu0 %v2670_v0  ;;  %2494 = vmatprep.subr.bf16.mxu1 %v2670_v0  ;;  %v2577_v43 = vld [vmem:[%s3836_s0 + $0x94] ss:$12 sps:$4 sm:$0xff]   ;;  %v2581_v45 = vld [vmem:[%s3836_s0 + $0x90] ss:$12 sps:$4 sm:$0xff]   ;;  %v2583_v47 = vld [vmem:[%s3836_s0 + $0xac] ss:$12 sps:$4 sm:$0xff]  }
  0x10   :  { %v2579_v44 = vld [vmem:[%s3836_s0 + $0x2d4] ss:$12 sps:$4 sm:$0xff]   ;;  %v2582_v46 = vld [vmem:[%s3836_s0 + $0x2d0] ss:$12 sps:$4 sm:$0xff]   ;;  %v2585_v48 = vld [vmem:[%s3836_s0 + $0x2ec] ss:$12 sps:$4 sm:$0xff]  }
  0x11   :  { %v2587_v49 = vld [vmem:[%s3836_s0 + $0xa8] ss:$12 sps:$4 sm:$0xff]   ;;  %v2590_v51 = vld [vmem:[%s3836_s0 + $0xc4] ss:$12 sps:$4 sm:$0xff]   ;;  %v2593_v53 = vld [vmem:[%s3836_s0 + $0xc0] ss:$12 sps:$4 sm:$0xff]  }
  0x12   :  { %878 = vmatpush1.bf16.msra.mxu0 %v2528_v5  ;;  %2510 = vmatpush1.bf16.msra.mxu1 %v2528_v5  ;;  %v2588_v50 = vld [vmem:[%s3836_s0 + $0x2e8] ss:$12 sps:$4 sm:$0xff]   ;;  %v2594_v54 = vld [vmem:[%s3836_s0 + $0x20] ss:$12 sps:$4 sm:$0xff]   ;;  %v2597_v56 = vld [vmem:[%s3836_s0 + $0x38] ss:$12 sps:$4 sm:$0xff]  }
  0x13   :  { %879 = vmatprep.subr.bf16.mxu0 %v2670_v0  ;;  %2495 = vmatprep.subr.bf16.mxu1 %v2670_v0  ;;  %v2592_v52 = vld [vmem:[%s3836_s0 + $0x8] ss:$12 sps:$4 sm:$0xff]   ;;  %v2598_v57 = vld [vmem:[%s3836_s0 + $0xd8] ss:$12 sps:$4 sm:$0xff]   ;;  %v2599_v58 = vld [vmem:[%s3836_s0 + $0x50] ss:$12 sps:$4 sm:$0xff]  }
  0x14   :  { %v2595_v55 = vld [vmem:[%s3836_s0 + $0xdc] ss:$12 sps:$4 sm:$0xff]   ;;  %v2600_v59 = vld [vmem:[%s3836_s0 + $0xf4] ss:$12 sps:$4 sm:$0xff]   ;;  %v2605_v63 = vld [vmem:[%s3836_s0 + $0x10c] ss:$12 sps:$4 sm:$0xff]  }
  0x15   :  { %v2602_v60 = vld [vmem:[%s3836_s0 + $0x68] ss:$12 sps:$4 sm:$0xff]   ;;  %v2603_v61 = vld [vmem:[%s3836_s0 + $0xf0] ss:$12 sps:$4 sm:$0xff]   ;;  %v2604_v62 = vld [vmem:[%s3836_s0 + $0x80] ss:$12 sps:$4 sm:$0xff]  }
  0x16   :  { %880 = vmatpush1.bf16.msra.mxu0 %v2529_v7  ;;  %2511 = vmatpush1.bf16.msra.mxu1 %v2529_v7  ;;  %v2608_v1 = vld [vmem:[%s3836_s0 + $0x108] ss:$12 sps:$4 sm:$0xff]   ;;  %v2609_v2 = vld [vmem:[%s3836_s0 + $0xb0] ss:$12 sps:$4 sm:$0xff]   ;;  %v2613_v5 = vld [vmem:[%s3836_s0 + $0x120] ss:$12 sps:$4 sm:$0xff]  }
  0x17   :  { %881 = vmatprep.subr.bf16.mxu0 %v2670_v0  ;;  %2496 = vmatprep.subr.bf16.mxu1 %v2670_v0  ;;  %v2610_v3 = vld [vmem:[%s3836_s0 + $0x124] ss:$12 sps:$4 sm:$0xff]   ;;  %v2612_v4 = vld [vmem:[%s3836_s0 + $0xc8] ss:$12 sps:$4 sm:$0xff]   ;;  %v2614_v6 = vld [vmem:[%s3836_s0 + $0xe0] ss:$12 sps:$4 sm:$0xff]  }
  0x18   :  { %v2615_v7 = vld [vmem:[%s3836_s0 + $0x13c] ss:$12 sps:$4 sm:$0xff]   ;;  %v2617_v8 = vld [vmem:[%s3836_s0 + $0xf8] ss:$12 sps:$4 sm:$0xff]  }
  0x1a   :  { %882 = vmatpush1.bf16.msra.mxu0 %v2530_v9  ;;  %2512 = vmatpush1.bf16.msra.mxu1 %v2530_v9  ;;  %v2618_v9 = vld [vmem:[%s3836_s0 + $0x138] ss:$12 sps:$4 sm:$0xff]  }
  0x1b   :  { %883 = vmatprep.subr.bf16.mxu0 %v2670_v0  ;;  %2497 = vmatprep.subr.bf16.mxu1 %v2670_v0 }
  0x1e   :  { %884 = vmatpush1.bf16.msra.mxu0 %v2531_v10  ;;  %2513 = vmatpush1.bf16.msra.mxu1 %v2531_v10  ;;  %v2619_v10 = vld [vmem:[%s3836_s0 + $0x110] ss:$12 sps:$4 sm:$0xff]  }
  0x1f   :  { %885 = vmatprep.subr.bf16.mxu0 %v2670_v0  ;;  %2498 = vmatprep.subr.bf16.mxu1 %v2670_v0 }
  0x22   :  { %886 = vmatpush2.bf16.msra.mxu0 %v2532_v11  ;;  %2514 = vmatpush2.bf16.msra.mxu1 %v2532_v11  ;;  %v2620_v11 = vld [vmem:[%s3836_s0 + $0x154] ss:$12 sps:$4 sm:$0xff]  }
  0x23   :  { %887 = vmatprep.subr.bf16.mxu0 %v2670_v0  ;;  %2499 = vmatprep.subr.bf16.mxu1 %v2670_v0 }
  0x26   :  { %888 = vmatpush2.bf16.msra.mxu0 %v2533_v12  ;;  %2515 = vmatpush2.bf16.msra.mxu1 %v2533_v12  ;;  %v2622_v12 = vld [vmem:[%s3836_s0 + $0x128] ss:$12 sps:$4 sm:$0xff]  }
  0x27   :  { %889 = vmatprep.subr.bf16.mxu0 %v2670_v0  ;;  %2500 = vmatprep.subr.bf16.mxu1 %v2670_v0 }
  0x2a   :  { %890 = vmatpush2.bf16.msra.mxu0 %v2534_v13  ;;  %2516 = vmatpush2.bf16.msra.mxu1 %v2534_v13  ;;  %v2623_v13 = vld [vmem:[%s3836_s0 + $0x150] ss:$12 sps:$4 sm:$0xff]  }
  0x2b   :  { %891 = vmatprep.subr.bf16.mxu0 %v2670_v0  ;;  %2501 = vmatprep.subr.bf16.mxu1 %v2670_v0 }
  0x2e   :  { %892 = vmatpush2.bf16.msra.mxu0 %v2535_v14  ;;  %2517 = vmatpush2.bf16.msra.mxu1 %v2535_v14  ;;  %v2624_v14 = vld [vmem:[%s3836_s0 + $0x140] ss:$12 sps:$4 sm:$0xff]  }
  0x2f   :  { %893 = vmatprep.subr.bf16.mxu0 %v2670_v0  ;;  %2502 = vmatprep.subr.bf16.mxu1 %v2670_v0 }
  0x32   :  { %894 = vmatpush2.bf16.msra.mxu0 %v2536_v15  ;;  %2518 = vmatpush2.bf16.msra.mxu1 %v2536_v15  ;;  %v2625_v15 = vld [vmem:[%s3836_s0 + $0x16c] ss:$12 sps:$4 sm:$0xff]  }
  0x33   :  { %895 = vmatprep.subr.bf16.mxu0 %v2670_v0  ;;  %2503 = vmatprep.subr.bf16.mxu1 %v2670_v0 }
  0x36   :  { %896 = vmatpush2.bf16.msra.mxu0 %v2537_v16  ;;  %2519 = vmatpush2.bf16.msra.mxu1 %v2537_v16  ;;  %v2627_v16 = vld [vmem:[%s3836_s0 + $0x158] ss:$12 sps:$4 sm:$0xff]  }
  0x37   :  { %897 = vmatprep.subr.bf16.mxu0 %v2670_v0  ;;  %2504 = vmatprep.subr.bf16.mxu1 %v2670_v0 }
  0x3a   :  { %898 = vmatpush2.bf16.msra.mxu0 %v2538_v17  ;;  %2520 = vmatpush2.bf16.msra.mxu1 %v2538_v17  ;;  %v2628_v17 = vld [vmem:[%s3836_s0 + $0x168] ss:$12 sps:$4 sm:$0xff]  }
  0x3b   :  { %899 = vmatprep.subr.bf16.mxu0 %v2670_v0  ;;  %2505 = vmatprep.subr.bf16.mxu1 %v2670_v0  ;;  %v2607_v0 = vld [vmem:[%s3836_s0 + $0x98] ss:$12 sps:$4 sm:$0xff]  }
  0x3e   :  { %900 = vmatpush2.bf16.msra.mxu0 %v2539_v18  ;;  %2521 = vmatpush2.bf16.msra.mxu1 %v2539_v18  ;;  %v2629_v18 = vld [vmem:[%s3836_s0 + $0x170] ss:$12 sps:$4 sm:$0xff]  }
  0x3f   :  { %2422 = vmatprep.subr.bf16.mxu1 %v2564_v19 }
  0x41   :  { %902 = vmatmul.mubr.bf16.vlgmr.msra.gmra.mxu0 %v2540_v20  ;;  %1094 = vmatmul.mubr.bf16.vlgmr.msra.gmra.mxu1 %v2543_v21  ;;  %v2632_v20 = vld [vmem:[%s3836_s0 + $0x188] ss:$12 sps:$4 sm:$0xff]   ;;  %v2633_v21 = vld [vmem:[%s3836_s0 + $0x180] ss:$12 sps:$4 sm:$0xff]  }
  0x42   :  { %909 = vmatprep.mubr.bf16.mxu0 %v2546_v22  ;;  %1101 = vmatprep.mubr.bf16.mxu1 %v2548_v23  ;;  %v2634_v22 = vld [vmem:[%s3836_s0 + $0x1a0] ss:$12 sps:$4 sm:$0xff]   ;;  %v2635_v23 = vld [vmem:[%s3836_s0 + $0x19c] ss:$12 sps:$4 sm:$0xff]  }
  0x43   :  { %2423 = vmatpush3.bf16.msra.mxu1 %v2564_v19  ;;  %v2630_v19 = vld [vmem:[%s3836_s0 + $0x184] ss:$12 sps:$4 sm:$0xff]  }
  0x44   :  { %2424 = vmatprep.subr.bf16.mxu1 %v2589_v24 }
  0x47   :  { %2425 = vmatpush3.bf16.msra.mxu1 %v2589_v24  ;;  %v2637_v24 = vld [vmem:[%s3836_s0 + $0x1b8] ss:$12 sps:$4 sm:$0xff]  }
  0x49   :  { %910 = vmatmul.mubr.bf16.gmra.mxu0 %v2550_v25  ;;  %1102 = vmatmul.mubr.bf16.gmra.mxu1 %v2551_v26  ;;  %v2638_v25 = vld [vmem:[%s3836_s0 + $0x198] ss:$12 sps:$4 sm:$0xff]   ;;  %v2639_v26 = vld [vmem:[%s3836_s0 + $0x1d0] ss:$12 sps:$4 sm:$0xff]  }
  0x4a   :  { %917 = vmatprep.mubr.bf16.mxu0 %v2552_v27  ;;  %1109 = vmatprep.mubr.bf16.mxu1 %v2554_v28  ;;  %v2640_v27 = vld [vmem:[%s3836_s0 + $0x1b4] ss:$12 sps:$4 sm:$0xff]  }
  0x4b   :  { %v2642_v28 = vld [vmem:[%s3836_s0 + $0x1e8] ss:$12 sps:$4 sm:$0xff]  }
  0x51   :  { %918 = vmatmul.mubr.bf16.gmra.mxu0 %v2556_v29  ;;  %1110 = vmatmul.mubr.bf16.gmra.mxu1 %v2557_v30  ;;  %v2643_v29 = vld [vmem:[%s3836_s0 + $0x1b0] ss:$12 sps:$4 sm:$0xff]   ;;  %v2644_v30 = vld [vmem:[%s3836_s0 + $0x200] ss:$12 sps:$4 sm:$0xff]  }
  0x52   :  { %925 = vmatprep.mubr.bf16.mxu0 %v2558_v31  ;;  %1117 = vmatprep.mubr.bf16.mxu1 %v2560_v32  ;;  %v2645_v31 = vld [vmem:[%s3836_s0 + $0x1cc] ss:$12 sps:$4 sm:$0xff]  }
  0x53   :  { %v2647_v32 = vld [vmem:[%s3836_s0 + $0x218] ss:$12 sps:$4 sm:$0xff]  }
  0x59   :  { %926 = vmatmul.mubr.bf16.gmra.mxu0 %v2562_v33  ;;  %1118 = vmatmul.mubr.bf16.gmra.mxu1 %v2563_v34  ;;  %v2648_v33 = vld [vmem:[%s3836_s0 + $0x1c8] ss:$12 sps:$4 sm:$0xff]   ;;  %v2649_v34 = vld [vmem:[%s3836_s0 + $0x230] ss:$12 sps:$4 sm:$0xff]  }
  0x5a   :  { %933 = vmatprep.mubr.bf16.mxu0 %v2565_v35  ;;  %1125 = vmatprep.mubr.bf16.mxu1 %v2567_v36  ;;  %v2650_v35 = vld [vmem:[%s3836_s0 + $0x1e4] ss:$12 sps:$4 sm:$0xff]   ;;  %v2652_v36 = vld [vmem:[%s3836_s0 + $0x248] ss:$12 sps:$4 sm:$0xff]  }
  0x61   :  { %934 = vmatmul.mubr.bf16.gmra.mxu0 %v2569_v37  ;;  %1126 = vmatmul.mubr.bf16.gmra.mxu1 %v2570_v38  ;;  %v2653_v37 = vld [vmem:[%s3836_s0 + $0x1e0] ss:$12 sps:$4 sm:$0xff]  }
  0x62   :  { %941 = vmatprep.mubr.bf16.mxu0 %v2571_v39  ;;  %1133 = vmatprep.mubr.bf16.mxu1 %v2573_v40  ;;  %v2654_v38 = vld [vmem:[%s3836_s0 + $0x260] ss:$12 sps:$4 sm:$0xff]   ;;  %v2655_v39 = vld [vmem:[%s3836_s0 + $0x1fc] ss:$12 sps:$4 sm:$0xff]   ;;  %v2657_v40 = vld [vmem:[%s3836_s0 + $0x278] ss:$12 sps:$4 sm:$0xff]  }
  0x69   :  { %942 = vmatmul.mubr.bf16.gmra.mxu0 %v2575_v41  ;;  %1134 = vmatmul.mubr.bf16.gmra.mxu1 %v2576_v42  ;;  %v2658_v41 = vld [vmem:[%s3836_s0 + $0x1f8] ss:$12 sps:$4 sm:$0xff]   ;;  %v2659_v42 = vld [vmem:[%s3836_s0 + $0x290] ss:$12 sps:$4 sm:$0xff]  }
  0x6a   :  { %949 = vmatprep.mubr.bf16.mxu0 %v2577_v43  ;;  %1141 = vmatprep.mubr.bf16.mxu1 %v2579_v44  ;;  %v2660_v43 = vld [vmem:[%s3836_s0 + $0x214] ss:$12 sps:$4 sm:$0xff]  }
  0x6b   :  { %v2662_v44 = vld [vmem:[%s3836_s0 + $0x2a8] ss:$12 sps:$4 sm:$0xff]  }
  0x71   :  { %950 = vmatmul.mubr.bf16.gmra.mxu0 %v2581_v45  ;;  %1142 = vmatmul.mubr.bf16.gmra.mxu1 %v2582_v46  ;;  %v2663_v45 = vld [vmem:[%s3836_s0 + $0x210] ss:$12 sps:$4 sm:$0xff]   ;;  %v2664_v46 = vld [vmem:[%s3836_s0 + $0x2c0] ss:$12 sps:$4 sm:$0xff]  }
  0x72   :  { %957 = vmatprep.mubr.bf16.mxu0 %v2583_v47  ;;  %1149 = vmatprep.mubr.bf16.mxu1 %v2585_v48  ;;  %v2665_v47 = vld [vmem:[%s3836_s0 + $0x22c] ss:$12 sps:$4 sm:$0xff]  }
  0x73   :  { %v2667_v48 = vld [vmem:[%s3836_s0 + $0x2d8] ss:$12 sps:$4 sm:$0xff]  }
  0x79   :  { %958 = vmatmul.mubr.bf16.gmra.mxu0 %v2587_v49  ;;  %1150 = vmatmul.mubr.bf16.gmra.mxu1 %v2588_v50  ;;  %v2668_v49 = vld [vmem:[%s3836_s0 + $0x228] ss:$12 sps:$4 sm:$0xff]   ;;  %v2669_v50 = vld [vmem:[%s3836_s0 + $0x2f0] ss:$12 sps:$4 sm:$0xff]  }
  0x7a   :  { %965 = vmatprep.mubr.bf16.mxu0 %v2590_v51  ;;  %2426 = vmatprep.mubr.msk.bf16.mxu1 %vm772_vm0, %v2592_v52 }
  0x81   :  { %966 = vmatmul.mubr.bf16.gmra.mxu0 %v2593_v53  ;;  %2427 = vmatmul.mubr.msk.bf16.vlgmr.msra.gmra.mxu1 %vm772_vm0, %v2594_v54 }
  0x82   :  { %973 = vmatprep.mubr.bf16.mxu0 %v2595_v55  ;;  %2430 = vmatprep.mubr.msk.bf16.mxu1 %vm772_vm0, %v2597_v56 }
  0x89   :  { %974 = vmatmul.mubr.bf16.gmra.mxu0 %v2598_v57  ;;  %2431 = vmatmul.mubr.msk.bf16.gmra.mxu1 %vm772_vm0, %v2599_v58 }
  0x8a   :  { %981 = vmatprep.mubr.bf16.mxu0 %v2600_v59  ;;  %2434 = vmatprep.mubr.msk.bf16.mxu1 %vm772_vm0, %v2602_v60 }
  0x91   :  { %982 = vmatmul.mubr.bf16.gmra.mxu0 %v2603_v61  ;;  %2435 = vmatmul.mubr.msk.bf16.gmra.mxu1 %vm772_vm0, %v2604_v62 }
  0x92   :  { %989 = vmatprep.mubr.bf16.mxu0 %v2605_v63  ;;  %2438 = vmatprep.mubr.msk.bf16.mxu1 %vm772_vm0, %v2607_v0 }
  0x99   :  { %990 = vmatmul.mubr.bf16.gmra.mxu0 %v2608_v1  ;;  %2439 = vmatmul.mubr.msk.bf16.gmra.mxu1 %vm772_vm0, %v2609_v2 }
  0x9a   :  { %997 = vmatprep.mubr.bf16.mxu0 %v2610_v3  ;;  %2442 = vmatprep.mubr.msk.bf16.mxu1 %vm772_vm0, %v2612_v4 }
  0xa1   :  { %998 = vmatmul.mubr.bf16.gmra.mxu0 %v2613_v5  ;;  %2443 = vmatmul.mubr.msk.bf16.gmra.mxu1 %vm772_vm0, %v2614_v6 }
  0xa2   :  { %1005 = vmatprep.mubr.bf16.mxu0 %v2615_v7  ;;  %2446 = vmatprep.mubr.msk.bf16.mxu1 %vm772_vm0, %v2617_v8 }
  0xa9   :  { %1006 = vmatmul.mubr.bf16.gmra.mxu0 %v2618_v9  ;;  %2447 = vmatmul.mubr.msk.bf16.gmra.mxu1 %vm772_vm0, %v2619_v10 }
  0xaa   :  { %1013 = vmatprep.mubr.bf16.mxu0 %v2620_v11  ;;  %2450 = vmatprep.mubr.msk.bf16.mxu1 %vm772_vm0, %v2622_v12 }
  0xb1   :  { %1014 = vmatmul.mubr.bf16.gmra.mxu0 %v2623_v13  ;;  %2451 = vmatmul.mubr.msk.bf16.gmra.mxu1 %vm772_vm0, %v2624_v14 }
  0xb2   :  { %1021 = vmatprep.mubr.bf16.mxu0 %v2625_v15  ;;  %2454 = vmatprep.mubr.msk.bf16.mxu1 %vm772_vm0, %v2627_v16 }
  0xb9   :  { %1022 = vmatmul.mubr.bf16.gmra.mxu0 %v2628_v17  ;;  %2455 = vmatmul.mubr.msk.bf16.gmra.mxu1 %vm772_vm0, %v2629_v18 }
  0xba   :  { %1029 = vmatprep.mubr.bf16.mxu0 %v2630_v19  ;;  %2458 = vmatprep.mubr.msk.bf16.mxu1 %vm772_vm0, %v2632_v20 }
  0xc1   :  { %1030 = vmatmul.mubr.bf16.gmra.mxu0 %v2633_v21  ;;  %2459 = vmatmul.mubr.msk.bf16.gmra.mxu1 %vm772_vm0, %v2634_v22 }
  0xc2   :  { %1037 = vmatprep.mubr.bf16.mxu0 %v2635_v23  ;;  %2462 = vmatprep.mubr.msk.bf16.mxu1 %vm772_vm0, %v2637_v24 }
  0xc9   :  { %1038 = vmatmul.mubr.bf16.gmra.mxu0 %v2638_v25  ;;  %2463 = vmatmul.mubr.msk.bf16.gmra.mxu1 %vm772_vm0, %v2639_v26 }
  0xca   :  { %1045 = vmatprep.mubr.bf16.mxu0 %v2640_v27  ;;  %2466 = vmatprep.mubr.msk.bf16.mxu1 %vm772_vm0, %v2642_v28 }
  0xd1   :  { %1046 = vmatmul.mubr.bf16.gmra.mxu0 %v2643_v29  ;;  %2467 = vmatmul.mubr.msk.bf16.gmra.mxu1 %vm772_vm0, %v2644_v30 }
  0xd2   :  { %1053 = vmatprep.mubr.bf16.mxu0 %v2645_v31  ;;  %2470 = vmatprep.mubr.msk.bf16.mxu1 %vm772_vm0, %v2647_v32 }
  0xd9   :  { %1054 = vmatmul.mubr.bf16.gmra.mxu0 %v2648_v33  ;;  %2471 = vmatmul.mubr.msk.bf16.gmra.mxu1 %vm772_vm0, %v2649_v34 }
  0xda   :  { %1061 = vmatprep.mubr.bf16.mxu0 %v2650_v35  ;;  %2474 = vmatprep.mubr.msk.bf16.mxu1 %vm772_vm0, %v2652_v36 }
  0xe1   :  { %1062 = vmatmul.mubr.bf16.gmra.mxu0 %v2653_v37  ;;  %2475 = vmatmul.mubr.msk.bf16.gmra.mxu1 %vm772_vm0, %v2654_v38 }
  0xe2   :  { %1069 = vmatprep.mubr.bf16.mxu0 %v2655_v39  ;;  %2478 = vmatprep.mubr.msk.bf16.mxu1 %vm772_vm0, %v2657_v40 }
  0xe9   :  { %1070 = vmatmul.mubr.bf16.gmra.mxu0 %v2658_v41  ;;  %2479 = vmatmul.mubr.msk.bf16.gmra.mxu1 %vm772_vm0, %v2659_v42 }
  0xea   :  { %1077 = vmatprep.mubr.bf16.mxu0 %v2660_v43  ;;  %2482 = vmatprep.mubr.msk.bf16.mxu1 %vm772_vm0, %v2662_v44 }
  0xf1   :  { %1078 = vmatmul.mubr.bf16.gmra.mxu0 %v2663_v45  ;;  %2483 = vmatmul.mubr.msk.bf16.gmra.mxu1 %vm772_vm0, %v2664_v46 }
  0xf2   :  { %1085 = vmatprep.mubr.bf16.mxu0 %v2665_v47  ;;  %2486 = vmatprep.mubr.msk.bf16.mxu1 %vm772_vm0, %v2667_v48 }
  0xf9   :  { %1086 = vmatmul.mubr.bf16.gmra.mxu0 %v2668_v49  ;;  %2487 = vmatmul.mubr.msk.bf16.gmra.mxu1 %vm772_vm0, %v2669_v50 }
 0x101   :  { %v3098_v51 = vpop.f32.mrf.mxu0  ;;  %v3100_v52 = vpop.f32.mrf.mxu1 }
 0x103   :  { %v905_v53 = vpop.f32.mrf.mxu0  ;;  %v1097_v54 = vpop.f32.mrf.mxu1 }
 0x105   :  { %v3102_v55 = vpop.f32.mrf.mxu0  ;;  %v3104_v56 = vpop.f32.mrf.mxu1 }
 0x107   :  { %v908_v57 = vpop.f32.mrf.mxu0  ;;  %v1100_v58 = vpop.f32.mrf.mxu1 }
 0x109   :  { %v911_v59 = vpop.f32.mrf.mxu0  ;;  %v3106_v60 = vpop.f32.mrf.mxu1 }
 0x10b   :  { %v913_v61 = vpop.f32.mrf.mxu0  ;;  %v1105_v62 = vpop.f32.mrf.mxu1 }
 0x10d   :  { %v3108_v63 = vpop.f32.mrf.mxu0  ;;  %v3110_v0 = vpop.f32.mrf.mxu1 }
 0x10f   :  { %v916_v1 = vpop.f32.mrf.mxu0  ;;  %v1108_v2 = vpop.f32.mrf.mxu1 }
 0x111   :  { %v3112_v3 = vpop.f32.mrf.mxu0  ;;  %v3114_v4 = vpop.f32.mrf.mxu1 }
 0x113   :  { %v921_v5 = vpop.f32.mrf.mxu0  ;;  %v1113_v6 = vpop.f32.mrf.mxu1 }
 0x115   :  { %v3116_v7 = vpop.f32.mrf.mxu0  ;;  %v3118_v8 = vpop.f32.mrf.mxu1 }
 0x117   :  { %v924_v9 = vpop.f32.mrf.mxu0  ;;  %v1116_v10 = vpop.f32.mrf.mxu1 }
 0x119   :  { %v3120_v11 = vpop.f32.mrf.mxu0  ;;  %v3122_v12 = vpop.f32.mrf.mxu1 }
 0x11b   :  { %v929_v13 = vpop.f32.mrf.mxu0  ;;  %v1121_v14 = vpop.f32.mrf.mxu1 }
 0x11d   :  { %v3124_v15 = vpop.f32.mrf.mxu0  ;;  %v3126_v16 = vpop.f32.mrf.mxu1 }
 0x11f   :  { %v932_v17 = vpop.f32.mrf.mxu0  ;;  %v1124_v18 = vpop.f32.mrf.mxu1 }
 0x121   :  { %v3128_v19 = vpop.f32.mrf.mxu0  ;;  %v3130_v20 = vpop.f32.mrf.mxu1 }
 0x123   :  { %v937_v21 = vpop.f32.mrf.mxu0  ;;  %v1129_v22 = vpop.f32.mrf.mxu1 }
 0x125   :  { %v3132_v23 = vpop.f32.mrf.mxu0  ;;  %v3134_v24 = vpop.f32.mrf.mxu1 }
 0x127   :  { %v940_v25 = vpop.f32.mrf.mxu0  ;;  %v1132_v26 = vpop.f32.mrf.mxu1 }
 0x129   :  { %v3136_v27 = vpop.f32.mrf.mxu0  ;;  %v3138_v28 = vpop.f32.mrf.mxu1 }
 0x12b   :  { %v945_v29 = vpop.f32.mrf.mxu0  ;;  %v1137_v30 = vpop.f32.mrf.mxu1 }
 0x12d   :  { %v3140_v31 = vpop.f32.mrf.mxu0  ;;  %v3142_v32 = vpop.f32.mrf.mxu1 }
 0x12f   :  { %v948_v33 = vpop.f32.mrf.mxu0  ;;  %v1140_v34 = vpop.f32.mrf.mxu1 }
 0x131   :  { %v3144_v35 = vpop.f32.mrf.mxu0  ;;  %v3146_v36 = vpop.f32.mrf.mxu1 }
 0x133   :  { %v953_v37 = vpop.f32.mrf.mxu0  ;;  %v1145_v38 = vpop.f32.mrf.mxu1 }
 0x135   :  { %v3148_v39 = vpop.f32.mrf.mxu0  ;;  %v3150_v40 = vpop.f32.mrf.mxu1 }
 0x137   :  { %v956_v41 = vpop.f32.mrf.mxu0  ;;  %v1148_v42 = vpop.f32.mrf.mxu1 }
 0x139   :  { %v3152_v43 = vpop.f32.mrf.mxu0  ;;  %v3154_v44 = vpop.f32.mrf.mxu1 }
 0x13b   :  { %v961_v45 = vpop.f32.mrf.mxu0  ;;  %v1153_v46 = vpop.f32.mrf.mxu1 }
 0x13d   :  { %v3156_v47 = vpop.f32.mrf.mxu0  ;;  %v3158_v48 = vpop.f32.mrf.mxu1 }
 0x13f   :  { %v964_v49 = vpop.f32.mrf.mxu0  ;;  %v1156_v50 = vpop.f32.mrf.mxu1 }
 0x141   :  { %v3160_v53 = vpop.f32.mrf.mxu0  ;;  %v2428_v54 = vpop.f32.mrf.mxu1 }
 0x142   :  { %v1201_v57 = vadd.f32 %v2428_v54, %v911_v59 }
 0x143   :  { %v969_v58 = vpop.f32.mrf.mxu0  ;;  %v1192_v61 = vpop.f32.mrf.mxu1 }
 0x144   :  { %v2326_v62 = vpack.c.bf16 %v1201_v57, %v1201_v57  ;;  %v1193_v1 = vadd.f32 %v1192_v61, %v3098_v51  ;;  %v1909_v14 = vmul.f32 %v1201_v57, %v1201_v57  ;;  %v1773_v30 = vsel %vm18_vm2, %v1201_v57, 0.0 }
 0x145   :  { %v3163_v2 = vpop.f32.mrf.mxu0  ;;  %v2429_v5 = vpop.f32.mrf.mxu1 }
 0x146   :  { %1706 = vst.msk [vmem:[%s3837_s2 + $0x8] sm:$0xf] %vm1703_vm1, %v2326_v62  ;;  %v2324_v6 = vpack.c.bf16 %v1193_v1, %v1193_v1  ;;  %v1204_v9 = vadd.f32 %v2429_v5, %v3108_v63  ;;  %v1907_v51 = vmul.f32 %v1193_v1, %v1193_v1  ;;  %v1770_v17 = vsel %vm18_vm2, %v1193_v1, 0.0 }
 0x147   :  { %v972_v10 = vpop.f32.mrf.mxu0  ;;  %v1195_v13 = vpop.f32.mrf.mxu1  ;;  %v1974_v54 = vsel %vm18_vm2, %v1909_v14, 0.0 }
 0x148   :  { %1704 = vst.msk [vmem:[%s3837_s2] sm:$0xf] %vm1703_vm1, %v2324_v6  ;;  %v1196_v59 = vadd.f32 %v1195_v13, %v3102_v55  ;;  %v2327_v18 = vpack.c.bf16 %v1204_v9, %v1204_v9  ;;  %v1971_v37 = vsel %vm18_vm2, %v1907_v51, 0.0  ;;  %v1910_v38 = vmul.f32 %v1204_v9, %v1204_v9 }
 0x149   :  { %v3176_v21 = vpop.f32.mrf.mxu0  ;;  %v2432_v22 = vpop.f32.mrf.mxu1  ;;  %v1775_v57 = vsel %vm18_vm2, %v1204_v9, 0.0 }
 0x14a   :  { %v2325_v25 = vpack.c.bf16 %v1196_v59, %v1196_v59  ;;  %v1771_v63 = vsel %vm18_vm2, %v1196_v59, 0.0  ;;  %v1908_v26 = vmul.f32 %v1196_v59, %v1196_v59  ;;  %v1217_v29 = vadd.f32 %v2432_v22, %v3120_v11  ;;  %1707 = vst.msk [vmem:[%s3837_s2 + $0xc] sm:$0xf] %vm1703_vm1, %v2327_v18 }
 0x14b   :  { %v1772_v55 = vadd.f32 %v1771_v63, %v1770_v17  ;;  %v977_v33 = vpop.f32.mrf.mxu0  ;;  %v1208_v34 = vpop.f32.mrf.mxu1  ;;  %v2671_v63 = vmov 0.0  }
 0x14c   :  { %1705 = vst.msk [vmem:[%s3837_s2 + $0x4] sm:$0xf] %vm1703_vm1, %v2325_v25  ;;  %v1972_v11 = vsel %vm18_vm2, %v1908_v26, 0.0  ;;  %v2330_v41 = vpack.c.bf16 %v1217_v29, %v1217_v29  ;;  %v1209_v46 = vadd.f32 %v1208_v34, %v3112_v3  ;;  %v1976_v3 = vsel %vm18_vm2, %v1910_v38, 0.0 }
 0x14d   :  { %v1774_v42 = vadd.f32 %v1773_v30, %v1772_v55  ;;  %v1973_v45 = vadd.f32 %v1972_v11, %v1971_v37  ;;  %v3192_v49 = vpop.f32.mrf.mxu0  ;;  %v2433_v50 = vpop.f32.mrf.mxu1  ;;  %v1913_v18 = vmul.f32 %v1217_v29, %v1217_v29  ;;  %19 = vst.msk [vmem:[%s3838_s3] sm:$0xff] %vm18_vm2, %v2671_v63  ;;  %v1781_v11 = vsel %vm18_vm2, %v1217_v29, 0.0 }
 0x14e   :  { %1710 = vst.msk [vmem:[%s3837_s2 + $0x18] sm:$0xf] %vm1703_vm1, %v2330_v41  ;;  %v1220_v58 = vadd.f32 %v2433_v50, %v3124_v15  ;;  %v2328_v62 = vpack.c.bf16 %v1209_v46, %v1209_v46  ;;  %v1777_v10 = vsel %vm18_vm2, %v1209_v46, 0.0  ;;  %v1911_v13 = vmul.f32 %v1209_v46, %v1209_v46 }
 0x14f   :  { %v1975_v61 = vadd.f32 %v1974_v54, %v1973_v45  ;;  %v1776_v1 = vadd.f32 %v1775_v57, %v1774_v42  ;;  %v980_v5 = vpop.f32.mrf.mxu0  ;;  %v1211_v6 = vpop.f32.mrf.mxu1  ;;  %v1982_v57 = vsel %vm18_vm2, %v1913_v18, 0.0 }
 0x150   :  { %v2331_v51 = vpack.c.bf16 %v1220_v58, %v1220_v58  ;;  %1708 = vst.msk [vmem:[%s3837_s2 + $0x10] sm:$0xf] %vm1703_vm1, %v2328_v62  ;;  %v1212_v15 = vadd.f32 %v1211_v6, %v3116_v7  ;;  %v1978_v22 = vsel %vm18_vm2, %v1911_v13, 0.0  ;;  %v1914_v41 = vmul.f32 %v1220_v58, %v1220_v58 }
 0x151   :  { %v1778_v9 = vadd.f32 %v1777_v10, %v1776_v1  ;;  %v1977_v59 = vadd.f32 %v1976_v3, %v1975_v61  ;;  %v3208_v14 = vpop.f32.mrf.mxu0  ;;  %v2436_v17 = vpop.f32.mrf.mxu1  ;;  %v1783_v61 = vsel %vm18_vm2, %v1220_v58, 0.0 }
 0x152   :  { %1711 = vst.msk [vmem:[%s3837_s2 + $0x1c] sm:$0xf] %vm1703_vm1, %v2331_v51  ;;  %v1233_v25 = vadd.f32 %v2436_v17, %v3136_v27  ;;  %v2329_v26 = vpack.c.bf16 %v1212_v15, %v1212_v15  ;;  %v1779_v30 = vsel %vm18_vm2, %v1212_v15, 0.0  ;;  %v1912_v55 = vmul.f32 %v1212_v15, %v1212_v15 }
 0x153   :  { %v1979_v7 = vadd.f32 %v1978_v22, %v1977_v59  ;;  %v985_v33 = vpop.f32.mrf.mxu0  ;;  %v1224_v34 = vpop.f32.mrf.mxu1  ;;  %v1780_v37 = vadd.f32 %v1779_v30, %v1778_v9  ;;  %v1984_v13 = vsel %vm18_vm2, %v1914_v41, 0.0 }
 0x154   :  { %v2334_v38 = vpack.c.bf16 %v1233_v25, %v1233_v25  ;;  %1709 = vst.msk [vmem:[%s3837_s2 + $0x14] sm:$0xf] %vm1703_vm1, %v2329_v26  ;;  %v1980_v27 = vsel %vm18_vm2, %v1912_v55, 0.0  ;;  %v1225_v42 = vadd.f32 %v1224_v34, %v3128_v19  ;;  %v1917_v59 = vmul.f32 %v1233_v25, %v1233_v25 }
 0x155   :  { %v3228_v45 = vpop.f32.mrf.mxu0  ;;  %v2437_v46 = vpop.f32.mrf.mxu1  ;;  %v1782_v50 = vadd.f32 %v1781_v11, %v1780_v37  ;;  %v1981_v54 = vadd.f32 %v1980_v27, %v1979_v7  ;;  %v1789_v37 = vsel %vm18_vm2, %v1233_v25, 0.0 }
 0x156   :  { %1714 = vst.msk [vmem:[%s3837_s2 + $0x28] sm:$0xf] %vm1703_vm1, %v2334_v38  ;;  %v1236_v29 = vadd.f32 %v2437_v46, %v3140_v31  ;;  %v2332_v62 = vpack.c.bf16 %v1225_v42, %v1225_v42  ;;  %v1915_v1 = vmul.f32 %v1225_v42, %v1225_v42  ;;  %v1785_v31 = vsel %vm18_vm2, %v1225_v42, 0.0 }
 0x157   :  { %v988_v5 = vpop.f32.mrf.mxu0  ;;  %v1227_v19 = vpop.f32.mrf.mxu1  ;;  %v1983_v6 = vadd.f32 %v1982_v57, %v1981_v54  ;;  %v1784_v3 = vadd.f32 %v1783_v61, %v1782_v50  ;;  %v1990_v50 = vsel %vm18_vm2, %v1917_v59, 0.0 }
 0x158   :  { %v2335_v10 = vpack.c.bf16 %v1236_v29, %v1236_v29  ;;  %1712 = vst.msk [vmem:[%s3837_s2 + $0x20] sm:$0xf] %vm1703_vm1, %v2332_v62  ;;  %v1228_v51 = vadd.f32 %v1227_v19, %v3132_v23  ;;  %v1986_v22 = vsel %vm18_vm2, %v1915_v1, 0.0  ;;  %v1918_v38 = vmul.f32 %v1236_v29, %v1236_v29 }
 0x159   :  { %v3244_v9 = vpop.f32.mrf.mxu0  ;;  %v2440_v58 = vpop.f32.mrf.mxu1  ;;  %v1786_v15 = vadd.f32 %v1785_v31, %v1784_v3  ;;  %v1985_v17 = vadd.f32 %v1984_v13, %v1983_v6  ;;  %v1791_v54 = vsel %vm18_vm2, %v1236_v29, 0.0 }
 0x15a   :  { %1715 = vst.msk [vmem:[%s3837_s2 + $0x2c] sm:$0xf] %vm1703_vm1, %v2335_v10  ;;  %v1249_v18 = vadd.f32 %v2440_v58, %v3152_v43  ;;  %v2333_v63 = vpack.c.bf16 %v1228_v51, %v1228_v51  ;;  %v1787_v7 = vsel %vm18_vm2, %v1228_v51, 0.0  ;;  %v1916_v26 = vmul.f32 %v1228_v51, %v1228_v51 }
 0x15b   :  { %v993_v23 = vpop.f32.mrf.mxu0  ;;  %v1240_v30 = vpop.f32.mrf.mxu1  ;;  %v1987_v55 = vadd.f32 %v1986_v22, %v1985_v17  ;;  %v1788_v33 = vadd.f32 %v1787_v7, %v1786_v15  ;;  %v1992_v6 = vsel %vm18_vm2, %v1918_v38, 0.0 }
 0x15c   :  { %v2338_v34 = vpack.c.bf16 %v1249_v18, %v1249_v18  ;;  %1713 = vst.msk [vmem:[%s3837_s2 + $0x24] sm:$0xf] %vm1703_vm1, %v2333_v63  ;;  %v1988_v43 = vsel %vm18_vm2, %v1916_v26, 0.0  ;;  %v1241_v11 = vadd.f32 %v1240_v30, %v3144_v35  ;;  %v1921_v13 = vmul.f32 %v1249_v18, %v1249_v18 }
 0x15d   :  { %v3260_v41 = vpop.f32.mrf.mxu0  ;;  %v2441_v27 = vpop.f32.mrf.mxu1  ;;  %v1790_v42 = vadd.f32 %v1789_v37, %v1788_v33  ;;  %v1989_v46 = vadd.f32 %v1988_v43, %v1987_v55  ;;  %v1797_v30 = vsel %vm18_vm2, %v1249_v18, 0.0 }
 0x15e   :  { %1718 = vst.msk [vmem:[%s3837_s2 + $0x38] sm:$0xf] %vm1703_vm1, %v2338_v34  ;;  %v1252_v25 = vadd.f32 %v2441_v27, %v3156_v47  ;;  %v2336_v57 = vpack.c.bf16 %v1241_v11, %v1241_v11  ;;  %v1919_v61 = vmul.f32 %v1241_v11, %v1241_v11  ;;  %v1793_v47 = vsel %vm18_vm2, %v1241_v11, 0.0 }
 0x15f   :  { %v996_v62 = vpop.f32.mrf.mxu0  ;;  %v1243_v35 = vpop.f32.mrf.mxu1  ;;  %v1991_v1 = vadd.f32 %v1990_v50, %v1989_v46  ;;  %v1792_v5 = vadd.f32 %v1791_v54, %v1790_v42  ;;  %v1998_v11 = vsel %vm18_vm2, %v1921_v13, 0.0 }
 0x160   :  { %v2339_v19 = vpack.c.bf16 %v1252_v25, %v1252_v25  ;;  %1716 = vst.msk [vmem:[%s3837_s2 + $0x30] sm:$0xf] %vm1703_vm1, %v2336_v57  ;;  %v1244_v3 = vadd.f32 %v1243_v35, %v3148_v39  ;;  %v1994_v59 = vsel %vm18_vm2, %v1919_v61, 0.0  ;;  %v1922_v55 = vmul.f32 %v1252_v25, %v1252_v25 }
 0x161   :  { %v3276_v10 = vpop.f32.mrf.mxu0  ;;  %v2444_v29 = vpop.f32.mrf.mxu1  ;;  %v1794_v31 = vadd.f32 %v1793_v47, %v1792_v5  ;;  %v1993_v51 = vadd.f32 %v1992_v6, %v1991_v1  ;;  %v1799_v27 = vsel %vm18_vm2, %v1252_v25, 0.0 }
 0x162   :  { %1719 = vst.msk [vmem:[%s3837_s2 + $0x3c] sm:$0xf] %vm1703_vm1, %v2339_v19  ;;  %v1265_v58 = vadd.f32 %v2444_v29, %v3176_v21  ;;  %v2337_v15 = vpack.c.bf16 %v1244_v3, %v1244_v3  ;;  %v1795_v17 = vsel %vm18_vm2, %v1244_v3, 0.0  ;;  %v1920_v22 = vmul.f32 %v1244_v3, %v1244_v3 }
 0x163   :  { %v1001_v39 = vpop.f32.mrf.mxu0  ;;  %v1256_v63 = vpop.f32.mrf.mxu1  ;;  %v1995_v7 = vadd.f32 %v1994_v59, %v1993_v51  ;;  %v1796_v26 = vadd.f32 %v1795_v17, %v1794_v31  ;;  %v2000_v62 = vsel %vm18_vm2, %v1922_v55, 0.0 }
 0x164   :  { %v2342_v23 = vpack.c.bf16 %v1265_v58, %v1265_v58  ;;  %1717 = vst.msk [vmem:[%s3837_s2 + $0x34] sm:$0xf] %vm1703_vm1, %v2337_v15  ;;  %v1996_v21 = vsel %vm18_vm2, %v1920_v22, 0.0  ;;  %v1257_v33 = vadd.f32 %v1256_v63, %v3160_v53  ;;  %v1925_v5 = vmul.f32 %v1265_v58, %v1265_v58 }
 0x165   :  { %v3292_v34 = vpop.f32.mrf.mxu0  ;;  %v2445_v37 = vpop.f32.mrf.mxu1  ;;  %v1798_v38 = vadd.f32 %v1797_v30, %v1796_v26  ;;  %v1997_v43 = vadd.f32 %v1996_v21, %v1995_v7  ;;  %v1805_v22 = vsel %vm18_vm2, %v1265_v58, 0.0 }
 0x166   :  { %1722 = vst.msk [vmem:[%s3837_s2 + $0x48] sm:$0xf] %vm1703_vm1, %v2342_v23  ;;  %v1268_v18 = vadd.f32 %v2445_v37, %v3192_v49  ;;  %v2340_v42 = vpack.c.bf16 %v1257_v33, %v1257_v33  ;;  %v1923_v46 = vmul.f32 %v1257_v33, %v1257_v33  ;;  %v1801_v49 = vsel %vm18_vm2, %v1257_v33, 0.0 }
 0x167   :  { %v1004_v50 = vpop.f32.mrf.mxu0  ;;  %v1259_v53 = vpop.f32.mrf.mxu1  ;;  %v1999_v54 = vadd.f32 %v1998_v11, %v1997_v43  ;;  %v1800_v57 = vadd.f32 %v1799_v27, %v1798_v38  ;;  %v2006_v55 = vsel %vm18_vm2, %v1925_v5, 0.0 }
 0x168   :  { %v2343_v61 = vpack.c.bf16 %v1268_v18, %v1268_v18  ;;  %1720 = vst.msk [vmem:[%s3837_s2 + $0x40] sm:$0xf] %vm1703_vm1, %v2340_v42  ;;  %v1260_v35 = vadd.f32 %v1259_v53, %v3163_v2  ;;  %v2002_v3 = vsel %vm18_vm2, %v1923_v46, 0.0  ;;  %v1926_v39 = vmul.f32 %v1268_v18, %v1268_v18 }
 0x169   :  { %v1007_v1 = vpop.f32.mrf.mxu0  ;;  %v2448_v25 = vpop.f32.mrf.mxu1  ;;  %v1802_v19 = vadd.f32 %v1801_v49, %v1800_v57  ;;  %v2001_v6 = vadd.f32 %v2000_v62, %v1999_v54  ;;  %v1807_v21 = vsel %vm18_vm2, %v1268_v18, 0.0 }
 0x16a   :  { %1723 = vst.msk [vmem:[%s3837_s2 + $0x4c] sm:$0xf] %vm1703_vm1, %v2343_v61  ;;  %v1281_v47 = vadd.f32 %v2448_v25, %v3244_v9  ;;  %v2341_v29 = vpack.c.bf16 %v1260_v35, %v1260_v35  ;;  %v1803_v13 = vsel %vm18_vm2, %v1260_v35, 0.0  ;;  %v1924_v31 = vmul.f32 %v1260_v35, %v1260_v35 }
 0x16b   :  { %v1009_v51 = vpop.f32.mrf.mxu0  ;;  %v1272_v2 = vpop.f32.mrf.mxu1  ;;  %v2003_v59 = vadd.f32 %v2002_v3, %v2001_v6  ;;  %v1804_v15 = vadd.f32 %v1803_v13, %v1802_v19  ;;  %v2008_v42 = vsel %vm18_vm2, %v1926_v39, 0.0 }
 0x16c   :  { %v2346_v17 = vpack.c.bf16 %v1281_v47, %v1281_v47  ;;  %1721 = vst.msk [vmem:[%s3837_s2 + $0x44] sm:$0xf] %vm1703_vm1, %v2341_v29  ;;  %v2004_v9 = vsel %vm18_vm2, %v1924_v31, 0.0  ;;  %v1273_v63 = vadd.f32 %v1272_v2, %v3208_v14  ;;  %v1929_v53 = vmul.f32 %v1281_v47, %v1281_v47 }
 0x16d   :  { %v1010_v7 = vpop.f32.mrf.mxu0  ;;  %v2449_v26 = vpop.f32.mrf.mxu1  ;;  %v1806_v23 = vadd.f32 %v1805_v22, %v1804_v15  ;;  %v2005_v30 = vadd.f32 %v2004_v9, %v2003_v59  ;;  %v1813_v29 = vsel %vm18_vm2, %v1281_v47, 0.0 }
 0x16e   :  { %1726 = vst.msk [vmem:[%s3837_s2 + $0x58] sm:$0xf] %vm1703_vm1, %v2346_v17  ;;  %v1284_v58 = vadd.f32 %v2449_v26, %v3260_v41  ;;  %v2344_v33 = vpack.c.bf16 %v1273_v63, %v1273_v63  ;;  %v1927_v37 = vmul.f32 %v1273_v63, %v1273_v63  ;;  %v1809_v41 = vsel %vm18_vm2, %v1273_v63, 0.0 }
 0x16f   :  { %v1012_v38 = vpop.f32.mrf.mxu0  ;;  %v1275_v43 = vpop.f32.mrf.mxu1  ;;  %v2007_v14 = vadd.f32 %v2006_v55, %v2005_v30  ;;  %v1808_v11 = vadd.f32 %v1807_v21, %v1806_v23  ;;  %v2014_v17 = vsel %vm18_vm2, %v1929_v53, 0.0 }
 0x170   :  { %v2347_v27 = vpack.c.bf16 %v1284_v58, %v1284_v58  ;;  %1724 = vst.msk [vmem:[%s3837_s2 + $0x50] sm:$0xf] %vm1703_vm1, %v2344_v33  ;;  %v1276_v46 = vadd.f32 %v1275_v43, %v3228_v45  ;;  %v2010_v62 = vsel %vm18_vm2, %v1927_v37, 0.0  ;;  %v1930_v2 = vmul.f32 %v1284_v58, %v1284_v58 }
 0x171   :  { %v1015_v50 = vpop.f32.mrf.mxu0  ;;  %v2452_v18 = vpop.f32.mrf.mxu1  ;;  %v1810_v54 = vadd.f32 %v1809_v41, %v1808_v11  ;;  %v2009_v57 = vadd.f32 %v2008_v42, %v2007_v14  ;;  %v1815_v63 = vsel %vm18_vm2, %v1284_v58, 0.0 }
 0x172   :  { %1727 = vst.msk [vmem:[%s3837_s2 + $0x5c] sm:$0xf] %vm1703_vm1, %v2347_v27  ;;  %v3340_v61 = vadd.f32 %v2452_v18, %v1007_v1  ;;  %v2345_v49 = vpack.c.bf16 %v1276_v46, %v1276_v46  ;;  %v1811_v35 = vsel %vm18_vm2, %v1276_v46, 0.0  ;;  %v1928_v25 = vmul.f32 %v1276_v46, %v1276_v46 }
 0x173   :  { %v1017_v5 = vpop.f32.mrf.mxu0  ;;  %v1288_v45 = vpop.f32.mrf.mxu1  ;;  %v2011_v19 = vadd.f32 %v2010_v62, %v2009_v57  ;;  %v1812_v6 = vadd.f32 %v1811_v35, %v1810_v54 }
 0x174   :  { %v2350_v3 = vpack.c.bf16 %v3340_v61, %v3340_v61  ;;  %1725 = vst.msk [vmem:[%s3837_s2 + $0x54] sm:$0xf] %vm1703_vm1, %v2345_v49  ;;  %v2012_v1 = vsel %vm18_vm2, %v1928_v25, 0.0  ;;  %v1289_v13 = vadd.f32 %v1288_v45, %v3276_v10 }
 0x175   :  { %v1018_v31 = vpop.f32.mrf.mxu0  ;;  %v2453_v51 = vpop.f32.mrf.mxu1  ;;  %v1814_v59 = vadd.f32 %v1813_v29, %v1812_v6  ;;  %v2013_v15 = vadd.f32 %v2012_v1, %v2011_v19  ;;  %v1933_v29 = vmul.f32 %v3340_v61, %v3340_v61 }
 0x176   :  { %1730 = vst.msk [vmem:[%s3837_s2 + $0x68] sm:$0xf] %vm1703_vm1, %v2350_v3  ;;  %v1300_v47 = vadd.f32 %v2453_v51, %v1010_v7  ;;  %v2348_v22 = vpack.c.bf16 %v1289_v13, %v1289_v13  ;;  %v2016_v7 = vsel %vm18_vm2, %v1930_v2, 0.0  ;;  %v1931_v33 = vmul.f32 %v1289_v13, %v1289_v13 }
 0x177   :  { %v1020_v39 = vpop.f32.mrf.mxu0  ;;  %v1291_v9 = vpop.f32.mrf.mxu1  ;;  %v2015_v26 = vadd.f32 %v2014_v17, %v2013_v15  ;;  %v1816_v23 = vadd.f32 %v1815_v63, %v1814_v59  ;;  %v1817_v11 = vsel %vm18_vm2, %v1289_v13, 0.0  ;;  %v1821_v59 = vsel %vm18_vm2, %v3340_v61, 0.0 }
 0x178   :  { %v2351_v10 = vpack.c.bf16 %v1300_v47, %v1300_v47  ;;  %1728 = vst.msk [vmem:[%s3837_s2 + $0x60] sm:$0xf] %vm1703_vm1, %v2348_v22  ;;  %v1292_v30 = vadd.f32 %v1291_v9, %v3292_v34  ;;  %v2018_v53 = vsel %vm18_vm2, %v1931_v33, 0.0  ;;  %v2022_v39 = vsel %vm18_vm2, %v1933_v29, 0.0 }
 0x179   :  { %v1023_v55 = vpop.f32.mrf.mxu0  ;;  %v2456_v21 = vpop.f32.mrf.mxu1  ;;  %v2017_v37 = vadd.f32 %v2016_v7, %v2015_v26  ;;  %v1818_v42 = vadd.f32 %v1817_v11, %v1816_v23  ;;  %v1934_v9 = vmul.f32 %v1300_v47, %v1300_v47  ;;  %v1823_v61 = vsel %vm18_vm2, %v1300_v47, 0.0 }
 0x17a   :  { %1731 = vst.msk [vmem:[%s3837_s2 + $0x6c] sm:$0xf] %vm1703_vm1, %v2351_v10  ;;  %v3369_v58 = vadd.f32 %v2456_v21, %v1023_v55  ;;  %v2349_v38 = vpack.c.bf16 %v1292_v30, %v1292_v30  ;;  %v1932_v27 = vmul.f32 %v1292_v30, %v1292_v30  ;;  %v1819_v54 = vsel %vm18_vm2, %v1292_v30, 0.0 }
 0x17b   :  { %v1025_v43 = vpop.f32.mrf.mxu0  ;;  %v1304_v14 = vpop.f32.mrf.mxu1  ;;  %v2019_v62 = vadd.f32 %v2018_v53, %v2017_v37  ;;  %v1820_v45 = vadd.f32 %v1819_v54, %v1818_v42  ;;  %v2024_v33 = vsel %vm18_vm2, %v1934_v9, 0.0 }
 0x17c   :  { %v2354_v34 = vpack.c.bf16 %v3369_v58, %v3369_v58  ;;  %1729 = vst.msk [vmem:[%s3837_s2 + $0x64] sm:$0xf] %vm1703_vm1, %v2349_v38  ;;  %v1305_v41 = vadd.f32 %v1304_v14, %v1015_v50  ;;  %v2020_v5 = vsel %vm18_vm2, %v1932_v27, 0.0 }
 0x17d   :  { %v1026_v46 = vpop.f32.mrf.mxu0  ;;  %v2457_v18 = vpop.f32.mrf.mxu1  ;;  %v2021_v1 = vadd.f32 %v2020_v5, %v2019_v62 }
 0x17e   :  { %1734 = vst.msk [vmem:[%s3837_s2 + $0x78] sm:$0xf] %vm1703_vm1, %v2354_v34  ;;  %v3384_v57 = vadd.f32 %v2457_v18, %v1026_v46  ;;  %v2352_v49 = vpack.c.bf16 %v1305_v41, %v1305_v41  ;;  %v1935_v37 = vmul.f32 %v1305_v41, %v1305_v41  ;;  %v1825_v27 = vsel %vm18_vm2, %v1305_v41, 0.0 }
 0x17f   :  { %v1028_v35 = vpop.f32.mrf.mxu0  ;;  %v1307_v25 = vpop.f32.mrf.mxu1  ;;  %v2023_v26 = vadd.f32 %v2022_v39, %v2021_v1 }
 0x180   :  { %v2355_v50 = vpack.c.bf16 %v3384_v57, %v3384_v57  ;;  %1732 = vst.msk [vmem:[%s3837_s2 + $0x70] sm:$0xf] %vm1703_vm1, %v2352_v49  ;;  %v1308_v19 = vadd.f32 %v1307_v25, %v1018_v31  ;;  %v1822_v31 = vadd.f32 %v1821_v59, %v1820_v45  ;;  %v2026_v54 = vsel %vm18_vm2, %v1935_v37, 0.0 }
 0x181   :  { %v1031_v6 = vpop.f32.mrf.mxu0  ;;  %v2460_v3 = vpop.f32.mrf.mxu1  ;;  %v2025_v43 = vadd.f32 %v2024_v33, %v2023_v26  ;;  %v1938_v9 = vmul.f32 %v3384_v57, %v3384_v57 }
 0x182   :  { %1735 = vst.msk [vmem:[%s3837_s2 + $0x7c] sm:$0xf] %vm1703_vm1, %v2355_v50  ;;  %v2353_v13 = vpack.c.bf16 %v1308_v19, %v1308_v19  ;;  %v1824_v55 = vadd.f32 %v1823_v61, %v1822_v31  ;;  %v1936_v34 = vmul.f32 %v1308_v19, %v1308_v19  ;;  %v1827_v62 = vsel %vm18_vm2, %v1308_v19, 0.0 }
 0x183   :  { %v1033_v51 = vpop.f32.mrf.mxu0  ;;  %v1320_v2 = vpop.f32.mrf.mxu1  ;;  %v2027_v35 = vadd.f32 %v2026_v54, %v2025_v43  ;;  %v1937_v19 = vmul.f32 %v3369_v58, %v3369_v58  ;;  %v2032_v37 = vsel %vm18_vm2, %v1938_v9, 0.0 }
 0x184   :  { %v3401_v15 = vadd.f32 %v1320_v2, %v1031_v6  ;;  %1733 = vst.msk [vmem:[%s3837_s2 + $0x74] sm:$0xf] %vm1703_vm1, %v2353_v13  ;;  %v1826_v42 = vadd.f32 %v1825_v27, %v1824_v55  ;;  %v2028_v5 = vsel %vm18_vm2, %v1936_v34, 0.0  ;;  %v1829_v2 = vsel %vm18_vm2, %v3369_v58, 0.0 }
 0x185   :  { %v1034_v17 = vpop.f32.mrf.mxu0  ;;  %v2461_v22 = vpop.f32.mrf.mxu1  ;;  %v2029_v1 = vadd.f32 %v2028_v5, %v2027_v35  ;;  %v2030_v39 = vsel %vm18_vm2, %v1937_v19, 0.0 }
 0x186   :  { %v2356_v63 = vpack.c.bf16 %v3401_v15, %v3401_v15  ;;  %v1828_v45 = vadd.f32 %v1827_v62, %v1826_v42  ;;  %v1833_v27 = vsel %vm18_vm2, %v3401_v15, 0.0 }
 0x187   :  { %v1036_v10 = vpop.f32.mrf.mxu0  ;;  %v1323_v23 = vpop.f32.mrf.mxu1  ;;  %v2031_v58 = vadd.f32 %v2030_v39, %v2029_v1 }
 0x188   :  { %1736 = vst.msk [vmem:[%s3837_s2 + $0x80] sm:$0xf] %vm1703_vm1, %v2356_v63  ;;  %v3415_v30 = vadd.f32 %v1323_v23, %v1034_v17  ;;  %v1830_v31 = vadd.f32 %v1829_v2, %v1828_v45  ;;  %v1831_v23 = vsel %vm18_vm2, %v3384_v57, 0.0 }
 0x189   :  { %v1039_v21 = vpop.f32.mrf.mxu0  ;;  %v2464_v7 = vpop.f32.mrf.mxu1  ;;  %v2033_v57 = vadd.f32 %v2032_v37, %v2031_v58 }
 0x18a   :  { %v2357_v38 = vpack.c.bf16 %v3415_v30, %v3415_v30  ;;  %v3420_v14 = vadd.f32 %v2460_v3, %v1039_v21  ;;  %v1832_v55 = vadd.f32 %v1831_v23, %v1830_v31  ;;  %v1940_v34 = vmul.f32 %v3415_v30, %v3415_v30 }
 0x18b   :  { %v1041_v47 = vpop.f32.mrf.mxu0  ;;  %v1336_v11 = vpop.f32.mrf.mxu1  ;;  %v1835_v62 = vsel %vm18_vm2, %v3415_v30, 0.0 }
 0x18c   :  { %1737 = vst.msk [vmem:[%s3837_s2 + $0x84] sm:$0xf] %vm1703_vm1, %v2357_v38  ;;  %v2358_v46 = vpack.c.bf16 %v3420_v14, %v3420_v14  ;;  %v1939_v38 = vmul.f32 %v3401_v15, %v3401_v15  ;;  %v1837_v1 = vsel %vm18_vm2, %v3420_v14, 0.0 }
 0x18d   :  { %v1042_v18 = vpop.f32.mrf.mxu0  ;;  %v2465_v53 = vpop.f32.mrf.mxu1 }
 0x18e   :  { %v3431_v49 = vadd.f32 %v2461_v22, %v1042_v18  ;;  %1738 = vst.msk [vmem:[%s3837_s2 + $0x88] sm:$0xf] %vm1703_vm1, %v2358_v46  ;;  %v1834_v46 = vadd.f32 %v1833_v27, %v1832_v55 }
 0x18f   :  { %v1044_v41 = vpop.f32.mrf.mxu0  ;;  %v1339_v25 = vpop.f32.mrf.mxu1 }
 0x190   :  { %v2359_v50 = vpack.c.bf16 %v3431_v49, %v3431_v49  ;;  %v1941_v41 = vmul.f32 %v3420_v14, %v3420_v14  ;;  %v1836_v30 = vadd.f32 %v1835_v62, %v1834_v46  ;;  %v1839_v14 = vsel %vm18_vm2, %v3431_v49, 0.0 }
 0x191   :  { %v1047_v6 = vpop.f32.mrf.mxu0  ;;  %v3440_v3 = vpop.f32.mrf.mxu1 }
 0x192   :  { %1739 = vst.msk [vmem:[%s3837_s2 + $0x8c] sm:$0xf] %vm1703_vm1, %v2359_v50  ;;  %v3448_v29 = vadd.f32 %v1336_v11, %v1047_v6  ;;  %v2036_v50 = vsel %vm18_vm2, %v1940_v34, 0.0  ;;  %v2038_v31 = vsel %vm18_vm2, %v1941_v41, 0.0 }
 0x193   :  { %v1049_v13 = vpop.f32.mrf.mxu0  ;;  %v1352_v51 = vpop.f32.mrf.mxu1 }
 0x194   :  { %v2360_v59 = vpack.c.bf16 %v3448_v29, %v3448_v29  ;;  %v1943_v9 = vmul.f32 %v3448_v29, %v3448_v29 }
 0x195   :  { %v1050_v17 = vpop.f32.mrf.mxu0  ;;  %v3454_v22 = vpop.f32.mrf.mxu1 }
 0x196   :  { %1740 = vst.msk [vmem:[%s3837_s2 + $0x90] sm:$0xf] %vm1703_vm1, %v2360_v59  ;;  %v3463_v63 = vadd.f32 %v1339_v25, %v1050_v17  ;;  %v2042_v34 = vsel %vm18_vm2, %v1943_v9, 0.0 }
 0x197   :  { %v1052_v26 = vpop.f32.mrf.mxu0  ;;  %v1355_v10 = vpop.f32.mrf.mxu1 }
 0x198   :  { %v2361_v61 = vpack.c.bf16 %v3463_v63, %v3463_v63  ;;  %v1838_v26 = vadd.f32 %v1837_v1, %v1836_v30 }
 0x199   :  { %v1055_v21 = vpop.f32.mrf.mxu0  ;;  %v3469_v33 = vpop.f32.mrf.mxu1 }
 0x19a   :  { %1741 = vst.msk [vmem:[%s3837_s2 + $0x94] sm:$0xf] %vm1703_vm1, %v2361_v61  ;;  %v3478_v43 = vadd.f32 %v2464_v7, %v1055_v21  ;;  %v2034_v7 = vsel %vm18_vm2, %v1939_v38, 0.0  ;;  %v1841_v21 = vsel %vm18_vm2, %v3448_v29, 0.0 }
 0x19b   :  { %v1057_v47 = vpop.f32.mrf.mxu0  ;;  %v3480_v11 = vpop.f32.mrf.mxu1  ;;  %v2035_v35 = vadd.f32 %v2034_v7, %v2033_v57  ;;  %v1840_v57 = vadd.f32 %v1839_v14, %v1838_v26 }
 0x19c   :  { %v2362_v42 = vpack.c.bf16 %v3478_v43, %v3478_v43  ;;  %v1945_v46 = vmul.f32 %v3478_v43, %v3478_v43 }
 0x19d   :  { %v1058_v18 = vpop.f32.mrf.mxu0  ;;  %v3488_v54 = vpop.f32.mrf.mxu1  ;;  %v2037_v59 = vadd.f32 %v2036_v50, %v2035_v35  ;;  %v1842_v7 = vadd.f32 %v1841_v21, %v1840_v57 }
 0x19e   :  { %1742 = vst.msk [vmem:[%s3837_s2 + $0x98] sm:$0xf] %vm1703_vm1, %v2362_v42  ;;  %v3497_v15 = vadd.f32 %v2465_v53, %v1058_v18  ;;  %v1942_v53 = vmul.f32 %v3431_v49, %v3431_v49  ;;  %v1843_v42 = vsel %vm18_vm2, %v3463_v63, 0.0 }
 0x19f   :  { %v1060_v25 = vpop.f32.mrf.mxu0  ;;  %v3501_v5 = vpop.f32.mrf.mxu1  ;;  %v2039_v38 = vadd.f32 %v2038_v31, %v2037_v59 }
 0x1a0   :  { %v2363_v45 = vpack.c.bf16 %v3497_v15, %v3497_v15  ;;  %v2040_v49 = vsel %vm18_vm2, %v1942_v53, 0.0  ;;  %v1946_v25 = vmul.f32 %v3497_v15, %v3497_v15  ;;  %v2046_v53 = vsel %vm18_vm2, %v1945_v46, 0.0 }
 0x1a1   :  { %v1063_v6 = vpop.f32.mrf.mxu0  ;;  %v2476_v19 = vpop.f32.mrf.mxu1  ;;  %v1847_v9 = vsel %vm18_vm2, %v3497_v15, 0.0 }
 0x1a2   :  { %1743 = vst.msk [vmem:[%s3837_s2 + $0x9c] sm:$0xf] %vm1703_vm1, %v2363_v45  ;;  %v3514_v13 = vadd.f32 %v1352_v51, %v1063_v6  ;;  %v3517_v2 = vadd.f32 %v2476_v19, %v3106_v60  ;;  %v1944_v60 = vmul.f32 %v3463_v63, %v3463_v63  ;;  %v1845_v63 = vsel %vm18_vm2, %v3478_v43, 0.0 }
 0x1a3   :  { %v1065_v17 = vpop.f32.mrf.mxu0  ;;  %v1384_v39 = vpop.f32.mrf.mxu1  ;;  %v1844_v6 = vadd.f32 %v1843_v42, %v1842_v7 }
 0x1a4   :  { %v2364_v58 = vpack.c.bf16 %v3514_v13, %v3514_v13  ;;  %v2374_v51 = vpack.c.bf16 %v3517_v2, %v3517_v2  ;;  %v3531_v23 = vadd.f32 %v1384_v39, %v3100_v52  ;;  %v1849_v21 = vsel %vm18_vm2, %v3514_v13, 0.0 }
 0x1a5   :  { %v1066_v61 = vpop.f32.mrf.mxu0  ;;  %v2477_v55 = vpop.f32.mrf.mxu1 }
 0x1a6   :  { %1744 = vst.msk [vmem:[%s3837_s2 + $0xa0] sm:$0xf] %vm1703_vm1, %v2364_v58  ;;  %1754 = vst.msk [vmem:[%s3837_s2 + $0xc8] sm:$0xf] %vm1703_vm1, %v2374_v51  ;;  %v1356_v37 = vadd.f32 %v1355_v10, %v1066_v61  ;;  %v3545_v52 = vadd.f32 %v2477_v55, %v3110_v0  ;;  %v2372_v47 = vpack.c.bf16 %v3531_v23, %v3531_v23  ;;  %v2044_v0 = vsel %vm18_vm2, %v1944_v60, 0.0 }
 0x1a7   :  { %v1068_v29 = vpop.f32.mrf.mxu0  ;;  %v1387_v27 = vpop.f32.mrf.mxu1  ;;  %v2041_v10 = vadd.f32 %v2040_v49, %v2039_v38  ;;  %v1947_v58 = vmul.f32 %v3514_v13, %v3514_v13 }
 0x1a8   :  { %v2365_v18 = vpack.c.bf16 %v1356_v37, %v1356_v37  ;;  %1752 = vst.msk [vmem:[%s3837_s2 + $0xc0] sm:$0xf] %vm1703_vm1, %v2372_v47  ;;  %v2375_v62 = vpack.c.bf16 %v3545_v52, %v3545_v52  ;;  %v3570_v50 = vadd.f32 %v1387_v27, %v3104_v56  ;;  %v1948_v15 = vmul.f32 %v1356_v37, %v1356_v37 }
 0x1a9   :  { %v1071_v35 = vpop.f32.mrf.mxu0  ;;  %v2480_v41 = vpop.f32.mrf.mxu1  ;;  %v2043_v30 = vadd.f32 %v2042_v34, %v2041_v10  ;;  %v2050_v34 = vsel %vm18_vm2, %v1947_v58, 0.0 }
 0x1aa   :  { %1745 = vst.msk [vmem:[%s3837_s2 + $0xa4] sm:$0xf] %vm1703_vm1, %v2365_v18  ;;  %v1361_v45 = vadd.f32 %v3440_v3, %v1071_v35  ;;  %1755 = vst.msk [vmem:[%s3837_s2 + $0xcc] sm:$0xf] %vm1703_vm1, %v2375_v62  ;;  %v3578_v43 = vadd.f32 %v2480_v41, %v3122_v12  ;;  %v2373_v56 = vpack.c.bf16 %v3570_v50, %v3570_v50  ;;  %v2048_v12 = vsel %vm18_vm2, %v1946_v25, 0.0 }
 0x1ab   :  { %v1073_v19 = vpop.f32.mrf.mxu0  ;;  %v1400_v1 = vpop.f32.mrf.mxu1  ;;  %v2045_v31 = vadd.f32 %v2044_v0, %v2043_v30  ;;  %v1846_v3 = vadd.f32 %v1845_v63, %v1844_v6  ;;  %v2052_v46 = vsel %vm18_vm2, %v1948_v15, 0.0 }
 0x1ac   :  { %v2366_v59 = vpack.c.bf16 %v1361_v45, %v1361_v45  ;;  %v2378_v17 = vpack.c.bf16 %v3578_v43, %v3578_v43  ;;  %1753 = vst.msk [vmem:[%s3837_s2 + $0xc4] sm:$0xf] %vm1703_vm1, %v2373_v56  ;;  %v3599_v51 = vadd.f32 %v1400_v1, %v3114_v4  ;;  %v1949_v42 = vmul.f32 %v1361_v45, %v1361_v45 }
 0x1ad   :  { %v1074_v39 = vpop.f32.mrf.mxu0  ;;  %v2481_v14 = vpop.f32.mrf.mxu1  ;;  %v2047_v26 = vadd.f32 %v2046_v53, %v2045_v31  ;;  %v1848_v38 = vadd.f32 %v1847_v9, %v1846_v3  ;;  %v1853_v0 = vsel %vm18_vm2, %v1361_v45, 0.0 }
 0x1ae   :  { %1746 = vst.msk [vmem:[%s3837_s2 + $0xa8] sm:$0xf] %vm1703_vm1, %v2366_v59  ;;  %1758 = vst.msk [vmem:[%s3837_s2 + $0xd8] sm:$0xf] %vm1703_vm1, %v2378_v17  ;;  %v1364_v60 = vadd.f32 %v3454_v22, %v1074_v39  ;;  %v3607_v61 = vadd.f32 %v2481_v14, %v3126_v16  ;;  %v2376_v4 = vpack.c.bf16 %v3599_v51, %v3599_v51  ;;  %v1851_v22 = vsel %vm18_vm2, %v1356_v37, 0.0 }
 0x1af   :  { %v1076_v55 = vpop.f32.mrf.mxu0  ;;  %v1403_v49 = vpop.f32.mrf.mxu1  ;;  %v2049_v57 = vadd.f32 %v2048_v12, %v2047_v26  ;;  %v1850_v13 = vadd.f32 %v1849_v21, %v1848_v38  ;;  %v2054_v6 = vsel %vm18_vm2, %v1949_v42, 0.0 }
 0x1b0   :  { %v2367_v47 = vpack.c.bf16 %v1364_v60, %v1364_v60  ;;  %1756 = vst.msk [vmem:[%s3837_s2 + $0xd0] sm:$0xf] %vm1703_vm1, %v2376_v4  ;;  %v2379_v16 = vpack.c.bf16 %v3607_v61, %v3607_v61  ;;  %v3627_v18 = vadd.f32 %v1403_v49, %v3118_v8  ;;  %v1950_v62 = vmul.f32 %v1364_v60, %v1364_v60 }
 0x1b1   :  { %v1079_v29 = vpop.f32.mrf.mxu0  ;;  %v2484_v27 = vpop.f32.mrf.mxu1  ;;  %v2051_v8 = vadd.f32 %v2050_v34, %v2049_v57  ;;  %v1852_v63 = vadd.f32 %v1851_v22, %v1850_v13  ;;  %v1855_v19 = vsel %vm18_vm2, %v1364_v60, 0.0 }
 0x1b2   :  { %1747 = vst.msk [vmem:[%s3837_s2 + $0xac] sm:$0xf] %vm1703_vm1, %v2367_v47  ;;  %v1369_v37 = vadd.f32 %v3480_v11, %v1079_v29  ;;  %1759 = vst.msk [vmem:[%s3837_s2 + $0xdc] sm:$0xf] %vm1703_vm1, %v2379_v16  ;;  %v3636_v35 = vadd.f32 %v2484_v27, %v3138_v28  ;;  %v2377_v11 = vpack.c.bf16 %v3627_v18, %v3627_v18  ;;  %v2056_v3 = vsel %vm18_vm2, %v1950_v62, 0.0 }
 0x1b3   :  { %v1081_v10 = vpop.f32.mrf.mxu0  ;;  %v1416_v7 = vpop.f32.mrf.mxu1  ;;  %v2053_v53 = vadd.f32 %v2052_v46, %v2051_v8  ;;  %v1854_v56 = vadd.f32 %v1853_v0, %v1852_v63 }
 0x1b4   :  { %v3639_v41 = vadd.f32 %v1416_v7, %v3130_v20  ;;  %v2368_v25 = vpack.c.bf16 %v1369_v37, %v1369_v37  ;;  %v1951_v1 = vmul.f32 %v1369_v37, %v1369_v37  ;;  %v2382_v28 = vpack.c.bf16 %v3636_v35, %v3636_v35  ;;  %1757 = vst.msk [vmem:[%s3837_s2 + $0xd4] sm:$0xf] %vm1703_vm1, %v2377_v11 }
 0x1b5   :  { %v1082_v30 = vpop.f32.mrf.mxu0  ;;  %v2485_v45 = vpop.f32.mrf.mxu1  ;;  %v1857_v17 = vsel %vm18_vm2, %v1369_v37, 0.0  ;;  %v2055_v14 = vadd.f32 %v2054_v6, %v2053_v53  ;;  %v1856_v9 = vadd.f32 %v1855_v19, %v1854_v56  ;;  %v1955_v11 = vmul.f32 %v3531_v23, %v3531_v23 }
 0x1b6   :  { %1748 = vst.msk [vmem:[%s3837_s2 + $0xb0] sm:$0xf] %vm1703_vm1, %v2368_v25  ;;  %v2380_v20 = vpack.c.bf16 %v3639_v41, %v3639_v41  ;;  %1762 = vst.msk [vmem:[%s3837_s2 + $0xe8] sm:$0xf] %vm1703_vm1, %v2382_v28  ;;  %v1372_v39 = vadd.f32 %v3501_v5, %v1082_v30  ;;  %v3669_v12 = vadd.f32 %v2485_v45, %v3142_v32  ;;  %v2058_v60 = vsel %vm18_vm2, %v1951_v1, 0.0 }
 0x1b7   :  { %v1084_v59 = vpop.f32.mrf.mxu0  ;;  %v1419_v31 = vpop.f32.mrf.mxu1  ;;  %v2057_v21 = vadd.f32 %v2056_v3, %v2055_v14  ;;  %v1858_v4 = vadd.f32 %v1857_v17, %v1856_v9  ;;  %v1865_v1 = vsel %vm18_vm2, %v3531_v23, 0.0  ;;  %v1956_v28 = vmul.f32 %v3570_v50, %v3570_v50 }
 0x1b8   :  { %1760 = vst.msk [vmem:[%s3837_s2 + $0xe0] sm:$0xf] %vm1703_vm1, %v2380_v20  ;;  %v3672_v58 = vadd.f32 %v1419_v31, %v3134_v24  ;;  %v2369_v55 = vpack.c.bf16 %v1372_v39, %v1372_v39  ;;  %v1859_v5 = vsel %vm18_vm2, %v1372_v39, 0.0  ;;  %v1952_v49 = vmul.f32 %v1372_v39, %v1372_v39 }
 0x1b9   :  { %v1087_v26 = vpop.f32.mrf.mxu0  ;;  %v2488_v15 = vpop.f32.mrf.mxu1  ;;  %v2383_v38 = vpack.c.bf16 %v3669_v12, %v3669_v12  ;;  %v2059_v32 = vadd.f32 %v2058_v60, %v2057_v21  ;;  %v1860_v29 = vadd.f32 %v1859_v5, %v1858_v4  ;;  %v1957_v31 = vmul.f32 %v3517_v2, %v3517_v2 }
 0x1ba   :  { %1749 = vst.msk [vmem:[%s3837_s2 + $0xb4] sm:$0xf] %vm1703_vm1, %v2369_v55  ;;  %v2381_v24 = vpack.c.bf16 %v3672_v58, %v3672_v58  ;;  %v1377_v27 = vadd.f32 %v3469_v33, %v1087_v26  ;;  %v3690_v34 = vadd.f32 %v2488_v15, %v3154_v44  ;;  %v2060_v16 = vsel %vm18_vm2, %v1952_v49, 0.0 }
 0x1bb   :  { %v1089_v57 = vpop.f32.mrf.mxu0  ;;  %v1432_v47 = vpop.f32.mrf.mxu1  ;;  %1763 = vst.msk [vmem:[%s3837_s2 + $0xec] sm:$0xf] %vm1703_vm1, %v2383_v38  ;;  %v2061_v8 = vadd.f32 %v2060_v16, %v2059_v32  ;;  %v2066_v23 = vsel %vm18_vm2, %v1955_v11, 0.0  ;;  %v1867_v3 = vsel %vm18_vm2, %v3570_v50, 0.0  ;;  %v1869_v14 = vsel %vm18_vm2, %v3517_v2, 0.0 }
 0x1bc   :  { %1761 = vst.msk [vmem:[%s3837_s2 + $0xe4] sm:$0xf] %vm1703_vm1, %v2381_v24  ;;  %v3698_v13 = vadd.f32 %v1432_v47, %v3146_v36  ;;  %v2370_v33 = vpack.c.bf16 %v1377_v27, %v1377_v27  ;;  %v1861_v44 = vsel %vm18_vm2, %v1377_v27, 0.0  ;;  %v1953_v10 = vmul.f32 %v1377_v27, %v1377_v27 }
 0x1bd   :  { %v1090_v22 = vpop.f32.mrf.mxu0  ;;  %v2489_v42 = vpop.f32.mrf.mxu1  ;;  %v2386_v7 = vpack.c.bf16 %v3690_v34, %v3690_v34  ;;  %v1862_v36 = vadd.f32 %v1861_v44, %v1860_v29  ;;  %v1958_v9 = vmul.f32 %v3545_v52, %v3545_v52  ;;  %v2068_v26 = vsel %vm18_vm2, %v1956_v28, 0.0 }
 0x1be   :  { %v1380_v46 = vadd.f32 %v3488_v54, %v1090_v22  ;;  %v3702_v37 = vadd.f32 %v2489_v42, %v3158_v48  ;;  %v2384_v62 = vpack.c.bf16 %v3698_v13, %v3698_v13  ;;  %1750 = vst.msk [vmem:[%s3837_s2 + $0xb8] sm:$0xf] %vm1703_vm1, %v2370_v33  ;;  %v2062_v48 = vsel %vm18_vm2, %v1953_v10, 0.0 }
 0x1bf   :  { %v1092_v0 = vpop.f32.mrf.mxu0  ;;  %1766 = vst.msk [vmem:[%s3837_s2 + $0xf8] sm:$0xf] %vm1703_vm1, %v2386_v7  ;;  %v1435_v63 = vpop.f32.mrf.mxu1  ;;  %v2063_v45 = vadd.f32 %v2062_v48, %v2061_v8  ;;  %v2070_v60 = vsel %vm18_vm2, %v1957_v31, 0.0  ;;  %v1871_v55 = vsel %vm18_vm2, %v3545_v52, 0.0  ;;  %v1959_v2 = vmul.f32 %v3599_v51, %v3599_v51 }
 0x1c0   :  { %v2371_v54 = vpack.c.bf16 %v1380_v46, %v1380_v46  ;;  %1764 = vst.msk [vmem:[%s3837_s2 + $0xf0] sm:$0xf] %vm1703_vm1, %v2384_v62  ;;  %v1863_v25 = vsel %vm18_vm2, %v1380_v46, 0.0  ;;  %v1954_v30 = vmul.f32 %v1380_v46, %v1380_v46  ;;  %v2387_v19 = vpack.c.bf16 %v3702_v37, %v3702_v37 }
 0x1c1   :  { %v1864_v6 = vadd.f32 %v1863_v25, %v1862_v36  ;;  %v3737_v56 = vadd.f32 %v1435_v63, %v3150_v40  ;;  %v2072_v21 = vsel %vm18_vm2, %v1958_v9, 0.0  ;;  %v1873_v4 = vsel %vm18_vm2, %v3599_v51, 0.0 }
 0x1c2   :  { %1751 = vst.msk [vmem:[%s3837_s2 + $0xbc] sm:$0xf] %vm1703_vm1, %v2371_v54  ;;  %v2064_v53 = vsel %vm18_vm2, %v1954_v30, 0.0  ;;  %1767 = vst.msk [vmem:[%s3837_s2 + $0xfc] sm:$0xf] %vm1703_vm1, %v2387_v19  ;;  %v1960_v38 = vmul.f32 %v3627_v18, %v3627_v18  ;;  %v1961_v24 = vmul.f32 %v3578_v43, %v3578_v43  ;;  %v2074_v52 = vsel %vm18_vm2, %v1959_v2, 0.0 }
 0x1c3   :  { %v1866_v20 = vadd.f32 %v1865_v1, %v1864_v6  ;;  %v2065_v59 = vadd.f32 %v2064_v53, %v2063_v45  ;;  %v2385_v17 = vpack.c.bf16 %v3737_v56, %v3737_v56  ;;  %v1875_v32 = vsel %vm18_vm2, %v3627_v18, 0.0 }
 0x1c4   :  { %v1877_v22 = vsel %vm18_vm2, %v3578_v43, 0.0  ;;  %v1962_v51 = vmul.f32 %v3607_v61, %v3607_v61  ;;  %v2076_v42 = vsel %vm18_vm2, %v1960_v38, 0.0  ;;  %v2078_v33 = vsel %vm18_vm2, %v1961_v24, 0.0 }
 0x1c5   :  { %v1868_v40 = vadd.f32 %v1867_v3, %v1866_v20  ;;  %v2067_v39 = vadd.f32 %v2066_v23, %v2065_v59  ;;  %1765 = vst.msk [vmem:[%s3837_s2 + $0xf4] sm:$0xf] %vm1703_vm1, %v2385_v17  ;;  %v1879_v44 = vsel %vm18_vm2, %v3607_v61, 0.0  ;;  %v1963_v18 = vmul.f32 %v3639_v41, %v3639_v41 }
 0x1c6   :  { %v2080_v0 = vsel %vm18_vm2, %v1962_v51, 0.0  ;;  %v1881_v43 = vsel %vm18_vm2, %v3639_v41, 0.0  ;;  %v1964_v62 = vmul.f32 %v3672_v58, %v3672_v58  ;;  %v1965_v48 = vmul.f32 %v3636_v35, %v3636_v35 }
 0x1c7   :  { %v1870_v15 = vadd.f32 %v1869_v14, %v1868_v40  ;;  %v2069_v50 = vadd.f32 %v2068_v26, %v2067_v39  ;;  %v2082_v61 = vsel %vm18_vm2, %v1963_v18, 0.0  ;;  %v1883_v54 = vsel %vm18_vm2, %v3672_v58, 0.0 }
 0x1c8   :  { %v1885_v25 = vsel %vm18_vm2, %v3636_v35, 0.0  ;;  %v1966_v41 = vmul.f32 %v3669_v12, %v3669_v12  ;;  %v2084_v30 = vsel %vm18_vm2, %v1964_v62, 0.0  ;;  %v2086_v19 = vsel %vm18_vm2, %v1965_v48, 0.0 }
 0x1c9   :  { %v1872_v5 = vadd.f32 %v1871_v55, %v1870_v15  ;;  %v2071_v49 = vadd.f32 %v2070_v60, %v2069_v50  ;;  %v1887_v1 = vsel %vm18_vm2, %v3669_v12, 0.0  ;;  %v1967_v58 = vmul.f32 %v3698_v13, %v3698_v13 }
 0x1ca   :  { %v2088_v20 = vsel %vm18_vm2, %v1966_v41, 0.0  ;;  %v1889_v35 = vsel %vm18_vm2, %v3698_v13, 0.0  ;;  %v1968_v59 = vmul.f32 %v3737_v56, %v3737_v56  ;;  %v1969_v3 = vmul.f32 %v3690_v34, %v3690_v34 }
 0x1cb   :  { %v1874_v57 = vadd.f32 %v1873_v4, %v1872_v5  ;;  %v2073_v47 = vadd.f32 %v2072_v21, %v2071_v49  ;;  %v2090_v12 = vsel %vm18_vm2, %v1967_v58, 0.0  ;;  %v1891_v17 = vsel %vm18_vm2, %v3737_v56, 0.0 }
 0x1cc   :  { %v1893_v14 = vsel %vm18_vm2, %v3690_v34, 0.0  ;;  %v1970_v13 = vmul.f32 %v3702_v37, %v3702_v37  ;;  %v2092_v9 = vsel %vm18_vm2, %v1968_v59, 0.0  ;;  %v2094_v50 = vsel %vm18_vm2, %v1969_v3, 0.0 }
 0x1cd   :  { %v1876_v29 = vadd.f32 %v1875_v32, %v1874_v57  ;;  %v2075_v27 = vadd.f32 %v2074_v52, %v2073_v47  ;;  %v1895_v60 = vsel %vm18_vm2, %v3702_v37, 0.0  ;;  %v1768_v32 = vld [vmem:[%s3838_s3] sm:$0x1] }
 0x1ce   :  { %v2096_v56 = vsel %vm18_vm2, %v1970_v13, 0.0 }
 0x1cf   :  { %v2077_v16 = vadd.f32 %v2076_v42, %v2075_v27  ;;  %v1878_v46 = vadd.f32 %v1877_v22, %v1876_v29  ;;  %v1906_v27 = vld [vmem:[%s3838_s3 + $0x1] sm:$0x1] }
 0x1d1   :  { %v1880_v10 = vadd.f32 %v1879_v44, %v1878_v46  ;;  %v2079_v7 = vadd.f32 %v2078_v33, %v2077_v16 }
 0x1d3   :  { %v1882_v8 = vadd.f32 %v1881_v43, %v1880_v10  ;;  %v2081_v36 = vadd.f32 %v2080_v0, %v2079_v7 }
 0x1d5   :  { %v1884_v63 = vadd.f32 %v1883_v54, %v1882_v8  ;;  %v2083_v11 = vadd.f32 %v2082_v61, %v2081_v36 }
 0x1d7   :  { %v1886_v45 = vadd.f32 %v1885_v25, %v1884_v63  ;;  %v2085_v6 = vadd.f32 %v2084_v30, %v2083_v11 }
 0x1d9   :  { %v1888_v28 = vadd.f32 %v1887_v1, %v1886_v45  ;;  %v2087_v53 = vadd.f32 %v2086_v19, %v2085_v6 }
 0x1db   :  { %v1890_v31 = vadd.f32 %v1889_v35, %v1888_v28  ;;  %v2089_v23 = vadd.f32 %v2088_v20, %v2087_v53 }
 0x1dd   :  { %v1892_v40 = vadd.f32 %v1891_v17, %v1890_v31  ;;  %v2091_v39 = vadd.f32 %v2090_v12, %v2089_v23 }
 0x1df   :  { %v1894_v26 = vadd.f32 %v1893_v14, %v1892_v40  ;;  %v2093_v15 = vadd.f32 %v2092_v9, %v2091_v39 }
 0x1e1   :  { %v1896_v55 = vadd.f32 %v1895_v60, %v1894_v26  ;;  %v2095_v2 = vadd.f32 %v2094_v50, %v2093_v15 }
 0x1e3   :  { %v1897_v5 = vrot.slane %v1896_v55, 4  ;;  %v2097_v49 = vadd.f32 %v2096_v56, %v2095_v2 }
 0x1e5   :  { %v1898_v21 = vadd.f32 %v1897_v5, %v1896_v55  ;;  %v2098_v34 = vrot.slane %v2097_v49, 4 }
 0x1e7   :  { %v1899_v4 = vrot.slane %v1898_v21, 2  ;;  %v2099_v38 = vadd.f32 %v2098_v34, %v2097_v49 }
 0x1e9   :  { %v1900_v57 = vadd.f32 %v1899_v4, %v1898_v21  ;;  %v2100_v47 = vrot.slane %v2099_v38, 2 }
 0x1eb   :  { %v1901_v24 = vrot.slane %v1900_v57, 1  ;;  %v2101_v52 = vadd.f32 %v2100_v47, %v2099_v38 }
 0x1ed   :  { %v1902_v29 = vadd.f32 %v1901_v24, %v1900_v57  ;;  %v2102_v37 = vrot.slane %v2101_v52, 1 }
 0x1ef   :  { %v1903_v22 = vadd.f32 %v1902_v29, %v1768_v32  ;;  %v2103_v51 = vadd.f32 %v2102_v37, %v2101_v52 }
 0x1f1   :  { %1905 = vst.msk [vmem:[%s3838_s3] sm:$0x1] %vm1904_vm3, %v1903_v22  ;;  %v2104_v42 = vadd.f32 %v2103_v51, %v1906_v27 }
 0x1f3   :  { %2105 = vst.msk [vmem:[%s3838_s3 + $0x1] sm:$0x1] %vm1904_vm3, %v2104_v42 }

// kernel: squeeze.189
= control target key start
LH: loop header
LB: loop body
LE: loop exit
PB: predicated region body
PF: predicated region fallthrough
CT: control target
= control target key end

     0   :  { %s40_s8 = smov 80   ;;  %vm8_vm0 = vcmask 130048   ;;  %s41_s9 = smov 96   ;;  %s58_s0 = inlined_call_operand.vmem [shape: f32[64], index: 0, kind: input, shape index: {}]   ;;  %s59_s1 = inlined_call_operand.vmem [shape: f32[4,16], index: 1, kind: output, shape index: {}]  }
   0x1   :  { %v5_v0 = vld [vmem:[%s58_s0] sm:$0x1]  ;;  %s39_s0 = smov 112  }
   0x2   :  { %6 = vst [vmem:[#allocation1] sm:$0x1] %v5_v0 }
   0x9   :  { %v10_v1 = vld [vmem:[#allocation1] sm:$0x1]  }
   0xa   :  { %v22_v2 = vld [vmem:[#allocation1] sm:$0x1]   ;;  %11 = vrot.lane.b32.xlu0 %v10_v1, %s39_s0 }
   0xb   :  { %23 = vrot.lane.b32.xlu1 %v22_v2, %s40_s8  ;;  %v7_v3 = vld [vmem:[#allocation1] sm:$0x1]  }
   0xc   :  { %v16_v4 = vld [vmem:[#allocation1] sm:$0x1]   ;;  %9 = vst.msk [vmem:[#allocation0] sm:$0x1] %vm8_vm0, %v7_v3  }
   0xe   :  { %17 = vrot.lane.b32.xlu0 %v16_v4, %s41_s9 }
  0x7c   :  { %v12_v5 = vpop.permute.xlu0 %11  }
  0x7d   :  { %v24_v6 = vpop.permute.xlu1 %23   ;;  %15 = vst.msk [vmem:[#allocation0 + $0x1] sm:$0x1] %vm8_vm0, %v12_v5  }
  0x7e   :  { %27 = vst.msk [vmem:[#allocation0 + $0x3] sm:$0x1] %vm8_vm0, %v24_v6  }
  0x80   :  { %v18_v7 = vpop.permute.xlu0 %17  }
  0x81   :  { %21 = vst.msk [vmem:[#allocation0 + $0x2] sm:$0x1] %vm8_vm0, %v18_v7  }
  0x88   :  { %v32_v8 = vld [vmem:[#allocation0] sm:$0xf] }
  0x89   :  { %35 = vst [vmem:[%s59_s1] sm:$0xf] %v32_v8 }

// kernel: tile.62
= control target key start
LH: loop header
LB: loop body
LE: loop exit
PB: predicated region body
PF: predicated region fallthrough
CT: control target
= control target key end

     0   :  { %s22_s0 = inlined_call_operand.vmem [shape: f32[16], index: 0, kind: input, shape index: {}]   ;;  %s23_s1 = inlined_call_operand.vmem [shape: f32[4,16], index: 1, kind: output, shape index: {}]  }
   0x1   :  { %v4_v0 = vld [vmem:[%s22_s0] ss:$0 sm:$0xff] }
   0x2   :  { %5 = vst [vmem:[%s23_s1] sm:$0xf] %v4_v0 }

// kernel: tile.64
= control target key start
LH: loop header
LB: loop body
LE: loop exit
PB: predicated region body
PF: predicated region fallthrough
CT: control target
= control target key end

     0   :  { %vm8_vm0 = vcmask 130048   ;;  %s40_s8 = smov 16   ;;  %s41_s9 = smov 32   ;;  %vm14_vm1 = vcmask 523648   ;;  %vm20_vm2 = vcmask 392448   ;;  %vm26_vm3 = vcmask 261248   ;;  %s58_s0 = inlined_call_operand.vmem [shape: f32[4,16], index: 0, kind: input, shape index: {}]   ;;  %s59_s1 = inlined_call_operand.vmem [shape: f32[1,64], index: 1, kind: output, shape index: {}]  }
   0x1   :  { %v5_v0 = vld [vmem:[%s58_s0] sm:$0xf]  ;;  %s39_s0 = smov 48  }
   0x2   :  { %6 = vst [vmem:[#allocation1] sm:$0xf] %v5_v0 }
   0x9   :  { %v11_v1 = vld [vmem:[#allocation1 + $0x3] sm:$0x1]   ;;  %v23_v2 = vld [vmem:[#allocation1 + $0x1] sm:$0x1]   ;;  %v7_v3 = vld [vmem:[#allocation1] sm:$0x1]  }
   0xa   :  { %12 = vrot.lane.b32.xlu0 %v11_v1, %s39_s0  ;;  %24 = vrot.lane.b32.xlu1 %v23_v2, %s40_s8  ;;  %v17_v4 = vld [vmem:[#allocation1 + $0x2] sm:$0x1]   ;;  %9 = vst.msk [vmem:[#allocation0] sm:$0x1] %vm8_vm0, %v7_v3  }
   0xe   :  { %18 = vrot.lane.b32.xlu0 %v17_v4, %s41_s9 }
  0x7c   :  { %v13_v5 = vpop.permute.xlu0 %12   ;;  %v25_v6 = vpop.permute.xlu1 %24  }
  0x7d   :  { %15 = vst.msk [vmem:[#allocation0] sm:$0x1] %vm14_vm1, %v13_v5  }
  0x80   :  { %v19_v7 = vpop.permute.xlu0 %18  }
  0x81   :  { %21 = vst.msk [vmem:[#allocation0] sm:$0x1] %vm20_vm2, %v19_v7  }
  0x82   :  { %27 = vst.msk [vmem:[#allocation0] sm:$0x1] %vm26_vm3, %v25_v6  }
  0x89   :  { %v32_v8 = vld [vmem:[#allocation0] sm:$0x1] }
  0x8a   :  { %35 = vst [vmem:[%s59_s1] sm:$0x1] %v32_v8 }

// kernel: generator_forward.16
= control target key start
LH: loop header
LB: loop body
LE: loop exit
PB: predicated region body
PF: predicated region fallthrough
CT: control target
= control target key end

     0   :  { %vm604_vm0 = vcmask 519168   ;;  %s1472_s0 = inlined_call_operand.vmem [shape: bf16[512,64], index: 0, kind: input, shape index: {}]   ;;  %s1473_s1 = inlined_call_operand.vmem [shape: f32[1,64], index: 1, kind: input, shape index: {}]   ;;  %s1474_s2 = inlined_call_operand.vmem [shape: f32[1,64], index: 2, kind: input, shape index: {}]   ;;  %s1475_s3 = inlined_call_operand.vmem [shape: bf16[512,64], index: 3, kind: output, shape index: {}]  }
   0x1   :  { %v804_v0 = vld [vmem:[%s1472_s0] sm:$0xff]   ;;  %v931_v4 = vld [vmem:[%s1472_s0 + $0x8] sm:$0xff]   ;;  %v932_v5 = vld [vmem:[%s1472_s0 + $0x10] sm:$0xff]  }
   0x2   :  { %v988_v1 = vld [vmem:[%s1473_s1] ss:$0 sm:$0xff]  ;;  %v805_v2 = vunpack.c.l.bf16 %v804_v0  ;;  %v806_v3 = vunpack.c.h.bf16 %v804_v0  ;;  %v933_v6 = vld [vmem:[%s1472_s0 + $0x18] sm:$0xff]   ;;  %v809_v8 = vunpack.c.l.bf16 %v931_v4  ;;  %v810_v9 = vunpack.c.h.bf16 %v931_v4  ;;  %v935_v41 = vld [vmem:[%s1472_s0 + $0x28] sm:$0xff]  }
   0x3   :  { %v1002_v7 = vld [vmem:[%s1474_s2] ss:$0 sm:$0xff]  ;;  %v813_v10 = vunpack.c.l.bf16 %v932_v5  ;;  %v814_v11 = vunpack.c.h.bf16 %v932_v5  ;;  %v817_v14 = vunpack.c.l.bf16 %v933_v6  ;;  %v818_v15 = vunpack.c.h.bf16 %v933_v6  ;;  %v936_v42 = vld [vmem:[%s1472_s0 + $0x30] sm:$0xff]   ;;  %v937_v47 = vld [vmem:[%s1472_s0 + $0x38] sm:$0xff]  }
   0x4   :  { %v149_v12 = vmul.f32 %v805_v2, %v988_v1  ;;  %v150_v13 = vmul.f32 %v806_v3, %v988_v1  ;;  %v151_v16 = vmul.f32 %v809_v8, %v988_v1  ;;  %v152_v17 = vmul.f32 %v810_v9, %v988_v1  ;;  %v934_v36 = vld [vmem:[%s1472_s0 + $0x20] sm:$0xff]  }
   0x5   :  { %v153_v18 = vmul.f32 %v813_v10, %v988_v1  ;;  %v154_v19 = vmul.f32 %v814_v11, %v988_v1  ;;  %v155_v22 = vmul.f32 %v817_v14, %v988_v1  ;;  %v156_v23 = vmul.f32 %v818_v15, %v988_v1 }
   0x6   :  { %v220_v20 = vadd.f32 %v1002_v7, %v149_v12  ;;  %v221_v21 = vadd.f32 %v1002_v7, %v150_v13  ;;  %v222_v24 = vadd.f32 %v1002_v7, %v151_v16  ;;  %v223_v25 = vadd.f32 %v1002_v7, %v152_v17 }
   0x7   :  { %v224_v26 = vadd.f32 %v1002_v7, %v153_v18  ;;  %v225_v27 = vadd.f32 %v1002_v7, %v154_v19  ;;  %v226_v30 = vadd.f32 %v1002_v7, %v155_v22  ;;  %v227_v31 = vadd.f32 %v1002_v7, %v156_v23  ;;  %v938_v18 = vld [vmem:[%s1472_s0 + $0x40] sm:$0xff]   ;;  %v939_v23 = vld [vmem:[%s1472_s0 + $0x48] sm:$0xff]  }
   0x8   :  { %v284_v28 = vmax.f32 %v220_v20, 0.0  ;;  %v285_v29 = vmax.f32 %v221_v21, 0.0  ;;  %v286_v32 = vmax.f32 %v222_v24, 0.0  ;;  %v287_v33 = vmax.f32 %v223_v25, 0.0  ;;  %v940_v24 = vld [vmem:[%s1472_s0 + $0x50] sm:$0xff]  }
   0x9   :  { %v288_v34 = vmax.f32 %v224_v26, 0.0  ;;  %v289_v35 = vmax.f32 %v225_v27, 0.0  ;;  %v290_v39 = vmax.f32 %v226_v30, 0.0  ;;  %v291_v40 = vmax.f32 %v227_v31, 0.0 }
   0xa   :  { %v739_v37 = vpack.c.bf16 %v284_v28, %v284_v28  ;;  %v740_v38 = vpack.c.bf16 %v285_v29, %v285_v29  ;;  %v741_v43 = vpack.c.bf16 %v286_v32, %v286_v32  ;;  %v742_v44 = vpack.c.bf16 %v287_v33, %v287_v33  ;;  %v941_v29 = vld [vmem:[%s1472_s0 + $0x58] sm:$0xff]  }
   0xb   :  { %v743_v45 = vpack.c.bf16 %v288_v34, %v288_v34  ;;  %v744_v46 = vpack.c.bf16 %v289_v35, %v289_v35  ;;  %v745_v48 = vpack.c.bf16 %v290_v39, %v290_v39  ;;  %v746_v49 = vpack.c.bf16 %v291_v40, %v291_v40 }
   0xc   :  { %605 = vst.msk [vmem:[%s1475_s3] sm:$0xf] %vm604_vm0, %v739_v37  ;;  %606 = vst.msk [vmem:[%s1475_s3 + $0x4] sm:$0xf] %vm604_vm0, %v740_v38  ;;  %v821_v50 = vunpack.c.l.bf16 %v934_v36  ;;  %v822_v51 = vunpack.c.h.bf16 %v934_v36  ;;  %v825_v52 = vunpack.c.l.bf16 %v935_v41  ;;  %v826_v53 = vunpack.c.h.bf16 %v935_v41 }
   0xd   :  { %607 = vst.msk [vmem:[%s1475_s3 + $0x8] sm:$0xf] %vm604_vm0, %v741_v43  ;;  %608 = vst.msk [vmem:[%s1475_s3 + $0xc] sm:$0xf] %vm604_vm0, %v742_v44  ;;  %v829_v54 = vunpack.c.l.bf16 %v936_v42  ;;  %v830_v55 = vunpack.c.h.bf16 %v936_v42  ;;  %v833_v58 = vunpack.c.l.bf16 %v937_v47  ;;  %v834_v59 = vunpack.c.h.bf16 %v937_v47 }
   0xe   :  { %609 = vst.msk [vmem:[%s1475_s3 + $0x10] sm:$0xf] %vm604_vm0, %v743_v45  ;;  %610 = vst.msk [vmem:[%s1475_s3 + $0x14] sm:$0xf] %vm604_vm0, %v744_v46  ;;  %v157_v56 = vmul.f32 %v821_v50, %v988_v1  ;;  %v158_v57 = vmul.f32 %v822_v51, %v988_v1  ;;  %v159_v60 = vmul.f32 %v825_v52, %v988_v1  ;;  %v837_v32 = vunpack.c.l.bf16 %v938_v18 }
   0xf   :  { %611 = vst.msk [vmem:[%s1475_s3 + $0x18] sm:$0xf] %vm604_vm0, %v745_v48  ;;  %612 = vst.msk [vmem:[%s1475_s3 + $0x1c] sm:$0xf] %vm604_vm0, %v746_v49  ;;  %v160_v61 = vmul.f32 %v826_v53, %v988_v1  ;;  %v161_v62 = vmul.f32 %v829_v54, %v988_v1  ;;  %v162_v63 = vmul.f32 %v830_v55, %v988_v1  ;;  %v838_v33 = vunpack.c.h.bf16 %v938_v18 }
  0x10   :  { %v228_v0 = vadd.f32 %v1002_v7, %v157_v56  ;;  %v229_v2 = vadd.f32 %v1002_v7, %v158_v57  ;;  %v163_v3 = vmul.f32 %v833_v58, %v988_v1  ;;  %v164_v4 = vmul.f32 %v834_v59, %v988_v1 }
  0x11   :  { %v230_v5 = vadd.f32 %v1002_v7, %v159_v60  ;;  %v231_v6 = vadd.f32 %v1002_v7, %v160_v61  ;;  %v232_v8 = vadd.f32 %v1002_v7, %v161_v62  ;;  %v233_v9 = vadd.f32 %v1002_v7, %v162_v63  ;;  %v942_v62 = vld [vmem:[%s1472_s0 + $0x60] sm:$0xff]  }
  0x12   :  { %v292_v10 = vmax.f32 %v228_v0, 0.0  ;;  %v293_v11 = vmax.f32 %v229_v2, 0.0  ;;  %v234_v12 = vadd.f32 %v1002_v7, %v163_v3  ;;  %v235_v13 = vadd.f32 %v1002_v7, %v164_v4  ;;  %v943_v4 = vld [vmem:[%s1472_s0 + $0x68] sm:$0xff]  }
  0x13   :  { %v294_v14 = vmax.f32 %v230_v5, 0.0  ;;  %v295_v15 = vmax.f32 %v231_v6, 0.0  ;;  %v296_v16 = vmax.f32 %v232_v8, 0.0  ;;  %v297_v17 = vmax.f32 %v233_v9, 0.0  ;;  %v944_v5 = vld [vmem:[%s1472_s0 + $0x70] sm:$0xff]  }
  0x14   :  { %v747_v19 = vpack.c.bf16 %v292_v10, %v292_v10  ;;  %v748_v20 = vpack.c.bf16 %v293_v11, %v293_v11  ;;  %v298_v21 = vmax.f32 %v234_v12, 0.0  ;;  %v299_v22 = vmax.f32 %v235_v13, 0.0  ;;  %v945_v11 = vld [vmem:[%s1472_s0 + $0x78] sm:$0xff]  }
  0x15   :  { %v749_v25 = vpack.c.bf16 %v294_v14, %v294_v14  ;;  %v750_v26 = vpack.c.bf16 %v295_v15, %v295_v15  ;;  %v751_v27 = vpack.c.bf16 %v296_v16, %v296_v16  ;;  %v752_v28 = vpack.c.bf16 %v297_v17, %v297_v17 }
  0x16   :  { %613 = vst.msk [vmem:[%s1475_s3 + $0x20] sm:$0xf] %vm604_vm0, %v747_v19  ;;  %614 = vst.msk [vmem:[%s1475_s3 + $0x24] sm:$0xf] %vm604_vm0, %v748_v20  ;;  %v753_v30 = vpack.c.bf16 %v298_v21, %v298_v21  ;;  %v754_v31 = vpack.c.bf16 %v299_v22, %v299_v22  ;;  %v841_v34 = vunpack.c.l.bf16 %v939_v23  ;;  %v842_v35 = vunpack.c.h.bf16 %v939_v23 }
  0x17   :  { %615 = vst.msk [vmem:[%s1475_s3 + $0x28] sm:$0xf] %vm604_vm0, %v749_v25  ;;  %616 = vst.msk [vmem:[%s1475_s3 + $0x2c] sm:$0xf] %vm604_vm0, %v750_v26  ;;  %v845_v36 = vunpack.c.l.bf16 %v940_v24  ;;  %v846_v37 = vunpack.c.h.bf16 %v940_v24  ;;  %v165_v38 = vmul.f32 %v837_v32, %v988_v1  ;;  %v166_v39 = vmul.f32 %v838_v33, %v988_v1 }
  0x18   :  { %617 = vst.msk [vmem:[%s1475_s3 + $0x30] sm:$0xf] %vm604_vm0, %v751_v27  ;;  %618 = vst.msk [vmem:[%s1475_s3 + $0x34] sm:$0xf] %vm604_vm0, %v752_v28  ;;  %v849_v40 = vunpack.c.l.bf16 %v941_v29  ;;  %v850_v41 = vunpack.c.h.bf16 %v941_v29  ;;  %v167_v42 = vmul.f32 %v841_v34, %v988_v1  ;;  %v168_v43 = vmul.f32 %v842_v35, %v988_v1 }
  0x19   :  { %619 = vst.msk [vmem:[%s1475_s3 + $0x38] sm:$0xf] %vm604_vm0, %v753_v30  ;;  %620 = vst.msk [vmem:[%s1475_s3 + $0x3c] sm:$0xf] %vm604_vm0, %v754_v31  ;;  %v169_v44 = vmul.f32 %v845_v36, %v988_v1  ;;  %v170_v45 = vmul.f32 %v846_v37, %v988_v1  ;;  %v236_v46 = vadd.f32 %v1002_v7, %v165_v38  ;;  %v853_v14 = vunpack.c.l.bf16 %v942_v62 }
  0x1a   :  { %v237_v47 = vadd.f32 %v1002_v7, %v166_v39  ;;  %v171_v48 = vmul.f32 %v849_v40, %v988_v1  ;;  %v172_v49 = vmul.f32 %v850_v41, %v988_v1  ;;  %v238_v50 = vadd.f32 %v1002_v7, %v167_v42 }
  0x1b   :  { %v239_v51 = vadd.f32 %v1002_v7, %v168_v43  ;;  %v240_v52 = vadd.f32 %v1002_v7, %v169_v44  ;;  %v241_v53 = vadd.f32 %v1002_v7, %v170_v45  ;;  %v300_v54 = vmax.f32 %v236_v46, 0.0  ;;  %v946_v44 = vld [vmem:[%s1472_s0 + $0x80] sm:$0xff]  }
  0x1c   :  { %v301_v55 = vmax.f32 %v237_v47, 0.0  ;;  %v242_v56 = vadd.f32 %v1002_v7, %v171_v48  ;;  %v243_v57 = vadd.f32 %v1002_v7, %v172_v49  ;;  %v302_v58 = vmax.f32 %v238_v50, 0.0  ;;  %v947_v49 = vld [vmem:[%s1472_s0 + $0x88] sm:$0xff]   ;;  %v948_v50 = vld [vmem:[%s1472_s0 + $0x90] sm:$0xff]  }
  0x1d   :  { %v303_v59 = vmax.f32 %v239_v51, 0.0  ;;  %v304_v60 = vmax.f32 %v240_v52, 0.0  ;;  %v305_v61 = vmax.f32 %v241_v53, 0.0  ;;  %v755_v63 = vpack.c.bf16 %v300_v54, %v300_v54 }
  0x1e   :  { %v756_v0 = vpack.c.bf16 %v301_v55, %v301_v55  ;;  %v306_v2 = vmax.f32 %v242_v56, 0.0  ;;  %v307_v3 = vmax.f32 %v243_v57, 0.0  ;;  %v757_v6 = vpack.c.bf16 %v302_v58, %v302_v58  ;;  %v949_v55 = vld [vmem:[%s1472_s0 + $0x98] sm:$0xff]  }
  0x1f   :  { %v758_v8 = vpack.c.bf16 %v303_v59, %v303_v59  ;;  %v759_v9 = vpack.c.bf16 %v304_v60, %v304_v60  ;;  %v760_v10 = vpack.c.bf16 %v305_v61, %v305_v61  ;;  %621 = vst.msk [vmem:[%s1475_s3 + $0x40] sm:$0xf] %vm604_vm0, %v755_v63  ;;  %v854_v15 = vunpack.c.h.bf16 %v942_v62 }
  0x20   :  { %622 = vst.msk [vmem:[%s1475_s3 + $0x44] sm:$0xf] %vm604_vm0, %v756_v0  ;;  %v761_v12 = vpack.c.bf16 %v306_v2, %v306_v2  ;;  %v762_v13 = vpack.c.bf16 %v307_v3, %v307_v3  ;;  %623 = vst.msk [vmem:[%s1475_s3 + $0x48] sm:$0xf] %vm604_vm0, %v757_v6  ;;  %v857_v16 = vunpack.c.l.bf16 %v943_v4  ;;  %v858_v17 = vunpack.c.h.bf16 %v943_v4 }
  0x21   :  { %624 = vst.msk [vmem:[%s1475_s3 + $0x4c] sm:$0xf] %vm604_vm0, %v758_v8  ;;  %625 = vst.msk [vmem:[%s1475_s3 + $0x50] sm:$0xf] %vm604_vm0, %v759_v9  ;;  %v861_v18 = vunpack.c.l.bf16 %v944_v5  ;;  %v862_v19 = vunpack.c.h.bf16 %v944_v5  ;;  %v173_v20 = vmul.f32 %v853_v14, %v988_v1  ;;  %v174_v21 = vmul.f32 %v854_v15, %v988_v1 }
  0x22   :  { %626 = vst.msk [vmem:[%s1475_s3 + $0x54] sm:$0xf] %vm604_vm0, %v760_v10  ;;  %627 = vst.msk [vmem:[%s1475_s3 + $0x58] sm:$0xf] %vm604_vm0, %v761_v12  ;;  %v865_v22 = vunpack.c.l.bf16 %v945_v11  ;;  %v866_v23 = vunpack.c.h.bf16 %v945_v11  ;;  %v175_v24 = vmul.f32 %v857_v16, %v988_v1  ;;  %v176_v25 = vmul.f32 %v858_v17, %v988_v1 }
  0x23   :  { %628 = vst.msk [vmem:[%s1475_s3 + $0x5c] sm:$0xf] %vm604_vm0, %v762_v13  ;;  %v177_v26 = vmul.f32 %v861_v18, %v988_v1  ;;  %v178_v27 = vmul.f32 %v862_v19, %v988_v1  ;;  %v244_v28 = vadd.f32 %v1002_v7, %v173_v20  ;;  %v245_v29 = vadd.f32 %v1002_v7, %v174_v21 }
  0x24   :  { %v179_v30 = vmul.f32 %v865_v22, %v988_v1  ;;  %v180_v31 = vmul.f32 %v866_v23, %v988_v1  ;;  %v246_v32 = vadd.f32 %v1002_v7, %v175_v24  ;;  %v247_v33 = vadd.f32 %v1002_v7, %v176_v25 }
  0x25   :  { %v248_v34 = vadd.f32 %v1002_v7, %v177_v26  ;;  %v249_v35 = vadd.f32 %v1002_v7, %v178_v27  ;;  %v308_v36 = vmax.f32 %v244_v28, 0.0  ;;  %v309_v37 = vmax.f32 %v245_v29, 0.0  ;;  %v950_v26 = vld [vmem:[%s1472_s0 + $0xa0] sm:$0xff]  }
  0x26   :  { %v250_v38 = vadd.f32 %v1002_v7, %v179_v30  ;;  %v251_v39 = vadd.f32 %v1002_v7, %v180_v31  ;;  %v310_v40 = vmax.f32 %v246_v32, 0.0  ;;  %v311_v41 = vmax.f32 %v247_v33, 0.0  ;;  %v951_v31 = vld [vmem:[%s1472_s0 + $0xa8] sm:$0xff]   ;;  %v952_v32 = vld [vmem:[%s1472_s0 + $0xb0] sm:$0xff]  }
  0x27   :  { %v312_v42 = vmax.f32 %v248_v34, 0.0  ;;  %v313_v43 = vmax.f32 %v249_v35, 0.0  ;;  %v763_v45 = vpack.c.bf16 %v308_v36, %v308_v36  ;;  %v764_v46 = vpack.c.bf16 %v309_v37, %v309_v37  ;;  %v953_v37 = vld [vmem:[%s1472_s0 + $0xb8] sm:$0xff]  }
  0x28   :  { %v314_v47 = vmax.f32 %v250_v38, 0.0  ;;  %v315_v48 = vmax.f32 %v251_v39, 0.0  ;;  %v765_v51 = vpack.c.bf16 %v310_v40, %v310_v40  ;;  %v766_v52 = vpack.c.bf16 %v311_v41, %v311_v41 }
  0x29   :  { %v767_v53 = vpack.c.bf16 %v312_v42, %v312_v42  ;;  %v768_v54 = vpack.c.bf16 %v313_v43, %v313_v43  ;;  %629 = vst.msk [vmem:[%s1475_s3 + $0x60] sm:$0xf] %vm604_vm0, %v763_v45  ;;  %630 = vst.msk [vmem:[%s1475_s3 + $0x64] sm:$0xf] %vm604_vm0, %v764_v46  ;;  %v869_v58 = vunpack.c.l.bf16 %v946_v44  ;;  %v870_v59 = vunpack.c.h.bf16 %v946_v44 }
  0x2a   :  { %v769_v56 = vpack.c.bf16 %v314_v47, %v314_v47  ;;  %v770_v57 = vpack.c.bf16 %v315_v48, %v315_v48  ;;  %631 = vst.msk [vmem:[%s1475_s3 + $0x68] sm:$0xf] %vm604_vm0, %v765_v51  ;;  %632 = vst.msk [vmem:[%s1475_s3 + $0x6c] sm:$0xf] %vm604_vm0, %v766_v52  ;;  %v873_v60 = vunpack.c.l.bf16 %v947_v49  ;;  %v874_v61 = vunpack.c.h.bf16 %v947_v49 }
  0x2b   :  { %633 = vst.msk [vmem:[%s1475_s3 + $0x70] sm:$0xf] %vm604_vm0, %v767_v53  ;;  %634 = vst.msk [vmem:[%s1475_s3 + $0x74] sm:$0xf] %vm604_vm0, %v768_v54  ;;  %v877_v62 = vunpack.c.l.bf16 %v948_v50  ;;  %v878_v63 = vunpack.c.h.bf16 %v948_v50  ;;  %v181_v0 = vmul.f32 %v869_v58, %v988_v1  ;;  %v182_v2 = vmul.f32 %v870_v59, %v988_v1 }
  0x2c   :  { %635 = vst.msk [vmem:[%s1475_s3 + $0x78] sm:$0xf] %vm604_vm0, %v769_v56  ;;  %636 = vst.msk [vmem:[%s1475_s3 + $0x7c] sm:$0xf] %vm604_vm0, %v770_v57  ;;  %v881_v3 = vunpack.c.l.bf16 %v949_v55  ;;  %v882_v4 = vunpack.c.h.bf16 %v949_v55  ;;  %v183_v5 = vmul.f32 %v873_v60, %v988_v1  ;;  %v184_v6 = vmul.f32 %v874_v61, %v988_v1 }
  0x2d   :  { %v185_v8 = vmul.f32 %v877_v62, %v988_v1  ;;  %v186_v9 = vmul.f32 %v878_v63, %v988_v1  ;;  %v252_v10 = vadd.f32 %v1002_v7, %v181_v0  ;;  %v253_v11 = vadd.f32 %v1002_v7, %v182_v2 }
  0x2e   :  { %v187_v12 = vmul.f32 %v881_v3, %v988_v1  ;;  %v188_v13 = vmul.f32 %v882_v4, %v988_v1  ;;  %v254_v14 = vadd.f32 %v1002_v7, %v183_v5  ;;  %v255_v15 = vadd.f32 %v1002_v7, %v184_v6 }
  0x2f   :  { %v256_v16 = vadd.f32 %v1002_v7, %v185_v8  ;;  %v257_v17 = vadd.f32 %v1002_v7, %v186_v9  ;;  %v316_v18 = vmax.f32 %v252_v10, 0.0  ;;  %v317_v19 = vmax.f32 %v253_v11, 0.0  ;;  %v954_v8 = vld [vmem:[%s1472_s0 + $0xc0] sm:$0xff]  }
  0x30   :  { %v258_v20 = vadd.f32 %v1002_v7, %v187_v12  ;;  %v259_v21 = vadd.f32 %v1002_v7, %v188_v13  ;;  %v318_v22 = vmax.f32 %v254_v14, 0.0  ;;  %v319_v23 = vmax.f32 %v255_v15, 0.0  ;;  %v955_v13 = vld [vmem:[%s1472_s0 + $0xc8] sm:$0xff]   ;;  %v956_v14 = vld [vmem:[%s1472_s0 + $0xd0] sm:$0xff]  }
  0x31   :  { %v320_v24 = vmax.f32 %v256_v16, 0.0  ;;  %v321_v25 = vmax.f32 %v257_v17, 0.0  ;;  %v771_v27 = vpack.c.bf16 %v316_v18, %v316_v18  ;;  %v772_v28 = vpack.c.bf16 %v317_v19, %v317_v19  ;;  %v957_v19 = vld [vmem:[%s1472_s0 + $0xd8] sm:$0xff]  }
  0x32   :  { %v322_v29 = vmax.f32 %v258_v20, 0.0  ;;  %v323_v30 = vmax.f32 %v259_v21, 0.0  ;;  %v773_v33 = vpack.c.bf16 %v318_v22, %v318_v22  ;;  %v774_v34 = vpack.c.bf16 %v319_v23, %v319_v23 }
  0x33   :  { %v775_v35 = vpack.c.bf16 %v320_v24, %v320_v24  ;;  %v776_v36 = vpack.c.bf16 %v321_v25, %v321_v25  ;;  %637 = vst.msk [vmem:[%s1475_s3 + $0x80] sm:$0xf] %vm604_vm0, %v771_v27  ;;  %638 = vst.msk [vmem:[%s1475_s3 + $0x84] sm:$0xf] %vm604_vm0, %v772_v28  ;;  %v885_v40 = vunpack.c.l.bf16 %v950_v26  ;;  %v886_v41 = vunpack.c.h.bf16 %v950_v26 }
  0x34   :  { %v777_v38 = vpack.c.bf16 %v322_v29, %v322_v29  ;;  %v778_v39 = vpack.c.bf16 %v323_v30, %v323_v30  ;;  %639 = vst.msk [vmem:[%s1475_s3 + $0x88] sm:$0xf] %vm604_vm0, %v773_v33  ;;  %640 = vst.msk [vmem:[%s1475_s3 + $0x8c] sm:$0xf] %vm604_vm0, %v774_v34  ;;  %v889_v42 = vunpack.c.l.bf16 %v951_v31  ;;  %v890_v43 = vunpack.c.h.bf16 %v951_v31 }
  0x35   :  { %641 = vst.msk [vmem:[%s1475_s3 + $0x90] sm:$0xf] %vm604_vm0, %v775_v35  ;;  %642 = vst.msk [vmem:[%s1475_s3 + $0x94] sm:$0xf] %vm604_vm0, %v776_v36  ;;  %v893_v44 = vunpack.c.l.bf16 %v952_v32  ;;  %v894_v45 = vunpack.c.h.bf16 %v952_v32  ;;  %v189_v46 = vmul.f32 %v885_v40, %v988_v1  ;;  %v190_v47 = vmul.f32 %v886_v41, %v988_v1 }
  0x36   :  { %643 = vst.msk [vmem:[%s1475_s3 + $0x98] sm:$0xf] %vm604_vm0, %v777_v38  ;;  %644 = vst.msk [vmem:[%s1475_s3 + $0x9c] sm:$0xf] %vm604_vm0, %v778_v39  ;;  %v897_v48 = vunpack.c.l.bf16 %v953_v37  ;;  %v898_v49 = vunpack.c.h.bf16 %v953_v37  ;;  %v191_v50 = vmul.f32 %v889_v42, %v988_v1  ;;  %v192_v51 = vmul.f32 %v890_v43, %v988_v1 }
  0x37   :  { %v193_v52 = vmul.f32 %v893_v44, %v988_v1  ;;  %v194_v53 = vmul.f32 %v894_v45, %v988_v1  ;;  %v260_v54 = vadd.f32 %v1002_v7, %v189_v46  ;;  %v261_v55 = vadd.f32 %v1002_v7, %v190_v47 }
  0x38   :  { %v195_v56 = vmul.f32 %v897_v48, %v988_v1  ;;  %v196_v57 = vmul.f32 %v898_v49, %v988_v1  ;;  %v262_v58 = vadd.f32 %v1002_v7, %v191_v50  ;;  %v263_v59 = vadd.f32 %v1002_v7, %v192_v51 }
  0x39   :  { %v264_v60 = vadd.f32 %v1002_v7, %v193_v52  ;;  %v265_v61 = vadd.f32 %v1002_v7, %v194_v53  ;;  %v324_v62 = vmax.f32 %v260_v54, 0.0  ;;  %v325_v63 = vmax.f32 %v261_v55, 0.0  ;;  %v958_v52 = vld [vmem:[%s1472_s0 + $0xe0] sm:$0xff]  }
  0x3a   :  { %v266_v0 = vadd.f32 %v1002_v7, %v195_v56  ;;  %v267_v2 = vadd.f32 %v1002_v7, %v196_v57  ;;  %v326_v3 = vmax.f32 %v262_v58, 0.0  ;;  %v327_v4 = vmax.f32 %v263_v59, 0.0  ;;  %v959_v57 = vld [vmem:[%s1472_s0 + $0xe8] sm:$0xff]   ;;  %v960_v58 = vld [vmem:[%s1472_s0 + $0xf0] sm:$0xff]  }
  0x3b   :  { %v328_v5 = vmax.f32 %v264_v60, 0.0  ;;  %v329_v6 = vmax.f32 %v265_v61, 0.0  ;;  %v779_v9 = vpack.c.bf16 %v324_v62, %v324_v62  ;;  %v780_v10 = vpack.c.bf16 %v325_v63, %v325_v63  ;;  %v961_v63 = vld [vmem:[%s1472_s0 + $0xf8] sm:$0xff]  }
  0x3c   :  { %v330_v11 = vmax.f32 %v266_v0, 0.0  ;;  %v331_v12 = vmax.f32 %v267_v2, 0.0  ;;  %v781_v15 = vpack.c.bf16 %v326_v3, %v326_v3  ;;  %v782_v16 = vpack.c.bf16 %v327_v4, %v327_v4 }
  0x3d   :  { %v783_v17 = vpack.c.bf16 %v328_v5, %v328_v5  ;;  %v784_v18 = vpack.c.bf16 %v329_v6, %v329_v6  ;;  %645 = vst.msk [vmem:[%s1475_s3 + $0xa0] sm:$0xf] %vm604_vm0, %v779_v9  ;;  %646 = vst.msk [vmem:[%s1475_s3 + $0xa4] sm:$0xf] %vm604_vm0, %v780_v10  ;;  %v901_v22 = vunpack.c.l.bf16 %v954_v8  ;;  %v902_v23 = vunpack.c.h.bf16 %v954_v8 }
  0x3e   :  { %v785_v20 = vpack.c.bf16 %v330_v11, %v330_v11  ;;  %v786_v21 = vpack.c.bf16 %v331_v12, %v331_v12  ;;  %647 = vst.msk [vmem:[%s1475_s3 + $0xa8] sm:$0xf] %vm604_vm0, %v781_v15  ;;  %648 = vst.msk [vmem:[%s1475_s3 + $0xac] sm:$0xf] %vm604_vm0, %v782_v16  ;;  %v905_v24 = vunpack.c.l.bf16 %v955_v13  ;;  %v906_v25 = vunpack.c.h.bf16 %v955_v13 }
  0x3f   :  { %649 = vst.msk [vmem:[%s1475_s3 + $0xb0] sm:$0xf] %vm604_vm0, %v783_v17  ;;  %650 = vst.msk [vmem:[%s1475_s3 + $0xb4] sm:$0xf] %vm604_vm0, %v784_v18  ;;  %v909_v26 = vunpack.c.l.bf16 %v956_v14  ;;  %v910_v27 = vunpack.c.h.bf16 %v956_v14  ;;  %v197_v28 = vmul.f32 %v901_v22, %v988_v1  ;;  %v198_v29 = vmul.f32 %v902_v23, %v988_v1 }
  0x40   :  { %651 = vst.msk [vmem:[%s1475_s3 + $0xb8] sm:$0xf] %vm604_vm0, %v785_v20  ;;  %652 = vst.msk [vmem:[%s1475_s3 + $0xbc] sm:$0xf] %vm604_vm0, %v786_v21  ;;  %v913_v30 = vunpack.c.l.bf16 %v957_v19  ;;  %v914_v31 = vunpack.c.h.bf16 %v957_v19  ;;  %v199_v32 = vmul.f32 %v905_v24, %v988_v1  ;;  %v200_v33 = vmul.f32 %v906_v25, %v988_v1 }
  0x41   :  { %v201_v34 = vmul.f32 %v909_v26, %v988_v1  ;;  %v202_v35 = vmul.f32 %v910_v27, %v988_v1  ;;  %v268_v36 = vadd.f32 %v1002_v7, %v197_v28  ;;  %v269_v37 = vadd.f32 %v1002_v7, %v198_v29 }
  0x42   :  { %v203_v38 = vmul.f32 %v913_v30, %v988_v1  ;;  %v204_v39 = vmul.f32 %v914_v31, %v988_v1  ;;  %v270_v40 = vadd.f32 %v1002_v7, %v199_v32  ;;  %v271_v41 = vadd.f32 %v1002_v7, %v200_v33 }
  0x43   :  { %v272_v42 = vadd.f32 %v1002_v7, %v201_v34  ;;  %v273_v43 = vadd.f32 %v1002_v7, %v202_v35  ;;  %v332_v44 = vmax.f32 %v268_v36, 0.0  ;;  %v333_v45 = vmax.f32 %v269_v37, 0.0 }
  0x44   :  { %v274_v46 = vadd.f32 %v1002_v7, %v203_v38  ;;  %v275_v47 = vadd.f32 %v1002_v7, %v204_v39  ;;  %v334_v48 = vmax.f32 %v270_v40, 0.0  ;;  %v335_v49 = vmax.f32 %v271_v41, 0.0 }
  0x45   :  { %v336_v50 = vmax.f32 %v272_v42, 0.0  ;;  %v337_v51 = vmax.f32 %v273_v43, 0.0  ;;  %v787_v53 = vpack.c.bf16 %v332_v44, %v332_v44  ;;  %v788_v54 = vpack.c.bf16 %v333_v45, %v333_v45 }
  0x46   :  { %v338_v55 = vmax.f32 %v274_v46, 0.0  ;;  %v339_v56 = vmax.f32 %v275_v47, 0.0  ;;  %v789_v59 = vpack.c.bf16 %v334_v48, %v334_v48  ;;  %v790_v60 = vpack.c.bf16 %v335_v49, %v335_v49 }
  0x47   :  { %v791_v61 = vpack.c.bf16 %v336_v50, %v336_v50  ;;  %v792_v62 = vpack.c.bf16 %v337_v51, %v337_v51  ;;  %653 = vst.msk [vmem:[%s1475_s3 + $0xc0] sm:$0xf] %vm604_vm0, %v787_v53  ;;  %654 = vst.msk [vmem:[%s1475_s3 + $0xc4] sm:$0xf] %vm604_vm0, %v788_v54  ;;  %v917_v3 = vunpack.c.l.bf16 %v958_v52  ;;  %v918_v4 = vunpack.c.h.bf16 %v958_v52 }
  0x48   :  { %v793_v0 = vpack.c.bf16 %v338_v55, %v338_v55  ;;  %v794_v2 = vpack.c.bf16 %v339_v56, %v339_v56  ;;  %655 = vst.msk [vmem:[%s1475_s3 + $0xc8] sm:$0xf] %vm604_vm0, %v789_v59  ;;  %656 = vst.msk [vmem:[%s1475_s3 + $0xcc] sm:$0xf] %vm604_vm0, %v790_v60  ;;  %v921_v5 = vunpack.c.l.bf16 %v959_v57  ;;  %v922_v6 = vunpack.c.h.bf16 %v959_v57 }
  0x49   :  { %657 = vst.msk [vmem:[%s1475_s3 + $0xd0] sm:$0xf] %vm604_vm0, %v791_v61  ;;  %658 = vst.msk [vmem:[%s1475_s3 + $0xd4] sm:$0xf] %vm604_vm0, %v792_v62  ;;  %v925_v8 = vunpack.c.l.bf16 %v960_v58  ;;  %v926_v9 = vunpack.c.h.bf16 %v960_v58  ;;  %v205_v10 = vmul.f32 %v917_v3, %v988_v1  ;;  %v206_v11 = vmul.f32 %v918_v4, %v988_v1 }
  0x4a   :  { %659 = vst.msk [vmem:[%s1475_s3 + $0xd8] sm:$0xf] %vm604_vm0, %v793_v0  ;;  %660 = vst.msk [vmem:[%s1475_s3 + $0xdc] sm:$0xf] %vm604_vm0, %v794_v2  ;;  %v929_v12 = vunpack.c.l.bf16 %v961_v63  ;;  %v930_v13 = vunpack.c.h.bf16 %v961_v63  ;;  %v207_v14 = vmul.f32 %v921_v5, %v988_v1  ;;  %v208_v15 = vmul.f32 %v922_v6, %v988_v1 }
  0x4b   :  { %v209_v16 = vmul.f32 %v925_v8, %v988_v1  ;;  %v210_v17 = vmul.f32 %v926_v9, %v988_v1  ;;  %v276_v18 = vadd.f32 %v1002_v7, %v205_v10  ;;  %v277_v19 = vadd.f32 %v1002_v7, %v206_v11 }
  0x4c   :  { %v211_v20 = vmul.f32 %v929_v12, %v988_v1  ;;  %v212_v21 = vmul.f32 %v930_v13, %v988_v1  ;;  %v278_v22 = vadd.f32 %v1002_v7, %v207_v14  ;;  %v279_v23 = vadd.f32 %v1002_v7, %v208_v15 }
  0x4d   :  { %v280_v24 = vadd.f32 %v1002_v7, %v209_v16  ;;  %v281_v25 = vadd.f32 %v1002_v7, %v210_v17  ;;  %v340_v26 = vmax.f32 %v276_v18, 0.0  ;;  %v341_v27 = vmax.f32 %v277_v19, 0.0 }
  0x4e   :  { %v282_v28 = vadd.f32 %v1002_v7, %v211_v20  ;;  %v283_v29 = vadd.f32 %v1002_v7, %v212_v21  ;;  %v342_v30 = vmax.f32 %v278_v22, 0.0  ;;  %v343_v31 = vmax.f32 %v279_v23, 0.0 }
  0x4f   :  { %v344_v32 = vmax.f32 %v280_v24, 0.0  ;;  %v345_v33 = vmax.f32 %v281_v25, 0.0  ;;  %v795_v34 = vpack.c.bf16 %v340_v26, %v340_v26  ;;  %v796_v1 = vpack.c.bf16 %v341_v27, %v341_v27 }
  0x50   :  { %v346_v35 = vmax.f32 %v282_v28, 0.0  ;;  %v347_v36 = vmax.f32 %v283_v29, 0.0  ;;  %v797_v37 = vpack.c.bf16 %v342_v30, %v342_v30  ;;  %v798_v38 = vpack.c.bf16 %v343_v31, %v343_v31 }
  0x51   :  { %v799_v39 = vpack.c.bf16 %v344_v32, %v344_v32  ;;  %v800_v40 = vpack.c.bf16 %v345_v33, %v345_v33  ;;  %661 = vst.msk [vmem:[%s1475_s3 + $0xe0] sm:$0xf] %vm604_vm0, %v795_v34  ;;  %662 = vst.msk [vmem:[%s1475_s3 + $0xe4] sm:$0xf] %vm604_vm0, %v796_v1 }
  0x52   :  { %v801_v7 = vpack.c.bf16 %v346_v35, %v346_v35  ;;  %v802_v41 = vpack.c.bf16 %v347_v36, %v347_v36  ;;  %663 = vst.msk [vmem:[%s1475_s3 + $0xe8] sm:$0xf] %vm604_vm0, %v797_v37  ;;  %664 = vst.msk [vmem:[%s1475_s3 + $0xec] sm:$0xf] %vm604_vm0, %v798_v38 }
  0x53   :  { %665 = vst.msk [vmem:[%s1475_s3 + $0xf0] sm:$0xf] %vm604_vm0, %v799_v39  ;;  %666 = vst.msk [vmem:[%s1475_s3 + $0xf4] sm:$0xf] %vm604_vm0, %v800_v40 }
  0x54   :  { %667 = vst.msk [vmem:[%s1475_s3 + $0xf8] sm:$0xf] %vm604_vm0, %v801_v7  ;;  %668 = vst.msk [vmem:[%s1475_s3 + $0xfc] sm:$0xf] %vm604_vm0, %v802_v41 }

// kernel: generator_forward.17
= control target key start
LH: loop header
LB: loop body
LE: loop exit
PB: predicated region body
PF: predicated region fallthrough
CT: control target
= control target key end

     0   :  { %s1307_s12 = smov 0   ;;  %s1309_s13 = smov 0   ;;  %s1655_s0 = inlined_call_operand.vmem [shape: bf16[16,144], index: 0, kind: input, shape index: {}]   ;;  %s1656_s1 = inlined_call_operand.vmem [shape: bf16[144,2048], index: 1, kind: input, shape index: {}]   ;;  %s1657_s2 = inlined_call_operand.vmem [shape: f32[16,1], index: 2, kind: input, shape index: {}]   ;;  %s1658_s3 = inlined_call_operand.vmem [shape: f32[16,2048], index: 3, kind: output, shape index: {}]  }
   0x1   :  { %s1311_s14 = smov 0  }
   0x2 LB: > { %s1106_s15 = sadd.s32 4294967295, %s1284_s14   ;;  %s1324_s16 = sadd.s32 1, %s1284_s14   ;;  %s1284_s14 = sphi %s1311_s14, %s1662_s14   ;;  %s1280_s13 = sphi %s1309_s13, %s1661_s13   ;;  %s1276_s12 = sphi %s1307_s12, %s1660_s12  }
   0x3   : > { %s38_s17 = ssub.s32 %s1284_s14, %s1324_s16  ;;  %s41_s18 = sadd.s32 1, %s1280_s13 }
   0x4   : > { %p39_p0 = scmp.eq.s32.totalorder %s38_s17, 0  ;;  %p48_p1 = scmp.ne.s32.totalorder %s1280_s13, %s1276_s12 }
   0x5   : > { %p49_p2 = scmp.eq.s32.totalorder %s1284_s14, 0  ;;  %p99_p3 = scmp.eq.s32.totalorder %s1106_s15, 1 }
   0x6   : > { %s1335_s19 = scalar_select %p39_p0, %s1280_s13, %s41_s18  }
   0x7   : > { %p50_p4 = por %p49_p2, %p48_p1  ;;  %p1337_p5 = por %p99_p3, %p48_p1 }
   0x8   : > { %p1109_p6 = scmp.ge.s32.totalorder %s1284_s14, 2 }
   0xa   : > { %127 = sbr.rel (%p1109_p6) target bundleno = 56 (0x38), region = 24 }
   0xf   : > { %130 = sbr.rel (!%p50_p4) target bundleno = 56 (0x38), region = 28  ;;  %s132_s21 = sand.u32 (%p50_p4), 1, %s1280_s13  }
  0x10   : > { %s1197_s22 = sshll.u32 (%p50_p4), %s1284_s14, 5  ;;  %s1199_s23 = smul.u32 (%p50_p4), 576, %s132_s21 }
  0x11   : > { %s1347_s26 = scalar_lea.vmem (%p50_p4), %s1656_s1, %s1197_s22 }
  0x12   : > { %v150_v0 = vld [vmem:[%s1347_s26] sm:$0xff] (%p50_p4)  ;;  %v152_v1 = vld [vmem:[%s1347_s26 + $0x8] sm:$0xff] (%p50_p4)  ;;  %v154_v2 = vld [vmem:[%s1347_s26 + $0x10] sm:$0xff] (%p50_p4)  ;;  %s1355_s27 = scalar_lea.vmem (%p50_p4), [#allocation2], %s1199_s23 }
  0x13   : > { %v156_v3 = vld [vmem:[%s1347_s26 + $0x18] sm:$0xff] (%p50_p4)  ;;  %v158_v4 = vld [vmem:[%s1347_s26 + $0x40] sm:$0xff] (%p50_p4)  ;;  %v160_v5 = vld [vmem:[%s1347_s26 + $0x48] sm:$0xff] (%p50_p4)  ;;  %151 = vst [vmem:[%s1355_s27] sm:$0xff] (%p50_p4), %v150_v0 }
  0x14   : > { %153 = vst [vmem:[%s1355_s27 + $0x8] sm:$0xff] %v152_v1  ;;  %155 = vst [vmem:[%s1355_s27 + $0x10] sm:$0xff] %v154_v2  ;;  %v162_v6 = vld [vmem:[%s1347_s26 + $0x50] sm:$0xff]  ;;  %v164_v7 = vld [vmem:[%s1347_s26 + $0x58] sm:$0xff] }
  0x15   : > { %157 = vst [vmem:[%s1355_s27 + $0x18] sm:$0xff] %v156_v3  ;;  %159 = vst [vmem:[%s1355_s27 + $0x20] sm:$0xff] %v158_v4  ;;  %v166_v8 = vld [vmem:[%s1347_s26 + $0x80] sm:$0xff]  ;;  %v168_v9 = vld [vmem:[%s1347_s26 + $0x88] sm:$0xff] }
  0x16   : > { %161 = vst [vmem:[%s1355_s27 + $0x28] sm:$0xff] %v160_v5  ;;  %163 = vst [vmem:[%s1355_s27 + $0x30] sm:$0xff] %v162_v6  ;;  %v170_v10 = vld [vmem:[%s1347_s26 + $0x90] sm:$0xff]  ;;  %v172_v11 = vld [vmem:[%s1347_s26 + $0x98] sm:$0xff] }
  0x17   : > { %165 = vst [vmem:[%s1355_s27 + $0x38] sm:$0xff] %v164_v7  ;;  %167 = vst [vmem:[%s1355_s27 + $0x40] sm:$0xff] %v166_v8  ;;  %v174_v12 = vld [vmem:[%s1347_s26 + $0xc0] sm:$0xff]  ;;  %v176_v13 = vld [vmem:[%s1347_s26 + $0xc8] sm:$0xff] }
  0x18   : > { %169 = vst [vmem:[%s1355_s27 + $0x48] sm:$0xff] %v168_v9  ;;  %171 = vst [vmem:[%s1355_s27 + $0x50] sm:$0xff] %v170_v10  ;;  %v178_v14 = vld [vmem:[%s1347_s26 + $0xd0] sm:$0xff]  ;;  %v180_v15 = vld [vmem:[%s1347_s26 + $0xd8] sm:$0xff] }
  0x19   : > { %173 = vst [vmem:[%s1355_s27 + $0x58] sm:$0xff] %v172_v11  ;;  %175 = vst [vmem:[%s1355_s27 + $0x60] sm:$0xff] %v174_v12  ;;  %v182_v16 = vld [vmem:[%s1347_s26 + $0x100] sm:$0xff]  ;;  %v184_v17 = vld [vmem:[%s1347_s26 + $0x108] sm:$0xff] }
  0x1a   : > { %177 = vst [vmem:[%s1355_s27 + $0x68] sm:$0xff] %v176_v13  ;;  %179 = vst [vmem:[%s1355_s27 + $0x70] sm:$0xff] %v178_v14  ;;  %v186_v18 = vld [vmem:[%s1347_s26 + $0x110] sm:$0xff]  ;;  %v188_v19 = vld [vmem:[%s1347_s26 + $0x118] sm:$0xff] }
  0x1b   : > { %181 = vst [vmem:[%s1355_s27 + $0x78] sm:$0xff] %v180_v15  ;;  %183 = vst [vmem:[%s1355_s27 + $0x80] sm:$0xff] %v182_v16  ;;  %v190_v20 = vld [vmem:[%s1347_s26 + $0x140] sm:$0xff]  ;;  %v192_v21 = vld [vmem:[%s1347_s26 + $0x148] sm:$0xff] }
  0x1c   : > { %185 = vst [vmem:[%s1355_s27 + $0x88] sm:$0xff] %v184_v17  ;;  %187 = vst [vmem:[%s1355_s27 + $0x90] sm:$0xff] %v186_v18  ;;  %v194_v22 = vld [vmem:[%s1347_s26 + $0x150] sm:$0xff]  ;;  %v196_v23 = vld [vmem:[%s1347_s26 + $0x158] sm:$0xff] }
  0x1d   : > { %189 = vst [vmem:[%s1355_s27 + $0x98] sm:$0xff] %v188_v19  ;;  %191 = vst [vmem:[%s1355_s27 + $0xa0] sm:$0xff] %v190_v20  ;;  %v198_v24 = vld [vmem:[%s1347_s26 + $0x180] sm:$0xff]  ;;  %v200_v25 = vld [vmem:[%s1347_s26 + $0x188] sm:$0xff] }
  0x1e   : > { %193 = vst [vmem:[%s1355_s27 + $0xa8] sm:$0xff] %v192_v21  ;;  %195 = vst [vmem:[%s1355_s27 + $0xb0] sm:$0xff] %v194_v22  ;;  %v202_v26 = vld [vmem:[%s1347_s26 + $0x190] sm:$0xff]  ;;  %v204_v27 = vld [vmem:[%s1347_s26 + $0x198] sm:$0xff] }
  0x1f   : > { %197 = vst [vmem:[%s1355_s27 + $0xb8] sm:$0xff] %v196_v23  ;;  %199 = vst [vmem:[%s1355_s27 + $0xc0] sm:$0xff] %v198_v24  ;;  %v206_v28 = vld [vmem:[%s1347_s26 + $0x1c0] sm:$0xff]  ;;  %v208_v29 = vld [vmem:[%s1347_s26 + $0x1c8] sm:$0xff] }
  0x20   : > { %201 = vst [vmem:[%s1355_s27 + $0xc8] sm:$0xff] %v200_v25  ;;  %203 = vst [vmem:[%s1355_s27 + $0xd0] sm:$0xff] %v202_v26  ;;  %v210_v30 = vld [vmem:[%s1347_s26 + $0x1d0] sm:$0xff]  ;;  %v212_v31 = vld [vmem:[%s1347_s26 + $0x1d8] sm:$0xff] }
  0x21   : > { %205 = vst [vmem:[%s1355_s27 + $0xd8] sm:$0xff] %v204_v27  ;;  %207 = vst [vmem:[%s1355_s27 + $0xe0] sm:$0xff] %v206_v28  ;;  %v214_v32 = vld [vmem:[%s1347_s26 + $0x200] sm:$0xff]  ;;  %v216_v33 = vld [vmem:[%s1347_s26 + $0x208] sm:$0xff] }
  0x22   : > { %209 = vst [vmem:[%s1355_s27 + $0xe8] sm:$0xff] %v208_v29  ;;  %211 = vst [vmem:[%s1355_s27 + $0xf0] sm:$0xff] %v210_v30  ;;  %v218_v34 = vld [vmem:[%s1347_s26 + $0x210] sm:$0xff]  ;;  %v220_v35 = vld [vmem:[%s1347_s26 + $0x218] sm:$0xff] }
  0x23   : > { %213 = vst [vmem:[%s1355_s27 + $0xf8] sm:$0xff] %v212_v31  ;;  %215 = vst [vmem:[%s1355_s27 + $0x100] sm:$0xff] %v214_v32  ;;  %v222_v36 = vld [vmem:[%s1347_s26 + $0x240] sm:$0xff]  ;;  %v224_v37 = vld [vmem:[%s1347_s26 + $0x248] sm:$0xff] }
  0x24   : > { %217 = vst [vmem:[%s1355_s27 + $0x108] sm:$0xff] %v216_v33  ;;  %219 = vst [vmem:[%s1355_s27 + $0x110] sm:$0xff] %v218_v34  ;;  %v226_v38 = vld [vmem:[%s1347_s26 + $0x250] sm:$0xff]  ;;  %v228_v39 = vld [vmem:[%s1347_s26 + $0x258] sm:$0xff] }
  0x25   : > { %221 = vst [vmem:[%s1355_s27 + $0x118] sm:$0xff] %v220_v35  ;;  %223 = vst [vmem:[%s1355_s27 + $0x120] sm:$0xff] %v222_v36  ;;  %v230_v40 = vld [vmem:[%s1347_s26 + $0x280] sm:$0xff]  ;;  %v232_v41 = vld [vmem:[%s1347_s26 + $0x288] sm:$0xff] }
  0x26   : > { %225 = vst [vmem:[%s1355_s27 + $0x128] sm:$0xff] %v224_v37  ;;  %227 = vst [vmem:[%s1355_s27 + $0x130] sm:$0xff] %v226_v38  ;;  %v234_v42 = vld [vmem:[%s1347_s26 + $0x290] sm:$0xff]  ;;  %v236_v43 = vld [vmem:[%s1347_s26 + $0x298] sm:$0xff] }
  0x27   : > { %229 = vst [vmem:[%s1355_s27 + $0x138] sm:$0xff] %v228_v39  ;;  %231 = vst [vmem:[%s1355_s27 + $0x140] sm:$0xff] %v230_v40  ;;  %v238_v44 = vld [vmem:[%s1347_s26 + $0x2c0] sm:$0xff]  ;;  %v240_v45 = vld [vmem:[%s1347_s26 + $0x2c8] sm:$0xff] }
  0x28   : > { %233 = vst [vmem:[%s1355_s27 + $0x148] sm:$0xff] %v232_v41  ;;  %235 = vst [vmem:[%s1355_s27 + $0x150] sm:$0xff] %v234_v42  ;;  %v242_v46 = vld [vmem:[%s1347_s26 + $0x2d0] sm:$0xff]  ;;  %v244_v47 = vld [vmem:[%s1347_s26 + $0x2d8] sm:$0xff] }
  0x29   : > { %237 = vst [vmem:[%s1355_s27 + $0x158] sm:$0xff] %v236_v43  ;;  %239 = vst [vmem:[%s1355_s27 + $0x160] sm:$0xff] %v238_v44  ;;  %v246_v48 = vld [vmem:[%s1347_s26 + $0x300] sm:$0xff]  ;;  %v248_v49 = vld [vmem:[%s1347_s26 + $0x308] sm:$0xff] }
  0x2a   : > { %241 = vst [vmem:[%s1355_s27 + $0x168] sm:$0xff] %v240_v45  ;;  %243 = vst [vmem:[%s1355_s27 + $0x170] sm:$0xff] %v242_v46  ;;  %v250_v50 = vld [vmem:[%s1347_s26 + $0x310] sm:$0xff]  ;;  %v252_v51 = vld [vmem:[%s1347_s26 + $0x318] sm:$0xff] }
  0x2b   : > { %245 = vst [vmem:[%s1355_s27 + $0x178] sm:$0xff] %v244_v47  ;;  %247 = vst [vmem:[%s1355_s27 + $0x180] sm:$0xff] %v246_v48  ;;  %v254_v52 = vld [vmem:[%s1347_s26 + $0x340] sm:$0xff]  ;;  %v256_v53 = vld [vmem:[%s1347_s26 + $0x348] sm:$0xff] }
  0x2c   : > { %249 = vst [vmem:[%s1355_s27 + $0x188] sm:$0xff] %v248_v49  ;;  %251 = vst [vmem:[%s1355_s27 + $0x190] sm:$0xff] %v250_v50  ;;  %v258_v54 = vld [vmem:[%s1347_s26 + $0x350] sm:$0xff]  ;;  %v260_v55 = vld [vmem:[%s1347_s26 + $0x358] sm:$0xff] }
  0x2d   : > { %253 = vst [vmem:[%s1355_s27 + $0x198] sm:$0xff] %v252_v51  ;;  %255 = vst [vmem:[%s1355_s27 + $0x1a0] sm:$0xff] %v254_v52  ;;  %v262_v56 = vld [vmem:[%s1347_s26 + $0x380] sm:$0xff]  ;;  %v264_v57 = vld [vmem:[%s1347_s26 + $0x388] sm:$0xff] }
  0x2e   : > { %257 = vst [vmem:[%s1355_s27 + $0x1a8] sm:$0xff] %v256_v53  ;;  %259 = vst [vmem:[%s1355_s27 + $0x1b0] sm:$0xff] %v258_v54  ;;  %v266_v58 = vld [vmem:[%s1347_s26 + $0x390] sm:$0xff]  ;;  %v268_v59 = vld [vmem:[%s1347_s26 + $0x398] sm:$0xff] }
  0x2f   : > { %261 = vst [vmem:[%s1355_s27 + $0x1b8] sm:$0xff] %v260_v55  ;;  %263 = vst [vmem:[%s1355_s27 + $0x1c0] sm:$0xff] %v262_v56  ;;  %v270_v60 = vld [vmem:[%s1347_s26 + $0x3c0] sm:$0xff]  ;;  %v272_v61 = vld [vmem:[%s1347_s26 + $0x3c8] sm:$0xff] }
  0x30   : > { %265 = vst [vmem:[%s1355_s27 + $0x1c8] sm:$0xff] %v264_v57  ;;  %267 = vst [vmem:[%s1355_s27 + $0x1d0] sm:$0xff] %v266_v58  ;;  %v274_v62 = vld [vmem:[%s1347_s26 + $0x3d0] sm:$0xff]  ;;  %v276_v63 = vld [vmem:[%s1347_s26 + $0x3d8] sm:$0xff] }
  0x31   : > { %269 = vst [vmem:[%s1355_s27 + $0x1d8] sm:$0xff] %v268_v59  ;;  %271 = vst [vmem:[%s1355_s27 + $0x1e0] sm:$0xff] %v270_v60  ;;  %v278_v0 = vld [vmem:[%s1347_s26 + $0x400] sm:$0xff]  ;;  %v280_v1 = vld [vmem:[%s1347_s26 + $0x408] sm:$0xff] }
  0x32   : > { %273 = vst [vmem:[%s1355_s27 + $0x1e8] sm:$0xff] %v272_v61  ;;  %275 = vst [vmem:[%s1355_s27 + $0x1f0] sm:$0xff] %v274_v62  ;;  %v282_v2 = vld [vmem:[%s1347_s26 + $0x410] sm:$0xff]  ;;  %v284_v3 = vld [vmem:[%s1347_s26 + $0x418] sm:$0xff] }
  0x33   : > { %277 = vst [vmem:[%s1355_s27 + $0x1f8] sm:$0xff] %v276_v63  ;;  %279 = vst [vmem:[%s1355_s27 + $0x200] sm:$0xff] %v278_v0  ;;  %v286_v4 = vld [vmem:[%s1347_s26 + $0x440] sm:$0xff]  ;;  %v288_v5 = vld [vmem:[%s1347_s26 + $0x448] sm:$0xff] }
  0x34   : > { %281 = vst [vmem:[%s1355_s27 + $0x208] sm:$0xff] %v280_v1  ;;  %283 = vst [vmem:[%s1355_s27 + $0x210] sm:$0xff] %v282_v2  ;;  %v290_v6 = vld [vmem:[%s1347_s26 + $0x450] sm:$0xff]  ;;  %v292_v7 = vld [vmem:[%s1347_s26 + $0x458] sm:$0xff] }
  0x35   : > { %285 = vst [vmem:[%s1355_s27 + $0x218] sm:$0xff] %v284_v3  ;;  %287 = vst [vmem:[%s1355_s27 + $0x220] sm:$0xff] %v286_v4 }
  0x36   : > { %289 = vst [vmem:[%s1355_s27 + $0x228] sm:$0xff] %v288_v5  ;;  %291 = vst [vmem:[%s1355_s27 + $0x230] sm:$0xff] %v290_v6 }
  0x37   : > { %293 = vst [vmem:[%s1355_s27 + $0x238] sm:$0xff] %v292_v7 }
  0x38 PF: > { %p1112_p7 = scmp.ge.s32.totalorder %s1284_s14, 1  ;;  %p298_p8 = scmp.lt.s32.totalorder %s1284_s14, 3 }
  0x3a   : > { %p299_p9 = pnand %p1112_p7, %p298_p8 }
  0x3b   : > { %s305_s28 = sand.u32 (!%p299_p9), 1, %s1276_s12  }
  0x3c   : > { %302 = sbr.rel (%p299_p9) target bundleno = 368 (0x170), region = 51  ;;  %s1113_s17 = sshll.u32 (!%p299_p9), %s305_s28, 7 }
  0x3d   : > { %s1200_s4 = smul.u32 (!%p299_p9), 576, %s305_s28  ;;  %s1604_s18 = scalar_lea.vmem (!%p299_p9), [#allocation3], %s1113_s17 }
  0x3f   : > { %s1512_s7 = scalar_lea.vmem (!%p299_p9), [#allocation2], %s1200_s4 }
  0x41   : > { %v1501_v8 = vld [vmem:[%s1655_s0 + $0x4] ss:$8 sps:$4 sm:$0xff]   ;;  %vm785_vm0 = vcmask 130048   ;;  %v1286_v10 = vmov 0   ;;  %s1198_s12 = sshll.u32 (%p1337_p5), %s1106_s15, 6 }
  0x42   : > { %v404_v9 = vld [vmem:[%s1657_s2] sm:$0xff]  ;;  %1188 = vmatprep.mubr.msk.bf16.mxu0 %vm785_vm0, %v1501_v8  ;;  %1189 = vmatprep.mubr.msk.bf16.mxu1 %vm785_vm0, %v1501_v8  ;;  %v389_v13 = vld [vmem:[%s1512_s7 + $0x1c8] sm:$0xff]  ;;  %s1002_s20 = scalar_lea.vmem (%p1337_p5), %s1658_s3, %s1198_s12 }
  0x43   : > { %1226 = vset.pattern.permute.xlu0 %v1286_v10  ;;  %v388_v11 = vld [vmem:[%s1512_s7 + $0x1c0] sm:$0xff]  ;;  %v393_v15 = vld [vmem:[%s1512_s7 + $0x1e8] sm:$0xff] }
  0x44   : > { %v392_v12 = vld [vmem:[%s1512_s7 + $0x1e0] sm:$0xff]  ;;  %408 = vperm.xlu0 %1226, %v404_v9   ;;  %v1175_v19 = vcombine.high %v389_v13, %v393_v15  ;;  %v1174_v20 = vcombine.low %v389_v13, %v393_v15  ;;  %v381_v22 = vld [vmem:[%s1512_s7 + $0x188] sm:$0xff] }
  0x45   : > { %v1173_v14 = vcombine.high %v388_v11, %v392_v12  ;;  %v1172_v16 = vcombine.low %v388_v11, %v392_v12  ;;  %v380_v17 = vld [vmem:[%s1512_s7 + $0x180] sm:$0xff]  ;;  %v385_v23 = vld [vmem:[%s1512_s7 + $0x1a8] sm:$0xff] }
  0x46   : > { %v384_v18 = vld [vmem:[%s1512_s7 + $0x1a0] sm:$0xff]  ;;  %v1167_v25 = vcombine.high %v381_v22, %v385_v23  ;;  %v373_v27 = vld [vmem:[%s1512_s7 + $0x148] sm:$0xff]  ;;  %832 = vmatprep.subr.bf16.mxu1 %v1175_v19  ;;  %v1166_v31 = vcombine.low %v381_v22, %v385_v23  ;;  %v390_v19 = vld [vmem:[%s1512_s7 + $0x1d0] sm:$0xff] }
  0x47   : > { %v1165_v21 = vcombine.high %v380_v17, %v384_v18  ;;  %v372_v24 = vld [vmem:[%s1512_s7 + $0x140] sm:$0xff]  ;;  %789 = vmatprep.subr.bf16.mxu0 %v1173_v14  ;;  %v377_v28 = vld [vmem:[%s1512_s7 + $0x168] sm:$0xff]  ;;  %v1164_v29 = vcombine.low %v380_v17, %v384_v18  ;;  %833 = vmatpush1.bf16.msra.mxu1 %v1174_v20  ;;  %v394_v20 = vld [vmem:[%s1512_s7 + $0x1f0] sm:$0xff] }
  0x48   : > { %v376_v26 = vld [vmem:[%s1512_s7 + $0x160] sm:$0xff]  ;;  %790 = vmatpush1.bf16.msra.mxu0 %v1172_v16  ;;  %v405_v30 = vld [vmem:[%s1657_s2 + $0x8] sm:$0xff]  ;;  %834 = vmatprep.subr.bf16.mxu1 %v1167_v25  ;;  %v1159_v33 = vcombine.high %v373_v27, %v377_v28  ;;  %v1158_v39 = vcombine.low %v373_v27, %v377_v28  ;;  %v395_v22 = vld [vmem:[%s1512_s7 + $0x1f8] sm:$0xff]  ;;  %v1177_v25 = vcombine.high %v390_v19, %v394_v20 }
  0x49   : > { %791 = vmatprep.subr.bf16.mxu0 %v1165_v21  ;;  %v1157_v32 = vcombine.high %v372_v24, %v376_v26  ;;  %v364_v34 = vld [vmem:[%s1512_s7 + $0x100] sm:$0xff]  ;;  %v365_v36 = vld [vmem:[%s1512_s7 + $0x108] sm:$0xff]  ;;  %413 = vperm.xlu0 %1226, %v405_v30   ;;  %v1156_v38 = vcombine.low %v372_v24, %v376_v26  ;;  %v391_v21 = vld [vmem:[%s1512_s7 + $0x1d8] sm:$0xff] }
  0x4a   : > { %v368_v35 = vld [vmem:[%s1512_s7 + $0x120] sm:$0xff]  ;;  %v369_v37 = vld [vmem:[%s1512_s7 + $0x128] sm:$0xff]  ;;  %v1179_v26 = vcombine.high %v391_v21, %v395_v22  ;;  %v382_v27 = vld [vmem:[%s1512_s7 + $0x190] sm:$0xff] }
  0x4b   : > { %835 = vmatpush1.bf16.msra.mxu1 %v1166_v31  ;;  %v1149_v40 = vcombine.high %v364_v34, %v368_v35  ;;  %v1151_v41 = vcombine.high %v365_v36, %v369_v37  ;;  %v356_v42 = vld [vmem:[%s1512_s7 + $0xc0] sm:$0xff]  ;;  %v357_v44 = vld [vmem:[%s1512_s7 + $0xc8] sm:$0xff]  ;;  %v1148_v46 = vcombine.low %v364_v34, %v368_v35  ;;  %v1150_v47 = vcombine.low %v365_v36, %v369_v37  ;;  %v386_v28 = vld [vmem:[%s1512_s7 + $0x1b0] sm:$0xff] }
  0x4c   : > { %792 = vmatpush1.bf16.msra.mxu0 %v1164_v29  ;;  %836 = vmatprep.subr.bf16.mxu1 %v1159_v33  ;;  %v360_v43 = vld [vmem:[%s1512_s7 + $0xe0] sm:$0xff]  ;;  %v361_v45 = vld [vmem:[%s1512_s7 + $0xe8] sm:$0xff]  ;;  %v383_v30 = vld [vmem:[%s1512_s7 + $0x198] sm:$0xff]  ;;  %v1178_v33 = vcombine.low %v391_v21, %v395_v22  ;;  %v1169_v34 = vcombine.high %v382_v27, %v386_v28 }
  0x4d   : > { %793 = vmatprep.subr.bf16.mxu0 %v1157_v32  ;;  %v1141_v48 = vcombine.high %v356_v42, %v360_v43  ;;  %v1143_v49 = vcombine.high %v357_v44, %v361_v45  ;;  %v348_v50 = vld [vmem:[%s1512_s7 + $0x80] sm:$0xff]  ;;  %v349_v52 = vld [vmem:[%s1512_s7 + $0x88] sm:$0xff]  ;;  %v1140_v54 = vcombine.low %v356_v42, %v360_v43  ;;  %v1142_v55 = vcombine.low %v357_v44, %v361_v45  ;;  %v387_v31 = vld [vmem:[%s1512_s7 + $0x1b8] sm:$0xff] }
  0x4e   : > { %v352_v51 = vld [vmem:[%s1512_s7 + $0xa0] sm:$0xff]  ;;  %v353_v53 = vld [vmem:[%s1512_s7 + $0xa8] sm:$0xff]  ;;  %v1176_v32 = vcombine.low %v390_v19, %v394_v20  ;;  %v1171_v35 = vcombine.high %v383_v30, %v387_v31  ;;  %v374_v36 = vld [vmem:[%s1512_s7 + $0x150] sm:$0xff] }
  0x4f   : > { %837 = vmatpush1.bf16.msra.mxu1 %v1158_v39  ;;  %v1133_v56 = vcombine.high %v348_v50, %v352_v51  ;;  %v1135_v57 = vcombine.high %v349_v52, %v353_v53  ;;  %v340_v58 = vld [vmem:[%s1512_s7 + $0x40] sm:$0xff]  ;;  %v341_v60 = vld [vmem:[%s1512_s7 + $0x48] sm:$0xff]  ;;  %v1132_v62 = vcombine.low %v348_v50, %v352_v51  ;;  %v1134_v63 = vcombine.low %v349_v52, %v353_v53  ;;  %v378_v37 = vld [vmem:[%s1512_s7 + $0x170] sm:$0xff] }
  0x50   : > { %794 = vmatpush1.bf16.msra.mxu0 %v1156_v38  ;;  %838 = vmatprep.subr.bf16.mxu1 %v1151_v41  ;;  %v344_v59 = vld [vmem:[%s1512_s7 + $0x60] sm:$0xff]  ;;  %v345_v61 = vld [vmem:[%s1512_s7 + $0x68] sm:$0xff]  ;;  %v375_v38 = vld [vmem:[%s1512_s7 + $0x158] sm:$0xff]  ;;  %v1170_v41 = vcombine.low %v383_v30, %v387_v31  ;;  %v1161_v42 = vcombine.high %v374_v36, %v378_v37 }
  0x51   : > { %795 = vmatprep.subr.bf16.mxu0 %v1149_v40  ;;  %v1125_v0 = vcombine.high %v340_v58, %v344_v59  ;;  %v1127_v1 = vcombine.high %v341_v60, %v345_v61  ;;  %v332_v2 = vld [vmem:[%s1512_s7] sm:$0xff]  ;;  %v333_v4 = vld [vmem:[%s1512_s7 + $0x8] sm:$0xff]  ;;  %v1124_v6 = vcombine.low %v340_v58, %v344_v59  ;;  %v1126_v7 = vcombine.low %v341_v60, %v345_v61  ;;  %v379_v39 = vld [vmem:[%s1512_s7 + $0x178] sm:$0xff] }
  0x52   : > { %v336_v3 = vld [vmem:[%s1512_s7 + $0x20] sm:$0xff]  ;;  %v337_v5 = vld [vmem:[%s1512_s7 + $0x28] sm:$0xff]  ;;  %v1168_v40 = vcombine.low %v382_v27, %v386_v28  ;;  %v1163_v43 = vcombine.high %v375_v38, %v379_v39  ;;  %v366_v44 = vld [vmem:[%s1512_s7 + $0x110] sm:$0xff] }
  0x53   : > { %839 = vmatpush1.bf16.msra.mxu1 %v1150_v47  ;;  %v1117_v9 = vcombine.high %v332_v2, %v336_v3  ;;  %v1119_v10 = vcombine.high %v333_v4, %v337_v5  ;;  %v396_v11 = vld [vmem:[%s1512_s7 + $0x200] sm:$0xff]  ;;  %v397_v13 = vld [vmem:[%s1512_s7 + $0x208] sm:$0xff]  ;;  %v1116_v15 = vcombine.low %v332_v2, %v336_v3  ;;  %v1118_v16 = vcombine.low %v333_v4, %v337_v5  ;;  %v370_v45 = vld [vmem:[%s1512_s7 + $0x130] sm:$0xff] }
  0x54   : > { %796 = vmatpush1.bf16.msra.mxu0 %v1148_v46  ;;  %840 = vmatprep.subr.bf16.mxu1 %v1143_v49  ;;  %v400_v12 = vld [vmem:[%s1512_s7 + $0x220] sm:$0xff]  ;;  %v401_v14 = vld [vmem:[%s1512_s7 + $0x228] sm:$0xff]  ;;  %v367_v46 = vld [vmem:[%s1512_s7 + $0x118] sm:$0xff]  ;;  %v1162_v49 = vcombine.low %v375_v38, %v379_v39  ;;  %v1153_v50 = vcombine.high %v366_v44, %v370_v45 }
  0x55   : > { %797 = vmatprep.subr.bf16.mxu0 %v1141_v48  ;;  %v1181_v17 = vcombine.high %v396_v11, %v400_v12  ;;  %v1183_v18 = vcombine.high %v397_v13, %v401_v14  ;;  %v1180_v23 = vcombine.low %v396_v11, %v400_v12  ;;  %v1182_v24 = vcombine.low %v397_v13, %v401_v14  ;;  %v1562_v29 = vld [vmem:[%s1655_s0] ss:$8 sps:$4 sm:$0xff]   ;;  %v371_v47 = vld [vmem:[%s1512_s7 + $0x138] sm:$0xff]  ;;  %v358_v52 = vld [vmem:[%s1512_s7 + $0xd0] sm:$0xff] }
  0x56   : > { %v1160_v48 = vcombine.low %v374_v36, %v378_v37  ;;  %v1155_v51 = vcombine.high %v367_v46, %v371_v47  ;;  %v362_v53 = vld [vmem:[%s1512_s7 + $0xf0] sm:$0xff]  ;;  %v351_v61 = vld [vmem:[%s1512_s7 + $0x98] sm:$0xff] }
  0x57   : > { %841 = vmatpush1.bf16.msra.mxu1 %v1142_v55  ;;  %v363_v55 = vld [vmem:[%s1512_s7 + $0xf8] sm:$0xff]  ;;  %v350_v59 = vld [vmem:[%s1512_s7 + $0x90] sm:$0xff] }
  0x58   : > { %798 = vmatpush1.bf16.msra.mxu0 %v1140_v54  ;;  %842 = vmatprep.subr.bf16.mxu1 %v1135_v57  ;;  %v359_v54 = vld [vmem:[%s1512_s7 + $0xd8] sm:$0xff]  ;;  %v1145_v57 = vcombine.high %v358_v52, %v362_v53  ;;  %v354_v60 = vld [vmem:[%s1512_s7 + $0xb0] sm:$0xff] }
  0x59   : > { %799 = vmatprep.subr.bf16.mxu0 %v1133_v56  ;;  %v1152_v56 = vcombine.low %v366_v44, %v370_v45  ;;  %v1147_v58 = vcombine.high %v359_v54, %v363_v55  ;;  %v342_v3 = vld [vmem:[%s1512_s7 + $0x50] sm:$0xff]  ;;  %v343_v5 = vld [vmem:[%s1512_s7 + $0x58] sm:$0xff] }
  0x5a   : > { %v346_v4 = vld [vmem:[%s1512_s7 + $0x70] sm:$0xff]  ;;  %v335_v14 = vld [vmem:[%s1512_s7 + $0x18] sm:$0xff] }
  0x5b   : > { %843 = vmatpush1.bf16.msra.mxu1 %v1134_v63  ;;  %v1144_v63 = vcombine.low %v358_v52, %v362_v53  ;;  %v334_v12 = vld [vmem:[%s1512_s7 + $0x10] sm:$0xff]  ;;  %v399_v22 = vld [vmem:[%s1512_s7 + $0x218] sm:$0xff] }
  0x5c   : > { %800 = vmatpush1.bf16.msra.mxu0 %v1132_v62  ;;  %844 = vmatprep.subr.bf16.mxu1 %v1127_v1  ;;  %v355_v62 = vld [vmem:[%s1512_s7 + $0xb8] sm:$0xff]  ;;  %v1137_v1 = vcombine.high %v350_v59, %v354_v60  ;;  %v338_v13 = vld [vmem:[%s1512_s7 + $0x30] sm:$0xff] }
  0x5d   : > { %801 = vmatprep.subr.bf16.mxu0 %v1125_v0  ;;  %v1146_v0 = vcombine.low %v359_v54, %v363_v55  ;;  %v1139_v2 = vcombine.high %v351_v61, %v355_v62  ;;  %v398_v20 = vld [vmem:[%s1512_s7 + $0x210] sm:$0xff] }
  0x5e   : > { %v402_v21 = vld [vmem:[%s1512_s7 + $0x230] sm:$0xff] }
  0x5f   : > { %845 = vmatpush1.bf16.msra.mxu1 %v1126_v7  ;;  %v1136_v7 = vcombine.low %v350_v59, %v354_v60  ;;  %v1184_v28 = vcombine.low %v398_v20, %v402_v21 }
  0x60   : > { %802 = vmatpush1.bf16.msra.mxu0 %v1124_v6  ;;  %846 = vmatprep.subr.bf16.mxu1 %v1119_v10  ;;  %v347_v6 = vld [vmem:[%s1512_s7 + $0x78] sm:$0xff]  ;;  %v1129_v10 = vcombine.high %v342_v3, %v346_v4 }
  0x61   : > { %803 = vmatprep.subr.bf16.mxu0 %v1117_v9  ;;  %v1138_v9 = vcombine.low %v351_v61, %v355_v62  ;;  %v1131_v11 = vcombine.high %v343_v5, %v347_v6 }
  0x63   : > { %847 = vmatpush1.bf16.msra.mxu1 %v1118_v16  ;;  %v1128_v16 = vcombine.low %v342_v3, %v346_v4 }
  0x64   : > { %804 = vmatpush1.bf16.msra.mxu0 %v1116_v15  ;;  %862 = vmatprep.subr.bf16.mxu1 %v1183_v18  ;;  %v339_v15 = vld [vmem:[%s1512_s7 + $0x38] sm:$0xff]  ;;  %v1121_v18 = vcombine.high %v334_v12, %v338_v13 }
  0x65   : > { %819 = vmatprep.subr.bf16.mxu0 %v1181_v17  ;;  %v1130_v17 = vcombine.low %v343_v5, %v347_v6  ;;  %v1123_v19 = vcombine.high %v335_v14, %v339_v15 }
  0x67   : > { %863 = vmatpush2.bf16.msra.mxu1 %v1182_v24  ;;  %v1120_v24 = vcombine.low %v334_v12, %v338_v13 }
  0x68   : > { %820 = vmatpush2.bf16.msra.mxu0 %v1180_v23  ;;  %918 = vmatprep.subr.bf16.mxu1 %v1179_v26  ;;  %v403_v23 = vld [vmem:[%s1512_s7 + $0x238] sm:$0xff]  ;;  %v1185_v26 = vcombine.high %v398_v20, %v402_v21 }
  0x69   : > { %875 = vmatprep.subr.bf16.mxu0 %v1177_v25  ;;  %v1122_v25 = vcombine.low %v335_v14, %v339_v15  ;;  %v1187_v27 = vcombine.high %v399_v22, %v403_v23  ;;  %v1186_v30 = vcombine.low %v399_v22, %v403_v23 }
  0x6a   : > { %865 = vmatmul.mubr.bf16.vlgmr.msra.gmra.mxu1 %v1562_v29 }
  0x6b   : > { %822 = vmatmul.mubr.bf16.vlgmr.msra.gmra.mxu0 %v1562_v29  ;;  %919 = vmatpush1.bf16.msra.mxu1 %v1178_v33 }
  0x6c   : > { %876 = vmatpush1.bf16.msra.mxu0 %v1176_v32  ;;  %920 = vmatprep.subr.bf16.mxu1 %v1171_v35 }
  0x6d   : > { %877 = vmatprep.subr.bf16.mxu0 %v1169_v34  ;;  %1190 = vmatprep.mubr.msk.bf16.mxu0 %vm785_vm0, %v1501_v8 }
  0x6e   : > { %1191 = vmatprep.mubr.msk.bf16.mxu1 %vm785_vm0, %v1501_v8  ;;  %v1154_v8 = vcombine.low %v367_v46, %v371_v47 }
  0x6f   : > { %921 = vmatpush1.bf16.msra.mxu1 %v1170_v41 }
  0x70   : > { %878 = vmatpush1.bf16.msra.mxu0 %v1168_v40  ;;  %922 = vmatprep.subr.bf16.mxu1 %v1163_v43 }
  0x71   : > { %879 = vmatprep.subr.bf16.mxu0 %v1161_v42 }
  0x73   : > { %923 = vmatpush1.bf16.msra.mxu1 %v1162_v49 }
  0x74   : > { %880 = vmatpush1.bf16.msra.mxu0 %v1160_v48  ;;  %924 = vmatprep.subr.bf16.mxu1 %v1155_v51 }
  0x75   : > { %881 = vmatprep.subr.bf16.mxu0 %v1153_v50 }
  0x77   : > { %925 = vmatpush1.bf16.msra.mxu1 %v1154_v8 }
  0x78   : > { %882 = vmatpush1.bf16.msra.mxu0 %v1152_v56  ;;  %926 = vmatprep.subr.bf16.mxu1 %v1147_v58 }
  0x79   : > { %883 = vmatprep.subr.bf16.mxu0 %v1145_v57 }
  0x7b   : > { %927 = vmatpush1.bf16.msra.mxu1 %v1146_v0 }
  0x7c   : > { %884 = vmatpush1.bf16.msra.mxu0 %v1144_v63  ;;  %928 = vmatprep.subr.bf16.mxu1 %v1139_v2 }
  0x7d   : > { %885 = vmatprep.subr.bf16.mxu0 %v1137_v1 }
  0x7f   : > { %929 = vmatpush1.bf16.msra.mxu1 %v1138_v9 }
  0x80   : > { %886 = vmatpush1.bf16.msra.mxu0 %v1136_v7  ;;  %930 = vmatprep.subr.bf16.mxu1 %v1131_v11 }
  0x81   : > { %887 = vmatprep.subr.bf16.mxu0 %v1129_v10 }
  0x83   : > { %931 = vmatpush1.bf16.msra.mxu1 %v1130_v17 }
  0x84   : > { %888 = vmatpush1.bf16.msra.mxu0 %v1128_v16  ;;  %932 = vmatprep.subr.bf16.mxu1 %v1123_v19 }
  0x85   : > { %889 = vmatprep.subr.bf16.mxu0 %v1121_v18 }
  0x87   : > { %933 = vmatpush1.bf16.msra.mxu1 %v1122_v25 }
  0x88   : > { %890 = vmatpush1.bf16.msra.mxu0 %v1120_v24  ;;  %948 = vmatprep.subr.bf16.mxu1 %v1187_v27 }
  0x89   : > { %905 = vmatprep.subr.bf16.mxu0 %v1185_v26 }
  0x8b   : > { %949 = vmatpush2.bf16.msra.mxu1 %v1186_v30 }
  0x8c   : > { %906 = vmatpush2.bf16.msra.mxu0 %v1184_v28 }
  0x8e   : > { %951 = vmatmul.mubr.bf16.vlgmr.msra.gmra.mxu1 %v1562_v29 }
  0x8f   : > { %908 = vmatmul.mubr.bf16.vlgmr.msra.gmra.mxu0 %v1562_v29 }
  0xbf   : > { %v409_v31 = vpop.permute.xlu0 %408 }
  0xc4   : > { %v414_v37 = vpop.permute.xlu0 %413 }
 0x12a   : > { %v866_v34 = vpop.f32.mrf.mxu1 }
 0x12b   : > { %v823_v32 = vpop.f32.mrf.mxu0  ;;  %v867_v35 = vadd.f32 %v866_v34, %v409_v31 }
 0x12c   : > { %v824_v33 = vadd.f32 %v823_v32, %v409_v31  ;;  %v868_v39 = vpop.f32.mrf.mxu1 }
 0x12d   : > { %v825_v36 = vpop.f32.mrf.mxu0  ;;  %v869_v40 = vadd.f32 %v868_v39, %v409_v31 }
 0x12e   : > { %1230 = vtanh.f32 %v824_v33  ;;  %v826_v38 = vadd.f32 %v825_v36, %v409_v31  ;;  %v870_v43 = vpop.f32.mrf.mxu1 }
 0x12f   : > { %1232 = vtanh.f32 %v867_v35  ;;  %v827_v41 = vpop.f32.mrf.mxu0  ;;  %v871_v44 = vadd.f32 %v870_v43, %v414_v37 }
 0x130   : > { %1234 = vtanh.f32 %v826_v38  ;;  %v828_v42 = vadd.f32 %v827_v41, %v414_v37  ;;  %v872_v46 = vpop.f32.mrf.mxu1 }
 0x131   : > { %1236 = vtanh.f32 %v869_v40  ;;  %v829_v29 = vpop.f32.mrf.mxu0  ;;  %v873_v47 = vadd.f32 %v872_v46, %v414_v37 }
 0x132   : > { %1238 = vtanh.f32 %v828_v42  ;;  %v830_v45 = vadd.f32 %v829_v29, %v414_v37 }
 0x133   : > { %1240 = vtanh.f32 %v871_v44 }
 0x134   : > { %1242 = vtanh.f32 %v830_v45 }
 0x135   : > { %1244 = vtanh.f32 %v873_v47 }
 0x13b   : > { %v1231_v48 = vpop.eup %1230 }
 0x13c   : > { %v1233_v49 = vpop.eup %1232  ;;  %977 = vst [vmem:[%s1604_s18] sm:$0xff] %v1231_v48 }
 0x13d   : > { %v1235_v50 = vpop.eup %1234  ;;  %979 = vst [vmem:[%s1604_s18 + $0x10] sm:$0xff] %v1233_v49 }
 0x13e   : > { %v1237_v51 = vpop.eup %1236  ;;  %978 = vst [vmem:[%s1604_s18 + $0x8] sm:$0xff] %v1235_v50 }
 0x13f   : > { %v1239_v52 = vpop.eup %1238  ;;  %980 = vst [vmem:[%s1604_s18 + $0x18] sm:$0xff] %v1237_v51 }
 0x140   : > { %v1241_v53 = vpop.eup %1240  ;;  %985 = vst [vmem:[%s1604_s18 + $0x40] sm:$0xff] %v1239_v52 }
 0x141   : > { %v1243_v54 = vpop.eup %1242  ;;  %987 = vst [vmem:[%s1604_s18 + $0x50] sm:$0xff] %v1241_v53 }
 0x142   : > { %v1245_v55 = vpop.eup %1244  ;;  %986 = vst [vmem:[%s1604_s18 + $0x48] sm:$0xff] %v1243_v54 }
 0x143   : > { %988 = vst [vmem:[%s1604_s18 + $0x58] sm:$0xff] %v1245_v55  ;;  %v1015_v16 = vld [vmem:[%s1604_s18] sm:$0xff] (%p1337_p5) }
 0x144   : > { %v1019_v18 = vld [vmem:[%s1604_s18 + $0x10] sm:$0xff] (%p1337_p5)  ;;  %1016 = vst [vmem:[%s1002_s20] sm:$0xff] (%p1337_p5), %v1015_v16 }
 0x145   : > { %v1017_v17 = vld [vmem:[%s1604_s18 + $0x8] sm:$0xff] (%p1337_p5)  ;;  %1020 = vst [vmem:[%s1002_s20 + $0x10] sm:$0xff] (%p1337_p5), %v1019_v18 }
 0x146   : > { %v1021_v19 = vld [vmem:[%s1604_s18 + $0x18] sm:$0xff] (%p1337_p5)  ;;  %1018 = vst [vmem:[%s1002_s20 + $0x8] sm:$0xff] (%p1337_p5), %v1017_v17 }
 0x147   : > { %1022 = vst [vmem:[%s1002_s20 + $0x18] sm:$0xff] (%p1337_p5), %v1021_v19  ;;  %v1031_v24 = vld [vmem:[%s1604_s18 + $0x40] sm:$0xff] (%p1337_p5) }
 0x148   : > { %1032 = vst [vmem:[%s1002_s20 + $0x80] sm:$0xff] (%p1337_p5), %v1031_v24  ;;  %v1035_v26 = vld [vmem:[%s1604_s18 + $0x50] sm:$0xff] (%p1337_p5) }
 0x149   : > { %v1033_v25 = vld [vmem:[%s1604_s18 + $0x48] sm:$0xff] (%p1337_p5)  ;;  %1036 = vst [vmem:[%s1002_s20 + $0x90] sm:$0xff] (%p1337_p5), %v1035_v26 }
 0x14a   : > { %v1037_v27 = vld [vmem:[%s1604_s18 + $0x58] sm:$0xff] (%p1337_p5)  ;;  %1034 = vst [vmem:[%s1002_s20 + $0x88] sm:$0xff] (%p1337_p5), %v1033_v25 }
 0x14b   : > { %1038 = vst [vmem:[%s1002_s20 + $0x98] sm:$0xff] (%p1337_p5), %v1037_v27 }
 0x14e   : > { %v952_v57 = vpop.f32.mrf.mxu1 }
 0x14f   : > { %v909_v56 = vpop.f32.mrf.mxu0  ;;  %v953_v58 = vadd.f32 %v952_v57, %v409_v31 }
 0x150   : > { %v910_v8 = vadd.f32 %v909_v56, %v409_v31  ;;  %v954_v61 = vpop.f32.mrf.mxu1 }
 0x151   : > { %v911_v59 = vpop.f32.mrf.mxu0  ;;  %v955_v62 = vadd.f32 %v954_v61, %v409_v31 }
 0x152   : > { %1246 = vtanh.f32 %v910_v8  ;;  %v912_v60 = vadd.f32 %v911_v59, %v409_v31  ;;  %v956_v1 = vpop.f32.mrf.mxu1 }
 0x153   : > { %1248 = vtanh.f32 %v953_v58  ;;  %v913_v63 = vpop.f32.mrf.mxu0  ;;  %v957_v2 = vadd.f32 %v956_v1, %v414_v37 }
 0x154   : > { %1250 = vtanh.f32 %v912_v60  ;;  %v914_v0 = vadd.f32 %v913_v63, %v414_v37  ;;  %v958_v5 = vpop.f32.mrf.mxu1 }
 0x155   : > { %1252 = vtanh.f32 %v955_v62  ;;  %v915_v3 = vpop.f32.mrf.mxu0  ;;  %v959_v6 = vadd.f32 %v958_v5, %v414_v37 }
 0x156   : > { %1254 = vtanh.f32 %v914_v0  ;;  %v916_v4 = vadd.f32 %v915_v3, %v414_v37 }
 0x157   : > { %1256 = vtanh.f32 %v957_v2 }
 0x158   : > { %1258 = vtanh.f32 %v916_v4 }
 0x159   : > { %1260 = vtanh.f32 %v959_v6 }
 0x15f   : > { %v1247_v7 = vpop.eup %1246 }
 0x160   : > { %v1249_v9 = vpop.eup %1248  ;;  %981 = vst [vmem:[%s1604_s18 + $0x20] sm:$0xff] %v1247_v7 }
 0x161   : > { %v1251_v10 = vpop.eup %1250  ;;  %983 = vst [vmem:[%s1604_s18 + $0x30] sm:$0xff] %v1249_v9 }
 0x162   : > { %v1253_v11 = vpop.eup %1252  ;;  %982 = vst [vmem:[%s1604_s18 + $0x28] sm:$0xff] %v1251_v10 }
 0x163   : > { %v1255_v12 = vpop.eup %1254  ;;  %984 = vst [vmem:[%s1604_s18 + $0x38] sm:$0xff] %v1253_v11  ;;  %999 = sbr.rel (!%p1337_p5) target bundleno = 368 (0x170), region = 59 }
 0x164   : > { %v1257_v13 = vpop.eup %1256  ;;  %989 = vst [vmem:[%s1604_s18 + $0x60] sm:$0xff] %v1255_v12 }
 0x165   : > { %v1259_v14 = vpop.eup %1258  ;;  %991 = vst [vmem:[%s1604_s18 + $0x70] sm:$0xff] %v1257_v13 }
 0x166   : > { %v1261_v15 = vpop.eup %1260  ;;  %990 = vst [vmem:[%s1604_s18 + $0x68] sm:$0xff] %v1259_v14 }
 0x167   : > { %992 = vst [vmem:[%s1604_s18 + $0x78] sm:$0xff] %v1261_v15  ;;  %v1023_v20 = vld [vmem:[%s1604_s18 + $0x20] sm:$0xff] (%p1337_p5) }
 0x168   : > { %1024 = vst [vmem:[%s1002_s20 + $0x20] sm:$0xff] %v1023_v20  ;;  %v1027_v22 = vld [vmem:[%s1604_s18 + $0x30] sm:$0xff] }
 0x169   : > { %v1025_v21 = vld [vmem:[%s1604_s18 + $0x28] sm:$0xff]  ;;  %1028 = vst [vmem:[%s1002_s20 + $0x30] sm:$0xff] %v1027_v22 }
 0x16a   : > { %1026 = vst [vmem:[%s1002_s20 + $0x28] sm:$0xff] %v1025_v21  ;;  %v1029_v23 = vld [vmem:[%s1604_s18 + $0x38] sm:$0xff] }
 0x16b   : > { %1030 = vst [vmem:[%s1002_s20 + $0x38] sm:$0xff] %v1029_v23  ;;  %v1039_v28 = vld [vmem:[%s1604_s18 + $0x60] sm:$0xff] }
 0x16c   : > { %v1043_v31 = vld [vmem:[%s1604_s18 + $0x70] sm:$0xff]  ;;  %1040 = vst [vmem:[%s1002_s20 + $0xa0] sm:$0xff] %v1039_v28 }
 0x16d   : > { %v1041_v30 = vld [vmem:[%s1604_s18 + $0x68] sm:$0xff]  ;;  %1044 = vst [vmem:[%s1002_s20 + $0xb0] sm:$0xff] %v1043_v31 }
 0x16e   : > { %1042 = vst [vmem:[%s1002_s20 + $0xa8] sm:$0xff] %v1041_v30  ;;  %v1045_v32 = vld [vmem:[%s1604_s18 + $0x78] sm:$0xff] }
 0x16f   : > { %1046 = vst [vmem:[%s1002_s20 + $0xb8] sm:$0xff] %v1045_v32 }
 0x170 PF: > { %p10_p10 = scmp.ge.s32.totalorder %s1324_s16, 4   ;;  %s1660_s12 = smov %s1280_s13 }
 0x171   : > { %s1661_s13 = smov %s1335_s19  ;;  %s1662_s14 = smov %s1324_s16 }
 0x172   :  { %12 = sbr.rel (!%p10_p10) target bundleno = 2 (0x2), region = 113 }

</bundles_post_ra>
